<compile_context>
chip_gen: v7x
topology: tpu7x:2x2x1
jax: 0.10.0
libtpu: 0.0.40
codegen_flags: <defaults>
</compile_context>

<pallas_src>
import functools

import jax
import jax.numpy as jnp
from jax import lax
from jax.experimental import pallas as pl
from jax.experimental.pallas import tpu as pltpu

_LEAKY_SLOPE = 0.2
_H = 16                       # stand-in discriminator input spatial size
_W = 16
_MM_DTYPE = jnp.bfloat16      # explicit MXU operand dtype; accumulation stays f32


# --------------------------------------------------------------------------- #
# One fused Pallas kernel: discriminator (3 convs + 2 FCs) + generator loss
# --------------------------------------------------------------------------- #
def _disc_loss_kernel(x_ref,
                      w1_ref, b1_ref, w2_ref, b2_ref, w3_ref, b3_ref,
                      wfc1_ref, bfc1_ref, wfc2_ref, bfc2_ref,
                      o_ref, *, gan_type, n_fake, soft):
    f32 = jnp.float32
    cl = x_ref.shape[1]                       # lanes = M * H * W  (M images)
    hw = _H * _W
    assert cl % hw == 0

    # lane -> (row i, col j) inside its 16x16 image; powers of two => shifts/ands only.
    lane = lax.broadcasted_iota(jnp.int32, (1, cl), 1)
    i_idx = (lane >> 4) & (_H - 1)
    j_idx = lane & (_W - 1)

    def shift_lanes(x, off):
        # value at lane t becomes x[t + off]; wrapped lanes are masked by the callers.
        if off == 0:
            return x
        return pltpu.roll(x, (-off) % cl, axis=1)

    def conv3x3(x, w_ref_l, b_ref_l, c_out, dilation):
        """3x3 conv (implicit zero pad) on the (C, M*H*W) layout.

        Stride-2 convs of the original net are evaluated at full resolution via the
        a-trous trick (dilation on the next layer), so no in-kernel subsampling is
        needed; only the lanes actually read downstream are required to be valid."""
        acc = None
        for di in range(3):
            for dj in range(3):
                t = di * 3 + dj
                off = dilation * ((di - 1) * _W + (dj - 1))
                xs = shift_lanes(x, off)
                ii = i_idx + dilation * (di - 1)
                jj = j_idx + dilation * (dj - 1)
                ok = (ii >= 0) & (ii < _H) & (jj >= 0) & (jj < _W)
                xs = jnp.where(ok, xs, 0.0)                     # implicit zero padding
                wt = w_ref_l[t * c_out:(t + 1) * c_out, :]      # (Cout, Cin) bf16
                y = jnp.dot(wt, xs.astype(_MM_DTYPE),
                            preferred_element_type=f32)
                acc = y if acc is None else acc + y
        acc = acc + b_ref_l[...]                                # (Cout, 1) bias
        return jnp.where(acc >= 0.0, acc, _LEAKY_SLOPE * acc)   # LeakyReLU (f32, VPU)

    x = x_ref[...].astype(f32)                                  # (8, L), ch 3..7 zero
    x = conv3x3(x, w1_ref, b1_ref, 8, 1)                        # conv1  stride 1
    x = conv3x3(x, w2_ref, b2_ref, 16, 1)                       # conv2  stride 2 (a-trous)
    x = conv3x3(x, w3_ref, b3_ref, 32, 2)                       # conv3  stride 2 (dilation 2)

    # fc1 == a 4x4, dilation-4 "conv" evaluated only at each image-origin lane
    # (sources 64*a + 4*b never leave the image block, so no mask is needed).
    acc = None
    for a in range(4):
        for b in range(4):
            t = a * 4 + b
            xs = shift_lanes(x, 4 * a * _W + 4 * b)
            wt = wfc1_ref[t * 64:(t + 1) * 64, :]               # (64, 32) bf16
            y = jnp.dot(wt, xs.astype(_MM_DTYPE), preferred_element_type=f32)
            acc = y if acc is None else acc + y                 # (64, L)

    # keep only the origin lane of every image -> (64, M)
    m = cl // hw
    r_io = lax.broadcasted_iota(jnp.int32, (cl, m), 0)
    c_io = lax.broadcasted_iota(jnp.int32, (cl, m), 1)
    sel = (r_io == c_io * hw).astype(f32)
    h = jnp.dot(acc, sel, preferred_element_type=f32)           # (64, M)
    h = h + bfc1_ref[...]
    h = jnp.where(h >= 0.0, h, _LEAKY_SLOPE * h)

    # fc2 (64 -> 1) on the VPU/XLU: broadcast-mul + sublane reduce, f32 end to end.
    d = jnp.sum(wfc2_ref[...] * h, axis=0, keepdims=True) + bfc2_ref[...]   # (1, M)

    def softplus(z):
        # log(1 + u) vs log1p(u) differ by < f32 eps here (u = exp(-|z|) <= 1);
        # the log(1 + .) form is kept for its guaranteed Mosaic lowering.
        return jnp.maximum(z, 0.0) + jnp.log(1.0 + jnp.exp(-jnp.abs(z)))

    t_real = 0.9 if soft else 1.0                                # soft label on "real"
    if gan_type == "GAN":
        # BCEWithLogits(d_fake, ones) = mean(softplus(-d_fake))
        loss = jnp.mean(softplus(-d))
    elif gan_type.find("WGAN") >= 0:
        loss = -jnp.mean(d)
    elif gan_type == "RGAN":
        d_fake = d[:, :n_fake]                                   # lanes [0, B)   = fake
        d_real = d[:, n_fake:]                                   # lanes [B, 2B)  = real (detached)
        better_real = d_real - jnp.mean(d_fake)
        better_fake = d_fake - jnp.mean(d_real)
        # bce(better_fake, better_real)
        loss = (jnp.mean(softplus(better_fake) - t_real * better_fake)
                + jnp.mean(softplus(better_real)))
    else:
        raise ValueError(gan_type)

    o_ref[...] = loss.reshape(1, 1)


def _full_spec(shape):
    return pl.BlockSpec(shape, lambda: (0,) * len(shape))


def fused_generator_loss(xk, disc_ops, gan_type, n_fake, soft=False):
    """xk: (8, M*H*W) f32 channel-major activations (M = B, or 2B for RGAN)."""
    operands = (xk,) + tuple(disc_ops)
    kernel = functools.partial(_disc_loss_kernel, gan_type=gan_type,
                               n_fake=n_fake, soft=soft)
    return pl.pallas_call(
        kernel,
        out_shape=jax.ShapeDtypeStruct((1, 1), jnp.float32),
        in_specs=[_full_spec(a.shape) for a in operands],
        out_specs=pl.BlockSpec((1, 1), lambda: (0, 0)),
        compiler_params=pltpu.CompilerParams(vmem_limit_bytes=16 * 1024 * 1024),
    )(*operands)


# --------------------------------------------------------------------------- #
# One-time weight preprocessing: compact per-tap operands (no dense inflation)
# --------------------------------------------------------------------------- #
def prepare_discriminator_operands(params):
    """Reorders the raw discriminator weights into per-tap row blocks (bf16 for the
    MXU) and column-vector biases (f32).  Total streamed weight bytes ~80 KB."""
    def conv_taps(w, pad_cin_to=None):
        o_ch, c_ch, k, _ = w.shape
        wt = jnp.transpose(w, (2, 3, 0, 1)).reshape(k * k * o_ch, c_ch)
        if pad_cin_to is not None and pad_cin_to > c_ch:
            wt = jnp.pad(wt, ((0, 0), (0, pad_cin_to - c_ch)))
        return wt.astype(_MM_DTYPE)

    w1t = conv_taps(params["w1"], pad_cin_to=8)                      # (72, 8)
    w2t = conv_taps(params["w2"])                                    # (144, 8)
    w3t = conv_taps(params["w3"])                                    # (288, 16)
    wfc1t = (params["wfc1"].reshape(32, 16, 64)
             .transpose(1, 2, 0).reshape(16 * 64, 32)).astype(_MM_DTYPE)  # (1024, 32)
    return (
        w1t, params["b1"].reshape(-1, 1).astype(jnp.float32),
        w2t, params["b2"].reshape(-1, 1).astype(jnp.float32),
        w3t, params["b3"].reshape(-1, 1).astype(jnp.float32),
        wfc1t, params["bfc1"].reshape(-1, 1).astype(jnp.float32),
        params["wfc2"].astype(jnp.float32),                          # (64, 1), VPU path
        params["bfc2"].reshape(1, 1).astype(jnp.float32),
    )


# --------------------------------------------------------------------------- #
# Synthetic discriminator parameters (deterministic init)
# --------------------------------------------------------------------------- #
def init_discriminator_params(key):
    ks = jax.random.split(key, 5)
    s = 0.05
    return {
        "w1": s * jax.random.normal(ks[0], (8, 3, 3, 3), jnp.float32),
        "b1": jnp.zeros((8,), jnp.float32),
        "w2": s * jax.random.normal(ks[1], (16, 8, 3, 3), jnp.float32),
        "b2": jnp.zeros((16,), jnp.float32),
        "w3": s * jax.random.normal(ks[2], (32, 16, 3, 3), jnp.float32),
        "b3": jnp.zeros((32,), jnp.float32),
        "wfc1": s * jax.random.normal(ks[3], (32 * 4 * 4, 64), jnp.float32),
        "bfc1": jnp.zeros((64,), jnp.float32),
        "wfc2": s * jax.random.normal(ks[4], (64, 1), jnp.float32),
        "bfc2": jnp.zeros((1,), jnp.float32),
    }


# --------------------------------------------------------------------------- #
# Adversarial.forward -> generator loss (single fused Pallas kernel per call)
# --------------------------------------------------------------------------- #
def _to_kernel_layout(x):
    """(N, 3, 16, 16) NCHW -> (8, N*256): channels in sublanes (zero-padded to 8),
    (image, row, col) flattened into lanes.  Tiny, one-time layout plumbing."""
    n = x.shape[0]
    x = jnp.transpose(x, (1, 0, 2, 3)).reshape(3, n * _H * _W)
    return jnp.pad(x, ((0, 5), (0, 0)))


@functools.partial(jax.jit, static_argnames=("gan_type", "soft"))
def adversarial_forward(fake, real, disc_ops, gan_type="GAN", soft=False):
    # TODO(synk): the gan_k discriminator-update loop (optimizer.zero_grad/step,
    # loss_d.backward, WGAN weight clamping, WGAN-GP gradient penalty) is training-time
    # optimizer/autodiff state with no forward Pallas equivalent; discriminator weights
    # stay fixed here (mirrors fake.detach() with frozen weights).
    b = fake.shape[0]
    if gan_type == "RGAN":
        # d_real is detached in the spec; ONE discriminator pass on fake++real.
        x = jnp.concatenate([fake, jax.lax.stop_gradient(real)], axis=0)
    else:
        x = fake                                            # GAN / WGAN only need d(fake)
    xk = _to_kernel_layout(x)
    loss = fused_generator_loss(xk, disc_ops, gan_type, n_fake=b, soft=soft)
    return loss[0, 0]


# --------------------------------------------------------------------------- #
# Pure-JAX reference (test harness only, not part of the hot path)
# --------------------------------------------------------------------------- #
def _reference_generator_loss(fake, real, p, gan_type, soft=False):
    def disc(x):
        def conv(x, w, b, stride):
            y = jax.lax.conv_general_dilated(
                x, w, window_strides=(stride, stride),
                padding=((1, 1), (1, 1)),
                dimension_numbers=("NCHW", "OIHW", "NCHW"))
            y = y + b[None, :, None, None]
            return jnp.where(y >= 0, y, _LEAKY_SLOPE * y)
        x = conv(x, p["w1"], p["b1"], 1)
        x = conv(x, p["w2"], p["b2"], 2)
        x = conv(x, p["w3"], p["b3"], 2)
        x = x.reshape(x.shape[0], -1)
        x = x @ p["wfc1"] + p["bfc1"]
        x = jnp.where(x >= 0, x, _LEAKY_SLOPE * x)
        return x @ p["wfc2"] + p["bfc2"]

    def softplus(z):
        return jnp.maximum(z, 0.0) + jnp.log1p(jnp.exp(-jnp.abs(z)))

    t = 0.9 if soft else 1.0
    d_fake = disc(fake)
    if gan_type == "GAN":
        return jnp.mean(softplus(-d_fake))
    if gan_type.find("WGAN") >= 0:
        return -jnp.mean(d_fake)
    d_real = disc(real)
    better_real = d_real - jnp.mean(d_fake, axis=0, keepdims=True)
    better_fake = d_fake - jnp.mean(d_real, axis=0, keepdims=True)
    return (jnp.mean(softplus(better_fake) - t * better_fake)
            + jnp.mean(softplus(better_real)))


if __name__ == "__main__":
    key = jax.random.PRNGKey(0)
    k_fake, k_real, k_params = jax.random.split(key, 3)

    fake = jax.random.normal(k_fake, (2, 3, 16, 16), jnp.float32)  # NCHW
    real = jax.random.normal(k_real, (2, 3, 16, 16), jnp.float32)  # NCHW
    params = init_discriminator_params(k_params)

    # One-time, compact weight reordering (setup, outside the per-call hot path).
    disc_ops = prepare_discriminator_operands(params)

    losses = {gt: adversarial_forward(fake, real, disc_ops, gan_type=gt)
              for gt in ("GAN", "WGAN", "RGAN")}
    jax.block_until_ready(losses)

    # Correctness check against a pure-JAX f32 reference (bf16 MXU operands -> loose tol).
    for gt, loss in losses.items():
        ref = _reference_generator_loss(fake, real, params, gt)
        assert abs(float(loss) - float(ref)) < 1e-2, (gt, float(loss), float(ref))

    print("KERNEL_OK")
</pallas_src>

<mosaic_0001>
module attributes {stable_mosaic.version = 11 : i64} {
  func.func @_disc_loss_kernel(%arg0: memref<8x512xf32, #tpu.memory_space<vmem>>, %arg1: memref<72x8xbf16, #tpu.memory_space<vmem>>, %arg2: memref<8x1xf32, #tpu.memory_space<vmem>>, %arg3: memref<144x8xbf16, #tpu.memory_space<vmem>>, %arg4: memref<16x1xf32, #tpu.memory_space<vmem>>, %arg5: memref<288x16xbf16, #tpu.memory_space<vmem>>, %arg6: memref<32x1xf32, #tpu.memory_space<vmem>>, %arg7: memref<1024x32xbf16, #tpu.memory_space<vmem>>, %arg8: memref<64x1xf32, #tpu.memory_space<vmem>>, %arg9: memref<64x1xf32, #tpu.memory_space<vmem>>, %arg10: memref<1x1xf32, #tpu.memory_space<vmem>>, %arg11: memref<1x1xf32, #tpu.memory_space<vmem>>) attributes {dimension_semantics = [], scalar_prefetch = 0 : i64, scratch_operands = 0 : i64, tpu.core_type = #tpu.core_type<tc>} {
    %0 = tpu.iota {dimensions = array<i32: 1>} : vector<1x512xi32>
    %c4_i32 = arith.constant 4 : i32
    %1 = vector.broadcast %c4_i32 : i32 to vector<1x512xi32>
    %2 = arith.shrsi %0, %1 : vector<1x512xi32>
    %c15_i32 = arith.constant 15 : i32
    %3 = vector.broadcast %c15_i32 : i32 to vector<1x512xi32>
    %4 = arith.andi %2, %3 : vector<1x512xi32>
    %c15_i32_0 = arith.constant 15 : i32
    %5 = vector.broadcast %c15_i32_0 : i32 to vector<1x512xi32>
    %6 = arith.andi %0, %5 : vector<1x512xi32>
    %c0 = arith.constant 0 : index
    %c0_1 = arith.constant 0 : index
    %7 = vector.load %arg0[%c0, %c0_1] : memref<8x512xf32, #tpu.memory_space<vmem>>, vector<8x512xf32>
    %c17_i32 = arith.constant 17 : i32
    %8 = tpu.dynamic_rotate %7 by %c17_i32 dim 1 : vector<8x512xf32>, i32 -> vector<8x512xf32>
    %c-1_i32 = arith.constant -1 : i32
    %9 = vector.broadcast %c-1_i32 : i32 to vector<1x512xi32>
    %10 = arith.addi %4, %9 : vector<1x512xi32>
    %c-1_i32_2 = arith.constant -1 : i32
    %11 = vector.broadcast %c-1_i32_2 : i32 to vector<1x512xi32>
    %12 = arith.addi %6, %11 : vector<1x512xi32>
    %c0_i32 = arith.constant 0 : i32
    %13 = vector.broadcast %c0_i32 : i32 to vector<1x512xi32>
    %14 = arith.cmpi sge, %10, %13 : vector<1x512xi32>
    %c16_i32 = arith.constant 16 : i32
    %15 = vector.broadcast %c16_i32 : i32 to vector<1x512xi32>
    %16 = arith.cmpi slt, %10, %15 : vector<1x512xi32>
    %17 = arith.andi %14, %16 : vector<1x512xi1>
    %c0_i32_3 = arith.constant 0 : i32
    %18 = vector.broadcast %c0_i32_3 : i32 to vector<1x512xi32>
    %19 = arith.cmpi sge, %12, %18 : vector<1x512xi32>
    %20 = arith.andi %17, %19 : vector<1x512xi1>
    %c16_i32_4 = arith.constant 16 : i32
    %21 = vector.broadcast %c16_i32_4 : i32 to vector<1x512xi32>
    %22 = arith.cmpi slt, %12, %21 : vector<1x512xi32>
    %23 = arith.andi %20, %22 : vector<1x512xi1>
    %cst = arith.constant 0.000000e+00 : f32
    %24 = vector.shape_cast %23 : vector<1x512xi1> to vector<1x512xi1>
    %25 = vector.broadcast %24 : vector<1x512xi1> to vector<8x512xi1>
    %26 = vector.broadcast %cst : f32 to vector<8x512xf32>
    %27 = arith.select %25, %8, %26 : vector<8x512xi1>, vector<8x512xf32>
    %c0_5 = arith.constant 0 : index
    %c0_6 = arith.constant 0 : index
    %28 = vector.load %arg1[%c0_5, %c0_6] : memref<72x8xbf16, #tpu.memory_space<vmem>>, vector<8x8xbf16>
    %29 = arith.truncf %27 : vector<8x512xf32> to vector<8x512xbf16>
    %cst_7 = arith.constant dense<0.000000e+00> : vector<8x512xf32>
    %30 = tpu.matmul %28, %29, %cst_7 {dimension_numbers = #tpu.dot_dimension_numbers<[1], [0], [0], [1], [0, 0, 1, 1], [], []>} : vector<8x8xbf16>, vector<8x512xbf16>, vector<8x512xf32> -> vector<8x512xf32>
    %c16_i32_8 = arith.constant 16 : i32
    %31 = tpu.dynamic_rotate %7 by %c16_i32_8 dim 1 : vector<8x512xf32>, i32 -> vector<8x512xf32>
    %c-1_i32_9 = arith.constant -1 : i32
    %32 = vector.broadcast %c-1_i32_9 : i32 to vector<1x512xi32>
    %33 = arith.addi %4, %32 : vector<1x512xi32>
    %c0_i32_10 = arith.constant 0 : i32
    %34 = vector.broadcast %c0_i32_10 : i32 to vector<1x512xi32>
    %35 = arith.addi %6, %34 : vector<1x512xi32>
    %c0_i32_11 = arith.constant 0 : i32
    %36 = vector.broadcast %c0_i32_11 : i32 to vector<1x512xi32>
    %37 = arith.cmpi sge, %33, %36 : vector<1x512xi32>
    %c16_i32_12 = arith.constant 16 : i32
    %38 = vector.broadcast %c16_i32_12 : i32 to vector<1x512xi32>
    %39 = arith.cmpi slt, %33, %38 : vector<1x512xi32>
    %40 = arith.andi %37, %39 : vector<1x512xi1>
    %c0_i32_13 = arith.constant 0 : i32
    %41 = vector.broadcast %c0_i32_13 : i32 to vector<1x512xi32>
    %42 = arith.cmpi sge, %35, %41 : vector<1x512xi32>
    %43 = arith.andi %40, %42 : vector<1x512xi1>
    %c16_i32_14 = arith.constant 16 : i32
    %44 = vector.broadcast %c16_i32_14 : i32 to vector<1x512xi32>
    %45 = arith.cmpi slt, %35, %44 : vector<1x512xi32>
    %46 = arith.andi %43, %45 : vector<1x512xi1>
    %cst_15 = arith.constant 0.000000e+00 : f32
    %47 = vector.shape_cast %46 : vector<1x512xi1> to vector<1x512xi1>
    %48 = vector.broadcast %47 : vector<1x512xi1> to vector<8x512xi1>
    %49 = vector.broadcast %cst_15 : f32 to vector<8x512xf32>
    %50 = arith.select %48, %31, %49 : vector<8x512xi1>, vector<8x512xf32>
    %c8 = arith.constant 8 : index
    %c0_16 = arith.constant 0 : index
    %51 = vector.load %arg1[%c8, %c0_16] : memref<72x8xbf16, #tpu.memory_space<vmem>>, vector<8x8xbf16>
    %52 = arith.truncf %50 : vector<8x512xf32> to vector<8x512xbf16>
    %cst_17 = arith.constant dense<0.000000e+00> : vector<8x512xf32>
    %53 = tpu.matmul %51, %52, %cst_17 {dimension_numbers = #tpu.dot_dimension_numbers<[1], [0], [0], [1], [0, 0, 1, 1], [], []>} : vector<8x8xbf16>, vector<8x512xbf16>, vector<8x512xf32> -> vector<8x512xf32>
    %54 = arith.addf %30, %53 : vector<8x512xf32>
    %c15_i32_18 = arith.constant 15 : i32
    %55 = tpu.dynamic_rotate %7 by %c15_i32_18 dim 1 : vector<8x512xf32>, i32 -> vector<8x512xf32>
    %c-1_i32_19 = arith.constant -1 : i32
    %56 = vector.broadcast %c-1_i32_19 : i32 to vector<1x512xi32>
    %57 = arith.addi %4, %56 : vector<1x512xi32>
    %c1_i32 = arith.constant 1 : i32
    %58 = vector.broadcast %c1_i32 : i32 to vector<1x512xi32>
    %59 = arith.addi %6, %58 : vector<1x512xi32>
    %c0_i32_20 = arith.constant 0 : i32
    %60 = vector.broadcast %c0_i32_20 : i32 to vector<1x512xi32>
    %61 = arith.cmpi sge, %57, %60 : vector<1x512xi32>
    %c16_i32_21 = arith.constant 16 : i32
    %62 = vector.broadcast %c16_i32_21 : i32 to vector<1x512xi32>
    %63 = arith.cmpi slt, %57, %62 : vector<1x512xi32>
    %64 = arith.andi %61, %63 : vector<1x512xi1>
    %c0_i32_22 = arith.constant 0 : i32
    %65 = vector.broadcast %c0_i32_22 : i32 to vector<1x512xi32>
    %66 = arith.cmpi sge, %59, %65 : vector<1x512xi32>
    %67 = arith.andi %64, %66 : vector<1x512xi1>
    %c16_i32_23 = arith.constant 16 : i32
    %68 = vector.broadcast %c16_i32_23 : i32 to vector<1x512xi32>
    %69 = arith.cmpi slt, %59, %68 : vector<1x512xi32>
    %70 = arith.andi %67, %69 : vector<1x512xi1>
    %cst_24 = arith.constant 0.000000e+00 : f32
    %71 = vector.shape_cast %70 : vector<1x512xi1> to vector<1x512xi1>
    %72 = vector.broadcast %71 : vector<1x512xi1> to vector<8x512xi1>
    %73 = vector.broadcast %cst_24 : f32 to vector<8x512xf32>
    %74 = arith.select %72, %55, %73 : vector<8x512xi1>, vector<8x512xf32>
    %c16 = arith.constant 16 : index
    %c0_25 = arith.constant 0 : index
    %75 = vector.load %arg1[%c16, %c0_25] : memref<72x8xbf16, #tpu.memory_space<vmem>>, vector<8x8xbf16>
    %76 = arith.truncf %74 : vector<8x512xf32> to vector<8x512xbf16>
    %cst_26 = arith.constant dense<0.000000e+00> : vector<8x512xf32>
    %77 = tpu.matmul %75, %76, %cst_26 {dimension_numbers = #tpu.dot_dimension_numbers<[1], [0], [0], [1], [0, 0, 1, 1], [], []>} : vector<8x8xbf16>, vector<8x512xbf16>, vector<8x512xf32> -> vector<8x512xf32>
    %78 = arith.addf %54, %77 : vector<8x512xf32>
    %c1_i32_27 = arith.constant 1 : i32
    %79 = tpu.dynamic_rotate %7 by %c1_i32_27 dim 1 : vector<8x512xf32>, i32 -> vector<8x512xf32>
    %c0_i32_28 = arith.constant 0 : i32
    %80 = vector.broadcast %c0_i32_28 : i32 to vector<1x512xi32>
    %81 = arith.addi %4, %80 : vector<1x512xi32>
    %c-1_i32_29 = arith.constant -1 : i32
    %82 = vector.broadcast %c-1_i32_29 : i32 to vector<1x512xi32>
    %83 = arith.addi %6, %82 : vector<1x512xi32>
    %c0_i32_30 = arith.constant 0 : i32
    %84 = vector.broadcast %c0_i32_30 : i32 to vector<1x512xi32>
    %85 = arith.cmpi sge, %81, %84 : vector<1x512xi32>
    %c16_i32_31 = arith.constant 16 : i32
    %86 = vector.broadcast %c16_i32_31 : i32 to vector<1x512xi32>
    %87 = arith.cmpi slt, %81, %86 : vector<1x512xi32>
    %88 = arith.andi %85, %87 : vector<1x512xi1>
    %c0_i32_32 = arith.constant 0 : i32
    %89 = vector.broadcast %c0_i32_32 : i32 to vector<1x512xi32>
    %90 = arith.cmpi sge, %83, %89 : vector<1x512xi32>
    %91 = arith.andi %88, %90 : vector<1x512xi1>
    %c16_i32_33 = arith.constant 16 : i32
    %92 = vector.broadcast %c16_i32_33 : i32 to vector<1x512xi32>
    %93 = arith.cmpi slt, %83, %92 : vector<1x512xi32>
    %94 = arith.andi %91, %93 : vector<1x512xi1>
    %cst_34 = arith.constant 0.000000e+00 : f32
    %95 = vector.shape_cast %94 : vector<1x512xi1> to vector<1x512xi1>
    %96 = vector.broadcast %95 : vector<1x512xi1> to vector<8x512xi1>
    %97 = vector.broadcast %cst_34 : f32 to vector<8x512xf32>
    %98 = arith.select %96, %79, %97 : vector<8x512xi1>, vector<8x512xf32>
    %c24 = arith.constant 24 : index
    %c0_35 = arith.constant 0 : index
    %99 = vector.load %arg1[%c24, %c0_35] : memref<72x8xbf16, #tpu.memory_space<vmem>>, vector<8x8xbf16>
    %100 = arith.truncf %98 : vector<8x512xf32> to vector<8x512xbf16>
    %cst_36 = arith.constant dense<0.000000e+00> : vector<8x512xf32>
    %101 = tpu.matmul %99, %100, %cst_36 {dimension_numbers = #tpu.dot_dimension_numbers<[1], [0], [0], [1], [0, 0, 1, 1], [], []>} : vector<8x8xbf16>, vector<8x512xbf16>, vector<8x512xf32> -> vector<8x512xf32>
    %102 = arith.addf %78, %101 : vector<8x512xf32>
    %c0_i32_37 = arith.constant 0 : i32
    %103 = vector.broadcast %c0_i32_37 : i32 to vector<1x512xi32>
    %104 = arith.addi %4, %103 : vector<1x512xi32>
    %c0_i32_38 = arith.constant 0 : i32
    %105 = vector.broadcast %c0_i32_38 : i32 to vector<1x512xi32>
    %106 = arith.addi %6, %105 : vector<1x512xi32>
    %c0_i32_39 = arith.constant 0 : i32
    %107 = vector.broadcast %c0_i32_39 : i32 to vector<1x512xi32>
    %108 = arith.cmpi sge, %104, %107 : vector<1x512xi32>
    %c16_i32_40 = arith.constant 16 : i32
    %109 = vector.broadcast %c16_i32_40 : i32 to vector<1x512xi32>
    %110 = arith.cmpi slt, %104, %109 : vector<1x512xi32>
    %111 = arith.andi %108, %110 : vector<1x512xi1>
    %c0_i32_41 = arith.constant 0 : i32
    %112 = vector.broadcast %c0_i32_41 : i32 to vector<1x512xi32>
    %113 = arith.cmpi sge, %106, %112 : vector<1x512xi32>
    %114 = arith.andi %111, %113 : vector<1x512xi1>
    %c16_i32_42 = arith.constant 16 : i32
    %115 = vector.broadcast %c16_i32_42 : i32 to vector<1x512xi32>
    %116 = arith.cmpi slt, %106, %115 : vector<1x512xi32>
    %117 = arith.andi %114, %116 : vector<1x512xi1>
    %cst_43 = arith.constant 0.000000e+00 : f32
    %118 = vector.shape_cast %117 : vector<1x512xi1> to vector<1x512xi1>
    %119 = vector.broadcast %118 : vector<1x512xi1> to vector<8x512xi1>
    %120 = vector.broadcast %cst_43 : f32 to vector<8x512xf32>
    %121 = arith.select %119, %7, %120 : vector<8x512xi1>, vector<8x512xf32>
    %c32 = arith.constant 32 : index
    %c0_44 = arith.constant 0 : index
    %122 = vector.load %arg1[%c32, %c0_44] : memref<72x8xbf16, #tpu.memory_space<vmem>>, vector<8x8xbf16>
    %123 = arith.truncf %121 : vector<8x512xf32> to vector<8x512xbf16>
    %cst_45 = arith.constant dense<0.000000e+00> : vector<8x512xf32>
    %124 = tpu.matmul %122, %123, %cst_45 {dimension_numbers = #tpu.dot_dimension_numbers<[1], [0], [0], [1], [0, 0, 1, 1], [], []>} : vector<8x8xbf16>, vector<8x512xbf16>, vector<8x512xf32> -> vector<8x512xf32>
    %125 = arith.addf %102, %124 : vector<8x512xf32>
    %c511_i32 = arith.constant 511 : i32
    %126 = tpu.dynamic_rotate %7 by %c511_i32 dim 1 : vector<8x512xf32>, i32 -> vector<8x512xf32>
    %c0_i32_46 = arith.constant 0 : i32
    %127 = vector.broadcast %c0_i32_46 : i32 to vector<1x512xi32>
    %128 = arith.addi %4, %127 : vector<1x512xi32>
    %c1_i32_47 = arith.constant 1 : i32
    %129 = vector.broadcast %c1_i32_47 : i32 to vector<1x512xi32>
    %130 = arith.addi %6, %129 : vector<1x512xi32>
    %c0_i32_48 = arith.constant 0 : i32
    %131 = vector.broadcast %c0_i32_48 : i32 to vector<1x512xi32>
    %132 = arith.cmpi sge, %128, %131 : vector<1x512xi32>
    %c16_i32_49 = arith.constant 16 : i32
    %133 = vector.broadcast %c16_i32_49 : i32 to vector<1x512xi32>
    %134 = arith.cmpi slt, %128, %133 : vector<1x512xi32>
    %135 = arith.andi %132, %134 : vector<1x512xi1>
    %c0_i32_50 = arith.constant 0 : i32
    %136 = vector.broadcast %c0_i32_50 : i32 to vector<1x512xi32>
    %137 = arith.cmpi sge, %130, %136 : vector<1x512xi32>
    %138 = arith.andi %135, %137 : vector<1x512xi1>
    %c16_i32_51 = arith.constant 16 : i32
    %139 = vector.broadcast %c16_i32_51 : i32 to vector<1x512xi32>
    %140 = arith.cmpi slt, %130, %139 : vector<1x512xi32>
    %141 = arith.andi %138, %140 : vector<1x512xi1>
    %cst_52 = arith.constant 0.000000e+00 : f32
    %142 = vector.shape_cast %141 : vector<1x512xi1> to vector<1x512xi1>
    %143 = vector.broadcast %142 : vector<1x512xi1> to vector<8x512xi1>
    %144 = vector.broadcast %cst_52 : f32 to vector<8x512xf32>
    %145 = arith.select %143, %126, %144 : vector<8x512xi1>, vector<8x512xf32>
    %c40 = arith.constant 40 : index
    %c0_53 = arith.constant 0 : index
    %146 = vector.load %arg1[%c40, %c0_53] : memref<72x8xbf16, #tpu.memory_space<vmem>>, vector<8x8xbf16>
    %147 = arith.truncf %145 : vector<8x512xf32> to vector<8x512xbf16>
    %cst_54 = arith.constant dense<0.000000e+00> : vector<8x512xf32>
    %148 = tpu.matmul %146, %147, %cst_54 {dimension_numbers = #tpu.dot_dimension_numbers<[1], [0], [0], [1], [0, 0, 1, 1], [], []>} : vector<8x8xbf16>, vector<8x512xbf16>, vector<8x512xf32> -> vector<8x512xf32>
    %149 = arith.addf %125, %148 : vector<8x512xf32>
    %c497_i32 = arith.constant 497 : i32
    %150 = tpu.dynamic_rotate %7 by %c497_i32 dim 1 : vector<8x512xf32>, i32 -> vector<8x512xf32>
    %c1_i32_55 = arith.constant 1 : i32
    %151 = vector.broadcast %c1_i32_55 : i32 to vector<1x512xi32>
    %152 = arith.addi %4, %151 : vector<1x512xi32>
    %c-1_i32_56 = arith.constant -1 : i32
    %153 = vector.broadcast %c-1_i32_56 : i32 to vector<1x512xi32>
    %154 = arith.addi %6, %153 : vector<1x512xi32>
    %c0_i32_57 = arith.constant 0 : i32
    %155 = vector.broadcast %c0_i32_57 : i32 to vector<1x512xi32>
    %156 = arith.cmpi sge, %152, %155 : vector<1x512xi32>
    %c16_i32_58 = arith.constant 16 : i32
    %157 = vector.broadcast %c16_i32_58 : i32 to vector<1x512xi32>
    %158 = arith.cmpi slt, %152, %157 : vector<1x512xi32>
    %159 = arith.andi %156, %158 : vector<1x512xi1>
    %c0_i32_59 = arith.constant 0 : i32
    %160 = vector.broadcast %c0_i32_59 : i32 to vector<1x512xi32>
    %161 = arith.cmpi sge, %154, %160 : vector<1x512xi32>
    %162 = arith.andi %159, %161 : vector<1x512xi1>
    %c16_i32_60 = arith.constant 16 : i32
    %163 = vector.broadcast %c16_i32_60 : i32 to vector<1x512xi32>
    %164 = arith.cmpi slt, %154, %163 : vector<1x512xi32>
    %165 = arith.andi %162, %164 : vector<1x512xi1>
    %cst_61 = arith.constant 0.000000e+00 : f32
    %166 = vector.shape_cast %165 : vector<1x512xi1> to vector<1x512xi1>
    %167 = vector.broadcast %166 : vector<1x512xi1> to vector<8x512xi1>
    %168 = vector.broadcast %cst_61 : f32 to vector<8x512xf32>
    %169 = arith.select %167, %150, %168 : vector<8x512xi1>, vector<8x512xf32>
    %c48 = arith.constant 48 : index
    %c0_62 = arith.constant 0 : index
    %170 = vector.load %arg1[%c48, %c0_62] : memref<72x8xbf16, #tpu.memory_space<vmem>>, vector<8x8xbf16>
    %171 = arith.truncf %169 : vector<8x512xf32> to vector<8x512xbf16>
    %cst_63 = arith.constant dense<0.000000e+00> : vector<8x512xf32>
    %172 = tpu.matmul %170, %171, %cst_63 {dimension_numbers = #tpu.dot_dimension_numbers<[1], [0], [0], [1], [0, 0, 1, 1], [], []>} : vector<8x8xbf16>, vector<8x512xbf16>, vector<8x512xf32> -> vector<8x512xf32>
    %173 = arith.addf %149, %172 : vector<8x512xf32>
    %c496_i32 = arith.constant 496 : i32
    %174 = tpu.dynamic_rotate %7 by %c496_i32 dim 1 : vector<8x512xf32>, i32 -> vector<8x512xf32>
    %c1_i32_64 = arith.constant 1 : i32
    %175 = vector.broadcast %c1_i32_64 : i32 to vector<1x512xi32>
    %176 = arith.addi %4, %175 : vector<1x512xi32>
    %c0_i32_65 = arith.constant 0 : i32
    %177 = vector.broadcast %c0_i32_65 : i32 to vector<1x512xi32>
    %178 = arith.addi %6, %177 : vector<1x512xi32>
    %c0_i32_66 = arith.constant 0 : i32
    %179 = vector.broadcast %c0_i32_66 : i32 to vector<1x512xi32>
    %180 = arith.cmpi sge, %176, %179 : vector<1x512xi32>
    %c16_i32_67 = arith.constant 16 : i32
    %181 = vector.broadcast %c16_i32_67 : i32 to vector<1x512xi32>
    %182 = arith.cmpi slt, %176, %181 : vector<1x512xi32>
    %183 = arith.andi %180, %182 : vector<1x512xi1>
    %c0_i32_68 = arith.constant 0 : i32
    %184 = vector.broadcast %c0_i32_68 : i32 to vector<1x512xi32>
    %185 = arith.cmpi sge, %178, %184 : vector<1x512xi32>
    %186 = arith.andi %183, %185 : vector<1x512xi1>
    %c16_i32_69 = arith.constant 16 : i32
    %187 = vector.broadcast %c16_i32_69 : i32 to vector<1x512xi32>
    %188 = arith.cmpi slt, %178, %187 : vector<1x512xi32>
    %189 = arith.andi %186, %188 : vector<1x512xi1>
    %cst_70 = arith.constant 0.000000e+00 : f32
    %190 = vector.shape_cast %189 : vector<1x512xi1> to vector<1x512xi1>
    %191 = vector.broadcast %190 : vector<1x512xi1> to vector<8x512xi1>
    %192 = vector.broadcast %cst_70 : f32 to vector<8x512xf32>
    %193 = arith.select %191, %174, %192 : vector<8x512xi1>, vector<8x512xf32>
    %c56 = arith.constant 56 : index
    %c0_71 = arith.constant 0 : index
    %194 = vector.load %arg1[%c56, %c0_71] : memref<72x8xbf16, #tpu.memory_space<vmem>>, vector<8x8xbf16>
    %195 = arith.truncf %193 : vector<8x512xf32> to vector<8x512xbf16>
    %cst_72 = arith.constant dense<0.000000e+00> : vector<8x512xf32>
    %196 = tpu.matmul %194, %195, %cst_72 {dimension_numbers = #tpu.dot_dimension_numbers<[1], [0], [0], [1], [0, 0, 1, 1], [], []>} : vector<8x8xbf16>, vector<8x512xbf16>, vector<8x512xf32> -> vector<8x512xf32>
    %197 = arith.addf %173, %196 : vector<8x512xf32>
    %c495_i32 = arith.constant 495 : i32
    %198 = tpu.dynamic_rotate %7 by %c495_i32 dim 1 : vector<8x512xf32>, i32 -> vector<8x512xf32>
    %c1_i32_73 = arith.constant 1 : i32
    %199 = vector.broadcast %c1_i32_73 : i32 to vector<1x512xi32>
    %200 = arith.addi %4, %199 : vector<1x512xi32>
    %c1_i32_74 = arith.constant 1 : i32
    %201 = vector.broadcast %c1_i32_74 : i32 to vector<1x512xi32>
    %202 = arith.addi %6, %201 : vector<1x512xi32>
    %c0_i32_75 = arith.constant 0 : i32
    %203 = vector.broadcast %c0_i32_75 : i32 to vector<1x512xi32>
    %204 = arith.cmpi sge, %200, %203 : vector<1x512xi32>
    %c16_i32_76 = arith.constant 16 : i32
    %205 = vector.broadcast %c16_i32_76 : i32 to vector<1x512xi32>
    %206 = arith.cmpi slt, %200, %205 : vector<1x512xi32>
    %207 = arith.andi %204, %206 : vector<1x512xi1>
    %c0_i32_77 = arith.constant 0 : i32
    %208 = vector.broadcast %c0_i32_77 : i32 to vector<1x512xi32>
    %209 = arith.cmpi sge, %202, %208 : vector<1x512xi32>
    %210 = arith.andi %207, %209 : vector<1x512xi1>
    %c16_i32_78 = arith.constant 16 : i32
    %211 = vector.broadcast %c16_i32_78 : i32 to vector<1x512xi32>
    %212 = arith.cmpi slt, %202, %211 : vector<1x512xi32>
    %213 = arith.andi %210, %212 : vector<1x512xi1>
    %cst_79 = arith.constant 0.000000e+00 : f32
    %214 = vector.shape_cast %213 : vector<1x512xi1> to vector<1x512xi1>
    %215 = vector.broadcast %214 : vector<1x512xi1> to vector<8x512xi1>
    %216 = vector.broadcast %cst_79 : f32 to vector<8x512xf32>
    %217 = arith.select %215, %198, %216 : vector<8x512xi1>, vector<8x512xf32>
    %c64 = arith.constant 64 : index
    %c0_80 = arith.constant 0 : index
    %218 = vector.load %arg1[%c64, %c0_80] : memref<72x8xbf16, #tpu.memory_space<vmem>>, vector<8x8xbf16>
    %219 = arith.truncf %217 : vector<8x512xf32> to vector<8x512xbf16>
    %cst_81 = arith.constant dense<0.000000e+00> : vector<8x512xf32>
    %220 = tpu.matmul %218, %219, %cst_81 {dimension_numbers = #tpu.dot_dimension_numbers<[1], [0], [0], [1], [0, 0, 1, 1], [], []>} : vector<8x8xbf16>, vector<8x512xbf16>, vector<8x512xf32> -> vector<8x512xf32>
    %221 = arith.addf %197, %220 : vector<8x512xf32>
    %c0_82 = arith.constant 0 : index
    %c0_83 = arith.constant 0 : index
    %222 = vector.load %arg2[%c0_82, %c0_83] : memref<8x1xf32, #tpu.memory_space<vmem>>, vector<8x1xf32>
    %223 = vector.broadcast %222 : vector<8x1xf32> to vector<8x512xf32>
    %224 = arith.addf %221, %223 : vector<8x512xf32>
    %cst_84 = arith.constant 0.000000e+00 : f32
    %225 = vector.broadcast %cst_84 : f32 to vector<8x512xf32>
    %226 = arith.cmpf oge, %224, %225 : vector<8x512xf32>
    %cst_85 = arith.constant 2.000000e-01 : f32
    %227 = vector.broadcast %cst_85 : f32 to vector<8x512xf32>
    %228 = arith.mulf %227, %224 : vector<8x512xf32>
    %229 = arith.select %226, %224, %228 : vector<8x512xi1>, vector<8x512xf32>
    %c17_i32_86 = arith.constant 17 : i32
    %230 = tpu.dynamic_rotate %229 by %c17_i32_86 dim 1 : vector<8x512xf32>, i32 -> vector<8x512xf32>
    %c-1_i32_87 = arith.constant -1 : i32
    %231 = vector.broadcast %c-1_i32_87 : i32 to vector<1x512xi32>
    %232 = arith.addi %4, %231 : vector<1x512xi32>
    %c-1_i32_88 = arith.constant -1 : i32
    %233 = vector.broadcast %c-1_i32_88 : i32 to vector<1x512xi32>
    %234 = arith.addi %6, %233 : vector<1x512xi32>
    %c0_i32_89 = arith.constant 0 : i32
    %235 = vector.broadcast %c0_i32_89 : i32 to vector<1x512xi32>
    %236 = arith.cmpi sge, %232, %235 : vector<1x512xi32>
    %c16_i32_90 = arith.constant 16 : i32
    %237 = vector.broadcast %c16_i32_90 : i32 to vector<1x512xi32>
    %238 = arith.cmpi slt, %232, %237 : vector<1x512xi32>
    %239 = arith.andi %236, %238 : vector<1x512xi1>
    %c0_i32_91 = arith.constant 0 : i32
    %240 = vector.broadcast %c0_i32_91 : i32 to vector<1x512xi32>
    %241 = arith.cmpi sge, %234, %240 : vector<1x512xi32>
    %242 = arith.andi %239, %241 : vector<1x512xi1>
    %c16_i32_92 = arith.constant 16 : i32
    %243 = vector.broadcast %c16_i32_92 : i32 to vector<1x512xi32>
    %244 = arith.cmpi slt, %234, %243 : vector<1x512xi32>
    %245 = arith.andi %242, %244 : vector<1x512xi1>
    %cst_93 = arith.constant 0.000000e+00 : f32
    %246 = vector.shape_cast %245 : vector<1x512xi1> to vector<1x512xi1>
    %247 = vector.broadcast %246 : vector<1x512xi1> to vector<8x512xi1>
    %248 = vector.broadcast %cst_93 : f32 to vector<8x512xf32>
    %249 = arith.select %247, %230, %248 : vector<8x512xi1>, vector<8x512xf32>
    %c0_94 = arith.constant 0 : index
    %c0_95 = arith.constant 0 : index
    %250 = vector.load %arg3[%c0_94, %c0_95] : memref<144x8xbf16, #tpu.memory_space<vmem>>, vector<16x8xbf16>
    %251 = arith.truncf %249 : vector<8x512xf32> to vector<8x512xbf16>
    %cst_96 = arith.constant dense<0.000000e+00> : vector<16x512xf32>
    %252 = tpu.matmul %250, %251, %cst_96 {dimension_numbers = #tpu.dot_dimension_numbers<[1], [0], [0], [1], [0, 0, 1, 1], [], []>} : vector<16x8xbf16>, vector<8x512xbf16>, vector<16x512xf32> -> vector<16x512xf32>
    %c16_i32_97 = arith.constant 16 : i32
    %253 = tpu.dynamic_rotate %229 by %c16_i32_97 dim 1 : vector<8x512xf32>, i32 -> vector<8x512xf32>
    %c-1_i32_98 = arith.constant -1 : i32
    %254 = vector.broadcast %c-1_i32_98 : i32 to vector<1x512xi32>
    %255 = arith.addi %4, %254 : vector<1x512xi32>
    %c0_i32_99 = arith.constant 0 : i32
    %256 = vector.broadcast %c0_i32_99 : i32 to vector<1x512xi32>
    %257 = arith.addi %6, %256 : vector<1x512xi32>
    %c0_i32_100 = arith.constant 0 : i32
    %258 = vector.broadcast %c0_i32_100 : i32 to vector<1x512xi32>
    %259 = arith.cmpi sge, %255, %258 : vector<1x512xi32>
    %c16_i32_101 = arith.constant 16 : i32
    %260 = vector.broadcast %c16_i32_101 : i32 to vector<1x512xi32>
    %261 = arith.cmpi slt, %255, %260 : vector<1x512xi32>
    %262 = arith.andi %259, %261 : vector<1x512xi1>
    %c0_i32_102 = arith.constant 0 : i32
    %263 = vector.broadcast %c0_i32_102 : i32 to vector<1x512xi32>
    %264 = arith.cmpi sge, %257, %263 : vector<1x512xi32>
    %265 = arith.andi %262, %264 : vector<1x512xi1>
    %c16_i32_103 = arith.constant 16 : i32
    %266 = vector.broadcast %c16_i32_103 : i32 to vector<1x512xi32>
    %267 = arith.cmpi slt, %257, %266 : vector<1x512xi32>
    %268 = arith.andi %265, %267 : vector<1x512xi1>
    %cst_104 = arith.constant 0.000000e+00 : f32
    %269 = vector.shape_cast %268 : vector<1x512xi1> to vector<1x512xi1>
    %270 = vector.broadcast %269 : vector<1x512xi1> to vector<8x512xi1>
    %271 = vector.broadcast %cst_104 : f32 to vector<8x512xf32>
    %272 = arith.select %270, %253, %271 : vector<8x512xi1>, vector<8x512xf32>
    %c16_105 = arith.constant 16 : index
    %c0_106 = arith.constant 0 : index
    %273 = vector.load %arg3[%c16_105, %c0_106] : memref<144x8xbf16, #tpu.memory_space<vmem>>, vector<16x8xbf16>
    %274 = arith.truncf %272 : vector<8x512xf32> to vector<8x512xbf16>
    %cst_107 = arith.constant dense<0.000000e+00> : vector<16x512xf32>
    %275 = tpu.matmul %273, %274, %cst_107 {dimension_numbers = #tpu.dot_dimension_numbers<[1], [0], [0], [1], [0, 0, 1, 1], [], []>} : vector<16x8xbf16>, vector<8x512xbf16>, vector<16x512xf32> -> vector<16x512xf32>
    %276 = arith.addf %252, %275 : vector<16x512xf32>
    %c15_i32_108 = arith.constant 15 : i32
    %277 = tpu.dynamic_rotate %229 by %c15_i32_108 dim 1 : vector<8x512xf32>, i32 -> vector<8x512xf32>
    %c-1_i32_109 = arith.constant -1 : i32
    %278 = vector.broadcast %c-1_i32_109 : i32 to vector<1x512xi32>
    %279 = arith.addi %4, %278 : vector<1x512xi32>
    %c1_i32_110 = arith.constant 1 : i32
    %280 = vector.broadcast %c1_i32_110 : i32 to vector<1x512xi32>
    %281 = arith.addi %6, %280 : vector<1x512xi32>
    %c0_i32_111 = arith.constant 0 : i32
    %282 = vector.broadcast %c0_i32_111 : i32 to vector<1x512xi32>
    %283 = arith.cmpi sge, %279, %282 : vector<1x512xi32>
    %c16_i32_112 = arith.constant 16 : i32
    %284 = vector.broadcast %c16_i32_112 : i32 to vector<1x512xi32>
    %285 = arith.cmpi slt, %279, %284 : vector<1x512xi32>
    %286 = arith.andi %283, %285 : vector<1x512xi1>
    %c0_i32_113 = arith.constant 0 : i32
    %287 = vector.broadcast %c0_i32_113 : i32 to vector<1x512xi32>
    %288 = arith.cmpi sge, %281, %287 : vector<1x512xi32>
    %289 = arith.andi %286, %288 : vector<1x512xi1>
    %c16_i32_114 = arith.constant 16 : i32
    %290 = vector.broadcast %c16_i32_114 : i32 to vector<1x512xi32>
    %291 = arith.cmpi slt, %281, %290 : vector<1x512xi32>
    %292 = arith.andi %289, %291 : vector<1x512xi1>
    %cst_115 = arith.constant 0.000000e+00 : f32
    %293 = vector.shape_cast %292 : vector<1x512xi1> to vector<1x512xi1>
    %294 = vector.broadcast %293 : vector<1x512xi1> to vector<8x512xi1>
    %295 = vector.broadcast %cst_115 : f32 to vector<8x512xf32>
    %296 = arith.select %294, %277, %295 : vector<8x512xi1>, vector<8x512xf32>
    %c32_116 = arith.constant 32 : index
    %c0_117 = arith.constant 0 : index
    %297 = vector.load %arg3[%c32_116, %c0_117] : memref<144x8xbf16, #tpu.memory_space<vmem>>, vector<16x8xbf16>
    %298 = arith.truncf %296 : vector<8x512xf32> to vector<8x512xbf16>
    %cst_118 = arith.constant dense<0.000000e+00> : vector<16x512xf32>
    %299 = tpu.matmul %297, %298, %cst_118 {dimension_numbers = #tpu.dot_dimension_numbers<[1], [0], [0], [1], [0, 0, 1, 1], [], []>} : vector<16x8xbf16>, vector<8x512xbf16>, vector<16x512xf32> -> vector<16x512xf32>
    %300 = arith.addf %276, %299 : vector<16x512xf32>
    %c1_i32_119 = arith.constant 1 : i32
    %301 = tpu.dynamic_rotate %229 by %c1_i32_119 dim 1 : vector<8x512xf32>, i32 -> vector<8x512xf32>
    %c0_i32_120 = arith.constant 0 : i32
    %302 = vector.broadcast %c0_i32_120 : i32 to vector<1x512xi32>
    %303 = arith.addi %4, %302 : vector<1x512xi32>
    %c-1_i32_121 = arith.constant -1 : i32
    %304 = vector.broadcast %c-1_i32_121 : i32 to vector<1x512xi32>
    %305 = arith.addi %6, %304 : vector<1x512xi32>
    %c0_i32_122 = arith.constant 0 : i32
    %306 = vector.broadcast %c0_i32_122 : i32 to vector<1x512xi32>
    %307 = arith.cmpi sge, %303, %306 : vector<1x512xi32>
    %c16_i32_123 = arith.constant 16 : i32
    %308 = vector.broadcast %c16_i32_123 : i32 to vector<1x512xi32>
    %309 = arith.cmpi slt, %303, %308 : vector<1x512xi32>
    %310 = arith.andi %307, %309 : vector<1x512xi1>
    %c0_i32_124 = arith.constant 0 : i32
    %311 = vector.broadcast %c0_i32_124 : i32 to vector<1x512xi32>
    %312 = arith.cmpi sge, %305, %311 : vector<1x512xi32>
    %313 = arith.andi %310, %312 : vector<1x512xi1>
    %c16_i32_125 = arith.constant 16 : i32
    %314 = vector.broadcast %c16_i32_125 : i32 to vector<1x512xi32>
    %315 = arith.cmpi slt, %305, %314 : vector<1x512xi32>
    %316 = arith.andi %313, %315 : vector<1x512xi1>
    %cst_126 = arith.constant 0.000000e+00 : f32
    %317 = vector.shape_cast %316 : vector<1x512xi1> to vector<1x512xi1>
    %318 = vector.broadcast %317 : vector<1x512xi1> to vector<8x512xi1>
    %319 = vector.broadcast %cst_126 : f32 to vector<8x512xf32>
    %320 = arith.select %318, %301, %319 : vector<8x512xi1>, vector<8x512xf32>
    %c48_127 = arith.constant 48 : index
    %c0_128 = arith.constant 0 : index
    %321 = vector.load %arg3[%c48_127, %c0_128] : memref<144x8xbf16, #tpu.memory_space<vmem>>, vector<16x8xbf16>
    %322 = arith.truncf %320 : vector<8x512xf32> to vector<8x512xbf16>
    %cst_129 = arith.constant dense<0.000000e+00> : vector<16x512xf32>
    %323 = tpu.matmul %321, %322, %cst_129 {dimension_numbers = #tpu.dot_dimension_numbers<[1], [0], [0], [1], [0, 0, 1, 1], [], []>} : vector<16x8xbf16>, vector<8x512xbf16>, vector<16x512xf32> -> vector<16x512xf32>
    %324 = arith.addf %300, %323 : vector<16x512xf32>
    %c0_i32_130 = arith.constant 0 : i32
    %325 = vector.broadcast %c0_i32_130 : i32 to vector<1x512xi32>
    %326 = arith.addi %4, %325 : vector<1x512xi32>
    %c0_i32_131 = arith.constant 0 : i32
    %327 = vector.broadcast %c0_i32_131 : i32 to vector<1x512xi32>
    %328 = arith.addi %6, %327 : vector<1x512xi32>
    %c0_i32_132 = arith.constant 0 : i32
    %329 = vector.broadcast %c0_i32_132 : i32 to vector<1x512xi32>
    %330 = arith.cmpi sge, %326, %329 : vector<1x512xi32>
    %c16_i32_133 = arith.constant 16 : i32
    %331 = vector.broadcast %c16_i32_133 : i32 to vector<1x512xi32>
    %332 = arith.cmpi slt, %326, %331 : vector<1x512xi32>
    %333 = arith.andi %330, %332 : vector<1x512xi1>
    %c0_i32_134 = arith.constant 0 : i32
    %334 = vector.broadcast %c0_i32_134 : i32 to vector<1x512xi32>
    %335 = arith.cmpi sge, %328, %334 : vector<1x512xi32>
    %336 = arith.andi %333, %335 : vector<1x512xi1>
    %c16_i32_135 = arith.constant 16 : i32
    %337 = vector.broadcast %c16_i32_135 : i32 to vector<1x512xi32>
    %338 = arith.cmpi slt, %328, %337 : vector<1x512xi32>
    %339 = arith.andi %336, %338 : vector<1x512xi1>
    %cst_136 = arith.constant 0.000000e+00 : f32
    %340 = vector.shape_cast %339 : vector<1x512xi1> to vector<1x512xi1>
    %341 = vector.broadcast %340 : vector<1x512xi1> to vector<8x512xi1>
    %342 = vector.broadcast %cst_136 : f32 to vector<8x512xf32>
    %343 = arith.select %341, %229, %342 : vector<8x512xi1>, vector<8x512xf32>
    %c64_137 = arith.constant 64 : index
    %c0_138 = arith.constant 0 : index
    %344 = vector.load %arg3[%c64_137, %c0_138] : memref<144x8xbf16, #tpu.memory_space<vmem>>, vector<16x8xbf16>
    %345 = arith.truncf %343 : vector<8x512xf32> to vector<8x512xbf16>
    %cst_139 = arith.constant dense<0.000000e+00> : vector<16x512xf32>
    %346 = tpu.matmul %344, %345, %cst_139 {dimension_numbers = #tpu.dot_dimension_numbers<[1], [0], [0], [1], [0, 0, 1, 1], [], []>} : vector<16x8xbf16>, vector<8x512xbf16>, vector<16x512xf32> -> vector<16x512xf32>
    %347 = arith.addf %324, %346 : vector<16x512xf32>
    %c511_i32_140 = arith.constant 511 : i32
    %348 = tpu.dynamic_rotate %229 by %c511_i32_140 dim 1 : vector<8x512xf32>, i32 -> vector<8x512xf32>
    %c0_i32_141 = arith.constant 0 : i32
    %349 = vector.broadcast %c0_i32_141 : i32 to vector<1x512xi32>
    %350 = arith.addi %4, %349 : vector<1x512xi32>
    %c1_i32_142 = arith.constant 1 : i32
    %351 = vector.broadcast %c1_i32_142 : i32 to vector<1x512xi32>
    %352 = arith.addi %6, %351 : vector<1x512xi32>
    %c0_i32_143 = arith.constant 0 : i32
    %353 = vector.broadcast %c0_i32_143 : i32 to vector<1x512xi32>
    %354 = arith.cmpi sge, %350, %353 : vector<1x512xi32>
    %c16_i32_144 = arith.constant 16 : i32
    %355 = vector.broadcast %c16_i32_144 : i32 to vector<1x512xi32>
    %356 = arith.cmpi slt, %350, %355 : vector<1x512xi32>
    %357 = arith.andi %354, %356 : vector<1x512xi1>
    %c0_i32_145 = arith.constant 0 : i32
    %358 = vector.broadcast %c0_i32_145 : i32 to vector<1x512xi32>
    %359 = arith.cmpi sge, %352, %358 : vector<1x512xi32>
    %360 = arith.andi %357, %359 : vector<1x512xi1>
    %c16_i32_146 = arith.constant 16 : i32
    %361 = vector.broadcast %c16_i32_146 : i32 to vector<1x512xi32>
    %362 = arith.cmpi slt, %352, %361 : vector<1x512xi32>
    %363 = arith.andi %360, %362 : vector<1x512xi1>
    %cst_147 = arith.constant 0.000000e+00 : f32
    %364 = vector.shape_cast %363 : vector<1x512xi1> to vector<1x512xi1>
    %365 = vector.broadcast %364 : vector<1x512xi1> to vector<8x512xi1>
    %366 = vector.broadcast %cst_147 : f32 to vector<8x512xf32>
    %367 = arith.select %365, %348, %366 : vector<8x512xi1>, vector<8x512xf32>
    %c80 = arith.constant 80 : index
    %c0_148 = arith.constant 0 : index
    %368 = vector.load %arg3[%c80, %c0_148] : memref<144x8xbf16, #tpu.memory_space<vmem>>, vector<16x8xbf16>
    %369 = arith.truncf %367 : vector<8x512xf32> to vector<8x512xbf16>
    %cst_149 = arith.constant dense<0.000000e+00> : vector<16x512xf32>
    %370 = tpu.matmul %368, %369, %cst_149 {dimension_numbers = #tpu.dot_dimension_numbers<[1], [0], [0], [1], [0, 0, 1, 1], [], []>} : vector<16x8xbf16>, vector<8x512xbf16>, vector<16x512xf32> -> vector<16x512xf32>
    %371 = arith.addf %347, %370 : vector<16x512xf32>
    %c497_i32_150 = arith.constant 497 : i32
    %372 = tpu.dynamic_rotate %229 by %c497_i32_150 dim 1 : vector<8x512xf32>, i32 -> vector<8x512xf32>
    %c1_i32_151 = arith.constant 1 : i32
    %373 = vector.broadcast %c1_i32_151 : i32 to vector<1x512xi32>
    %374 = arith.addi %4, %373 : vector<1x512xi32>
    %c-1_i32_152 = arith.constant -1 : i32
    %375 = vector.broadcast %c-1_i32_152 : i32 to vector<1x512xi32>
    %376 = arith.addi %6, %375 : vector<1x512xi32>
    %c0_i32_153 = arith.constant 0 : i32
    %377 = vector.broadcast %c0_i32_153 : i32 to vector<1x512xi32>
    %378 = arith.cmpi sge, %374, %377 : vector<1x512xi32>
    %c16_i32_154 = arith.constant 16 : i32
    %379 = vector.broadcast %c16_i32_154 : i32 to vector<1x512xi32>
    %380 = arith.cmpi slt, %374, %379 : vector<1x512xi32>
    %381 = arith.andi %378, %380 : vector<1x512xi1>
    %c0_i32_155 = arith.constant 0 : i32
    %382 = vector.broadcast %c0_i32_155 : i32 to vector<1x512xi32>
    %383 = arith.cmpi sge, %376, %382 : vector<1x512xi32>
    %384 = arith.andi %381, %383 : vector<1x512xi1>
    %c16_i32_156 = arith.constant 16 : i32
    %385 = vector.broadcast %c16_i32_156 : i32 to vector<1x512xi32>
    %386 = arith.cmpi slt, %376, %385 : vector<1x512xi32>
    %387 = arith.andi %384, %386 : vector<1x512xi1>
    %cst_157 = arith.constant 0.000000e+00 : f32
    %388 = vector.shape_cast %387 : vector<1x512xi1> to vector<1x512xi1>
    %389 = vector.broadcast %388 : vector<1x512xi1> to vector<8x512xi1>
    %390 = vector.broadcast %cst_157 : f32 to vector<8x512xf32>
    %391 = arith.select %389, %372, %390 : vector<8x512xi1>, vector<8x512xf32>
    %c96 = arith.constant 96 : index
    %c0_158 = arith.constant 0 : index
    %392 = vector.load %arg3[%c96, %c0_158] : memref<144x8xbf16, #tpu.memory_space<vmem>>, vector<16x8xbf16>
    %393 = arith.truncf %391 : vector<8x512xf32> to vector<8x512xbf16>
    %cst_159 = arith.constant dense<0.000000e+00> : vector<16x512xf32>
    %394 = tpu.matmul %392, %393, %cst_159 {dimension_numbers = #tpu.dot_dimension_numbers<[1], [0], [0], [1], [0, 0, 1, 1], [], []>} : vector<16x8xbf16>, vector<8x512xbf16>, vector<16x512xf32> -> vector<16x512xf32>
    %395 = arith.addf %371, %394 : vector<16x512xf32>
    %c496_i32_160 = arith.constant 496 : i32
    %396 = tpu.dynamic_rotate %229 by %c496_i32_160 dim 1 : vector<8x512xf32>, i32 -> vector<8x512xf32>
    %c1_i32_161 = arith.constant 1 : i32
    %397 = vector.broadcast %c1_i32_161 : i32 to vector<1x512xi32>
    %398 = arith.addi %4, %397 : vector<1x512xi32>
    %c0_i32_162 = arith.constant 0 : i32
    %399 = vector.broadcast %c0_i32_162 : i32 to vector<1x512xi32>
    %400 = arith.addi %6, %399 : vector<1x512xi32>
    %c0_i32_163 = arith.constant 0 : i32
    %401 = vector.broadcast %c0_i32_163 : i32 to vector<1x512xi32>
    %402 = arith.cmpi sge, %398, %401 : vector<1x512xi32>
    %c16_i32_164 = arith.constant 16 : i32
    %403 = vector.broadcast %c16_i32_164 : i32 to vector<1x512xi32>
    %404 = arith.cmpi slt, %398, %403 : vector<1x512xi32>
    %405 = arith.andi %402, %404 : vector<1x512xi1>
    %c0_i32_165 = arith.constant 0 : i32
    %406 = vector.broadcast %c0_i32_165 : i32 to vector<1x512xi32>
    %407 = arith.cmpi sge, %400, %406 : vector<1x512xi32>
    %408 = arith.andi %405, %407 : vector<1x512xi1>
    %c16_i32_166 = arith.constant 16 : i32
    %409 = vector.broadcast %c16_i32_166 : i32 to vector<1x512xi32>
    %410 = arith.cmpi slt, %400, %409 : vector<1x512xi32>
    %411 = arith.andi %408, %410 : vector<1x512xi1>
    %cst_167 = arith.constant 0.000000e+00 : f32
    %412 = vector.shape_cast %411 : vector<1x512xi1> to vector<1x512xi1>
    %413 = vector.broadcast %412 : vector<1x512xi1> to vector<8x512xi1>
    %414 = vector.broadcast %cst_167 : f32 to vector<8x512xf32>
    %415 = arith.select %413, %396, %414 : vector<8x512xi1>, vector<8x512xf32>
    %c112 = arith.constant 112 : index
    %c0_168 = arith.constant 0 : index
    %416 = vector.load %arg3[%c112, %c0_168] : memref<144x8xbf16, #tpu.memory_space<vmem>>, vector<16x8xbf16>
    %417 = arith.truncf %415 : vector<8x512xf32> to vector<8x512xbf16>
    %cst_169 = arith.constant dense<0.000000e+00> : vector<16x512xf32>
    %418 = tpu.matmul %416, %417, %cst_169 {dimension_numbers = #tpu.dot_dimension_numbers<[1], [0], [0], [1], [0, 0, 1, 1], [], []>} : vector<16x8xbf16>, vector<8x512xbf16>, vector<16x512xf32> -> vector<16x512xf32>
    %419 = arith.addf %395, %418 : vector<16x512xf32>
    %c495_i32_170 = arith.constant 495 : i32
    %420 = tpu.dynamic_rotate %229 by %c495_i32_170 dim 1 : vector<8x512xf32>, i32 -> vector<8x512xf32>
    %c1_i32_171 = arith.constant 1 : i32
    %421 = vector.broadcast %c1_i32_171 : i32 to vector<1x512xi32>
    %422 = arith.addi %4, %421 : vector<1x512xi32>
    %c1_i32_172 = arith.constant 1 : i32
    %423 = vector.broadcast %c1_i32_172 : i32 to vector<1x512xi32>
    %424 = arith.addi %6, %423 : vector<1x512xi32>
    %c0_i32_173 = arith.constant 0 : i32
    %425 = vector.broadcast %c0_i32_173 : i32 to vector<1x512xi32>
    %426 = arith.cmpi sge, %422, %425 : vector<1x512xi32>
    %c16_i32_174 = arith.constant 16 : i32
    %427 = vector.broadcast %c16_i32_174 : i32 to vector<1x512xi32>
    %428 = arith.cmpi slt, %422, %427 : vector<1x512xi32>
    %429 = arith.andi %426, %428 : vector<1x512xi1>
    %c0_i32_175 = arith.constant 0 : i32
    %430 = vector.broadcast %c0_i32_175 : i32 to vector<1x512xi32>
    %431 = arith.cmpi sge, %424, %430 : vector<1x512xi32>
    %432 = arith.andi %429, %431 : vector<1x512xi1>
    %c16_i32_176 = arith.constant 16 : i32
    %433 = vector.broadcast %c16_i32_176 : i32 to vector<1x512xi32>
    %434 = arith.cmpi slt, %424, %433 : vector<1x512xi32>
    %435 = arith.andi %432, %434 : vector<1x512xi1>
    %cst_177 = arith.constant 0.000000e+00 : f32
    %436 = vector.shape_cast %435 : vector<1x512xi1> to vector<1x512xi1>
    %437 = vector.broadcast %436 : vector<1x512xi1> to vector<8x512xi1>
    %438 = vector.broadcast %cst_177 : f32 to vector<8x512xf32>
    %439 = arith.select %437, %420, %438 : vector<8x512xi1>, vector<8x512xf32>
    %c128 = arith.constant 128 : index
    %c0_178 = arith.constant 0 : index
    %440 = vector.load %arg3[%c128, %c0_178] : memref<144x8xbf16, #tpu.memory_space<vmem>>, vector<16x8xbf16>
    %441 = arith.truncf %439 : vector<8x512xf32> to vector<8x512xbf16>
    %cst_179 = arith.constant dense<0.000000e+00> : vector<16x512xf32>
    %442 = tpu.matmul %440, %441, %cst_179 {dimension_numbers = #tpu.dot_dimension_numbers<[1], [0], [0], [1], [0, 0, 1, 1], [], []>} : vector<16x8xbf16>, vector<8x512xbf16>, vector<16x512xf32> -> vector<16x512xf32>
    %443 = arith.addf %419, %442 : vector<16x512xf32>
    %c0_180 = arith.constant 0 : index
    %c0_181 = arith.constant 0 : index
    %444 = vector.load %arg4[%c0_180, %c0_181] : memref<16x1xf32, #tpu.memory_space<vmem>>, vector<16x1xf32>
    %445 = vector.broadcast %444 : vector<16x1xf32> to vector<16x512xf32>
    %446 = arith.addf %443, %445 : vector<16x512xf32>
    %cst_182 = arith.constant 0.000000e+00 : f32
    %447 = vector.broadcast %cst_182 : f32 to vector<16x512xf32>
    %448 = arith.cmpf oge, %446, %447 : vector<16x512xf32>
    %cst_183 = arith.constant 2.000000e-01 : f32
    %449 = vector.broadcast %cst_183 : f32 to vector<16x512xf32>
    %450 = arith.mulf %449, %446 : vector<16x512xf32>
    %451 = arith.select %448, %446, %450 : vector<16x512xi1>, vector<16x512xf32>
    %c34_i32 = arith.constant 34 : i32
    %452 = tpu.dynamic_rotate %451 by %c34_i32 dim 1 : vector<16x512xf32>, i32 -> vector<16x512xf32>
    %c-2_i32 = arith.constant -2 : i32
    %453 = vector.broadcast %c-2_i32 : i32 to vector<1x512xi32>
    %454 = arith.addi %4, %453 : vector<1x512xi32>
    %c-2_i32_184 = arith.constant -2 : i32
    %455 = vector.broadcast %c-2_i32_184 : i32 to vector<1x512xi32>
    %456 = arith.addi %6, %455 : vector<1x512xi32>
    %c0_i32_185 = arith.constant 0 : i32
    %457 = vector.broadcast %c0_i32_185 : i32 to vector<1x512xi32>
    %458 = arith.cmpi sge, %454, %457 : vector<1x512xi32>
    %c16_i32_186 = arith.constant 16 : i32
    %459 = vector.broadcast %c16_i32_186 : i32 to vector<1x512xi32>
    %460 = arith.cmpi slt, %454, %459 : vector<1x512xi32>
    %461 = arith.andi %458, %460 : vector<1x512xi1>
    %c0_i32_187 = arith.constant 0 : i32
    %462 = vector.broadcast %c0_i32_187 : i32 to vector<1x512xi32>
    %463 = arith.cmpi sge, %456, %462 : vector<1x512xi32>
    %464 = arith.andi %461, %463 : vector<1x512xi1>
    %c16_i32_188 = arith.constant 16 : i32
    %465 = vector.broadcast %c16_i32_188 : i32 to vector<1x512xi32>
    %466 = arith.cmpi slt, %456, %465 : vector<1x512xi32>
    %467 = arith.andi %464, %466 : vector<1x512xi1>
    %cst_189 = arith.constant 0.000000e+00 : f32
    %468 = vector.shape_cast %467 : vector<1x512xi1> to vector<1x512xi1>
    %469 = vector.broadcast %468 : vector<1x512xi1> to vector<16x512xi1>
    %470 = vector.broadcast %cst_189 : f32 to vector<16x512xf32>
    %471 = arith.select %469, %452, %470 : vector<16x512xi1>, vector<16x512xf32>
    %c0_190 = arith.constant 0 : index
    %c0_191 = arith.constant 0 : index
    %472 = vector.load %arg5[%c0_190, %c0_191] : memref<288x16xbf16, #tpu.memory_space<vmem>>, vector<32x16xbf16>
    %473 = arith.truncf %471 : vector<16x512xf32> to vector<16x512xbf16>
    %cst_192 = arith.constant dense<0.000000e+00> : vector<32x512xf32>
    %474 = tpu.matmul %472, %473, %cst_192 {dimension_numbers = #tpu.dot_dimension_numbers<[1], [0], [0], [1], [0, 0, 1, 1], [], []>} : vector<32x16xbf16>, vector<16x512xbf16>, vector<32x512xf32> -> vector<32x512xf32>
    %c32_i32 = arith.constant 32 : i32
    %475 = tpu.dynamic_rotate %451 by %c32_i32 dim 1 : vector<16x512xf32>, i32 -> vector<16x512xf32>
    %c-2_i32_193 = arith.constant -2 : i32
    %476 = vector.broadcast %c-2_i32_193 : i32 to vector<1x512xi32>
    %477 = arith.addi %4, %476 : vector<1x512xi32>
    %c0_i32_194 = arith.constant 0 : i32
    %478 = vector.broadcast %c0_i32_194 : i32 to vector<1x512xi32>
    %479 = arith.addi %6, %478 : vector<1x512xi32>
    %c0_i32_195 = arith.constant 0 : i32
    %480 = vector.broadcast %c0_i32_195 : i32 to vector<1x512xi32>
    %481 = arith.cmpi sge, %477, %480 : vector<1x512xi32>
    %c16_i32_196 = arith.constant 16 : i32
    %482 = vector.broadcast %c16_i32_196 : i32 to vector<1x512xi32>
    %483 = arith.cmpi slt, %477, %482 : vector<1x512xi32>
    %484 = arith.andi %481, %483 : vector<1x512xi1>
    %c0_i32_197 = arith.constant 0 : i32
    %485 = vector.broadcast %c0_i32_197 : i32 to vector<1x512xi32>
    %486 = arith.cmpi sge, %479, %485 : vector<1x512xi32>
    %487 = arith.andi %484, %486 : vector<1x512xi1>
    %c16_i32_198 = arith.constant 16 : i32
    %488 = vector.broadcast %c16_i32_198 : i32 to vector<1x512xi32>
    %489 = arith.cmpi slt, %479, %488 : vector<1x512xi32>
    %490 = arith.andi %487, %489 : vector<1x512xi1>
    %cst_199 = arith.constant 0.000000e+00 : f32
    %491 = vector.shape_cast %490 : vector<1x512xi1> to vector<1x512xi1>
    %492 = vector.broadcast %491 : vector<1x512xi1> to vector<16x512xi1>
    %493 = vector.broadcast %cst_199 : f32 to vector<16x512xf32>
    %494 = arith.select %492, %475, %493 : vector<16x512xi1>, vector<16x512xf32>
    %c32_200 = arith.constant 32 : index
    %c0_201 = arith.constant 0 : index
    %495 = vector.load %arg5[%c32_200, %c0_201] : memref<288x16xbf16, #tpu.memory_space<vmem>>, vector<32x16xbf16>
    %496 = arith.truncf %494 : vector<16x512xf32> to vector<16x512xbf16>
    %cst_202 = arith.constant dense<0.000000e+00> : vector<32x512xf32>
    %497 = tpu.matmul %495, %496, %cst_202 {dimension_numbers = #tpu.dot_dimension_numbers<[1], [0], [0], [1], [0, 0, 1, 1], [], []>} : vector<32x16xbf16>, vector<16x512xbf16>, vector<32x512xf32> -> vector<32x512xf32>
    %498 = arith.addf %474, %497 : vector<32x512xf32>
    %c30_i32 = arith.constant 30 : i32
    %499 = tpu.dynamic_rotate %451 by %c30_i32 dim 1 : vector<16x512xf32>, i32 -> vector<16x512xf32>
    %c-2_i32_203 = arith.constant -2 : i32
    %500 = vector.broadcast %c-2_i32_203 : i32 to vector<1x512xi32>
    %501 = arith.addi %4, %500 : vector<1x512xi32>
    %c2_i32 = arith.constant 2 : i32
    %502 = vector.broadcast %c2_i32 : i32 to vector<1x512xi32>
    %503 = arith.addi %6, %502 : vector<1x512xi32>
    %c0_i32_204 = arith.constant 0 : i32
    %504 = vector.broadcast %c0_i32_204 : i32 to vector<1x512xi32>
    %505 = arith.cmpi sge, %501, %504 : vector<1x512xi32>
    %c16_i32_205 = arith.constant 16 : i32
    %506 = vector.broadcast %c16_i32_205 : i32 to vector<1x512xi32>
    %507 = arith.cmpi slt, %501, %506 : vector<1x512xi32>
    %508 = arith.andi %505, %507 : vector<1x512xi1>
    %c0_i32_206 = arith.constant 0 : i32
    %509 = vector.broadcast %c0_i32_206 : i32 to vector<1x512xi32>
    %510 = arith.cmpi sge, %503, %509 : vector<1x512xi32>
    %511 = arith.andi %508, %510 : vector<1x512xi1>
    %c16_i32_207 = arith.constant 16 : i32
    %512 = vector.broadcast %c16_i32_207 : i32 to vector<1x512xi32>
    %513 = arith.cmpi slt, %503, %512 : vector<1x512xi32>
    %514 = arith.andi %511, %513 : vector<1x512xi1>
    %cst_208 = arith.constant 0.000000e+00 : f32
    %515 = vector.shape_cast %514 : vector<1x512xi1> to vector<1x512xi1>
    %516 = vector.broadcast %515 : vector<1x512xi1> to vector<16x512xi1>
    %517 = vector.broadcast %cst_208 : f32 to vector<16x512xf32>
    %518 = arith.select %516, %499, %517 : vector<16x512xi1>, vector<16x512xf32>
    %c64_209 = arith.constant 64 : index
    %c0_210 = arith.constant 0 : index
    %519 = vector.load %arg5[%c64_209, %c0_210] : memref<288x16xbf16, #tpu.memory_space<vmem>>, vector<32x16xbf16>
    %520 = arith.truncf %518 : vector<16x512xf32> to vector<16x512xbf16>
    %cst_211 = arith.constant dense<0.000000e+00> : vector<32x512xf32>
    %521 = tpu.matmul %519, %520, %cst_211 {dimension_numbers = #tpu.dot_dimension_numbers<[1], [0], [0], [1], [0, 0, 1, 1], [], []>} : vector<32x16xbf16>, vector<16x512xbf16>, vector<32x512xf32> -> vector<32x512xf32>
    %522 = arith.addf %498, %521 : vector<32x512xf32>
    %c2_i32_212 = arith.constant 2 : i32
    %523 = tpu.dynamic_rotate %451 by %c2_i32_212 dim 1 : vector<16x512xf32>, i32 -> vector<16x512xf32>
    %c0_i32_213 = arith.constant 0 : i32
    %524 = vector.broadcast %c0_i32_213 : i32 to vector<1x512xi32>
    %525 = arith.addi %4, %524 : vector<1x512xi32>
    %c-2_i32_214 = arith.constant -2 : i32
    %526 = vector.broadcast %c-2_i32_214 : i32 to vector<1x512xi32>
    %527 = arith.addi %6, %526 : vector<1x512xi32>
    %c0_i32_215 = arith.constant 0 : i32
    %528 = vector.broadcast %c0_i32_215 : i32 to vector<1x512xi32>
    %529 = arith.cmpi sge, %525, %528 : vector<1x512xi32>
    %c16_i32_216 = arith.constant 16 : i32
    %530 = vector.broadcast %c16_i32_216 : i32 to vector<1x512xi32>
    %531 = arith.cmpi slt, %525, %530 : vector<1x512xi32>
    %532 = arith.andi %529, %531 : vector<1x512xi1>
    %c0_i32_217 = arith.constant 0 : i32
    %533 = vector.broadcast %c0_i32_217 : i32 to vector<1x512xi32>
    %534 = arith.cmpi sge, %527, %533 : vector<1x512xi32>
    %535 = arith.andi %532, %534 : vector<1x512xi1>
    %c16_i32_218 = arith.constant 16 : i32
    %536 = vector.broadcast %c16_i32_218 : i32 to vector<1x512xi32>
    %537 = arith.cmpi slt, %527, %536 : vector<1x512xi32>
    %538 = arith.andi %535, %537 : vector<1x512xi1>
    %cst_219 = arith.constant 0.000000e+00 : f32
    %539 = vector.shape_cast %538 : vector<1x512xi1> to vector<1x512xi1>
    %540 = vector.broadcast %539 : vector<1x512xi1> to vector<16x512xi1>
    %541 = vector.broadcast %cst_219 : f32 to vector<16x512xf32>
    %542 = arith.select %540, %523, %541 : vector<16x512xi1>, vector<16x512xf32>
    %c96_220 = arith.constant 96 : index
    %c0_221 = arith.constant 0 : index
    %543 = vector.load %arg5[%c96_220, %c0_221] : memref<288x16xbf16, #tpu.memory_space<vmem>>, vector<32x16xbf16>
    %544 = arith.truncf %542 : vector<16x512xf32> to vector<16x512xbf16>
    %cst_222 = arith.constant dense<0.000000e+00> : vector<32x512xf32>
    %545 = tpu.matmul %543, %544, %cst_222 {dimension_numbers = #tpu.dot_dimension_numbers<[1], [0], [0], [1], [0, 0, 1, 1], [], []>} : vector<32x16xbf16>, vector<16x512xbf16>, vector<32x512xf32> -> vector<32x512xf32>
    %546 = arith.addf %522, %545 : vector<32x512xf32>
    %c0_i32_223 = arith.constant 0 : i32
    %547 = vector.broadcast %c0_i32_223 : i32 to vector<1x512xi32>
    %548 = arith.addi %4, %547 : vector<1x512xi32>
    %c0_i32_224 = arith.constant 0 : i32
    %549 = vector.broadcast %c0_i32_224 : i32 to vector<1x512xi32>
    %550 = arith.addi %6, %549 : vector<1x512xi32>
    %c0_i32_225 = arith.constant 0 : i32
    %551 = vector.broadcast %c0_i32_225 : i32 to vector<1x512xi32>
    %552 = arith.cmpi sge, %548, %551 : vector<1x512xi32>
    %c16_i32_226 = arith.constant 16 : i32
    %553 = vector.broadcast %c16_i32_226 : i32 to vector<1x512xi32>
    %554 = arith.cmpi slt, %548, %553 : vector<1x512xi32>
    %555 = arith.andi %552, %554 : vector<1x512xi1>
    %c0_i32_227 = arith.constant 0 : i32
    %556 = vector.broadcast %c0_i32_227 : i32 to vector<1x512xi32>
    %557 = arith.cmpi sge, %550, %556 : vector<1x512xi32>
    %558 = arith.andi %555, %557 : vector<1x512xi1>
    %c16_i32_228 = arith.constant 16 : i32
    %559 = vector.broadcast %c16_i32_228 : i32 to vector<1x512xi32>
    %560 = arith.cmpi slt, %550, %559 : vector<1x512xi32>
    %561 = arith.andi %558, %560 : vector<1x512xi1>
    %cst_229 = arith.constant 0.000000e+00 : f32
    %562 = vector.shape_cast %561 : vector<1x512xi1> to vector<1x512xi1>
    %563 = vector.broadcast %562 : vector<1x512xi1> to vector<16x512xi1>
    %564 = vector.broadcast %cst_229 : f32 to vector<16x512xf32>
    %565 = arith.select %563, %451, %564 : vector<16x512xi1>, vector<16x512xf32>
    %c128_230 = arith.constant 128 : index
    %c0_231 = arith.constant 0 : index
    %566 = vector.load %arg5[%c128_230, %c0_231] : memref<288x16xbf16, #tpu.memory_space<vmem>>, vector<32x16xbf16>
    %567 = arith.truncf %565 : vector<16x512xf32> to vector<16x512xbf16>
    %cst_232 = arith.constant dense<0.000000e+00> : vector<32x512xf32>
    %568 = tpu.matmul %566, %567, %cst_232 {dimension_numbers = #tpu.dot_dimension_numbers<[1], [0], [0], [1], [0, 0, 1, 1], [], []>} : vector<32x16xbf16>, vector<16x512xbf16>, vector<32x512xf32> -> vector<32x512xf32>
    %569 = arith.addf %546, %568 : vector<32x512xf32>
    %c510_i32 = arith.constant 510 : i32
    %570 = tpu.dynamic_rotate %451 by %c510_i32 dim 1 : vector<16x512xf32>, i32 -> vector<16x512xf32>
    %c0_i32_233 = arith.constant 0 : i32
    %571 = vector.broadcast %c0_i32_233 : i32 to vector<1x512xi32>
    %572 = arith.addi %4, %571 : vector<1x512xi32>
    %c2_i32_234 = arith.constant 2 : i32
    %573 = vector.broadcast %c2_i32_234 : i32 to vector<1x512xi32>
    %574 = arith.addi %6, %573 : vector<1x512xi32>
    %c0_i32_235 = arith.constant 0 : i32
    %575 = vector.broadcast %c0_i32_235 : i32 to vector<1x512xi32>
    %576 = arith.cmpi sge, %572, %575 : vector<1x512xi32>
    %c16_i32_236 = arith.constant 16 : i32
    %577 = vector.broadcast %c16_i32_236 : i32 to vector<1x512xi32>
    %578 = arith.cmpi slt, %572, %577 : vector<1x512xi32>
    %579 = arith.andi %576, %578 : vector<1x512xi1>
    %c0_i32_237 = arith.constant 0 : i32
    %580 = vector.broadcast %c0_i32_237 : i32 to vector<1x512xi32>
    %581 = arith.cmpi sge, %574, %580 : vector<1x512xi32>
    %582 = arith.andi %579, %581 : vector<1x512xi1>
    %c16_i32_238 = arith.constant 16 : i32
    %583 = vector.broadcast %c16_i32_238 : i32 to vector<1x512xi32>
    %584 = arith.cmpi slt, %574, %583 : vector<1x512xi32>
    %585 = arith.andi %582, %584 : vector<1x512xi1>
    %cst_239 = arith.constant 0.000000e+00 : f32
    %586 = vector.shape_cast %585 : vector<1x512xi1> to vector<1x512xi1>
    %587 = vector.broadcast %586 : vector<1x512xi1> to vector<16x512xi1>
    %588 = vector.broadcast %cst_239 : f32 to vector<16x512xf32>
    %589 = arith.select %587, %570, %588 : vector<16x512xi1>, vector<16x512xf32>
    %c160 = arith.constant 160 : index
    %c0_240 = arith.constant 0 : index
    %590 = vector.load %arg5[%c160, %c0_240] : memref<288x16xbf16, #tpu.memory_space<vmem>>, vector<32x16xbf16>
    %591 = arith.truncf %589 : vector<16x512xf32> to vector<16x512xbf16>
    %cst_241 = arith.constant dense<0.000000e+00> : vector<32x512xf32>
    %592 = tpu.matmul %590, %591, %cst_241 {dimension_numbers = #tpu.dot_dimension_numbers<[1], [0], [0], [1], [0, 0, 1, 1], [], []>} : vector<32x16xbf16>, vector<16x512xbf16>, vector<32x512xf32> -> vector<32x512xf32>
    %593 = arith.addf %569, %592 : vector<32x512xf32>
    %c482_i32 = arith.constant 482 : i32
    %594 = tpu.dynamic_rotate %451 by %c482_i32 dim 1 : vector<16x512xf32>, i32 -> vector<16x512xf32>
    %c2_i32_242 = arith.constant 2 : i32
    %595 = vector.broadcast %c2_i32_242 : i32 to vector<1x512xi32>
    %596 = arith.addi %4, %595 : vector<1x512xi32>
    %c-2_i32_243 = arith.constant -2 : i32
    %597 = vector.broadcast %c-2_i32_243 : i32 to vector<1x512xi32>
    %598 = arith.addi %6, %597 : vector<1x512xi32>
    %c0_i32_244 = arith.constant 0 : i32
    %599 = vector.broadcast %c0_i32_244 : i32 to vector<1x512xi32>
    %600 = arith.cmpi sge, %596, %599 : vector<1x512xi32>
    %c16_i32_245 = arith.constant 16 : i32
    %601 = vector.broadcast %c16_i32_245 : i32 to vector<1x512xi32>
    %602 = arith.cmpi slt, %596, %601 : vector<1x512xi32>
    %603 = arith.andi %600, %602 : vector<1x512xi1>
    %c0_i32_246 = arith.constant 0 : i32
    %604 = vector.broadcast %c0_i32_246 : i32 to vector<1x512xi32>
    %605 = arith.cmpi sge, %598, %604 : vector<1x512xi32>
    %606 = arith.andi %603, %605 : vector<1x512xi1>
    %c16_i32_247 = arith.constant 16 : i32
    %607 = vector.broadcast %c16_i32_247 : i32 to vector<1x512xi32>
    %608 = arith.cmpi slt, %598, %607 : vector<1x512xi32>
    %609 = arith.andi %606, %608 : vector<1x512xi1>
    %cst_248 = arith.constant 0.000000e+00 : f32
    %610 = vector.shape_cast %609 : vector<1x512xi1> to vector<1x512xi1>
    %611 = vector.broadcast %610 : vector<1x512xi1> to vector<16x512xi1>
    %612 = vector.broadcast %cst_248 : f32 to vector<16x512xf32>
    %613 = arith.select %611, %594, %612 : vector<16x512xi1>, vector<16x512xf32>
    %c192 = arith.constant 192 : index
    %c0_249 = arith.constant 0 : index
    %614 = vector.load %arg5[%c192, %c0_249] : memref<288x16xbf16, #tpu.memory_space<vmem>>, vector<32x16xbf16>
    %615 = arith.truncf %613 : vector<16x512xf32> to vector<16x512xbf16>
    %cst_250 = arith.constant dense<0.000000e+00> : vector<32x512xf32>
    %616 = tpu.matmul %614, %615, %cst_250 {dimension_numbers = #tpu.dot_dimension_numbers<[1], [0], [0], [1], [0, 0, 1, 1], [], []>} : vector<32x16xbf16>, vector<16x512xbf16>, vector<32x512xf32> -> vector<32x512xf32>
    %617 = arith.addf %593, %616 : vector<32x512xf32>
    %c480_i32 = arith.constant 480 : i32
    %618 = tpu.dynamic_rotate %451 by %c480_i32 dim 1 : vector<16x512xf32>, i32 -> vector<16x512xf32>
    %c2_i32_251 = arith.constant 2 : i32
    %619 = vector.broadcast %c2_i32_251 : i32 to vector<1x512xi32>
    %620 = arith.addi %4, %619 : vector<1x512xi32>
    %c0_i32_252 = arith.constant 0 : i32
    %621 = vector.broadcast %c0_i32_252 : i32 to vector<1x512xi32>
    %622 = arith.addi %6, %621 : vector<1x512xi32>
    %c0_i32_253 = arith.constant 0 : i32
    %623 = vector.broadcast %c0_i32_253 : i32 to vector<1x512xi32>
    %624 = arith.cmpi sge, %620, %623 : vector<1x512xi32>
    %c16_i32_254 = arith.constant 16 : i32
    %625 = vector.broadcast %c16_i32_254 : i32 to vector<1x512xi32>
    %626 = arith.cmpi slt, %620, %625 : vector<1x512xi32>
    %627 = arith.andi %624, %626 : vector<1x512xi1>
    %c0_i32_255 = arith.constant 0 : i32
    %628 = vector.broadcast %c0_i32_255 : i32 to vector<1x512xi32>
    %629 = arith.cmpi sge, %622, %628 : vector<1x512xi32>
    %630 = arith.andi %627, %629 : vector<1x512xi1>
    %c16_i32_256 = arith.constant 16 : i32
    %631 = vector.broadcast %c16_i32_256 : i32 to vector<1x512xi32>
    %632 = arith.cmpi slt, %622, %631 : vector<1x512xi32>
    %633 = arith.andi %630, %632 : vector<1x512xi1>
    %cst_257 = arith.constant 0.000000e+00 : f32
    %634 = vector.shape_cast %633 : vector<1x512xi1> to vector<1x512xi1>
    %635 = vector.broadcast %634 : vector<1x512xi1> to vector<16x512xi1>
    %636 = vector.broadcast %cst_257 : f32 to vector<16x512xf32>
    %637 = arith.select %635, %618, %636 : vector<16x512xi1>, vector<16x512xf32>
    %c224 = arith.constant 224 : index
    %c0_258 = arith.constant 0 : index
    %638 = vector.load %arg5[%c224, %c0_258] : memref<288x16xbf16, #tpu.memory_space<vmem>>, vector<32x16xbf16>
    %639 = arith.truncf %637 : vector<16x512xf32> to vector<16x512xbf16>
    %cst_259 = arith.constant dense<0.000000e+00> : vector<32x512xf32>
    %640 = tpu.matmul %638, %639, %cst_259 {dimension_numbers = #tpu.dot_dimension_numbers<[1], [0], [0], [1], [0, 0, 1, 1], [], []>} : vector<32x16xbf16>, vector<16x512xbf16>, vector<32x512xf32> -> vector<32x512xf32>
    %641 = arith.addf %617, %640 : vector<32x512xf32>
    %c478_i32 = arith.constant 478 : i32
    %642 = tpu.dynamic_rotate %451 by %c478_i32 dim 1 : vector<16x512xf32>, i32 -> vector<16x512xf32>
    %c2_i32_260 = arith.constant 2 : i32
    %643 = vector.broadcast %c2_i32_260 : i32 to vector<1x512xi32>
    %644 = arith.addi %4, %643 : vector<1x512xi32>
    %c2_i32_261 = arith.constant 2 : i32
    %645 = vector.broadcast %c2_i32_261 : i32 to vector<1x512xi32>
    %646 = arith.addi %6, %645 : vector<1x512xi32>
    %c0_i32_262 = arith.constant 0 : i32
    %647 = vector.broadcast %c0_i32_262 : i32 to vector<1x512xi32>
    %648 = arith.cmpi sge, %644, %647 : vector<1x512xi32>
    %c16_i32_263 = arith.constant 16 : i32
    %649 = vector.broadcast %c16_i32_263 : i32 to vector<1x512xi32>
    %650 = arith.cmpi slt, %644, %649 : vector<1x512xi32>
    %651 = arith.andi %648, %650 : vector<1x512xi1>
    %c0_i32_264 = arith.constant 0 : i32
    %652 = vector.broadcast %c0_i32_264 : i32 to vector<1x512xi32>
    %653 = arith.cmpi sge, %646, %652 : vector<1x512xi32>
    %654 = arith.andi %651, %653 : vector<1x512xi1>
    %c16_i32_265 = arith.constant 16 : i32
    %655 = vector.broadcast %c16_i32_265 : i32 to vector<1x512xi32>
    %656 = arith.cmpi slt, %646, %655 : vector<1x512xi32>
    %657 = arith.andi %654, %656 : vector<1x512xi1>
    %cst_266 = arith.constant 0.000000e+00 : f32
    %658 = vector.shape_cast %657 : vector<1x512xi1> to vector<1x512xi1>
    %659 = vector.broadcast %658 : vector<1x512xi1> to vector<16x512xi1>
    %660 = vector.broadcast %cst_266 : f32 to vector<16x512xf32>
    %661 = arith.select %659, %642, %660 : vector<16x512xi1>, vector<16x512xf32>
    %c256 = arith.constant 256 : index
    %c0_267 = arith.constant 0 : index
    %662 = vector.load %arg5[%c256, %c0_267] : memref<288x16xbf16, #tpu.memory_space<vmem>>, vector<32x16xbf16>
    %663 = arith.truncf %661 : vector<16x512xf32> to vector<16x512xbf16>
    %cst_268 = arith.constant dense<0.000000e+00> : vector<32x512xf32>
    %664 = tpu.matmul %662, %663, %cst_268 {dimension_numbers = #tpu.dot_dimension_numbers<[1], [0], [0], [1], [0, 0, 1, 1], [], []>} : vector<32x16xbf16>, vector<16x512xbf16>, vector<32x512xf32> -> vector<32x512xf32>
    %665 = arith.addf %641, %664 : vector<32x512xf32>
    %c0_269 = arith.constant 0 : index
    %c0_270 = arith.constant 0 : index
    %666 = vector.load %arg6[%c0_269, %c0_270] : memref<32x1xf32, #tpu.memory_space<vmem>>, vector<32x1xf32>
    %667 = vector.broadcast %666 : vector<32x1xf32> to vector<32x512xf32>
    %668 = arith.addf %665, %667 : vector<32x512xf32>
    %cst_271 = arith.constant 0.000000e+00 : f32
    %669 = vector.broadcast %cst_271 : f32 to vector<32x512xf32>
    %670 = arith.cmpf oge, %668, %669 : vector<32x512xf32>
    %cst_272 = arith.constant 2.000000e-01 : f32
    %671 = vector.broadcast %cst_272 : f32 to vector<32x512xf32>
    %672 = arith.mulf %671, %668 : vector<32x512xf32>
    %673 = arith.select %670, %668, %672 : vector<32x512xi1>, vector<32x512xf32>
    %c0_273 = arith.constant 0 : index
    %c0_274 = arith.constant 0 : index
    %674 = vector.load %arg7[%c0_273, %c0_274] : memref<1024x32xbf16, #tpu.memory_space<vmem>>, vector<64x32xbf16>
    %675 = arith.truncf %673 : vector<32x512xf32> to vector<32x512xbf16>
    %cst_275 = arith.constant dense<0.000000e+00> : vector<64x512xf32>
    %676 = tpu.matmul %674, %675, %cst_275 {dimension_numbers = #tpu.dot_dimension_numbers<[1], [0], [0], [1], [0, 0, 1, 1], [], []>} : vector<64x32xbf16>, vector<32x512xbf16>, vector<64x512xf32> -> vector<64x512xf32>
    %c508_i32 = arith.constant 508 : i32
    %677 = tpu.dynamic_rotate %673 by %c508_i32 dim 1 : vector<32x512xf32>, i32 -> vector<32x512xf32>
    %c64_276 = arith.constant 64 : index
    %c0_277 = arith.constant 0 : index
    %678 = vector.load %arg7[%c64_276, %c0_277] : memref<1024x32xbf16, #tpu.memory_space<vmem>>, vector<64x32xbf16>
    %679 = arith.truncf %677 : vector<32x512xf32> to vector<32x512xbf16>
    %cst_278 = arith.constant dense<0.000000e+00> : vector<64x512xf32>
    %680 = tpu.matmul %678, %679, %cst_278 {dimension_numbers = #tpu.dot_dimension_numbers<[1], [0], [0], [1], [0, 0, 1, 1], [], []>} : vector<64x32xbf16>, vector<32x512xbf16>, vector<64x512xf32> -> vector<64x512xf32>
    %681 = arith.addf %676, %680 : vector<64x512xf32>
    %c504_i32 = arith.constant 504 : i32
    %682 = tpu.dynamic_rotate %673 by %c504_i32 dim 1 : vector<32x512xf32>, i32 -> vector<32x512xf32>
    %c128_279 = arith.constant 128 : index
    %c0_280 = arith.constant 0 : index
    %683 = vector.load %arg7[%c128_279, %c0_280] : memref<1024x32xbf16, #tpu.memory_space<vmem>>, vector<64x32xbf16>
    %684 = arith.truncf %682 : vector<32x512xf32> to vector<32x512xbf16>
    %cst_281 = arith.constant dense<0.000000e+00> : vector<64x512xf32>
    %685 = tpu.matmul %683, %684, %cst_281 {dimension_numbers = #tpu.dot_dimension_numbers<[1], [0], [0], [1], [0, 0, 1, 1], [], []>} : vector<64x32xbf16>, vector<32x512xbf16>, vector<64x512xf32> -> vector<64x512xf32>
    %686 = arith.addf %681, %685 : vector<64x512xf32>
    %c500_i32 = arith.constant 500 : i32
    %687 = tpu.dynamic_rotate %673 by %c500_i32 dim 1 : vector<32x512xf32>, i32 -> vector<32x512xf32>
    %c192_282 = arith.constant 192 : index
    %c0_283 = arith.constant 0 : index
    %688 = vector.load %arg7[%c192_282, %c0_283] : memref<1024x32xbf16, #tpu.memory_space<vmem>>, vector<64x32xbf16>
    %689 = arith.truncf %687 : vector<32x512xf32> to vector<32x512xbf16>
    %cst_284 = arith.constant dense<0.000000e+00> : vector<64x512xf32>
    %690 = tpu.matmul %688, %689, %cst_284 {dimension_numbers = #tpu.dot_dimension_numbers<[1], [0], [0], [1], [0, 0, 1, 1], [], []>} : vector<64x32xbf16>, vector<32x512xbf16>, vector<64x512xf32> -> vector<64x512xf32>
    %691 = arith.addf %686, %690 : vector<64x512xf32>
    %c448_i32 = arith.constant 448 : i32
    %692 = tpu.dynamic_rotate %673 by %c448_i32 dim 1 : vector<32x512xf32>, i32 -> vector<32x512xf32>
    %c256_285 = arith.constant 256 : index
    %c0_286 = arith.constant 0 : index
    %693 = vector.load %arg7[%c256_285, %c0_286] : memref<1024x32xbf16, #tpu.memory_space<vmem>>, vector<64x32xbf16>
    %694 = arith.truncf %692 : vector<32x512xf32> to vector<32x512xbf16>
    %cst_287 = arith.constant dense<0.000000e+00> : vector<64x512xf32>
    %695 = tpu.matmul %693, %694, %cst_287 {dimension_numbers = #tpu.dot_dimension_numbers<[1], [0], [0], [1], [0, 0, 1, 1], [], []>} : vector<64x32xbf16>, vector<32x512xbf16>, vector<64x512xf32> -> vector<64x512xf32>
    %696 = arith.addf %691, %695 : vector<64x512xf32>
    %c444_i32 = arith.constant 444 : i32
    %697 = tpu.dynamic_rotate %673 by %c444_i32 dim 1 : vector<32x512xf32>, i32 -> vector<32x512xf32>
    %c320 = arith.constant 320 : index
    %c0_288 = arith.constant 0 : index
    %698 = vector.load %arg7[%c320, %c0_288] : memref<1024x32xbf16, #tpu.memory_space<vmem>>, vector<64x32xbf16>
    %699 = arith.truncf %697 : vector<32x512xf32> to vector<32x512xbf16>
    %cst_289 = arith.constant dense<0.000000e+00> : vector<64x512xf32>
    %700 = tpu.matmul %698, %699, %cst_289 {dimension_numbers = #tpu.dot_dimension_numbers<[1], [0], [0], [1], [0, 0, 1, 1], [], []>} : vector<64x32xbf16>, vector<32x512xbf16>, vector<64x512xf32> -> vector<64x512xf32>
    %701 = arith.addf %696, %700 : vector<64x512xf32>
    %c440_i32 = arith.constant 440 : i32
    %702 = tpu.dynamic_rotate %673 by %c440_i32 dim 1 : vector<32x512xf32>, i32 -> vector<32x512xf32>
    %c384 = arith.constant 384 : index
    %c0_290 = arith.constant 0 : index
    %703 = vector.load %arg7[%c384, %c0_290] : memref<1024x32xbf16, #tpu.memory_space<vmem>>, vector<64x32xbf16>
    %704 = arith.truncf %702 : vector<32x512xf32> to vector<32x512xbf16>
    %cst_291 = arith.constant dense<0.000000e+00> : vector<64x512xf32>
    %705 = tpu.matmul %703, %704, %cst_291 {dimension_numbers = #tpu.dot_dimension_numbers<[1], [0], [0], [1], [0, 0, 1, 1], [], []>} : vector<64x32xbf16>, vector<32x512xbf16>, vector<64x512xf32> -> vector<64x512xf32>
    %706 = arith.addf %701, %705 : vector<64x512xf32>
    %c436_i32 = arith.constant 436 : i32
    %707 = tpu.dynamic_rotate %673 by %c436_i32 dim 1 : vector<32x512xf32>, i32 -> vector<32x512xf32>
    %c448 = arith.constant 448 : index
    %c0_292 = arith.constant 0 : index
    %708 = vector.load %arg7[%c448, %c0_292] : memref<1024x32xbf16, #tpu.memory_space<vmem>>, vector<64x32xbf16>
    %709 = arith.truncf %707 : vector<32x512xf32> to vector<32x512xbf16>
    %cst_293 = arith.constant dense<0.000000e+00> : vector<64x512xf32>
    %710 = tpu.matmul %708, %709, %cst_293 {dimension_numbers = #tpu.dot_dimension_numbers<[1], [0], [0], [1], [0, 0, 1, 1], [], []>} : vector<64x32xbf16>, vector<32x512xbf16>, vector<64x512xf32> -> vector<64x512xf32>
    %711 = arith.addf %706, %710 : vector<64x512xf32>
    %c384_i32 = arith.constant 384 : i32
    %712 = tpu.dynamic_rotate %673 by %c384_i32 dim 1 : vector<32x512xf32>, i32 -> vector<32x512xf32>
    %c512 = arith.constant 512 : index
    %c0_294 = arith.constant 0 : index
    %713 = vector.load %arg7[%c512, %c0_294] : memref<1024x32xbf16, #tpu.memory_space<vmem>>, vector<64x32xbf16>
    %714 = arith.truncf %712 : vector<32x512xf32> to vector<32x512xbf16>
    %cst_295 = arith.constant dense<0.000000e+00> : vector<64x512xf32>
    %715 = tpu.matmul %713, %714, %cst_295 {dimension_numbers = #tpu.dot_dimension_numbers<[1], [0], [0], [1], [0, 0, 1, 1], [], []>} : vector<64x32xbf16>, vector<32x512xbf16>, vector<64x512xf32> -> vector<64x512xf32>
    %716 = arith.addf %711, %715 : vector<64x512xf32>
    %c380_i32 = arith.constant 380 : i32
    %717 = tpu.dynamic_rotate %673 by %c380_i32 dim 1 : vector<32x512xf32>, i32 -> vector<32x512xf32>
    %c576 = arith.constant 576 : index
    %c0_296 = arith.constant 0 : index
    %718 = vector.load %arg7[%c576, %c0_296] : memref<1024x32xbf16, #tpu.memory_space<vmem>>, vector<64x32xbf16>
    %719 = arith.truncf %717 : vector<32x512xf32> to vector<32x512xbf16>
    %cst_297 = arith.constant dense<0.000000e+00> : vector<64x512xf32>
    %720 = tpu.matmul %718, %719, %cst_297 {dimension_numbers = #tpu.dot_dimension_numbers<[1], [0], [0], [1], [0, 0, 1, 1], [], []>} : vector<64x32xbf16>, vector<32x512xbf16>, vector<64x512xf32> -> vector<64x512xf32>
    %721 = arith.addf %716, %720 : vector<64x512xf32>
    %c376_i32 = arith.constant 376 : i32
    %722 = tpu.dynamic_rotate %673 by %c376_i32 dim 1 : vector<32x512xf32>, i32 -> vector<32x512xf32>
    %c640 = arith.constant 640 : index
    %c0_298 = arith.constant 0 : index
    %723 = vector.load %arg7[%c640, %c0_298] : memref<1024x32xbf16, #tpu.memory_space<vmem>>, vector<64x32xbf16>
    %724 = arith.truncf %722 : vector<32x512xf32> to vector<32x512xbf16>
    %cst_299 = arith.constant dense<0.000000e+00> : vector<64x512xf32>
    %725 = tpu.matmul %723, %724, %cst_299 {dimension_numbers = #tpu.dot_dimension_numbers<[1], [0], [0], [1], [0, 0, 1, 1], [], []>} : vector<64x32xbf16>, vector<32x512xbf16>, vector<64x512xf32> -> vector<64x512xf32>
    %726 = arith.addf %721, %725 : vector<64x512xf32>
    %c372_i32 = arith.constant 372 : i32
    %727 = tpu.dynamic_rotate %673 by %c372_i32 dim 1 : vector<32x512xf32>, i32 -> vector<32x512xf32>
    %c704 = arith.constant 704 : index
    %c0_300 = arith.constant 0 : index
    %728 = vector.load %arg7[%c704, %c0_300] : memref<1024x32xbf16, #tpu.memory_space<vmem>>, vector<64x32xbf16>
    %729 = arith.truncf %727 : vector<32x512xf32> to vector<32x512xbf16>
    %cst_301 = arith.constant dense<0.000000e+00> : vector<64x512xf32>
    %730 = tpu.matmul %728, %729, %cst_301 {dimension_numbers = #tpu.dot_dimension_numbers<[1], [0], [0], [1], [0, 0, 1, 1], [], []>} : vector<64x32xbf16>, vector<32x512xbf16>, vector<64x512xf32> -> vector<64x512xf32>
    %731 = arith.addf %726, %730 : vector<64x512xf32>
    %c320_i32 = arith.constant 320 : i32
    %732 = tpu.dynamic_rotate %673 by %c320_i32 dim 1 : vector<32x512xf32>, i32 -> vector<32x512xf32>
    %c768 = arith.constant 768 : index
    %c0_302 = arith.constant 0 : index
    %733 = vector.load %arg7[%c768, %c0_302] : memref<1024x32xbf16, #tpu.memory_space<vmem>>, vector<64x32xbf16>
    %734 = arith.truncf %732 : vector<32x512xf32> to vector<32x512xbf16>
    %cst_303 = arith.constant dense<0.000000e+00> : vector<64x512xf32>
    %735 = tpu.matmul %733, %734, %cst_303 {dimension_numbers = #tpu.dot_dimension_numbers<[1], [0], [0], [1], [0, 0, 1, 1], [], []>} : vector<64x32xbf16>, vector<32x512xbf16>, vector<64x512xf32> -> vector<64x512xf32>
    %736 = arith.addf %731, %735 : vector<64x512xf32>
    %c316_i32 = arith.constant 316 : i32
    %737 = tpu.dynamic_rotate %673 by %c316_i32 dim 1 : vector<32x512xf32>, i32 -> vector<32x512xf32>
    %c832 = arith.constant 832 : index
    %c0_304 = arith.constant 0 : index
    %738 = vector.load %arg7[%c832, %c0_304] : memref<1024x32xbf16, #tpu.memory_space<vmem>>, vector<64x32xbf16>
    %739 = arith.truncf %737 : vector<32x512xf32> to vector<32x512xbf16>
    %cst_305 = arith.constant dense<0.000000e+00> : vector<64x512xf32>
    %740 = tpu.matmul %738, %739, %cst_305 {dimension_numbers = #tpu.dot_dimension_numbers<[1], [0], [0], [1], [0, 0, 1, 1], [], []>} : vector<64x32xbf16>, vector<32x512xbf16>, vector<64x512xf32> -> vector<64x512xf32>
    %741 = arith.addf %736, %740 : vector<64x512xf32>
    %c312_i32 = arith.constant 312 : i32
    %742 = tpu.dynamic_rotate %673 by %c312_i32 dim 1 : vector<32x512xf32>, i32 -> vector<32x512xf32>
    %c896 = arith.constant 896 : index
    %c0_306 = arith.constant 0 : index
    %743 = vector.load %arg7[%c896, %c0_306] : memref<1024x32xbf16, #tpu.memory_space<vmem>>, vector<64x32xbf16>
    %744 = arith.truncf %742 : vector<32x512xf32> to vector<32x512xbf16>
    %cst_307 = arith.constant dense<0.000000e+00> : vector<64x512xf32>
    %745 = tpu.matmul %743, %744, %cst_307 {dimension_numbers = #tpu.dot_dimension_numbers<[1], [0], [0], [1], [0, 0, 1, 1], [], []>} : vector<64x32xbf16>, vector<32x512xbf16>, vector<64x512xf32> -> vector<64x512xf32>
    %746 = arith.addf %741, %745 : vector<64x512xf32>
    %c308_i32 = arith.constant 308 : i32
    %747 = tpu.dynamic_rotate %673 by %c308_i32 dim 1 : vector<32x512xf32>, i32 -> vector<32x512xf32>
    %c960 = arith.constant 960 : index
    %c0_308 = arith.constant 0 : index
    %748 = vector.load %arg7[%c960, %c0_308] : memref<1024x32xbf16, #tpu.memory_space<vmem>>, vector<64x32xbf16>
    %749 = arith.truncf %747 : vector<32x512xf32> to vector<32x512xbf16>
    %cst_309 = arith.constant dense<0.000000e+00> : vector<64x512xf32>
    %750 = tpu.matmul %748, %749, %cst_309 {dimension_numbers = #tpu.dot_dimension_numbers<[1], [0], [0], [1], [0, 0, 1, 1], [], []>} : vector<64x32xbf16>, vector<32x512xbf16>, vector<64x512xf32> -> vector<64x512xf32>
    %751 = arith.addf %746, %750 : vector<64x512xf32>
    %752 = tpu.iota {dimensions = array<i32: 0>} : vector<512x2xi32>
    %753 = tpu.iota {dimensions = array<i32: 1>} : vector<512x2xi32>
    %c256_i32 = arith.constant 256 : i32
    %754 = vector.broadcast %c256_i32 : i32 to vector<512x2xi32>
    %755 = arith.muli %753, %754 : vector<512x2xi32>
    %756 = arith.cmpi eq, %752, %755 : vector<512x2xi32>
    %757 = arith.extui %756 : vector<512x2xi1> to vector<512x2xi32>
    %758 = arith.sitofp %757 : vector<512x2xi32> to vector<512x2xf32>
    %cst_310 = arith.constant dense<0.000000e+00> : vector<64x2xf32>
    %759 = tpu.matmul %751, %758, %cst_310 {dimension_numbers = #tpu.dot_dimension_numbers<[1], [0], [0], [1], [0, 0, 1, 1], [], []>} : vector<64x512xf32>, vector<512x2xf32>, vector<64x2xf32> -> vector<64x2xf32>
    %c0_311 = arith.constant 0 : index
    %c0_312 = arith.constant 0 : index
    %760 = vector.load %arg8[%c0_311, %c0_312] : memref<64x1xf32, #tpu.memory_space<vmem>>, vector<64x1xf32>
    %761 = vector.broadcast %760 : vector<64x1xf32> to vector<64x2xf32>
    %762 = arith.addf %759, %761 : vector<64x2xf32>
    %cst_313 = arith.constant 0.000000e+00 : f32
    %763 = vector.broadcast %cst_313 : f32 to vector<64x2xf32>
    %764 = arith.cmpf oge, %762, %763 : vector<64x2xf32>
    %cst_314 = arith.constant 2.000000e-01 : f32
    %765 = vector.broadcast %cst_314 : f32 to vector<64x2xf32>
    %766 = arith.mulf %765, %762 : vector<64x2xf32>
    %767 = arith.select %764, %762, %766 : vector<64x2xi1>, vector<64x2xf32>
    %c0_315 = arith.constant 0 : index
    %c0_316 = arith.constant 0 : index
    %768 = vector.load %arg9[%c0_315, %c0_316] : memref<64x1xf32, #tpu.memory_space<vmem>>, vector<64x1xf32>
    %769 = vector.broadcast %768 : vector<64x1xf32> to vector<64x2xf32>
    %770 = arith.mulf %769, %767 : vector<64x2xf32>
    %cst_317 = arith.constant dense<0.000000e+00> : vector<2xf32>
    %771 = vector.multi_reduction <add>, %770, %cst_317 [0] : vector<64x2xf32> to vector<2xf32>
    %772 = vector.shape_cast %771 : vector<2xf32> to vector<1x2xf32>
    %c0_318 = arith.constant 0 : index
    %c0_319 = arith.constant 0 : index
    %773 = vector.load %arg10[%c0_318, %c0_319] : memref<1x1xf32, #tpu.memory_space<vmem>>, vector<1x1xf32>
    %774 = vector.broadcast %773 : vector<1x1xf32> to vector<1x2xf32>
    %775 = arith.addf %772, %774 : vector<1x2xf32>
    %cst_320 = arith.constant 0.000000e+00 : f32
    %776 = vector.broadcast %cst_320 : f32 to vector<1x2xf32>
    %777 = arith.subf %776, %775 : vector<1x2xf32>
    %cst_321 = arith.constant 0.000000e+00 : f32
    %778 = vector.broadcast %cst_321 : f32 to vector<1x2xf32>
    %779 = arith.maximumf %777, %778 : vector<1x2xf32>
    %780 = math.absf %777 : vector<1x2xf32>
    %cst_322 = arith.constant 0.000000e+00 : f32
    %781 = vector.broadcast %cst_322 : f32 to vector<1x2xf32>
    %782 = arith.subf %781, %780 : vector<1x2xf32>
    %783 = math.exp %782 : vector<1x2xf32>
    %cst_323 = arith.constant 1.000000e+00 : f32
    %784 = vector.broadcast %cst_323 : f32 to vector<1x2xf32>
    %785 = arith.addf %784, %783 : vector<1x2xf32>
    %786 = math.log %785 : vector<1x2xf32>
    %787 = arith.addf %779, %786 : vector<1x2xf32>
    %788 = vector.shape_cast %787 : vector<1x2xf32> to vector<1x1x2xf32>
    %cst_324 = arith.constant dense<0.000000e+00> : vector<1xf32>
    %789 = vector.multi_reduction <add>, %788, %cst_324 [1, 2] : vector<1x1x2xf32> to vector<1xf32>
    %790 = vector.shape_cast %789 : vector<1xf32> to vector<1x1x1xf32>
    %791 = vector.extract %790[0, 0, 0] : f32 from vector<1x1x1xf32>
    %cst_325 = arith.constant 2.000000e+00 : f32
    %792 = arith.divf %791, %cst_325 : f32
    %793 = vector.broadcast %792 : f32 to vector<1x1xf32>
    %c0_326 = arith.constant 0 : index
    %c0_327 = arith.constant 0 : index
    %794 = vector.load %arg11[%c0_326, %c0_327] : memref<1x1xf32, #tpu.memory_space<vmem>>, vector<1x1xf32>
    tpu.vector_store %arg11[%c0_326, %c0_327], %793 {strides = array<i32>} : memref<1x1xf32, #tpu.memory_space<vmem>>, vector<1x1xf32>,
    return
  }
}

</mosaic_0001>

<bundles_post_ra>
// kernel: adversarial_forward.1
= control target key start
LH: loop header
LB: loop body
LE: loop exit
PB: predicated region body
PF: predicated region fallthrough
CT: control target
= control target key end

     0   :  { %s14682_s0 = inlined_call_operand.vmem [shape: f32[8,512], index: 0, kind: input, shape index: {}]   ;;  %s14683_s1 = inlined_call_operand.vmem [shape: bf16[72,8], index: 1, kind: input, shape index: {}]   ;;  %s14684_s2 = inlined_call_operand.vmem [shape: f32[8,1], index: 2, kind: input, shape index: {}]   ;;  %s14685_s3 = inlined_call_operand.vmem [shape: bf16[144,8], index: 3, kind: input, shape index: {}]   ;;  %s14686_s4 = inlined_call_operand.vmem [shape: f32[16,1], index: 4, kind: input, shape index: {}]   ;;  %s14687_s5 = inlined_call_operand.vmem [shape: bf16[288,16], index: 5, kind: input, shape index: {}]   ;;  %s14688_s6 = inlined_call_operand.vmem [shape: f32[32,1], index: 6, kind: input, shape index: {}]   ;;  %s14689_s7 = inlined_call_operand.vmem [shape: bf16[1024,32], index: 7, kind: input, shape index: {}]   ;;  %s14690_s8 = inlined_call_operand.vmem [shape: f32[64,1], index: 8, kind: input, shape index: {}]   ;;  %s14691_s9 = inlined_call_operand.vmem [shape: f32[64,1], index: 9, kind: input, shape index: {}]   ;;  %s14692_s10 = inlined_call_operand.<no memory space> [shape: f32[1,1], index: 10, kind: input, shape index: {}]   ;;  %s14693_s11 = inlined_call_operand.hbm [shape: f32[1,1], index: 11, kind: output, shape index: {}]  }
   0x1   :  { %v16_v0 = vstv %s14692_s10 }
   0x2   :  { %17 = vst [vmem:[#allocation2] sm:$0x1] %v16_v0 }
   0x3   :  { %v11214_v1 = vld [vmem:[%s14682_s0] sm:$0xff]  ;;  %v11219_v2 = vld [vmem:[%s14682_s0 + $0x8] sm:$0xff]  ;;  %v11224_v3 = vld [vmem:[%s14682_s0 + $0x10] sm:$0xff]  ;;  %s11122_s26 = smov 16   ;;  %s11123_s27 = smov 17   ;;  %v14720_v7 = vmov 0  }
   0x4   :  { %v10401_v4 = vpack.i.bf16 %v11219_v2, %v11214_v1  ;;  %v11231_v5 = vld [vmem:[%s14682_s0 + $0x18] sm:$0xff]  ;;  %224 = vmatprep.mubr.bf16.mxu0 %v14720_v7  ;;  %265 = vmatprep.mubr.bf16.mxu1 %v14720_v7  ;;  %s11125_s0 = smov 15   ;;  %s11126_s28 = smov 1   ;;  %v1371_v8 = vld [vmem:[%s14684_s2] sm:$0xff] }
   0x5   :  { %v10406_v6 = vpack.i.bf16 %v11231_v5, %v11224_v3  ;;  %10481 = vset.pattern.permute.xlu0 %v14720_v7  ;;  %10562 = vset.pattern.permute.xlu1 %v14720_v7  ;;  %s11127_s29 = smov 127   ;;  %s11128_s30 = smov 113  }
   0x6   :  { %10402 = vrot.lane.b32.xlu0 %v10401_v4, %s11122_s26  ;;  %10412 = vrot.lane.b32.xlu1 %v10401_v4, %s11123_s27  ;;  %s11129_s12 = smov 112   ;;  %s11130_s13 = smov 111  }
   0xa   :  { %10407 = vrot.lane.b32.xlu0 %v10406_v6, %s11122_s26  ;;  %10417 = vrot.lane.b32.xlu1 %v10406_v6, %s11123_s27 }
   0xe   :  { %10427 = vrot.lane.b32.xlu1 %v10406_v6, %s11125_s0  ;;  %10422 = vrot.lane.b32.xlu0 %v10401_v4, %s11125_s0 }
  0x12   :  { %10437 = vrot.lane.b32.xlu1 %v10406_v6, %s11126_s28  ;;  %10432 = vrot.lane.b32.xlu0 %v10401_v4, %s11126_s28 }
  0x16   :  { %10447 = vrot.lane.b32.xlu1 %v10406_v6, %s11127_s29  ;;  %10442 = vrot.lane.b32.xlu0 %v10401_v4, %s11127_s29 }
  0x1a   :  { %10457 = vrot.lane.b32.xlu1 %v10406_v6, %s11128_s30  ;;  %10452 = vrot.lane.b32.xlu0 %v10401_v4, %s11128_s30 }
  0x1e   :  { %10467 = vrot.lane.b32.xlu1 %v10406_v6, %s11129_s12  ;;  %10462 = vrot.lane.b32.xlu0 %v10401_v4, %s11129_s12 }
  0x22   :  { %10477 = vrot.lane.b32.xlu1 %v10406_v6, %s11130_s13  ;;  %10472 = vrot.lane.b32.xlu0 %v10401_v4, %s11130_s13 }
  0x26   :  { %1374 = vperm.xlu0 %10481, %v1371_v8  }
  0x27   :  { %18 = vsyncpa [#allocation4], 0  ;;  %v14719_v9 = vlaneseq  ;;  %v14784_v38 = vmov 0  ;;  %v14788_v46 = vmov 0  ;;  %v14790_v47 = vmov 0  ;;  %s11132_s17 = smov 34  }
  0x28   :  { %v14792_v50 = vmov 0  ;;  %v14795_v55 = vmov 0  ;;  %v14797_v60 = vmov 0  ;;  %v14800_v63 = vmov 0  ;;  %s11133_s18 = smov 30  }
  0x29   :  { %v11259_v10 = vand.u32 127, %v14719_v9  ;;  %vm14802_vm0 = vcmask 1043456  }
  0x2b   :  { %v44_v11 = vadd.s32 128, %v11259_v10  ;;  %v46_v12 = vadd.s32 384, %v11259_v10  ;;  %v45_v13 = vadd.s32 256, %v11259_v10  ;;  %v47_v14 = vshra.s32 %v11259_v10, 4 }
  0x2c   :  { %v11278_v24 = vand.u32 15, %v11259_v10  ;;  %vm14700_vm3 = vcmp.lt.s32.totalorder %v11259_v10, 17  ;;  %vm14696_vm6 = vcmp.lt.s32.totalorder %v11259_v10, 16 }
  0x2d   :  { %v48_v15 = vshra.s32 %v44_v11, 4  ;;  %v50_v16 = vshra.s32 %v46_v12, 4  ;;  %v49_v17 = vshra.s32 %v45_v13, 4  ;;  %v11265_v18 = vand.u32 15, %v47_v14 }
  0x2e   :  { %v11269_v20 = vand.u32 15, %v44_v11  ;;  %v11271_v21 = vand.u32 15, %v46_v12  ;;  %14782 = vst [vmem:[#allocation12_spill] sm:$0xff] %v11278_v24  ;;  %v11280_v25 = vand.u32 15, %v45_v13  ;;  %v11293_v32 = vadd.s32 4294967295, %v11278_v24 }
  0x2f   :  { %14776 = vst [vmem:[#allocation6_spill] sm:$0xff] %v11265_v18  ;;  %v11267_v19 = vand.u32 15, %v48_v15  ;;  %v11273_v22 = vand.u32 15, %v50_v16  ;;  %v11275_v23 = vand.u32 15, %v49_v17  ;;  %v76_v26 = vadd.s32 4294967295, %v11265_v18 }
  0x30   :  { %14778 = vst [vmem:[#allocation8_spill] sm:$0xff] %v11269_v20  ;;  %14779 = vst [vmem:[#allocation9_spill] sm:$0xff] %v11271_v21  ;;  %v11285_v28 = vadd.s32 4294967295, %v11269_v20  ;;  %v11288_v29 = vadd.s32 4294967295, %v11271_v21  ;;  %v11296_v33 = vadd.s32 4294967295, %v11280_v25  ;;  %v11299_v34 = vadd.s32 1, %v11269_v20 }
  0x31   :  { %14777 = vst [vmem:[#allocation7_spill] sm:$0xff] %v11267_v19  ;;  %14780 = vst [vmem:[#allocation10_spill] sm:$0xff] %v11273_v22  ;;  %v77_v27 = vadd.s32 4294967295, %v11267_v19  ;;  %v79_v30 = vadd.s32 4294967295, %v11273_v22  ;;  %v78_v31 = vadd.s32 4294967295, %v11275_v23  ;;  %vm84_vm1 = vcmp.ge.s32.totalorder %v76_v26, 0 }
  0x32   :  { %14781 = vst [vmem:[#allocation11_spill] sm:$0xff] %v11275_v23  ;;  %14783 = vst [vmem:[#allocation13_spill] sm:$0xff] %v11280_v25  ;;  %vm88_vm2 = vcmp.lt.s32.totalorder %v76_v26, 16  ;;  %v11302_v35 = vadd.s32 1, %v11271_v21  ;;  %vm14694_vm7 = vcmp.ge.s32.totalorder %v11285_v28, 0  ;;  %v11309_v36 = vadd.s32 1, %v11278_v24 }
  0x33   :  { %vm85_vm4 = vcmp.ge.s32.totalorder %v77_v27, 0  ;;  %vm89_vm5 = vcmp.lt.s32.totalorder %v77_v27, 16  ;;  %v11312_v37 = vadd.s32 1, %v11280_v25  ;;  %vm87_vm9 = vcmp.ge.s32.totalorder %v79_v30, 0  ;;  %vm11314_vm11 = vmand %vm84_vm1, %vm88_vm2 }
  0x34   :  { %vm91_vm10 = vcmp.lt.s32.totalorder %v79_v30, 16  ;;  %v14785_v38 = vsel %vm11314_vm11, 4294967295, %v14784_v38  ;;  %vm86_vm12 = vcmp.ge.s32.totalorder %v78_v31, 0  ;;  %vm14695_vm13 = vcmp.ge.s32.totalorder %v11293_v32, 0  ;;  %vm11321_vm14 = vmand %vm85_vm4, %vm89_vm5 }
  0x35   :  { %vm90_vm15 = vcmp.lt.s32.totalorder %v78_v31, 16  ;;  %vm11334_vm2 = vmand %vm11321_vm14, %vm14694_vm7  ;;  %vm14697_vm5 = vcmp.lt.s32.totalorder %v11309_v36, 16  ;;  %v14807_v26 = vmov 0  ;;  %vm14812_vm1 = vcmp.ge.s32.totalorder %v11267_v19, 0 }
  0x36   :  { %v14789_v46 = vsel %vm11334_vm2, 4294967295, %v14788_v46  ;;  %vm11340_vm4 = vmand %vm87_vm9, %vm91_vm10 }
  0x37   :  { %v14791_v47 = vsel %vm11340_vm4, 4294967295, %v14790_v47  ;;  %vm11354_vm9 = vmand %vm86_vm12, %vm90_vm15  ;;  %vm14794_vm12 = vcmp.ge.s32.totalorder %v11288_v29, 0 }
  0x38   :  { %v14793_v50 = vsel %vm11354_vm9, 4294967295, %v14792_v50  ;;  %vm11369_vm15 = vmand %vm11340_vm4, %vm14794_vm12  ;;  %vm14799_vm12 = vcmp.ge.s32.totalorder %v11296_v33, 0 }
  0x39   :  { %v14796_v55 = vsel %vm11369_vm15, 4294967295, %v14795_v55  ;;  %vm11380_vm8 = vmand %vm11314_vm11, %vm14695_vm13 }
  0x3a   :  { %v14798_v60 = vsel %vm11380_vm8, 4294967295, %v14797_v60  ;;  %vm11388_vm7 = vmand %vm11354_vm9, %vm14799_vm12  ;;  %vm14803_vm12 = vcmp.lt.s32.totalorder %v11299_v34, 16 }
  0x3b   :  { %v14801_v63 = vsel %vm11388_vm7, 4294967295, %v14800_v63  ;;  %vm11407_vm13 = vmand %vm11321_vm14, %vm14803_vm12 }
  0x78   :  { %v10403_v39 = vpop.permute.xlu0 %10402  ;;  %v11319_v40 = vpop.permute.xlu1 %10412 }
  0x79   :  { %v10405_v42 = vunpack.i.h.bf16 %v10403_v39  ;;  %v10404_v43 = vunpack.i.l.bf16 %v10403_v39  ;;  %v10415_v44 = vunpack.i.h.bf16 %v11319_v40  ;;  %v10414_v45 = vunpack.i.l.bf16 %v11319_v40 }
  0x7a   :  { %v14809_v40 = vmov 0 }
  0x7b   :  { %v74_v48 = vsel %vm14700_vm3, %v10414_v45, %v10415_v44  ;;  %v140_v49 = vsel %vm14696_vm6, %v10404_v43, %v10405_v42 }
  0x7c   :  { %v10408_v51 = vpop.permute.xlu0 %10407  ;;  %v167_v52 = vsel %vm11321_vm14, %v140_v49, 0.0  ;;  %v10418_v53 = vpop.permute.xlu1 %10417  ;;  %v121_v54 = vsel %vm11334_vm2, %v74_v48, 0.0  ;;  %v14813_v49 = vmov 0 }
  0x7d   :  { %v10410_v56 = vunpack.i.h.bf16 %v10408_v51  ;;  %v10409_v57 = vunpack.i.l.bf16 %v10408_v51  ;;  %v172_v58 = vpack.c.bf16 %v167_v52, %v167_v52  ;;  %v10420_v59 = vunpack.i.h.bf16 %v10418_v53 }
  0x7e   :  { %v10419_v61 = vunpack.i.l.bf16 %v10418_v53  ;;  %v126_v62 = vpack.c.bf16 %v121_v54, %v121_v54 }
  0x7f   :  { %8962 = vmatprep.subr.msk.bf16.mxu0 %vm14802_vm0, %v172_v58  ;;  %v138_v0 = vsel %vm14696_vm6, %v10409_v57, %v10410_v56  ;;  %v141_v4 = vsel %vm14696_vm6, %v10410_v56, %v10404_v43  ;;  %v139_v6 = vsel %vm14696_vm6, %v10405_v42, %v10409_v57  ;;  %v75_v8 = vsel %vm14700_vm3, %v10420_v59, %v10414_v45  ;;  %vm11433_vm6 = vmand %vm11314_vm11, %vm14697_vm5  ;;  %v170_v56 = vld [vmem:[%s14683_s1 + $0x4] sm:$0xf] }
  0x80   :  { %v72_v12 = vsel %vm14700_vm3, %v10419_v61, %v10420_v59  ;;  %v169_v13 = vsel %vm11340_vm4, %v138_v0, 0.0  ;;  %v166_v14 = vsel %vm11314_vm11, %v141_v4, 0.0  ;;  %v168_v15 = vsel %vm11354_vm9, %v139_v6, 0.0  ;;  %v10428_v16 = vpop.permute.xlu1 %10427  ;;  %v10423_v17 = vpop.permute.xlu0 %10422 }
  0x81   :  { %vm14806_vm0 = vcmp.lt.s32.totalorder %v11302_v35, 16  ;;  %v174_v27 = vpack.c.bf16 %v169_v13, %v169_v13  ;;  %v171_v30 = vpack.c.bf16 %v166_v14, %v166_v14  ;;  %v173_v31 = vpack.c.bf16 %v168_v15, %v168_v15 }
  0x82   :  { %vm11423_vm12 = vmand %vm11340_vm4, %vm14806_vm0  ;;  %v123_v39 = vsel %vm11369_vm15, %v72_v12, 0.0  ;;  %v14810_v40 = vsel %vm11433_vm6, 4294967295, %v14809_v40  ;;  %v120_v43 = vsel %vm11380_vm8, %v75_v8, 0.0  ;;  %v73_v45 = vsel %vm14700_vm3, %v10415_v44, %v10419_v61 }
  0x83   :  { %v14808_v26 = vsel %vm11423_vm12, 4294967295, %v14807_v26  ;;  %v128_v42 = vpack.c.bf16 %v123_v39, %v123_v39  ;;  %v10430_v48 = vunpack.i.h.bf16 %v10428_v16  ;;  %vm14811_vm0 = vcmp.lt.s32.totalorder %v11267_v19, 16 }
  0x84   :  { %vm11445_vm10 = vmand %vm14812_vm1, %vm14811_vm0  ;;  %vm14815_vm5 = vcmask 1043456   ;;  %v125_v53 = vpack.c.bf16 %v120_v43, %v120_v43  ;;  %v122_v54 = vsel %vm11388_vm7, %v73_v45, 0.0  ;;  %vm14818_vm3 = vcmp.lt.s32.totalorder %v11273_v22, 16  ;;  %v10438_v0 = vpop.permute.xlu1 %10437  ;;  %v10433_v4 = vpop.permute.xlu0 %10432 }
  0x85   :  { %v14814_v49 = vsel %vm11445_vm10, 4294967295, %v14813_v49  ;;  %8964 = vmatprep.subr.msk.bf16.mxu1 %vm14815_vm5, %v174_v27  ;;  %vm14816_vm15 = vmmov %vm14815_vm5  ;;  %vm14819_vm8 = vcmp.ge.s32.totalorder %v11273_v22, 0  ;;  %v14820_v44 = vmov 0  ;;  %v127_v57 = vpack.c.bf16 %v122_v54, %v122_v54 }
  0x86   :  { %v181_v51 = vsel %vm14816_vm15, %v171_v30, 0  ;;  %vm14817_vm2 = vmmov %vm14815_vm5  ;;  %v10429_v58 = vunpack.i.l.bf16 %v10428_v16  ;;  %v10425_v59 = vunpack.i.h.bf16 %v10423_v17  ;;  %v10424_v61 = vunpack.i.l.bf16 %v10423_v17 }
  0x87   :  { %v187_v52 = vsel %vm14817_vm2, %v173_v31, 0  ;;  %vm11458_vm11 = vmand %vm14819_vm8, %vm14818_vm3  ;;  %193 = vmatpush1.bf16.msra.mxu0 %v181_v51  ;;  %vm14822_vm1 = vcmp.lt.s32.totalorder %v11312_v37, 16  ;;  %v14823_v6 = vmov 0  ;;  %v10440_v12 = vunpack.i.h.bf16 %v10438_v0 }
  0x88   :  { %v14821_v44 = vsel %vm11458_vm11, 4294967295, %v14820_v44  ;;  %234 = vmatpush1.bf16.msra.mxu1 %v187_v52  ;;  %vm11469_vm3 = vmand %vm11354_vm9, %vm14822_vm1  ;;  %v10439_v13 = vunpack.i.l.bf16 %v10438_v0  ;;  %v10435_v14 = vunpack.i.h.bf16 %v10433_v4  ;;  %vm14827_vm15 = vcmp.ge.s32.totalorder %v11285_v28, 0 }
  0x89   :  { %v14824_v6 = vsel %vm11469_vm3, 4294967295, %v14823_v6  ;;  %vm14825_vm8 = vmmov %vm14817_vm2  ;;  %8968 = vmatprep.subr.msk.bf16.mxu1 %vm14817_vm2, %v128_v42  ;;  %v14828_v15 = vmov 0  ;;  %vm14831_vm7 = vcmp.lt.s32.totalorder %v11259_v10, 15  ;;  %v10434_v27 = vunpack.i.l.bf16 %v10433_v4 }
  0x8a   :  { %8966 = vmatprep.subr.msk.bf16.mxu0 %vm14825_vm8, %v126_v62  ;;  %vm14826_vm5 = vmmov %vm14817_vm2  ;;  %v380_v62 = vsel %vm14831_vm7, %v10429_v58, %v10430_v48  ;;  %v14834_v30 = vmov 0  ;;  %v14842_v45 = vmov 0  ;;  %v14853_v4 = vmov 0 }
  0x8b   :  { %v278_v8 = vsel %vm14826_vm5, %v125_v53, 0  ;;  %vm11480_vm0 = vmand %vm11445_vm10, %vm14827_vm15  ;;  %vm14836_vm15 = vcmask 64512   ;;  %v415_v39 = vsel %vm11423_vm12, %v380_v62, 0.0  ;;  %v14858_v62 = vmov 0 }
  0x8c   :  { %v14829_v15 = vsel %vm11480_vm0, 4294967295, %v14828_v15  ;;  %vm14830_vm1 = vmmov %vm14817_vm2  ;;  %vm14833_vm2 = vcmp.ge.s32.totalorder %v11288_v29, 0  ;;  %8963 = vmatmul.mubr.msk.bf16.vlgmr.msra.gmra.mrb[0].mxu0 %vm14836_vm15, %v170_v56  ;;  %v420_v52 = vpack.c.bf16 %v415_v39, %v415_v39 }
  0x8d   :  { %v284_v16 = vsel %vm14830_vm1, %v127_v57, 0  ;;  %vm14832_vm8 = vmmov %vm14831_vm7  ;;  %vm14838_vm7 = vcmp.lt.s32.totalorder %v11259_v10, 1  ;;  %290 = vmatpush1.bf16.msra.mxu0 %v278_v8  ;;  %321 = vmatprep.mubr.bf16.mxu0 %v14720_v7 }
  0x8e   :  { %v382_v17 = vsel %vm14832_vm8, %v10424_v61, %v10425_v59  ;;  %vm11493_vm5 = vmand %vm11458_vm11, %vm14833_vm2  ;;  %v531_v42 = vsel %vm14838_vm7, %v10439_v13, %v10440_v12  ;;  %vm14841_vm2 = vcmp.ge.s32.totalorder %v11265_v18, 0 }
  0x8f   :  { %v14835_v30 = vsel %vm11493_vm5, 4294967295, %v14834_v30  ;;  %vm14837_vm9 = vmmov %vm14836_vm15  ;;  %v413_v31 = vsel %vm11407_vm13, %v382_v17, 0.0  ;;  %vm14845_vm15 = vcmp.lt.s32.totalorder %v11275_v23, 16  ;;  %v124_v17 = vld [vmem:[%s14683_s1] sm:$0xf] }
  0x90   :  { %8965 = vmatmul.mubr.msk.bf16.vlgmr.msra.gmra.mrb[0].mxu1 %vm14837_vm9, %v170_v56  ;;  %vm14839_vm1 = vmmov %vm14832_vm8  ;;  %vm14840_vm8 = vcmp.lt.s32.totalorder %v11265_v18, 16  ;;  %v418_v51 = vpack.c.bf16 %v413_v31, %v413_v31 }
  0x91   :  { %v383_v43 = vsel %vm14839_vm1, %v10430_v48, %v10424_v61  ;;  %vm11511_vm4 = vmand %vm14841_vm2, %vm14840_vm8  ;;  %331 = vmatpush1.bf16.msra.mxu1 %v284_v16  ;;  %v14847_v48 = vmov 0  ;;  %362 = vmatprep.mubr.bf16.mxu1 %v14720_v7  ;;  %vm14849_vm8 = vcmp.lt.s32.totalorder %v11259_v10, 15  ;;  %vm14850_vm2 = vcmask 1043456  }
  0x92   :  { %v14843_v45 = vsel %vm11511_vm4, 4294967295, %v14842_v45  ;;  %vm14844_vm9 = vmmov %vm14838_vm7  ;;  %v412_v54 = vsel %vm11433_vm6, %v383_v43, 0.0  ;;  %vm14846_vm7 = vcmp.ge.s32.totalorder %v11275_v23, 0  ;;  %v381_v57 = vsel %vm14849_vm8, %v10425_v59, %v10429_v58  ;;  %8970 = vmatprep.subr.msk.bf16.mxu0 %vm14850_vm2, %v418_v51  ;;  %v10448_v51 = vpop.permute.xlu1 %10447 }
  0x93   :  { %v533_v53 = vsel %vm14844_vm9, %v10434_v27, %v10435_v14  ;;  %vm11523_vm1 = vmand %vm14846_vm7, %vm14845_vm15  ;;  %v417_v56 = vpack.c.bf16 %v412_v54, %v412_v54  ;;  %v414_v61 = vsel %vm11469_vm3, %v381_v57, 0.0  ;;  %vm14852_vm15 = vcmp.ge.s32.totalorder %v11293_v32, 0 }
  0x94   :  { %v14848_v48 = vsel %vm11523_vm1, 4294967295, %v14847_v48  ;;  %vm14851_vm9 = vmmov %vm14850_vm2  ;;  %v564_v0 = vsel %vm11480_vm0, %v533_v53, 0.0  ;;  %v419_v8 = vpack.c.bf16 %v414_v61, %v414_v61  ;;  %v566_v58 = vsel %vm11493_vm5, %v531_v42, 0.0 }
  0x95   :  { %8972 = vmatprep.subr.msk.bf16.mxu1 %vm14851_vm9, %v420_v52  ;;  %vm11541_vm7 = vmand %vm11511_vm4, %vm14852_vm15  ;;  %vm14855_vm8 = vcmp.lt.s32.totalorder %v11259_v10, 1  ;;  %vm14857_vm9 = vcmp.ge.s32.totalorder %v11296_v33, 0  ;;  %vm14860_vm15 = vcmask 1043456   ;;  %v10443_v52 = vpop.permute.xlu0 %10442  ;;  %v690_v53 = vsel %vm11445_vm10, %v11219_v2, 0.0 }
  0x96   :  { %v14854_v4 = vsel %vm11541_vm7, 4294967295, %v14853_v4  ;;  %v534_v59 = vsel %vm14855_vm8, %v10440_v12, %v10434_v27  ;;  %vm14856_vm2 = vmmov %vm14855_vm8  ;;  %v425_v31 = vsel %vm14860_vm15, %v417_v56, 0  ;;  %v569_v12 = vpack.c.bf16 %v564_v0, %v564_v0  ;;  %v416_v0 = vld [vmem:[%s14683_s1 + $0x8] sm:$0xf] }
  0x97   :  { %v532_v16 = vsel %vm14856_vm2, %v10435_v14, %v10439_v13  ;;  %vm11555_vm0 = vmand %vm11523_vm1, %vm14857_vm9  ;;  %v571_v27 = vpack.c.bf16 %v566_v58, %v566_v58  ;;  %v563_v13 = vsel %vm11541_vm7, %v534_v59, 0.0  ;;  %vm14862_vm8 = vcmask 64512  }
  0x98   :  { %v14859_v62 = vsel %vm11555_vm0, 4294967295, %v14858_v62  ;;  %vm14861_vm5 = vmmov %vm14860_vm15  ;;  %v565_v14 = vsel %vm11555_vm0, %v532_v16, 0.0  ;;  %8967 = vmatmul.mubr.msk.bf16.vlgmr.msra.gmra.mrb[4].mxu0 %vm14862_vm8, %v124_v17  ;;  %v568_v42 = vpack.c.bf16 %v563_v13, %v563_v13  ;;  %v692_v54 = vsel %vm11458_vm11, %v11231_v5, 0.0 }
  0x99   :  { %v431_v39 = vsel %vm14861_vm5, %v419_v8, 0  ;;  %vm14863_vm2 = vmmov %vm14862_vm8  ;;  %437 = vmatpush1.bf16.msra.mxu0 %v425_v31  ;;  %468 = vmatprep.mubr.bf16.mxu0 %v14720_v7  ;;  %v570_v43 = vpack.c.bf16 %v565_v14, %v565_v14  ;;  %v689_v56 = vsel %vm11511_vm4, %v11214_v1, 0.0  ;;  %v952_v57 = vadd.s32 1, %v11267_v19 }
  0x9a   :  { %8969 = vmatmul.mubr.msk.bf16.vlgmr.msra.gmra.mrb[4].mxu1 %vm14863_vm2, %v124_v17  ;;  %8974 = vmatprep.subr.msk.bf16.mxu0 %vm14861_vm5, %v569_v12  ;;  %vm14864_vm9 = vmmov %vm14861_vm5  ;;  %v954_v61 = vadd.s32 1, %v11273_v22  ;;  %v10450_v8 = vunpack.i.h.bf16 %v10448_v51  ;;  %v10449_v58 = vunpack.i.l.bf16 %v10448_v51  ;;  %v10445_v59 = vunpack.i.h.bf16 %v10443_v52  ;;  %v10458_v51 = vpop.permute.xlu1 %10457 }
  0x9b   :  { %478 = vmatpush1.bf16.msra.mxu1 %v431_v39  ;;  %509 = vmatprep.mubr.bf16.mxu1 %v14720_v7  ;;  %v10444_v2 = vunpack.i.l.bf16 %v10443_v52  ;;  %vm14865_vm15 = vmmov %vm14861_vm5  ;;  %v695_v17 = vpack.c.bf16 %v690_v53, %v690_v53  ;;  %v697_v1 = vpack.c.bf16 %v692_v54, %v692_v54  ;;  %v694_v31 = vpack.c.bf16 %v689_v56, %v689_v56  ;;  %v10453_v52 = vpop.permute.xlu0 %10452 }
  0x9c   :  { %8976 = vmatprep.subr.msk.bf16.mxu1 %vm14864_vm9, %v571_v27  ;;  %v576_v16 = vsel %vm14865_vm15, %v568_v42, 0  ;;  %vm14866_vm8 = vmmov %vm14861_vm5  ;;  %v691_v39 = vsel %vm11523_vm1, %v11224_v3, 0.0  ;;  %vm14867_vm5 = vcmp.lt.s32.totalorder %v11299_v34, 16  ;;  %v14868_v12 = vmov 0 }
  0x9d   :  { %v582_v5 = vsel %vm14866_vm8, %v570_v43, 0  ;;  %vm11598_vm9 = vmand %vm11445_vm10, %vm14867_vm5  ;;  %v951_v27 = vadd.s32 1, %v11265_v18  ;;  %v14873_v3 = vmov 0  ;;  %vm956_vm7 = vcmp.ge.s32.totalorder %v952_v57, 0 }
  0x9e   :  { %v14869_v12 = vsel %vm11598_vm9, 4294967295, %v14868_v12  ;;  %vm14870_vm15 = vmmov %vm14863_vm2  ;;  %vm960_vm3 = vcmp.lt.s32.totalorder %v952_v57, 16  ;;  %vm14875_vm5 = vcmp.lt.s32.totalorder %v11259_v10, 127  ;;  %v14878_v42 = vmov 0 }
  0x9f   :  { %vm14871_vm8 = vmmov %vm14863_vm2  ;;  %vm14872_vm2 = vcmp.lt.s32.totalorder %v11302_v35, 16  ;;  %v809_v13 = vsel %vm14875_vm5, %v10445_v59, %v10449_v58  ;;  %v696_v43 = vpack.c.bf16 %v691_v39, %v691_v39  ;;  %v14881_v53 = vmov 0 }
  0xa0   :  { %8971 = vmatmul.mubr.msk.bf16.vlgmr.msra.gmra.mrb[8].mxu0 %vm14870_vm15, %v416_v0  ;;  %vm11609_vm0 = vmand %vm11458_vm11, %vm14872_vm2  ;;  %vm14877_vm15 = vcmp.lt.s32.totalorder %v11309_v36, 16  ;;  %v953_v54 = vadd.s32 1, %v11275_v23  ;;  %v10460_v39 = vunpack.i.h.bf16 %v10458_v51  ;;  %v10455_v9 = vunpack.i.h.bf16 %v10453_v52 }
  0xa1   :  { %v14874_v3 = vsel %vm11609_vm0, 4294967295, %v14873_v3  ;;  %588 = vmatpush1.bf16.msra.mxu0 %v576_v16  ;;  %vm14876_vm10 = vmmov %vm14875_vm5  ;;  %619 = vmatprep.mubr.bf16.mxu0 %v14720_v7  ;;  %vm14880_vm5 = vcmp.lt.s32.totalorder %v11312_v37, 16  ;;  %v829_v16 = vsel %vm11598_vm9, %v809_v13, 0.0  ;;  %v10459_v13 = vunpack.i.l.bf16 %v10458_v51 }
  0xa2   :  { %8973 = vmatmul.mubr.msk.bf16.vlgmr.msra.gmra.mrb[8].mxu1 %vm14871_vm8, %v416_v0  ;;  %v811_v14 = vsel %vm14876_vm10, %v10450_v8, %v10444_v2  ;;  %vm11621_vm8 = vmand %vm11511_vm4, %vm14877_vm15  ;;  %vm14883_vm15 = vcmask 1043456   ;;  %v14886_v0 = vmov 0  ;;  %vm961_vm6 = vcmp.lt.s32.totalorder %v953_v54, 16 }
  0xa3   :  { %629 = vmatpush1.bf16.msra.mxu1 %v582_v5  ;;  %v14879_v42 = vsel %vm11621_vm8, 4294967295, %v14878_v42  ;;  %660 = vmatprep.mubr.bf16.mxu1 %v14720_v7  ;;  %vm11631_vm10 = vmand %vm11523_vm1, %vm14880_vm5  ;;  %v831_v5 = vsel %vm11609_vm0, %v811_v14, 0.0  ;;  %vm14888_vm5 = vcmp.lt.s32.totalorder %v11259_v10, 127  ;;  %v10454_v14 = vunpack.i.l.bf16 %v10453_v52 }
  0xa4   :  { %v14882_v53 = vsel %vm11631_vm10, 4294967295, %v14881_v53  ;;  %8978 = vmatprep.subr.msk.bf16.mxu0 %vm14883_vm15, %v695_v17  ;;  %vm14884_vm2 = vmmov %vm14883_vm15  ;;  %v810_v17 = vsel %vm14888_vm5, %v10444_v2, %v10445_v59  ;;  %vm14891_vm15 = vcmp.ge.s32.totalorder %v954_v61, 0  ;;  %vm14903_vm0 = vcmp.lt.s32.totalorder %v951_v27, 16 }
  0xa5   :  { %8980 = vmatprep.subr.msk.bf16.mxu1 %vm14884_vm2, %v697_v1  ;;  %vm14885_vm11 = vmmov %vm14884_vm2  ;;  %v828_v59 = vsel %vm11621_vm8, %v810_v17, 0.0  ;;  %vm14904_vm9 = vcmp.ge.s32.totalorder %v951_v27, 0  ;;  %v10463_v17 = vpop.permute.xlu0 %10462 }
  0xa6   :  { %v702_v56 = vsel %vm14885_vm11, %v694_v31, 0  ;;  %vm11641_vm4 = vmand %vm956_vm7, %vm960_vm3  ;;  %vm14890_vm11 = vcmp.lt.s32.totalorder %v954_v61, 16  ;;  %v567_v31 = vld [vmem:[%s14683_s1 + $0xc] sm:$0xf]  ;;  %vm14894_vm7 = vcmask 1043456   ;;  %v833_v27 = vpack.c.bf16 %v828_v59, %v828_v59 }
  0xa7   :  { %v14887_v0 = vsel %vm11641_vm4, 4294967295, %v14886_v0  ;;  %vm14889_vm2 = vmmov %vm14888_vm5  ;;  %v708_v7 = vsel %vm14894_vm7, %v696_v43, 0  ;;  %vm14898_vm7 = vcmp.ge.s32.totalorder %v11288_v29, 0 }
  0xa8   :  { %v808_v1 = vsel %vm14889_vm2, %v10449_v58, %v10450_v8  ;;  %vm11655_vm3 = vmand %vm14891_vm15, %vm14890_vm11  ;;  %vm14895_vm2 = vcmp.ge.s32.totalorder %v11285_v28, 0  ;;  %vm957_vm15 = vcmp.ge.s32.totalorder %v953_v54, 0  ;;  %v834_v8 = vpack.c.bf16 %v829_v16, %v829_v16 }
  0xa9   :  { %vm11668_vm11 = vmand %vm11641_vm4, %vm14895_vm2  ;;  %v836_v58 = vpack.c.bf16 %v831_v5, %v831_v5  ;;  %v830_v2 = vsel %vm11631_vm10, %v808_v1, 0.0  ;;  %vm14901_vm2 = vcmask 64512   ;;  %vm14907_vm10 = vcmp.lt.s32.totalorder %v11259_v10, 113  ;;  %v10468_v5 = vpop.permute.xlu1 %10467 }
  0xaa   :  { %vm11680_vm5 = vmand %vm11655_vm3, %vm14898_vm7  ;;  %8975 = vmatmul.mubr.msk.bf16.vlgmr.msra.gmra.mrb[12].mxu0 %vm14901_vm2, %v567_v31  ;;  %v948_v29 = vsel %vm14907_vm10, %v10455_v9, %v10459_v13  ;;  %v14911_v54 = vmov 0   ;;  %v835_v16 = vpack.c.bf16 %v830_v2, %v830_v2  ;;  %v10470_v59 = vunpack.i.h.bf16 %v10468_v5 }
  0xab   :  { %vm14902_vm12 = vmmov %vm14901_vm2  ;;  %714 = vmatpush1.bf16.msra.mxu0 %v702_v56  ;;  %745 = vmatprep.mubr.bf16.mxu0 %v14911_v54  ;;  %v984_v56 = vsel %vm11668_vm11, %v948_v29, 0.0  ;;  %vm14919_vm2 = vcmp.ge.s32.totalorder %v11296_v33, 0  ;;  %v10469_v2 = vunpack.i.l.bf16 %v10468_v5  ;;  %v10465_v29 = vunpack.i.h.bf16 %v10463_v17 }
  0xac   :  { %8977 = vmatmul.mubr.msk.bf16.vlgmr.msra.gmra.mrb[12].mxu1 %vm14902_vm12, %v567_v31  ;;  %vm11688_vm1 = vmand %vm14904_vm9, %vm14903_vm0  ;;  %vm14912_vm12 = vcmask 1043456   ;;  %vm14914_vm9 = vcmp.ge.s32.totalorder %v11293_v32, 0  ;;  %v989_v33 = vpack.c.bf16 %v984_v56, %v984_v56 }
  0xad   :  { %755 = vmatpush1.bf16.msra.mxu1 %v708_v7  ;;  %vm14908_vm7 = vmmov %vm14907_vm10  ;;  %786 = vmatprep.mubr.bf16.mxu1 %v14911_v54  ;;  %v10478_v56 = vpop.permute.xlu1 %10477 }
  0xae   :  { %v950_v51 = vsel %vm14908_vm7, %v10460_v39, %v10454_v14  ;;  %vm11696_vm8 = vmand %vm957_vm15, %vm961_vm6  ;;  %8982 = vmatprep.subr.msk.bf16.mxu0 %vm14912_vm12, %v834_v8 }
  0xaf   :  { %vm14913_vm0 = vmmov %vm14912_vm12  ;;  %v986_v1 = vsel %vm11680_vm5, %v950_v51, 0.0  ;;  %v10464_v51 = vunpack.i.l.bf16 %v10463_v17 }
  0xb0   :  { %8984 = vmatprep.subr.msk.bf16.mxu1 %vm14913_vm0, %v836_v58  ;;  %vm11708_vm6 = vmand %vm11688_vm1, %vm14914_vm9  ;;  %v693_v58 = vld [vmem:[%s14683_s1 + $0x10] sm:$0xf]  ;;  %vm14734_vm9 = vcmp.lt.s32.totalorder %v11259_v10, 112 }
  0xb1   :  { %vm14917_vm10 = vmmov %vm14908_vm7 }
  0xb2   :  { %v949_v31 = vsel %vm14917_vm10, %v10454_v14, %v10455_v9  ;;  %vm14918_vm15 = vmmov %vm14908_vm7  ;;  %vm14923_vm10 = vcmask 64512  }
  0xb3   :  { %v947_v8 = vsel %vm14918_vm15, %v10459_v13, %v10460_v39  ;;  %vm11724_vm7 = vmand %vm11696_vm8, %vm14919_vm2  ;;  %v847_v39 = vsel %vm14913_vm0, %v835_v16, 0  ;;  %v991_v13 = vpack.c.bf16 %v986_v1, %v986_v1  ;;  %v983_v14 = vsel %vm11708_vm6, %v949_v31, 0.0  ;;  %8979 = vmatmul.mubr.msk.bf16.vlgmr.msra.gmra.mrb[16].mxu0 %vm14923_vm10, %v693_v58  ;;  %v10473_v1 = vpop.permute.xlu0 %10472 }
  0xb4   :  { %vm14922_vm12 = vmmov %vm14913_vm0  ;;  %v985_v25 = vsel %vm11724_vm7, %v947_v8, 0.0  ;;  %v1105_v16 = vsel %vm14734_vm9, %v10470_v59, %v10464_v51  ;;  %884 = vmatprep.mubr.bf16.mxu0 %v14911_v54  ;;  %v988_v5 = vpack.c.bf16 %v983_v14, %v983_v14  ;;  %v10475_v14 = vunpack.i.h.bf16 %v10473_v1 }
  0xb5   :  { %v841_v9 = vsel %vm14922_vm12, %v833_v27, 0  ;;  %vm14924_vm15 = vmmov %vm14923_vm10  ;;  %v1103_v27 = vsel %vm14734_vm9, %v10465_v29, %v10469_v2  ;;  %v990_v17 = vpack.c.bf16 %v985_v25, %v985_v25  ;;  %v1125_v8 = vsel %vm11655_vm3, %v1105_v16, 0.0  ;;  %v832_v25 = vld [vmem:[%s14683_s1 + $0x14] sm:$0xf] }
  0xb6   :  { %8981 = vmatmul.mubr.msk.bf16.vlgmr.msra.gmra.mrb[16].mxu1 %vm14924_vm15, %v693_v58  ;;  %853 = vmatpush1.bf16.msra.mxu0 %v841_v9  ;;  %vm14925_vm2 = vmmov %vm14913_vm0  ;;  %v1123_v31 = vsel %vm11641_vm4, %v1103_v27, 0.0  ;;  %v1104_v58 = vsel %vm14734_vm9, %v10464_v51, %v10465_v29  ;;  %v1102_v9 = vsel %vm14734_vm9, %v10469_v2, %v10470_v59  ;;  %v996_v21 = vsel %vm14913_vm0, %v988_v5, 0 }
  0xb7   :  { %894 = vmatpush1.bf16.msra.mxu1 %v847_v39  ;;  %925 = vmatprep.mubr.bf16.mxu1 %v14911_v54  ;;  %vm14926_vm12 = vmmov %vm14913_vm0  ;;  %v10480_v39 = vunpack.i.h.bf16 %v10478_v56  ;;  %vm14735_vm15 = vcmp.lt.s32.totalorder %v11259_v10, 111  ;;  %v1128_v16 = vpack.c.bf16 %v1123_v31, %v1123_v31  ;;  %v1130_v24 = vpack.c.bf16 %v1125_v8, %v1125_v8  ;;  %v987_v8 = vld [vmem:[%s14683_s1 + $0x18] sm:$0xf] }
  0xb8   :  { %8986 = vmatprep.subr.msk.bf16.mxu0 %vm14925_vm2, %v989_v33  ;;  %8988 = vmatprep.subr.msk.bf16.mxu1 %vm14926_vm12, %v991_v13  ;;  %v10479_v33 = vunpack.i.l.bf16 %v10478_v56  ;;  %v10474_v13 = vunpack.i.l.bf16 %v10473_v1  ;;  %vm14927_vm10 = vmmov %vm14913_vm0  ;;  %v1122_v29 = vsel %vm11688_vm1, %v1104_v58, 0.0  ;;  %v1124_v59 = vsel %vm11696_vm8, %v1102_v9, 0.0 }
  0xb9   :  { %v1002_v27 = vsel %vm14927_vm10, %v990_v17, 0  ;;  %vm14928_vm2 = vcmask 64512   ;;  %vm14930_vm9 = vcmp.lt.s32.totalorder %v11299_v34, 16  ;;  %v14931_v2 = vmov 0 }
  0xba   :  { %vm14929_vm12 = vmmov %vm14928_vm2  ;;  %v1242_v51 = vsel %vm14735_vm15, %v10475_v14, %v10479_v33  ;;  %v1244_v5 = vsel %vm14735_vm15, %v10480_v39, %v10474_v13  ;;  %vm14933_vm10 = vcmp.lt.s32.totalorder %v11302_v35, 16  ;;  %v14934_v34 = vmov 0  ;;  %v11011_v35 = vld [vmem:[%s14685_s3 + $0x40] sm:$0xff]  }
  0xbb   :  { %8983 = vmatmul.mubr.msk.bf16.vlgmr.msra.gmra.mrb[20].mxu0 %vm14928_vm2, %v832_v25  ;;  %vm11772_vm0 = vmand %vm11641_vm4, %vm14930_vm9  ;;  %v1129_v17 = vpack.c.bf16 %v1124_v59, %v1124_v59  ;;  %vm14936_vm9 = vcmask 1043456   ;;  %vm14938_vm15 = vcmp.lt.s32.totalorder %v11309_v36, 16  ;;  %v14944_v36 = vmov 0  ;;  %v1265_v59 = vld [vmem:[%s14683_s1 + $0x20] sm:$0xf] }
  0xbc   :  { %v14932_v2 = vsel %vm11772_vm0, 4294967295, %v14931_v2  ;;  %1008 = vmatpush1.bf16.msra.mxu0 %v996_v21  ;;  %vm11784_vm2 = vmand %vm11655_vm3, %vm14933_vm10  ;;  %1039 = vmatprep.mubr.bf16.mxu0 %v14911_v54  ;;  %v1127_v21 = vpack.c.bf16 %v1122_v29, %v1122_v29  ;;  %v1262_v56 = vsel %vm11772_vm0, %v1242_v51, 0.0  ;;  %vm14941_vm10 = vcmp.lt.s32.totalorder %v11259_v10, 111 }
  0xbd   :  { %v14935_v34 = vsel %vm11784_vm2, 4294967295, %v14934_v34  ;;  %8990 = vmatprep.subr.msk.bf16.mxu0 %vm14936_vm9, %v1128_v16  ;;  %vm11796_vm4 = vmand %vm11688_vm1, %vm14938_vm15  ;;  %v1264_v1 = vsel %vm11784_vm2, %v1244_v5, 0.0  ;;  %v1243_v31 = vsel %vm14941_vm10, %v10474_v13, %v10475_v14  ;;  %vm14946_vm0 = vcmask 1043456  }
  0xbe   :  { %8985 = vmatmul.mubr.msk.bf16.vlgmr.msra.gmra.mrb[20].mxu1 %vm14929_vm12, %v832_v25  ;;  %vm14937_vm12 = vmmov %vm14936_vm9  ;;  %v1135_v58 = vsel %vm14946_vm0, %v1127_v21, 0  ;;  %v1267_v25 = vpack.c.bf16 %v1262_v56, %v1262_v56  ;;  %v1269_v14 = vpack.c.bf16 %v1264_v1, %v1264_v1 }
  0xbf   :  { %1049 = vmatpush1.bf16.msra.mxu1 %v1002_v27  ;;  %1080 = vmatprep.mubr.bf16.mxu1 %v14911_v54  ;;  %vm14942_vm9 = vmmov %vm14941_vm10  ;;  %vm14948_vm10 = vcmask 64512   ;;  %v1126_v27 = vld [vmem:[%s14683_s1 + $0x1c] sm:$0xf]  ;;  %s11134_s1 = smov 2  }
  0xc0   :  { %8992 = vmatprep.subr.msk.bf16.mxu1 %vm14937_vm12, %v1130_v24  ;;  %v1241_v24 = vsel %vm14942_vm9, %v10479_v33, %v10480_v39  ;;  %vm14943_vm12 = vcmp.lt.s32.totalorder %v11312_v37, 16  ;;  %vm14947_vm2 = vmmov %vm14946_vm0  ;;  %v1261_v39 = vsel %vm11796_vm4, %v1243_v31, 0.0 }
  0xc1   :  { %vm11812_vm15 = vmand %vm11696_vm8, %vm14943_vm12  ;;  %v1141_v9 = vsel %vm14947_vm2, %v1129_v17, 0  ;;  %v1266_v33 = vpack.c.bf16 %v1261_v39, %v1261_v39 }
  0xc2   :  { %v14945_v36 = vsel %vm11812_vm15, 4294967295, %v14944_v36  ;;  %v1263_v37 = vsel %vm11812_vm15, %v1241_v24, 0.0  ;;  %vm14949_vm9 = vmmov %vm14948_vm10 }
  0xc3   :  { %8987 = vmatmul.mubr.msk.bf16.vlgmr.msra.gmra.mrb[24].mxu0 %vm14948_vm10, %v987_v8  ;;  %v1268_v13 = vpack.c.bf16 %v1263_v37, %v1263_v37  ;;  %vm14950_vm2 = vmmov %vm14946_vm0 }
  0xc4   :  { %1147 = vmatpush1.bf16.msra.mxu0 %v1135_v58  ;;  %1178 = vmatprep.mubr.bf16.mxu0 %v14911_v54  ;;  %vm14951_vm12 = vmmov %vm14946_vm0 }
  0xc5   :  { %8994 = vmatprep.subr.msk.bf16.mxu0 %vm14946_vm0, %v1267_v25  ;;  %v1274_v16 = vsel %vm14951_vm12, %v1266_v33, 0  ;;  %vm14952_vm10 = vmmov %vm14946_vm0 }
  0xc6   :  { %8989 = vmatmul.mubr.msk.bf16.vlgmr.msra.gmra.mrb[24].mxu1 %vm14949_vm9, %v987_v8  ;;  %v1280_v29 = vsel %vm14952_vm10, %v1268_v13, 0  ;;  %vm14953_vm15 = vmmov %vm14949_vm9 }
  0xc7   :  { %1188 = vmatpush1.bf16.msra.mxu1 %v1141_v9  ;;  %1219 = vmatprep.mubr.bf16.mxu1 %v14911_v54  ;;  %vm14954_vm0 = vmmov %vm14949_vm9 }
  0xc8   :  { %8996 = vmatprep.subr.msk.bf16.mxu1 %vm14950_vm2, %v1269_v14  ;;  %vm14955_vm2 = vmmov %vm14954_vm0 }
  0xcb   :  { %8991 = vmatmul.mubr.msk.bf16.vlgmr.msra.gmra.mrb[28].mxu0 %vm14949_vm9, %v1126_v27 }
  0xcc   :  { %1286 = vmatpush1.bf16.msra.mxu0 %v1274_v16  ;;  %1317 = vmatprep.mubr.bf16.mxu0 %v14911_v54 }
  0xce   :  { %8993 = vmatmul.mubr.msk.bf16.vlgmr.msra.gmra.mrb[28].mxu1 %vm14953_vm15, %v1126_v27 }
  0xcf   :  { %1327 = vmatpush1.bf16.msra.mxu1 %v1280_v29  ;;  %1358 = vmatprep.mubr.bf16.mxu1 %v14911_v54 }
  0xd3   :  { %8995 = vmatmul.mubr.msk.bf16.vlgmr.msra.gmra.mrb[32].mxu0 %vm14954_vm0, %v1265_v59  ;;  %vm14956_vm0 = vcmp.lt.s32.totalorder %v11259_v10, 16 }
  0xd4   :  { %1489 = vmatprep.mubr.bf16.mxu0 %v14911_v54 }
  0xd6   :  { %8997 = vmatmul.mubr.msk.bf16.vlgmr.msra.gmra.mrb[32].mxu1 %vm14955_vm2, %v1265_v59  ;;  %vm14957_vm2 = vcmp.lt.s32.totalorder %v11259_v10, 17 }
  0xd7   :  { %1532 = vmatprep.mubr.bf16.mxu1 %v14911_v54 }
 0x15f   :  { %v226_v51 = vpop.f32.mrb[0].mxu0 }
 0x160   :  { %v228_v21 = vpop.f32.mrb[1].mxu0 }
 0x161   :  { %v230_v56 = vpop.f32.mrb[2].mxu0 }
 0x162   :  { %v231_v31 = vpop.f32.mrb[3].mxu0 }
 0x163   :  { %v267_v5 = vpop.f32.mrb[0].mxu1 }
 0x164   :  { %v269_v17 = vpop.f32.mrb[1].mxu1 }
 0x165   :  { %v271_v1 = vpop.f32.mrb[2].mxu1 }
 0x166   :  { %v272_v24 = vpop.f32.mrb[3].mxu1 }
 0x16b   :  { %v323_v8 = vpop.f32.mrb[4].mxu0 }
 0x16c   :  { %v324_v9 = vadd.f32 %v323_v8, %v226_v51  ;;  %v325_v14 = vpop.f32.mrb[5].mxu0 }
 0x16d   :  { %v364_v58 = vpop.f32.mrb[4].mxu1  ;;  %v326_v37 = vadd.f32 %v325_v14, %v228_v21  ;;  %v327_v13 = vpop.f32.mrb[6].mxu0 }
 0x16e   :  { %v365_v25 = vadd.f32 %v364_v58, %v267_v5  ;;  %v366_v39 = vpop.f32.mrb[5].mxu1  ;;  %v328_v16 = vpop.f32.mrb[7].mxu0 }
 0x16f   :  { %v367_v33 = vadd.f32 %v366_v39, %v269_v17  ;;  %v368_v27 = vpop.f32.mrb[6].mxu1 }
 0x170   :  { %v369_v29 = vpop.f32.mrb[7].mxu1 }
 0x173   :  { %v470_v59 = vpop.f32.mrb[8].mxu0 }
 0x174   :  { %v518_v23 = vadd.f32 %v470_v59, %v324_v9  ;;  %v472_v56 = vpop.f32.mrb[9].mxu0 }
 0x175   :  { %v511_v20 = vpop.f32.mrb[8].mxu1  ;;  %v519_v31 = vadd.f32 %v472_v56, %v326_v37  ;;  %v474_v18 = vpop.f32.mrb[10].mxu0 }
 0x176   :  { %v520_v22 = vadd.f32 %v511_v20, %v365_v25  ;;  %v513_v1 = vpop.f32.mrb[9].mxu1  ;;  %v475_v51 = vpop.f32.mrb[11].mxu0 }
 0x177   :  { %v521_v24 = vadd.f32 %v513_v1, %v367_v33  ;;  %v515_v19 = vpop.f32.mrb[10].mxu1 }
 0x178   :  { %v516_v5 = vpop.f32.mrb[11].mxu1 }
 0x17d   :  { %v621_v8 = vpop.f32.mrb[12].mxu0 }
 0x17e   :  { %v669_v21 = vadd.f32 %v621_v8, %v518_v23  ;;  %v623_v14 = vpop.f32.mrb[13].mxu0 }
 0x17f   :  { %v662_v58 = vpop.f32.mrb[12].mxu1  ;;  %v670_v13 = vadd.f32 %v623_v14, %v519_v31  ;;  %v625_v16 = vpop.f32.mrb[14].mxu0 }
 0x180   :  { %v671_v17 = vadd.f32 %v662_v58, %v520_v22  ;;  %v664_v39 = vpop.f32.mrb[13].mxu1  ;;  %v626_v9 = vpop.f32.mrb[15].mxu0 }
 0x181   :  { %v672_v27 = vadd.f32 %v664_v39, %v521_v24  ;;  %v666_v29 = vpop.f32.mrb[14].mxu1 }
 0x182   :  { %v667_v20 = vpop.f32.mrb[15].mxu1 }
 0x186   :  { %v747_v25 = vpop.f32.mrb[16].mxu0 }
 0x187   :  { %v795_v37 = vadd.f32 %v747_v25, %v669_v21  ;;  %v749_v18 = vpop.f32.mrb[17].mxu0 }
 0x188   :  { %v796_v56 = vadd.f32 %v749_v18, %v670_v13  ;;  %v751_v51 = vpop.f32.mrb[18].mxu0 }
 0x189   :  { %v788_v59 = vpop.f32.mrb[16].mxu1  ;;  %v752_v23 = vpop.f32.mrb[19].mxu0 }
 0x18a   :  { %v797_v33 = vadd.f32 %v788_v59, %v671_v17  ;;  %v790_v19 = vpop.f32.mrb[17].mxu1 }
 0x18b   :  { %v798_v1 = vadd.f32 %v790_v19, %v672_v27  ;;  %v792_v5 = vpop.f32.mrb[18].mxu1 }
 0x18c   :  { %v793_v22 = vpop.f32.mrb[19].mxu1 }
 0x18e   :  { %v886_v8 = vpop.f32.mrb[20].mxu0 }
 0x18f   :  { %v934_v31 = vadd.f32 %v886_v8, %v795_v37  ;;  %v888_v14 = vpop.f32.mrb[21].mxu0 }
 0x190   :  { %v935_v16 = vadd.f32 %v888_v14, %v796_v56  ;;  %v890_v9 = vpop.f32.mrb[22].mxu0 }
 0x191   :  { %v927_v58 = vpop.f32.mrb[20].mxu1  ;;  %v891_v21 = vpop.f32.mrb[23].mxu0 }
 0x192   :  { %v936_v24 = vadd.f32 %v927_v58, %v797_v33  ;;  %v929_v39 = vpop.f32.mrb[21].mxu1 }
 0x193   :  { %v937_v29 = vadd.f32 %v929_v39, %v798_v1  ;;  %v931_v20 = vpop.f32.mrb[22].mxu1 }
 0x194   :  { %v932_v17 = vpop.f32.mrb[23].mxu1 }
 0x196   :  { %v1041_v25 = vpop.f32.mrb[24].mxu0 }
 0x197   :  { %v1089_v13 = vadd.f32 %v1041_v25, %v934_v31  ;;  %v1043_v18 = vpop.f32.mrb[25].mxu0  ;;  %v1375_v25 = vpop.permute.xlu0 %1374 }
 0x198   :  { %v1090_v51 = vadd.f32 %v1043_v18, %v935_v16  ;;  %v1045_v23 = vpop.f32.mrb[26].mxu0 }
 0x199   :  { %v1082_v59 = vpop.f32.mrb[24].mxu1  ;;  %v1046_v37 = vpop.f32.mrb[27].mxu0 }
 0x19a   :  { %v1091_v27 = vadd.f32 %v1082_v59, %v936_v24  ;;  %v1084_v19 = vpop.f32.mrb[25].mxu1 }
 0x19b   :  { %v1092_v5 = vadd.f32 %v1084_v19, %v937_v29  ;;  %v1086_v22 = vpop.f32.mrb[26].mxu1 }
 0x19c   :  { %v1087_v33 = vpop.f32.mrb[27].mxu1 }
 0x19e   :  { %v1180_v8 = vpop.f32.mrb[28].mxu0 }
 0x19f   :  { %v1228_v56 = vadd.f32 %v1180_v8, %v1089_v13  ;;  %v1182_v14 = vpop.f32.mrb[29].mxu0 }
 0x1a0   :  { %v1229_v9 = vadd.f32 %v1182_v14, %v1090_v51  ;;  %v1184_v21 = vpop.f32.mrb[30].mxu0 }
 0x1a1   :  { %v1221_v58 = vpop.f32.mrb[28].mxu1  ;;  %v1185_v31 = vpop.f32.mrb[31].mxu0 }
 0x1a2   :  { %v1230_v1 = vadd.f32 %v1221_v58, %v1091_v27  ;;  %v1223_v39 = vpop.f32.mrb[29].mxu1 }
 0x1a3   :  { %v1231_v20 = vadd.f32 %v1223_v39, %v1092_v5  ;;  %v1225_v17 = vpop.f32.mrb[30].mxu1 }
 0x1a4   :  { %v1226_v24 = vpop.f32.mrb[31].mxu1 }
 0x1a6   :  { %v1319_v59 = vpop.f32.mrb[32].mxu0 }
 0x1a7   :  { %v1367_v29 = vadd.f32 %v1319_v59, %v1228_v56  ;;  %v1321_v19 = vpop.f32.mrb[33].mxu0 }
 0x1a8   :  { %v1368_v22 = vadd.f32 %v1321_v19, %v1229_v9  ;;  %v1323_v33 = vpop.f32.mrb[34].mxu0 }
 0x1a9   :  { %v1360_v16 = vpop.f32.mrb[32].mxu1  ;;  %v1377_v27 = vadd.f32 %v1375_v25, %v1367_v29  ;;  %v1324_v58 = vpop.f32.mrb[35].mxu0  ;;  %v2590_v29 = vld [vmem:[%s14686_s4 + $0x8] sm:$0xff] }
 0x1aa   :  { %v1369_v18 = vadd.f32 %v1360_v16, %v1230_v1  ;;  %v1362_v23 = vpop.f32.mrb[33].mxu1  ;;  %v1378_v5 = vadd.f32 %v1375_v25, %v1368_v22  ;;  %v2589_v16 = vld [vmem:[%s14686_s4] sm:$0xff]  ;;  %s11138_s4 = smov 94  }
 0x1ab   :  { %v1370_v37 = vadd.f32 %v1362_v23, %v1231_v20  ;;  %v1364_v13 = vpop.f32.mrb[34].mxu1  ;;  %vm1381_vm15 = vcmp.ge.f32.partialorder %v1377_v27, 0.0  ;;  %v1385_v39 = vmul.f32 0.2, %v1377_v27 }
 0x1ac   :  { %v1379_v8 = vadd.f32 %v1375_v25, %v1369_v18  ;;  %v1365_v51 = vpop.f32.mrb[35].mxu1  ;;  %vm1382_vm10 = vcmp.ge.f32.partialorder %v1378_v5, 0.0  ;;  %v1386_v56 = vmul.f32 0.2, %v1378_v5 }
 0x1ad   :  { %v1380_v14 = vadd.f32 %v1375_v25, %v1370_v37  ;;  %v11847_v17 = vsel %vm1381_vm15, %v1377_v27, %v1385_v39  ;;  %vm14958_vm15 = vmmov %vm14956_vm0 }
 0x1ae   :  { %vm1383_vm12 = vcmp.ge.f32.partialorder %v1379_v8, 0.0  ;;  %v1387_v21 = vmul.f32 0.2, %v1379_v8  ;;  %v11851_v20 = vsel %vm1382_vm10, %v1378_v5, %v1386_v56  ;;  %vm14960_vm10 = vmmov %vm14956_vm0 }
 0x1af   :  { %vm1384_vm9 = vcmp.ge.f32.partialorder %v1380_v14, 0.0  ;;  %v1388_v1 = vmul.f32 0.2, %v1380_v14  ;;  %v10492_v24 = vpack.i.bf16 %v11851_v20, %v11847_v17 }
 0x1b0   :  { %v11849_v9 = vsel %vm1383_vm12, %v1379_v8, %v1387_v21  ;;  %vm14959_vm12 = vmmov %vm14956_vm0 }
 0x1b1   :  { %v11853_v31 = vsel %vm1384_vm9, %v1380_v14, %v1388_v1  ;;  %10493 = vrot.lane.b32.xlu0 %v10492_v24, %s11123_s27  ;;  %10483 = vrot.lane.b32.xlu1 %v10492_v24, %s11122_s26  ;;  %vm14961_vm9 = vcmask 1043456  }
 0x1b2   :  { %v10487_v25 = vpack.i.bf16 %v11849_v9, %v11853_v31  ;;  %v10527_v59 = vpack.i.bf16 %v11853_v31, %v11849_v9 }
 0x1b5   :  { %10503 = vrot.lane.b32.xlu0 %v10492_v24, %s11125_s0  ;;  %10488 = vrot.lane.b32.xlu1 %v10487_v25, %s11122_s26  ;;  %s11135_s26 = smov 126  }
 0x1b9   :  { %10513 = vrot.lane.b32.xlu0 %v10492_v24, %s11126_s28  ;;  %10498 = vrot.lane.b32.xlu1 %v10487_v25, %s11123_s27  ;;  %s11136_s27 = smov 98  }
 0x1bd   :  { %10523 = vrot.lane.b32.xlu0 %v10492_v24, %s11127_s29  ;;  %10508 = vrot.lane.b32.xlu1 %v10487_v25, %s11125_s0  ;;  %s11137_s0 = smov 96  }
 0x1c1   :  { %10533 = vrot.lane.b32.xlu0 %v10492_v24, %s11128_s30  ;;  %10518 = vrot.lane.b32.xlu1 %v10487_v25, %s11126_s28 }
 0x1c5   :  { %10543 = vrot.lane.b32.xlu0 %v10492_v24, %s11129_s12  ;;  %10528 = vrot.lane.b32.xlu1 %v10527_v59, %s11127_s29 }
 0x1c9   :  { %10553 = vrot.lane.b32.xlu0 %v10492_v24, %s11130_s13  ;;  %10538 = vrot.lane.b32.xlu1 %v10527_v59, %s11128_s30 }
 0x1cd   :  { %2593 = vperm.xlu0 %10481, %v2589_v16   ;;  %10548 = vrot.lane.b32.xlu1 %v10527_v59, %s11129_s12 }
 0x1d1   :  { %10558 = vrot.lane.b32.xlu1 %v10527_v59, %s11130_s13 }
 0x1d5   :  { %2598 = vperm.xlu1 %10562, %v2590_v29  }
 0x223   :  { %v10494_v18 = vpop.permute.xlu0 %10493  ;;  %v10484_v19 = vpop.permute.xlu1 %10483 }
 0x224   :  { %v10496_v23 = vunpack.i.h.bf16 %v10494_v18  ;;  %v10495_v22 = vunpack.i.l.bf16 %v10494_v18  ;;  %v10486_v37 = vunpack.i.h.bf16 %v10484_v19  ;;  %v10485_v33 = vunpack.i.l.bf16 %v10484_v19 }
 0x226   :  { %v1425_v13 = vsel %vm14956_vm0, %v10485_v33, %v10486_v37  ;;  %v1403_v51 = vsel %vm14957_vm2, %v10495_v22, %v10496_v23  ;;  %vm14963_vm0 = vnez %v14785_v38  ;;  %vm14964_vm2 = vnez %v14793_v50 }
 0x227   :  { %v10504_v27 = vpop.permute.xlu0 %10503  ;;  %v10489_v8 = vpop.permute.xlu1 %10488  ;;  %v1428_v58 = vsel %vm11321_vm14, %v1425_v13, 0.0  ;;  %vm14962_vm14 = vnez %v14791_v47 }
 0x228   :  { %v10491_v5 = vunpack.i.h.bf16 %v10489_v8  ;;  %v10490_v14 = vunpack.i.l.bf16 %v10489_v8  ;;  %v10506_v39 = vunpack.i.h.bf16 %v10504_v27  ;;  %v10505_v21 = vunpack.i.l.bf16 %v10504_v27 }
 0x229   :  { %v1434_v56 = vpack.c.bf16 %v1428_v58, %v1428_v58 }
 0x22a   :  { %v1423_v1 = vsel %vm14958_vm15, %v10491_v5, %v10490_v14  ;;  %v1426_v24 = vsel %vm14959_vm12, %v10490_v14, %v10485_v33  ;;  %v1424_v25 = vsel %vm14960_vm10, %v10486_v37, %v10491_v5  ;;  %vm14965_vm15 = vnez %v14789_v46  ;;  %v11003_v14 = vld [vmem:[%s14685_s3 + $0x8] sm:$0xff]  }
 0x22b   :  { %8999 = vmatprep.subr.msk.bf16.mxu0 %vm14961_vm9, %v1434_v56  ;;  %v10499_v41 = vpop.permute.xlu1 %10498  ;;  %v1430_v59 = vsel %vm14962_vm14, %v1423_v1, 0.0  ;;  %v1427_v16 = vsel %vm14963_vm0, %v1426_v24, 0.0  ;;  %v1429_v29 = vsel %vm14964_vm2, %v1424_v25, 0.0  ;;  %v1406_v18 = vsel %vm14965_vm15, %v1403_v51, 0.0  ;;  %v10514_v25 = vpop.permute.xlu0 %10513 }
 0x22c   :  { %v10501_v19 = vunpack.i.h.bf16 %v10499_v41  ;;  %v10500_v33 = vunpack.i.l.bf16 %v10499_v41  ;;  %vm14966_vm12 = vcmp.lt.s32.totalorder %v11259_v10, 15  ;;  %v1436_v13 = vpack.c.bf16 %v1430_v59, %v1430_v59 }
 0x22d   :  { %v1659_v37 = vsel %vm14966_vm12, %v10505_v21, %v10506_v39  ;;  %v1433_v27 = vpack.c.bf16 %v1427_v16, %v1427_v16  ;;  %v1435_v8 = vpack.c.bf16 %v1429_v29, %v1429_v29  ;;  %vm14967_vm10 = vcmp.lt.s32.totalorder %v11259_v10, 17 }
 0x22e   :  { %v1401_v47 = vsel %vm14967_vm10, %v10501_v19, %v10500_v33  ;;  %v1412_v58 = vpack.c.bf16 %v1406_v18, %v1406_v18  ;;  %vm14968_vm9 = vmmov %vm14967_vm10  ;;  %vm14970_vm0 = vcmask 1043456   ;;  %vm14973_vm12 = vnez %v14796_v55 }
 0x22f   :  { %v1404_v38 = vsel %vm14968_vm9, %v10500_v33, %v10495_v22  ;;  %vm14969_vm14 = vmmov %vm14968_vm9  ;;  %9001 = vmatprep.subr.msk.bf16.mxu1 %vm14970_vm0, %v1436_v13  ;;  %v10509_v46 = vpop.permute.xlu1 %10508  ;;  %v1408_v56 = vsel %vm14973_vm12, %v1401_v47, 0.0  ;;  %vm14974_vm10 = vnez %v14798_v60  ;;  %v10516_v33 = vunpack.i.h.bf16 %v10514_v25 }
 0x230   :  { %v1402_v50 = vsel %vm14969_vm14, %v10496_v23, %v10501_v19  ;;  %vm14971_vm2 = vmmov %vm14970_vm0  ;;  %v1405_v22 = vsel %vm14974_vm10, %v1404_v38, 0.0  ;;  %v10511_v1 = vunpack.i.h.bf16 %v10509_v46  ;;  %v10510_v24 = vunpack.i.l.bf16 %v10509_v46 }
 0x231   :  { %v1446_v51 = vsel %vm14971_vm2, %v1433_v27, 0  ;;  %vm14972_vm15 = vmmov %vm14970_vm0  ;;  %v1662_v23 = vsel %vm11407_vm13, %v1659_v37, 0.0  ;;  %v1414_v41 = vpack.c.bf16 %v1408_v56, %v1408_v56  ;;  %v1411_v59 = vpack.c.bf16 %v1405_v22, %v1405_v22 }
 0x232   :  { %v1452_v5 = vsel %vm14972_vm15, %v1435_v8, 0  ;;  %1458 = vmatpush1.bf16.msra.mxu0 %v1446_v51  ;;  %vm14975_vm9 = vmmov %vm14970_vm0  ;;  %vm14976_vm14 = vnez %v14801_v63  ;;  %vm14977_vm0 = vcmp.lt.s32.totalorder %v11259_v10, 15  ;;  %vm14978_vm2 = vcmask 64512  }
 0x233   :  { %1501 = vmatpush1.bf16.msra.mxu1 %v1452_v5  ;;  %9004 = vmatprep.subr.msk.bf16.mxu0 %vm14975_vm9, %v1412_v58  ;;  %v1407_v16 = vsel %vm14976_vm14, %v1402_v50, 0.0  ;;  %v1657_v55 = vsel %vm14977_vm0, %v10511_v1, %v10510_v24  ;;  %vm14979_vm15 = vmmov %vm14978_vm2  ;;  %v10519_v29 = vpop.permute.xlu1 %10518  ;;  %v1668_v18 = vpack.c.bf16 %v1662_v23, %v1662_v23  ;;  %vm14981_vm13 = vnez %v14808_v26  ;;  %v11004_v50 = vld [vmem:[%s14685_s3] sm:$0xff]   ;;  %v11005_v23 = vld [vmem:[%s14685_s3 + $0x10] sm:$0xff]  }
 0x234   :  { %v1413_v60 = vpack.c.bf16 %v1407_v16, %v1407_v16  ;;  %vm14980_vm12 = vmmov %vm14975_vm9  ;;  %v1664_v19 = vsel %vm14981_vm13, %v1657_v55, 0.0  ;;  %v10515_v37 = vunpack.i.l.bf16 %v10514_v25  ;;  %v10521_v27 = vunpack.i.h.bf16 %v10519_v29 }
 0x235   :  { %9000 = vmatmul.mubr.msk.bf16.vlgmr.msra.gmra.mrb[36].mxu0 %vm14978_vm2, %v11003_v14  ;;  %v1552_v11 = vsel %vm14980_vm12, %v1411_v59, 0  ;;  %vm14982_vm10 = vmmov %vm14975_vm9  ;;  %v10520_v8 = vunpack.i.l.bf16 %v10519_v29  ;;  %v1670_v58 = vpack.c.bf16 %v1664_v19, %v1664_v19  ;;  %vm14988_vm12 = vnez %v14810_v40 }
 0x236   :  { %9002 = vmatmul.mubr.msk.bf16.vlgmr.msra.gmra.mrb[36].mxu1 %vm14979_vm15, %v11003_v14  ;;  %9006 = vmatprep.subr.msk.bf16.mxu1 %vm14982_vm10, %v1414_v41  ;;  %vm14983_vm9 = vmmov %vm14977_vm0  ;;  %vm14989_vm13 = vnez %v14824_v6 }
 0x237   :  { %1564 = vmatpush1.bf16.msra.mxu0 %v1552_v11  ;;  %v1660_v63 = vsel %vm14983_vm9, %v10510_v24, %v10505_v21  ;;  %vm14984_vm14 = vmmov %vm14977_vm0  ;;  %1595 = vmatprep.mubr.bf16.mxu0 %v14911_v54  ;;  %v10529_v55 = vpop.permute.xlu1 %10528  ;;  %v10524_v11 = vpop.permute.xlu0 %10523 }
 0x238   :  { %v1658_v13 = vsel %vm14984_vm14, %v10506_v39, %v10511_v1  ;;  %vm14985_vm0 = vmmov %vm14982_vm10  ;;  %1638 = vmatprep.mubr.bf16.mxu1 %v14911_v54  ;;  %v1661_v26 = vsel %vm14988_vm12, %v1660_v63, 0.0  ;;  %vm14990_vm10 = vcmp.lt.s32.totalorder %v11259_v10, 1  ;;  %vm14992_vm14 = vnez %v14829_v15 }
 0x239   :  { %v1558_v47 = vsel %vm14985_vm0, %v1413_v60, 0  ;;  %vm14986_vm2 = vmmov %vm14985_vm0  ;;  %v1663_v39 = vsel %vm14989_vm13, %v1658_v13, 0.0  ;;  %v1795_v21 = vsel %vm14990_vm10, %v10515_v37, %v10516_v33  ;;  %v1667_v46 = vpack.c.bf16 %v1661_v26, %v1661_v26 }
 0x23a   :  { %9009 = vmatprep.subr.msk.bf16.mxu0 %vm14986_vm2, %v1668_v18  ;;  %1607 = vmatpush1.bf16.msra.mxu1 %v1558_v47  ;;  %vm14987_vm15 = vmmov %vm14985_vm0  ;;  %v1669_v51 = vpack.c.bf16 %v1663_v39, %v1663_v39  ;;  %v1798_v5 = vsel %vm14992_vm14, %v1795_v21, 0.0  ;;  %vm14993_vm0 = vnez %v14835_v30  ;;  %vm14994_vm2 = vcmask 64512  }
 0x23b   :  { %9011 = vmatprep.subr.msk.bf16.mxu1 %vm14987_vm15, %v1670_v58  ;;  %vm14991_vm9 = vmmov %vm14990_vm10  ;;  %vm14996_vm12 = vcmask 1043456   ;;  %v1804_v56 = vpack.c.bf16 %v1798_v5, %v1798_v5  ;;  %vm15000_vm14 = vcmp.lt.s32.totalorder %v11259_v10, 1  ;;  %v10531_v18 = vunpack.i.h.bf16 %v10529_v55  ;;  %v10539_v26 = vpop.permute.xlu1 %10538 }
 0x23c   :  { %v1793_v38 = vsel %vm14991_vm9, %v10521_v27, %v10520_v8  ;;  %vm14995_vm15 = vmmov %vm14994_vm2  ;;  %v1680_v6 = vsel %vm14996_vm12, %v1667_v46, 0  ;;  %v1796_v15 = vsel %vm15000_vm14, %v10520_v8, %v10515_v37  ;;  %v10525_v19 = vunpack.i.l.bf16 %v10524_v11 }
 0x23d   :  { %v1800_v40 = vsel %vm14993_vm0, %v1793_v38, 0.0  ;;  %vm14997_vm13 = vmmov %vm14996_vm12  ;;  %v10541_v46 = vunpack.i.h.bf16 %v10539_v26 }
 0x23e   :  { %v1686_v14 = vsel %vm14997_vm13, %v1669_v51, 0  ;;  %v1806_v22 = vpack.c.bf16 %v1800_v40, %v1800_v40  ;;  %vm14998_vm10 = vmmov %vm14996_vm12  ;;  %vm15004_vm12 = vnez %v14814_v49  ;;  %vm15005_vm13 = vnez %v14821_v44 }
 0x23f   :  { %vm14999_vm9 = vmmov %vm14998_vm10  ;;  %v1922_v59 = vsel %vm15004_vm12, %v11851_v20, 0.0  ;;  %v1924_v16 = vsel %vm15005_vm13, %v11853_v31, 0.0  ;;  %v10530_v20 = vunpack.i.l.bf16 %v10529_v55  ;;  %v10526_v31 = vunpack.i.h.bf16 %v10524_v11 }
 0x240   :  { %vm15001_vm0 = vmmov %vm15000_vm14  ;;  %vm15008_vm14 = vcmask 1043456   ;;  %v1928_v60 = vpack.c.bf16 %v1922_v59, %v1922_v59  ;;  %v1930_v29 = vpack.c.bf16 %v1924_v16, %v1924_v16 }
 0x241   :  { %9005 = vmatmul.mubr.msk.bf16.vlgmr.msra.gmra.mrb[36].mxu0 %vm14994_vm2, %v11004_v50  ;;  %v1794_v30 = vsel %vm15001_vm0, %v10516_v33, %v10521_v27  ;;  %vm15002_vm2 = vnez %v14854_v4  ;;  %vm15009_vm0 = vmmov %vm15008_vm14  ;;  %v11006_v27 = vld [vmem:[%s14685_s3 + $0x18] sm:$0xff]  }
 0x242   :  { %9007 = vmatmul.mubr.msk.bf16.vlgmr.msra.gmra.mrb[36].mxu1 %vm14995_vm15, %v11004_v50  ;;  %1692 = vmatpush1.bf16.msra.mxu0 %v1680_v6  ;;  %v1797_v1 = vsel %vm15002_vm2, %v1796_v15, 0.0  ;;  %vm15003_vm15 = vnez %v14859_v62  ;;  %vm15010_vm2 = vmmov %vm15009_vm0  ;;  %v10534_v50 = vpop.permute.xlu0 %10533  ;;  %v11007_v15 = vld [vmem:[%s14685_s3 + $0x20] sm:$0xff]  }
 0x243   :  { %1735 = vmatpush1.bf16.msra.mxu1 %v1686_v14  ;;  %9014 = vmatprep.subr.msk.bf16.mxu0 %vm14998_vm10, %v1804_v56  ;;  %v1799_v24 = vsel %vm15003_vm15, %v1794_v30, 0.0  ;;  %v1803_v25 = vpack.c.bf16 %v1797_v1, %v1797_v1  ;;  %vm15006_vm10 = vcmask 64512   ;;  %vm15011_vm15 = vmmov %vm15009_vm0  ;;  %v10536_v5 = vunpack.i.h.bf16 %v10534_v50 }
 0x244   :  { %9016 = vmatprep.subr.msk.bf16.mxu1 %vm14999_vm9, %v1806_v22  ;;  %1723 = vmatprep.mubr.bf16.mxu0 %v14911_v54  ;;  %v1805_v41 = vpack.c.bf16 %v1799_v24, %v1799_v24  ;;  %vm15007_vm9 = vmmov %vm15006_vm10  ;;  %v10535_v40 = vunpack.i.l.bf16 %v10534_v50 }
 0x245   :  { %1766 = vmatprep.mubr.bf16.mxu1 %v14911_v54  ;;  %v1816_v4 = vsel %vm15008_vm14, %v1803_v25, 0  ;;  %vm15014_vm14 = vcmp.lt.s32.totalorder %v11259_v10, 127 }
 0x246   :  { %v1822_v62 = vsel %vm15009_vm0, %v1805_v41, 0  ;;  %v2056_v63 = vsel %vm15014_vm14, %v10531_v18, %v10525_v19  ;;  %vm15015_vm0 = vmmov %vm15014_vm14  ;;  %vm15020_vm14 = vcmask 1043456   ;;  %v10544_v16 = vpop.permute.xlu0 %10543 }
 0x247   :  { %v2054_v13 = vsel %vm15015_vm0, %v10526_v31, %v10530_v20  ;;  %vm15021_vm0 = vmmov %vm15020_vm14 }
 0x248   :  { %vm15023_vm13 = vmmov %vm15021_vm0 }
 0x24d   :  { %9010 = vmatmul.mubr.msk.bf16.vlgmr.msra.gmra.mrb[36].mxu0 %vm15006_vm10, %v11005_v23  ;;  %vm15012_vm10 = vnez %v14843_v45 }
 0x24e   :  { %9012 = vmatmul.mubr.msk.bf16.vlgmr.msra.gmra.mrb[36].mxu1 %vm15007_vm9, %v11005_v23  ;;  %1828 = vmatpush1.bf16.msra.mxu0 %v1816_v4  ;;  %v1921_v33 = vsel %vm15012_vm10, %v11847_v17, 0.0  ;;  %vm15013_vm9 = vnez %v14848_v48 }
 0x24f   :  { %1871 = vmatpush1.bf16.msra.mxu1 %v1822_v62  ;;  %9019 = vmatprep.subr.msk.bf16.mxu0 %vm15010_vm2, %v1928_v60  ;;  %v1923_v37 = vsel %vm15013_vm9, %v11849_v9, 0.0  ;;  %v1927_v8 = vpack.c.bf16 %v1921_v33, %v1921_v33  ;;  %vm15016_vm2 = vnez %v14869_v12  ;;  %vm15018_vm9 = vcmask 64512  }
 0x250   :  { %9021 = vmatprep.subr.msk.bf16.mxu1 %vm15011_vm15, %v1930_v29  ;;  %1859 = vmatprep.mubr.bf16.mxu0 %v14911_v54  ;;  %v1929_v47 = vpack.c.bf16 %v1923_v37, %v1923_v37  ;;  %v2058_v58 = vsel %vm15016_vm2, %v2054_v13, 0.0  ;;  %vm15017_vm15 = vnez %v14874_v3  ;;  %vm15019_vm10 = vmmov %vm15018_vm9  ;;  %v10540_v12 = vunpack.i.l.bf16 %v10539_v26 }
 0x251   :  { %1902 = vmatprep.mubr.bf16.mxu1 %v14911_v54  ;;  %v2060_v17 = vsel %vm15017_vm15, %v2056_v63, 0.0  ;;  %v1940_v9 = vsel %vm15020_vm14, %v1927_v8, 0  ;;  %v2064_v21 = vpack.c.bf16 %v2058_v58, %v2058_v58  ;;  %vm15022_vm2 = vmmov %vm15021_vm0  ;;  %vm15024_vm15 = vcmp.lt.s32.totalorder %v11259_v10, 127 }
 0x252   :  { %v1946_v39 = vsel %vm15021_vm0, %v1929_v47, 0  ;;  %v2066_v38 = vpack.c.bf16 %v2060_v17, %v2060_v17  ;;  %v2055_v3 = vsel %vm15024_vm15, %v10525_v19, %v10526_v31  ;;  %vm15027_vm14 = vnez %v14882_v53  ;;  %v10549_v53 = vpop.permute.xlu1 %10548  ;;  %v11008_v31 = vld [vmem:[%s14685_s3 + $0x28] sm:$0xff]   ;;  %v10554_v47 = vpop.permute.xlu0 %10553 }
 0x253   :  { %v10551_v55 = vunpack.i.h.bf16 %v10549_v53  ;;  %v10550_v61 = vunpack.i.l.bf16 %v10549_v53  ;;  %v10546_v62 = vunpack.i.h.bf16 %v10544_v16  ;;  %v10545_v60 = vunpack.i.l.bf16 %v10544_v16 }
 0x254   :  { %v10556_v26 = vunpack.i.h.bf16 %v10554_v47 }
 0x256   :  { %v10559_v32 = vpop.permute.xlu1 %10558 }
 0x257   :  { %v10561_v58 = vunpack.i.h.bf16 %v10559_v32 }
 0x259   :  { %9015 = vmatmul.mubr.msk.bf16.vlgmr.msra.gmra.mrb[36].mxu0 %vm15018_vm9, %v11006_v27  ;;  %vm15026_vm9 = vnez %v14879_v42 }
 0x25a   :  { %9017 = vmatmul.mubr.msk.bf16.vlgmr.msra.gmra.mrb[36].mxu1 %vm15019_vm10, %v11006_v27  ;;  %1952 = vmatpush1.bf16.msra.mxu0 %v1940_v9  ;;  %vm15025_vm10 = vmmov %vm15024_vm15  ;;  %v2057_v6 = vsel %vm15026_vm9, %v2055_v3, 0.0  ;;  %v10555_v9 = vunpack.i.l.bf16 %v10554_v47 }
 0x25b   :  { %1995 = vmatpush1.bf16.msra.mxu1 %v1946_v39  ;;  %9024 = vmatprep.subr.msk.bf16.mxu0 %vm15022_vm2, %v2064_v21  ;;  %v2053_v51 = vsel %vm15025_vm10, %v10530_v20, %v10531_v18  ;;  %v2063_v30 = vpack.c.bf16 %v2057_v6, %v2057_v6  ;;  %vm15030_vm2 = vcmask 64512   ;;  %vm15032_vm10 = vcmask 1043456  }
 0x25c   :  { %9026 = vmatprep.subr.msk.bf16.mxu1 %vm15023_vm13, %v2066_v38  ;;  %1983 = vmatprep.mubr.bf16.mxu0 %v14911_v54  ;;  %v2059_v14 = vsel %vm15027_vm14, %v2053_v51, 0.0  ;;  %vm15028_vm13 = vcmp.lt.s32.totalorder %v11259_v10, 113  ;;  %vm15031_vm15 = vmmov %vm15030_vm2 }
 0x25d   :  { %2026 = vmatprep.mubr.bf16.mxu1 %v14911_v54  ;;  %v2192_v56 = vsel %vm15028_vm13, %v10541_v46, %v10535_v40  ;;  %vm15029_vm0 = vmmov %vm15028_vm13  ;;  %v2065_v1 = vpack.c.bf16 %v2059_v14, %v2059_v14  ;;  %v2076_v23 = vsel %vm15032_vm10, %v2063_v30, 0 }
 0x25e   :  { %v2190_v22 = vsel %vm15029_vm0, %v10536_v5, %v10540_v12  ;;  %v2196_v42 = vsel %vm11680_vm5, %v2192_v56, 0.0  ;;  %vm15033_vm9 = vmmov %vm15032_vm10 }
 0x25f   :  { %v2194_v24 = vsel %vm11668_vm11, %v2190_v22, 0.0  ;;  %v2082_v25 = vsel %vm15033_vm9, %v2065_v1, 0  ;;  %v2202_v59 = vpack.c.bf16 %v2196_v42, %v2196_v42  ;;  %vm15034_vm11 = vmmov %vm15033_vm9  ;;  %v11010_v22 = vld [vmem:[%s14685_s3 + $0x38] sm:$0xff]   ;;  %v2599_v42 = vpop.permute.xlu1 %2598 }
 0x260   :  { %v2200_v41 = vpack.c.bf16 %v2194_v24, %v2194_v24  ;;  %vm15035_vm14 = vmmov %vm15033_vm9 }
 0x261   :  { %vm15036_vm5 = vmmov %vm15029_vm0 }
 0x262   :  { %v2191_v28 = vsel %vm15036_vm5, %v10535_v40, %v10536_v5  ;;  %vm15037_vm13 = vmmov %vm15029_vm0  ;;  %vm15038_vm0 = vcmp.lt.s32.totalorder %v11259_v10, 112 }
 0x263   :  { %v2189_v4 = vsel %vm15037_vm13, %v10540_v12, %v10541_v46  ;;  %v2193_v29 = vsel %vm11708_vm6, %v2191_v28, 0.0  ;;  %v2328_v18 = vsel %vm15038_vm0, %v10551_v55, %v10545_v60  ;;  %vm15041_vm6 = vcmask 64512   ;;  %vm15043_vm10 = vmmov %vm15033_vm9  ;;  %v11009_v46 = vld [vmem:[%s14685_s3 + $0x30] sm:$0xff]   ;;  %s11131_s3 = smov 32  }
 0x264   :  { %v2195_v11 = vsel %vm11724_vm7, %v2189_v4, 0.0  ;;  %v2199_v19 = vpack.c.bf16 %v2193_v29, %v2193_v29  ;;  %v2332_v7 = vsel %vm11655_vm3, %v2328_v18, 0.0  ;;  %vm15042_vm7 = vmmov %vm15041_vm6  ;;  %vm15048_vm13 = vcmp.lt.s32.totalorder %v11259_v10, 111 }
 0x265   :  { %9020 = vmatmul.mubr.msk.bf16.vlgmr.msra.gmra.mrb[36].mxu0 %vm15030_vm2, %v11007_v15  ;;  %vm15039_vm2 = vmmov %vm15038_vm0  ;;  %v2201_v33 = vpack.c.bf16 %v2195_v11, %v2195_v11  ;;  %v2338_v8 = vpack.c.bf16 %v2332_v7, %v2332_v7  ;;  %v2464_v38 = vsel %vm15048_vm13, %v10561_v58, %v10555_v9 }
 0x266   :  { %9022 = vmatmul.mubr.msk.bf16.vlgmr.msra.gmra.mrb[36].mxu1 %vm15031_vm15, %v11007_v15  ;;  %2088 = vmatpush1.bf16.msra.mxu0 %v2076_v23  ;;  %v2326_v20 = vsel %vm15039_vm2, %v10546_v62, %v10550_v61  ;;  %vm15040_vm15 = vnez %v14887_v0  ;;  %v2212_v63 = vsel %vm15043_vm10, %v2199_v19, 0  ;;  %v10560_v0 = vunpack.i.l.bf16 %v10559_v32  ;;  %vm15046_vm3 = vmmov %vm15038_vm0 }
 0x267   :  { %2131 = vmatpush1.bf16.msra.mxu1 %v2082_v25  ;;  %9029 = vmatprep.subr.msk.bf16.mxu0 %vm15034_vm11, %v2200_v41  ;;  %v2330_v37 = vsel %vm15040_vm15, %v2326_v20, 0.0  ;;  %v2218_v13 = vsel %vm15033_vm9, %v2201_v33, 0  ;;  %vm15044_vm11 = vmmov %vm15033_vm9  ;;  %v2327_v57 = vsel %vm15046_vm3, %v10545_v60, %v10546_v62  ;;  %vm15050_vm2 = vnez %v14932_v2 }
 0x268   :  { %9031 = vmatprep.subr.msk.bf16.mxu1 %vm15035_vm14, %v2202_v59  ;;  %2119 = vmatprep.mubr.bf16.mxu0 %v14911_v54  ;;  %v2336_v27 = vpack.c.bf16 %v2330_v37, %v2330_v37  ;;  %vm15045_vm14 = vmmov %vm15033_vm9  ;;  %v2329_v39 = vsel %vm11688_vm1, %v2327_v57, 0.0  ;;  %vm15051_vm1 = vnez %v14935_v34  ;;  %vm15060_vm3 = vnez %v14945_v36  ;;  %v2594_v36 = vpop.permute.xlu0 %2593 }
 0x269   :  { %2162 = vmatprep.mubr.bf16.mxu1 %v14911_v54  ;;  %vm15047_vm5 = vmmov %vm15038_vm0  ;;  %v2335_v12 = vpack.c.bf16 %v2329_v39, %v2329_v39  ;;  %v2468_v43 = vsel %vm15051_vm1, %v2464_v38, 0.0 }
 0x26a   :  { %v2325_v17 = vsel %vm15047_vm5, %v10550_v61, %v10551_v55  ;;  %vm15049_vm0 = vmmov %vm15048_vm13  ;;  %v2474_v6 = vpack.c.bf16 %v2468_v43, %v2468_v43  ;;  %v4373_v43 = vld [vmem:[%s14688_s6 + $0x8] sm:$0xff] }
 0x26b   :  { %v2331_v21 = vsel %vm11696_vm8, %v2325_v17, 0.0  ;;  %v2462_v50 = vsel %vm15049_vm0, %v10556_v26, %v10560_v0  ;;  %vm15052_vm15 = vmmov %vm15041_vm6 }
 0x26c   :  { %v2337_v3 = vpack.c.bf16 %v2331_v21, %v2331_v21  ;;  %v2466_v51 = vsel %vm15050_vm2, %v2462_v50, 0.0  ;;  %vm15053_vm8 = vmmov %vm15041_vm6 }
 0x26d   :  { %v2472_v40 = vpack.c.bf16 %v2466_v51, %v2466_v51  ;;  %vm15061_vm5 = vmmov %vm15053_vm8  ;;  %v4372_v51 = vld [vmem:[%s14688_s6] sm:$0xff] }
 0x26e   :  { %vm15062_vm13 = vmmov %vm15061_vm5 }
 0x271   :  { %9025 = vmatmul.mubr.msk.bf16.vlgmr.msra.gmra.mrb[36].mxu0 %vm15041_vm6, %v11008_v31  ;;  %vm15054_vm6 = vmmov %vm15033_vm9 }
 0x272   :  { %9027 = vmatmul.mubr.msk.bf16.vlgmr.msra.gmra.mrb[36].mxu1 %vm15042_vm7, %v11008_v31  ;;  %2224 = vmatpush1.bf16.msra.mxu0 %v2212_v63  ;;  %v2348_v52 = vsel %vm15054_vm6, %v2335_v12, 0  ;;  %vm15055_vm7 = vmmov %vm15054_vm6 }
 0x273   :  { %2267 = vmatpush1.bf16.msra.mxu1 %v2218_v13  ;;  %9034 = vmatprep.subr.msk.bf16.mxu0 %vm15044_vm11, %v2336_v27  ;;  %v2354_v5 = vsel %vm15055_vm7, %v2337_v3, 0  ;;  %vm15056_vm10 = vmmov %vm15054_vm6 }
 0x274   :  { %9036 = vmatprep.subr.msk.bf16.mxu1 %vm15045_vm14, %v2338_v8  ;;  %2255 = vmatprep.mubr.bf16.mxu0 %v14911_v54  ;;  %vm15057_vm9 = vmmov %vm15054_vm6 }
 0x275   :  { %2298 = vmatprep.mubr.bf16.mxu1 %v14911_v54  ;;  %vm15058_vm11 = vmmov %vm15049_vm0 }
 0x276   :  { %v2463_v2 = vsel %vm15058_vm11, %v10555_v9, %v10556_v26  ;;  %vm15059_vm14 = vmmov %vm15049_vm0 }
 0x277   :  { %v2461_v34 = vsel %vm15059_vm14, %v10560_v0, %v10561_v58  ;;  %v2465_v14 = vsel %vm11796_vm4, %v2463_v2, 0.0  ;;  %vm15063_vm0 = vmmov %vm15054_vm6  ;;  %v15068_v2 = vld [vmem:[#allocation6_spill] sm:$0xff] }
 0x278   :  { %v2467_v56 = vsel %vm15060_vm3, %v2461_v34, 0.0  ;;  %v2471_v15 = vpack.c.bf16 %v2465_v14, %v2465_v14  ;;  %vm15064_vm2 = vmmov %vm15063_vm0  ;;  %v2658_v34 = vadd.s32 4294967294, %v15068_v2  ;;  %v15069_v14 = vld [vmem:[#allocation10_spill] sm:$0xff] }
 0x279   :  { %v2473_v30 = vpack.c.bf16 %v2467_v56, %v2467_v56  ;;  %vm15065_vm4 = vmmov %vm15061_vm5  ;;  %v2661_v56 = vadd.s32 4294967294, %v15069_v14 }
 0x27a   :  { %v2484_v1 = vsel %vm15063_vm0, %v2471_v15, 0  ;;  %vm15066_vm1 = vmmov %vm15065_vm4  ;;  %vm2670_vm0 = vcmp.lt.s32.totalorder %v2658_v34, 16 }
 0x27b   :  { %v2490_v24 = vsel %vm15064_vm2, %v2473_v30, 0 }
 0x27d   :  { %9030 = vmatmul.mubr.msk.bf16.vlgmr.msra.gmra.mrb[36].mxu0 %vm15052_vm15, %v11009_v46 }
 0x27e   :  { %9032 = vmatmul.mubr.msk.bf16.vlgmr.msra.gmra.mrb[36].mxu1 %vm15053_vm8, %v11009_v46  ;;  %2360 = vmatpush1.bf16.msra.mxu0 %v2348_v52  ;;  %v4374_v52 = vld [vmem:[%s14688_s6 + $0x10] sm:$0xff] }
 0x27f   :  { %2403 = vmatpush1.bf16.msra.mxu1 %v2354_v5  ;;  %9039 = vmatprep.subr.msk.bf16.mxu0 %vm15056_vm10, %v2472_v40  ;;  %v4375_v5 = vld [vmem:[%s14688_s6 + $0x18] sm:$0xff]  ;;  %v15067_v40 = vld [vmem:[#allocation7_spill] sm:$0xff] }
 0x280   :  { %9041 = vmatprep.subr.msk.bf16.mxu1 %vm15057_vm9, %v2474_v6  ;;  %2391 = vmatprep.mubr.bf16.mxu0 %v14911_v54  ;;  %v2659_v6 = vadd.s32 4294967294, %v15067_v40 }
 0x281   :  { %2434 = vmatprep.mubr.bf16.mxu1 %v14911_v54 }
 0x282   :  { %vm2667_vm3 = vcmp.ge.s32.totalorder %v2659_v6, 0 }
 0x289   :  { %9035 = vmatmul.mubr.msk.bf16.vlgmr.msra.gmra.mrb[36].mxu0 %vm15061_vm5, %v11010_v22  ;;  %vm2671_vm5 = vcmp.lt.s32.totalorder %v2659_v6, 16 }
 0x28a   :  { %9037 = vmatmul.mubr.msk.bf16.vlgmr.msra.gmra.mrb[36].mxu1 %vm15062_vm13, %v11010_v22  ;;  %2496 = vmatpush1.bf16.msra.mxu0 %v2484_v1  ;;  %vm2666_vm13 = vcmp.ge.s32.totalorder %v2658_v34, 0  ;;  %v15070_v22 = vld [vmem:[#allocation11_spill] sm:$0xff]  ;;  %vm12172_vm2 = vmand %vm2667_vm3, %vm2671_vm5  ;;  %vm2649_vm3 = vcmp.lt.s32.totalorder %v11259_v10, 34 }
 0x28b   :  { %2539 = vmatpush1.bf16.msra.mxu1 %v2490_v24  ;;  %2527 = vmatprep.mubr.bf16.mxu0 %v14911_v54  ;;  %v2660_v15 = vadd.s32 4294967294, %v15070_v22  ;;  %v15073_v24 = vld [vmem:[#allocation8_spill] sm:$0xff] }
 0x28c   :  { %2570 = vmatprep.mubr.bf16.mxu1 %v14911_v54 }
 0x295   :  { %9040 = vmatmul.mubr.msk.bf16.vlgmr.msra.gmra.mrb[36].mxu0 %vm15065_vm4, %v11011_v35  ;;  %vm2734_vm4 = vcmp.lt.s32.totalorder %v11259_v10, 32 }
 0x296   :  { %9042 = vmatmul.mubr.msk.bf16.vlgmr.msra.gmra.mrb[36].mxu1 %vm15066_vm1, %v11011_v35  ;;  %2824 = vmatprep.mubr.bf16.mxu0 %v14911_v54  ;;  %v12177_v35 = vadd.s32 4294967294, %v15073_v24  ;;  %vm12180_vm1 = vmand %vm2666_vm13, %vm2670_vm0 }
 0x297   :  { %2877 = vmatprep.mubr.bf16.mxu1 %v14911_v54 }
 0x368   :  { %v2529_v53 = vpop.f32.mrb[36].mxu0 }
 0x369   :  { %v2572_v23 = vpop.f32.mrb[36].mxu1  ;;  %v2601_v25 = vadd.f32 %v2594_v36, %v2529_v53  ;;  %v2531_v59 = vpop.f32.mrb[37].mxu0 }
 0x36a   :  { %v2603_v41 = vadd.f32 %v2594_v36, %v2572_v23  ;;  %v2574_v16 = vpop.f32.mrb[37].mxu1  ;;  %v2602_v55 = vadd.f32 %v2594_v36, %v2531_v59  ;;  %v2533_v28 = vpop.f32.mrb[38].mxu0 }
 0x36b   :  { %v2604_v61 = vadd.f32 %v2594_v36, %v2574_v16  ;;  %v2576_v4 = vpop.f32.mrb[38].mxu1  ;;  %vm2609_vm15 = vcmp.ge.f32.partialorder %v2601_v25, 0.0  ;;  %v2617_v62 = vmul.f32 0.2, %v2601_v25  ;;  %v2605_v18 = vadd.f32 %v2599_v42, %v2533_v28  ;;  %v2535_v31 = vpop.f32.mrb[39].mxu0 }
 0x36c   :  { %vm2611_vm8 = vcmp.ge.f32.partialorder %v2603_v41, 0.0  ;;  %v2619_v60 = vmul.f32 0.2, %v2603_v41  ;;  %vm2610_vm6 = vcmp.ge.f32.partialorder %v2602_v55, 0.0  ;;  %v2618_v29 = vmul.f32 0.2, %v2602_v55 }
 0x36d   :  { %vm2612_vm7 = vcmp.ge.f32.partialorder %v2604_v61, 0.0  ;;  %v2620_v11 = vmul.f32 0.2, %v2604_v61  ;;  %v2607_v20 = vadd.f32 %v2599_v42, %v2576_v4  ;;  %v2578_v19 = vpop.f32.mrb[39].mxu1  ;;  %v12122_v33 = vsel %vm2609_vm15, %v2601_v25, %v2617_v62  ;;  %v15076_v25 = vld [vmem:[#allocation12_spill] sm:$0xff] }
 0x36e   :  { %v12124_v37 = vsel %vm2611_vm8, %v2603_v41, %v2619_v60  ;;  %v2606_v7 = vadd.f32 %v2599_v42, %v2535_v31  ;;  %v2608_v32 = vadd.f32 %v2599_v42, %v2578_v19  ;;  %vm2613_vm10 = vcmp.ge.f32.partialorder %v2605_v18, 0.0  ;;  %v15078_v60 = vld [vmem:[#allocation13_spill] sm:$0xff] }
 0x36f   :  { %v2621_v63 = vmul.f32 0.2, %v2605_v18  ;;  %vm2615_vm9 = vcmp.ge.f32.partialorder %v2607_v20, 0.0  ;;  %v2623_v13 = vmul.f32 0.2, %v2607_v20  ;;  %v12127_v47 = vsel %vm2610_vm6, %v2602_v55, %v2618_v29  ;;  %vm9045_vm6 = vmpackc.low %vm12172_vm2, %vm12172_vm2  ;;  %v15077_v55 = vld [vmem:[#allocation9_spill] sm:$0xff] }
 0x370   :  { %vm2614_vm11 = vcmp.ge.f32.partialorder %v2606_v7, 0.0  ;;  %v2622_v27 = vmul.f32 0.2, %v2606_v7  ;;  %vm2616_vm14 = vcmp.ge.f32.partialorder %v2608_v32, 0.0  ;;  %v2624_v8 = vmul.f32 0.2, %v2608_v32 }
 0x371   :  { %v12130_v58 = vsel %vm2612_vm7, %v2604_v61, %v2620_v11  ;;  %v12132_v0 = vsel %vm2613_vm10, %v2605_v18, %v2621_v63  ;;  %v12134_v57 = vsel %vm2615_vm9, %v2607_v20, %v2623_v13  ;;  %v12185_v41 = vadd.s32 4294967294, %v15076_v25  ;;  %vm9048_vm9 = vmpackc.low %vm12180_vm1, %vm12180_vm1  ;;  %v11014_v63 = vld [vmem:[%s14687_s5] sm:$0xff]  }
 0x372   :  { %v12136_v17 = vsel %vm2614_vm11, %v2606_v7, %v2622_v27  ;;  %v12138_v26 = vsel %vm2616_vm14, %v2608_v32, %v2624_v8  ;;  %v10563_v9 = vpack.i.bf16 %v12132_v0, %v12122_v33  ;;  %v10568_v39 = vpack.i.bf16 %v12134_v57, %v12124_v37 }
 0x373   :  { %v10573_v21 = vpack.i.bf16 %v12136_v17, %v12127_v47  ;;  %v10578_v38 = vpack.i.bf16 %v12138_v26, %v12130_v58  ;;  %v9118_v50 = vpack.c.bf16 %v12136_v17, %v12127_v47  ;;  %v9126_v46 = vpack.c.bf16 %v12138_v26, %v12130_v58 }
 0x374   :  { %10564 = vrot.lane.b32.xlu0 %v10563_v9, %s11131_s3  ;;  %v9121_v12 = vpack.c.bf16 %v12132_v0, %v12122_v33  ;;  %v9129_v3 = vpack.c.bf16 %v12134_v57, %v12124_v37  ;;  %vm2669_vm15 = vcmp.ge.s32.totalorder %v2661_v56, 0  ;;  %vm2673_vm8 = vcmp.lt.s32.totalorder %v2661_v56, 16  ;;  %v11019_v33 = vld [vmem:[%s14687_s5 + $0x38] sm:$0xff]  }
 0x375   :  { %10574 = vrot.lane.b32.xlu1 %v10573_v21, %s11131_s3  ;;  %vm2668_vm7 = vcmp.ge.s32.totalorder %v2660_v15, 0  ;;  %vm2672_vm10 = vcmp.lt.s32.totalorder %v2660_v15, 16  ;;  %v12191_v61 = vadd.s32 4294967294, %v15077_v55  ;;  %vm14752_vm11 = vcmp.ge.s32.totalorder %v12177_v35, 0  ;;  %vm12206_vm14 = vmand %vm2669_vm15, %vm2673_vm8 }
 0x376   :  { %v12202_v29 = vadd.s32 4294967294, %v15078_v60  ;;  %vm12213_vm5 = vmand %vm2668_vm7, %vm2672_vm10  ;;  %vm14750_vm13 = vcmp.ge.s32.totalorder %v12185_v41, 0 }
 0x377   :  { %vm12231_vm0 = vmand %vm12172_vm2, %vm14752_vm11  ;;  %vm14751_vm15 = vcmp.ge.s32.totalorder %v12191_v61, 0 }
 0x378   :  { %10569 = vrot.lane.b32.xlu0 %v10568_v39, %s11131_s3  ;;  %vm9053_vm8 = vmpackc.low %vm12206_vm14, %vm12206_vm14 }
 0x379   :  { %10579 = vrot.lane.b32.xlu1 %v10578_v38, %s11131_s3  ;;  %vm9056_vm7 = vmpackc.low %vm12213_vm5, %vm12213_vm5  ;;  %s11140_s3 = smov 120  }
 0x37a   :  { %vm9063_vm10 = vmpackc.low %vm12231_vm0, %vm12231_vm0 }
 0x37c   :  { %10584 = vrot.lane.b32.xlu0 %v10563_v9, %s11132_s17 }
 0x37d   :  { %10594 = vrot.lane.b32.xlu1 %v10573_v21, %s11132_s17 }
 0x380   :  { %10589 = vrot.lane.b32.xlu0 %v10568_v39, %s11132_s17 }
 0x381   :  { %10599 = vrot.lane.b32.xlu1 %v10578_v38, %s11132_s17  ;;  %s11141_s17 = smov 116  }
 0x384   :  { %10604 = vrot.lane.b32.xlu0 %v10563_v9, %s11133_s18 }
 0x385   :  { %10614 = vrot.lane.b32.xlu1 %v10573_v21, %s11133_s18 }
 0x388   :  { %10609 = vrot.lane.b32.xlu0 %v10568_v39, %s11133_s18 }
 0x389   :  { %10619 = vrot.lane.b32.xlu1 %v10578_v38, %s11133_s18  ;;  %s11142_s18 = smov 64  }
 0x38c   :  { %10624 = vrot.lane.b32.xlu0 %v10563_v9, %s11134_s1 }
 0x38d   :  { %10634 = vrot.lane.b32.xlu1 %v10573_v21, %s11134_s1 }
 0x390   :  { %10629 = vrot.lane.b32.xlu0 %v10568_v39, %s11134_s1 }
 0x391   :  { %10639 = vrot.lane.b32.xlu1 %v10578_v38, %s11134_s1  ;;  %s11143_s1 = smov 60  }
 0x394   :  { %10649 = vrot.lane.b32.xlu0 %v10573_v21, %s11135_s26 }
 0x395   :  { %10644 = vrot.lane.b32.xlu1 %v10568_v39, %s11135_s26 }
 0x398   :  { %10654 = vrot.lane.b32.xlu0 %v10563_v9, %s11135_s26 }
 0x399   :  { %10659 = vrot.lane.b32.xlu1 %v10578_v38, %s11135_s26  ;;  %s11144_s26 = smov 56  }
 0x39c   :  { %10669 = vrot.lane.b32.xlu0 %v10573_v21, %s11136_s27 }
 0x39d   :  { %10664 = vrot.lane.b32.xlu1 %v10568_v39, %s11136_s27 }
 0x3a0   :  { %10674 = vrot.lane.b32.xlu0 %v10563_v9, %s11136_s27 }
 0x3a1   :  { %10679 = vrot.lane.b32.xlu1 %v10578_v38, %s11136_s27  ;;  %s11145_s27 = smov 52  }
 0x3a4   :  { %10689 = vrot.lane.b32.xlu0 %v10573_v21, %s11137_s0 }
 0x3a5   :  { %10684 = vrot.lane.b32.xlu1 %v10568_v39, %s11137_s0 }
 0x3a8   :  { %10694 = vrot.lane.b32.xlu0 %v10563_v9, %s11137_s0 }
 0x3a9   :  { %10699 = vrot.lane.b32.xlu1 %v10578_v38, %s11137_s0 }
 0x3ac   :  { %10709 = vrot.lane.b32.xlu0 %v10573_v21, %s11138_s4 }
 0x3ad   :  { %10704 = vrot.lane.b32.xlu1 %v10568_v39, %s11138_s4 }
 0x3b0   :  { %10714 = vrot.lane.b32.xlu0 %v10563_v9, %s11138_s4  ;;  %v12237_v9 = vadd.s32 2, %v15073_v24 }
 0x3b1   :  { %10719 = vrot.lane.b32.xlu1 %v10578_v38, %s11138_s4 }
 0x3b2   :  { %vm3058_vm11 = vcmp.lt.s32.totalorder %v12237_v9, 16 }
 0x3b3   :  { %vm12339_vm0 = vmand %vm12172_vm2, %vm3058_vm11 }
 0x3b4   :  { %4378 = vperm.xlu0 %10481, %v4372_v51  }
 0x3b5   :  { %4383 = vperm.xlu1 %10562, %v4373_v43  }
 0x3b8   :  { %4388 = vperm.xlu0 %10481, %v4374_v52  }
 0x3b9   :  { %4393 = vperm.xlu1 %10562, %v4375_v5  }
 0x3e6   :  { %v10565_v30 = vpop.permute.xlu0 %10564 }
 0x3e7   :  { %v10567_v36 = vunpack.i.h.bf16 %v10565_v30  ;;  %v10566_v42 = vunpack.i.l.bf16 %v10565_v30  ;;  %v10575_v53 = vpop.permute.xlu1 %10574 }
 0x3e8   :  { %v10577_v59 = vunpack.i.h.bf16 %v10575_v53  ;;  %v10576_v16 = vunpack.i.l.bf16 %v10575_v53  ;;  %v12269_v53 = vadd.s32 2, %v15077_v55 }
 0x3ea   :  { %v2740_v28 = vsel %vm2734_vm4, %v10567_v36, %v10577_v59  ;;  %v2739_v4 = vsel %vm2734_vm4, %v10566_v42, %v10576_v16  ;;  %v10570_v62 = vpop.permute.xlu0 %10569 }
 0x3eb   :  { %v10572_v11 = vunpack.i.h.bf16 %v10570_v62  ;;  %v10571_v18 = vunpack.i.l.bf16 %v10570_v62  ;;  %v10580_v20 = vpop.permute.xlu1 %10579  ;;  %v9046_v31 = vpack.c.bf16 %v2740_v28, %v2739_v4 }
 0x3ec   :  { %v10582_v7 = vunpack.i.h.bf16 %v10580_v20  ;;  %v10581_v32 = vunpack.i.l.bf16 %v10580_v20 }
 0x3ed   :  { %v2737_v13 = vsel %vm2734_vm4, %v10576_v16, %v10571_v18  ;;  %v2738_v27 = vsel %vm2734_vm4, %v10577_v59, %v10572_v11  ;;  %9047 = vmatprep.subr.msk.bf16.mxu0 %vm9045_vm6, %v9046_v31  ;;  %vm14753_vm6 = vcmp.ge.s32.totalorder %v12202_v29, 0 }
 0x3ee   :  { %v2736_v39 = vsel %vm2734_vm4, %v10572_v11, %v10582_v7  ;;  %v2742_v21 = vsel %vm2734_vm4, %v10582_v7, %v10567_v36  ;;  %v2735_v38 = vsel %vm2734_vm4, %v10571_v18, %v10581_v32  ;;  %v10585_v51 = vpop.permute.xlu0 %10584  ;;  %v2741_v43 = vsel %vm2734_vm4, %v10581_v32, %v10566_v42  ;;  %v11012_v36 = vld [vmem:[%s14687_s5 + $0x10] sm:$0xff]   ;;  %vm12264_vm4 = vmand %vm12180_vm1, %vm14750_vm13 }
 0x3ef   :  { %v10587_v52 = vunpack.i.h.bf16 %v10585_v51  ;;  %v10586_v5 = vunpack.i.l.bf16 %v10585_v51  ;;  %v10595_v6 = vpop.permute.xlu1 %10594  ;;  %v9054_v34 = vpack.c.bf16 %v2736_v39, %v2735_v38  ;;  %v9057_v56 = vpack.c.bf16 %v2738_v27, %v2737_v13  ;;  %vm12284_vm13 = vmand %vm12206_vm14, %vm14751_vm15 }
 0x3f0   :  { %v9049_v15 = vpack.c.bf16 %v2742_v21, %v2741_v43  ;;  %v10597_v30 = vunpack.i.h.bf16 %v10595_v6  ;;  %v10596_v24 = vunpack.i.l.bf16 %v10595_v6  ;;  %vm9066_vm15 = vmpackc.low %vm12264_vm4, %vm12264_vm4  ;;  %v12312_v27 = vadd.s32 2, %v15076_v25 }
 0x3f1   :  { %9055 = vmatprep.subr.msk.bf16.mxu1 %vm9053_vm8, %v9054_v34  ;;  %vm14754_vm8 = vcmask 130048   ;;  %v12329_v25 = vadd.s32 2, %v15078_v60  ;;  %vm15097_vm4 = vcmask 130048  }
 0x3f2   :  { %v2655_v59 = vsel %vm2649_vm3, %v10587_v52, %v10597_v30  ;;  %v2654_v16 = vsel %vm2649_vm3, %v10586_v5, %v10596_v24  ;;  %9050 = vmatpush1.bf16.msk.msra.mxu0 %vm9048_vm9, %v9049_v15  ;;  %v10590_v28 = vpop.permute.xlu0 %10589  ;;  %9058 = vmatpush1.bf16.msk.msra.mxu1 %vm9056_vm7, %v9057_v56  ;;  %vm12292_vm9 = vmand %vm12213_vm5, %vm14753_vm6  ;;  %vm3060_vm7 = vcmp.lt.s32.totalorder %v12269_v53, 16 }
 0x3f3   :  { %v10592_v4 = vunpack.i.h.bf16 %v10590_v28  ;;  %v10591_v62 = vunpack.i.l.bf16 %v10590_v28  ;;  %v10600_v11 = vpop.permute.xlu1 %10599  ;;  %v9064_v18 = vpack.c.bf16 %v2655_v59, %v2654_v16  ;;  %vm9071_vm6 = vmpackc.low %vm12284_vm13, %vm12284_vm13 }
 0x3f4   :  { %v10602_v31 = vunpack.i.h.bf16 %v10600_v11  ;;  %v10601_v7 = vunpack.i.l.bf16 %v10600_v11  ;;  %vm9081_vm13 = vmpackc.low %vm12339_vm0, %vm12339_vm0 }
 0x3f5   :  { %v2652_v32 = vsel %vm2649_vm3, %v10596_v24, %v10591_v62  ;;  %v2653_v13 = vsel %vm2649_vm3, %v10597_v30, %v10592_v4  ;;  %9051 = vmatmul.mubr.msk.bf16.vlgmr.msra.gmra.mrb[40].mxu0 %vm14754_vm8, %v11012_v36  ;;  %9059 = vmatmul.mubr.msk.bf16.vlgmr.msra.gmra.mrb[40].mxu1 %vm14754_vm8, %v11012_v36  ;;  %vm9074_vm8 = vmpackc.low %vm12292_vm9, %vm12292_vm9  ;;  %v11013_v24 = vld [vmem:[%s14687_s5 + $0x18] sm:$0xff]  }
 0x3f6   :  { %v2651_v39 = vsel %vm2649_vm3, %v10592_v4, %v10602_v31  ;;  %v2657_v21 = vsel %vm2649_vm3, %v10602_v31, %v10587_v52  ;;  %v2650_v38 = vsel %vm2649_vm3, %v10591_v62, %v10601_v7  ;;  %9065 = vmatprep.subr.msk.bf16.mxu0 %vm9063_vm10, %v9064_v18  ;;  %v10605_v51 = vpop.permute.xlu0 %10604  ;;  %v2656_v43 = vsel %vm2649_vm3, %v10601_v7, %v10586_v5 }
 0x3f7   :  { %v10607_v52 = vunpack.i.h.bf16 %v10605_v51  ;;  %v10606_v6 = vunpack.i.l.bf16 %v10605_v51  ;;  %v10615_v34 = vpop.permute.xlu1 %10614  ;;  %v9072_v56 = vpack.c.bf16 %v2651_v39, %v2650_v38  ;;  %2834 = vmatprep.mubr.bf16.mxu0 %v14911_v54  ;;  %2887 = vmatprep.mubr.bf16.mxu1 %v14911_v54  ;;  %v9075_v60 = vpack.c.bf16 %v2653_v13, %v2652_v32 }
 0x3f8   :  { %v9067_v15 = vpack.c.bf16 %v2657_v21, %v2656_v43  ;;  %v10617_v30 = vunpack.i.h.bf16 %v10615_v34  ;;  %v10616_v5 = vunpack.i.l.bf16 %v10615_v34  ;;  %vm15093_vm3 = vcmp.lt.s32.totalorder %v11259_v10, 30 }
 0x3f9   :  { %9073 = vmatprep.subr.msk.bf16.mxu1 %vm9071_vm6, %v9072_v56  ;;  %vm15094_vm2 = vmmov %vm15093_vm3  ;;  %vm3057_vm6 = vcmp.lt.s32.totalorder %v12312_v27, 16  ;;  %vm14755_vm10 = vcmp.lt.s32.totalorder %v12329_v25, 16 }
 0x3fa   :  { %v3042_v1 = vsel %vm15093_vm3, %v10607_v52, %v10617_v30  ;;  %v3041_v36 = vsel %vm15094_vm2, %v10606_v6, %v10616_v5  ;;  %9068 = vmatpush1.bf16.msk.msra.mxu0 %vm9066_vm15, %v9067_v15  ;;  %v10610_v59 = vpop.permute.xlu0 %10609  ;;  %9076 = vmatpush1.bf16.msk.msra.mxu1 %vm9074_vm8, %v9075_v60  ;;  %vm12373_vm15 = vmand %vm12206_vm14, %vm3060_vm7 }
 0x3fb   :  { %v10612_v16 = vunpack.i.h.bf16 %v10610_v59  ;;  %v10611_v28 = vunpack.i.l.bf16 %v10610_v59  ;;  %v10620_v55 = vpop.permute.xlu1 %10619  ;;  %v9082_v4 = vpack.c.bf16 %v3042_v1, %v3041_v36  ;;  %vm15098_vm8 = vmmov %vm15097_vm4 }
 0x3fc   :  { %v10622_v62 = vunpack.i.h.bf16 %v10620_v55  ;;  %v10621_v11 = vunpack.i.l.bf16 %v10620_v55  ;;  %vm12384_vm9 = vmand %vm12180_vm1, %vm3057_vm6 }
 0x3fd   :  { %9052 = vmatmul.mubr.msk.bf16.gmra.mrb[44].mxu0 %vm15097_vm4, %v11013_v24  ;;  %9060 = vmatmul.mubr.msk.bf16.gmra.mrb[44].mxu1 %vm15098_vm8, %v11013_v24  ;;  %vm15101_vm14 = vmmov %vm15094_vm2 }
 0x3fe   :  { %v3038_v19 = vsel %vm15101_vm14, %v10612_v16, %v10622_v62  ;;  %vm15102_vm0 = vmmov %vm15094_vm2  ;;  %9083 = vmatprep.subr.msk.bf16.mxu0 %vm9081_vm13, %v9082_v4  ;;  %v10625_v31 = vpop.permute.xlu0 %10624  ;;  %vm3243_vm2 = vcmp.lt.s32.totalorder %v11259_v10, 2  ;;  %2946 = vmatprep.mubr.bf16.mxu0 %v14911_v54 }
 0x3ff   :  { %v3037_v20 = vsel %vm15102_vm0, %v10611_v28, %v10621_v11  ;;  %vm9089_vm3 = vmpackc.low %vm12373_vm15, %vm12373_vm15  ;;  %v10627_v7 = vunpack.i.h.bf16 %v10625_v31  ;;  %v10626_v32 = vunpack.i.l.bf16 %v10625_v31  ;;  %v10635_v23 = vpop.permute.xlu1 %10634  ;;  %2999 = vmatprep.mubr.bf16.mxu1 %v14911_v54  ;;  %v11016_v31 = vld [vmem:[%s14687_s5 + $0x20] sm:$0xff]  }
 0x400   :  { %v9090_v13 = vpack.c.bf16 %v3038_v19, %v3037_v20  ;;  %vm12402_vm1 = vmand %vm12213_vm5, %vm14755_vm10  ;;  %v10637_v21 = vunpack.i.h.bf16 %v10635_v23  ;;  %v10636_v38 = vunpack.i.l.bf16 %v10635_v23  ;;  %vm15107_vm5 = vcmp.ge.s32.totalorder %v12177_v35, 0 }
 0x401   :  { %vm9084_vm13 = vmpackc.low %vm12384_vm9, %vm12384_vm9 }
 0x402   :  { %vm15105_vm15 = vmmov %vm15102_vm0  ;;  %9091 = vmatprep.subr.msk.bf16.mxu1 %vm9089_vm3, %v9090_v13  ;;  %v3248_v8 = vsel %vm3243_vm2, %v10626_v32, %v10636_v38  ;;  %v10630_v60 = vpop.permute.xlu0 %10629 }
 0x403   :  { %v3044_v51 = vsel %vm15105_vm15, %v10622_v62, %v10607_v52  ;;  %vm15106_vm4 = vmmov %vm15102_vm0  ;;  %v3040_v52 = vsel %vm15102_vm0, %v10617_v30, %v10612_v16  ;;  %v10632_v24 = vunpack.i.h.bf16 %v10630_v60  ;;  %v10631_v1 = vunpack.i.l.bf16 %v10630_v60  ;;  %v10640_v36 = vpop.permute.xlu1 %10639  ;;  %v11015_v62 = vld [vmem:[%s14687_s5 + $0x8] sm:$0xff]  }
 0x404   :  { %v3043_v43 = vsel %vm15106_vm4, %v10621_v11, %v10606_v6  ;;  %vm12420_vm8 = vmand %vm15004_vm12, %vm15107_vm5  ;;  %v3249_v6 = vsel %vm3243_vm2, %v10627_v7, %v10637_v21  ;;  %vm15111_vm15 = vcmp.ge.s32.totalorder %v12191_v61, 0  ;;  %vm15112_vm4 = vnez %v14821_v44 }
 0x405   :  { %vm15110_vm14 = vmmov %vm15102_vm0  ;;  %v9100_v15 = vpack.c.bf16 %v3249_v6, %v3248_v8  ;;  %v10642_v59 = vunpack.i.h.bf16 %v10640_v36  ;;  %v10641_v16 = vunpack.i.l.bf16 %v10640_v36  ;;  %vm15115_vm0 = vcmask 130048  }
 0x406   :  { %v3039_v56 = vsel %vm15110_vm14, %v10616_v5, %v10611_v28  ;;  %vm9092_vm3 = vmpackc.low %vm12402_vm1, %vm12402_vm1  ;;  %v9085_v5 = vpack.c.bf16 %v3044_v51, %v3043_v43  ;;  %9069 = vmatmul.mubr.msk.bf16.vlgmr.msra.gmra.mrb[40].mxu0 %vm15115_vm0, %v11014_v63  ;;  %vm15119_vm1 = vcmp.ge.s32.totalorder %v12185_v41, 0  ;;  %v3246_v23 = vsel %vm3243_vm2, %v10636_v38, %v10631_v1  ;;  %v12515_v39 = vpop.permute.xlu0 %10649  ;;  %v11017_v38 = vld [vmem:[%s14687_s5 + $0x28] sm:$0xff]  }
 0x407   :  { %vm12439_vm5 = vmand %vm15112_vm4, %vm15111_vm15  ;;  %v9093_v28 = vpack.c.bf16 %v3040_v52, %v3039_v56  ;;  %v3245_v55 = vsel %vm3243_vm2, %v10632_v24, %v10642_v59  ;;  %v3244_v4 = vsel %vm3243_vm2, %v10631_v1, %v10641_v16  ;;  %2956 = vmatprep.mubr.bf16.mxu0 %v14911_v54  ;;  %vm15123_vm15 = vcmp.ge.s32.totalorder %v12202_v29, 0  ;;  %v11018_v56 = vld [vmem:[%s14687_s5 + $0x30] sm:$0xff]  }
 0x408   :  { %vm9099_vm14 = vmpackc.low %vm12420_vm8, %vm12420_vm8  ;;  %9086 = vmatpush1.bf16.msk.msra.mxu0 %vm9084_vm13, %v9085_v5  ;;  %v9108_v42 = vpack.c.bf16 %v3245_v55, %v3244_v4  ;;  %vm15120_vm13 = vnez %v14843_v45  ;;  %v3251_v19 = vsel %vm3243_vm2, %v10642_v59, %v10627_v7  ;;  %v3250_v20 = vsel %vm3243_vm2, %v10641_v16, %v10626_v32 }
 0x409   :  { %vm15116_vm10 = vmmov %vm15115_vm0  ;;  %9101 = vmatprep.subr.msk.bf16.mxu0 %vm9099_vm14, %v9100_v15  ;;  %v3247_v13 = vsel %vm3243_vm2, %v10637_v21, %v10632_v24  ;;  %v9103_v7 = vpack.c.bf16 %v3251_v19, %v3250_v20  ;;  %v12517_v21 = vpop.permute.xlu1 %10644  ;;  %v10652_v47 = vunpack.i.h.bf16 %v12515_v39  ;;  %v10651_v58 = vunpack.i.l.bf16 %v12515_v39  ;;  %v11020_v19 = vld [vmem:[%s14687_s5 + $0x40] sm:$0xff]  }
 0x40a   :  { %9077 = vmatmul.mubr.msk.bf16.vlgmr.msra.gmra.mrb[40].mxu1 %vm15116_vm10, %v11014_v63  ;;  %vm9107_vm8 = vmpackc.low %vm12439_vm5, %vm12439_vm5  ;;  %vm15124_vm5 = vnez %v14848_v48  ;;  %v9111_v32 = vpack.c.bf16 %v3247_v13, %v3246_v23  ;;  %v12530_v51 = vpop.permute.xlu0 %10654  ;;  %v10647_v17 = vunpack.i.h.bf16 %v12517_v21  ;;  %v10646_v26 = vunpack.i.l.bf16 %v12517_v21 }
 0x40b   :  { %9094 = vmatpush1.bf16.msk.msra.mxu1 %vm9092_vm3, %v9093_v28  ;;  %3009 = vmatprep.mubr.bf16.mxu1 %v14911_v54  ;;  %vm15117_vm10 = vmmov %vm15115_vm0  ;;  %v3797_v30 = vadd.s32 2, %v15067_v40  ;;  %v3799_v5 = vadd.s32 2, %v15069_v14  ;;  %v11024_v14 = vld [vmem:[%s14687_s5 + $0x60] sm:$0xff]  }
 0x40c   :  { %9109 = vmatprep.subr.msk.bf16.mxu1 %vm9107_vm8, %v9108_v42  ;;  %vm15118_vm9 = vmmov %vm15115_vm0 }
 0x40d   :  { %vm12478_vm3 = vmand %vm15120_vm13, %vm15119_vm1  ;;  %v12532_v43 = vpop.permute.xlu1 %10659 }
 0x40e   :  { %9070 = vmatmul.mubr.msk.bf16.gmra.mrb[44].mxu0 %vm15117_vm10, %v11015_v62  ;;  %vm12486_vm14 = vmand %vm15124_vm5, %vm15123_vm15  ;;  %v10662_v63 = vunpack.i.h.bf16 %v12532_v43  ;;  %v10661_v34 = vunpack.i.l.bf16 %v12532_v43  ;;  %v12587_v44 = vpop.permute.xlu0 %10669  ;;  %v3796_v43 = vadd.s32 2, %v15068_v2 }
 0x40f   :  { %3137 = vmatprep.mubr.bf16.mxu0 %v14911_v54  ;;  %vm9102_vm0 = vmpackc.low %vm12478_vm3, %vm12478_vm3  ;;  %vm3592_vm3 = vcmp.lt.s32.totalorder %v11259_v10, 126  ;;  %v10671_v45 = vunpack.i.l.bf16 %v12587_v44 }
 0x410   :  { %vm9110_vm8 = vmpackc.low %vm12486_vm14, %vm12486_vm14  ;;  %v3596_v6 = vsel %vm3592_vm3, %v10652_v47, %v10647_v17  ;;  %v3595_v8 = vsel %vm3592_vm3, %v10651_v58, %v10646_v26  ;;  %v3593_v18 = vsel %vm3592_vm3, %v10646_v26, %v10661_v34 }
 0x411   :  { %vm9117_vm10 = vmpackc.low %vm15004_vm12, %vm15004_vm12  ;;  %v9136_v24 = vpack.c.bf16 %v3596_v6, %v3595_v8  ;;  %v12589_v1 = vpop.permute.xlu1 %10664 }
 0x412   :  { %9078 = vmatmul.mubr.msk.bf16.gmra.mrb[44].mxu1 %vm15118_vm9, %v11015_v62  ;;  %vm15127_vm1 = vmmov %vm15118_vm9  ;;  %v12622_v37 = vpop.permute.xlu0 %10674  ;;  %v10666_v40 = vunpack.i.l.bf16 %v12589_v1 }
 0x413   :  { %3190 = vmatprep.mubr.bf16.mxu1 %v14911_v54  ;;  %vm9125_vm2 = vmpackc.low %vm15112_vm4, %vm15112_vm4  ;;  %v10677_v59 = vunpack.i.h.bf16 %v12622_v37  ;;  %v10676_v16 = vunpack.i.l.bf16 %v12622_v37 }
 0x414   :  { %vm15128_vm15 = vmmov %vm15127_vm1 }
 0x415   :  { %vm15129_vm14 = vmmov %vm15127_vm1  ;;  %v12624_v57 = vpop.permute.xlu1 %10679 }
 0x416   :  { %9087 = vmatmul.mubr.msk.bf16.vlgmr.msra.gmra.mrb[40].mxu0 %vm15118_vm9, %v11016_v31  ;;  %v10682_v28 = vunpack.i.h.bf16 %v12624_v57  ;;  %v10681_v55 = vunpack.i.l.bf16 %v12624_v57 }
 0x417   :  { %9104 = vmatpush1.bf16.msk.msra.mxu0 %vm9102_vm0, %v9103_v7  ;;  %3147 = vmatprep.mubr.bf16.mxu0 %v14911_v54  ;;  %vm9120_vm0 = vmpackc.low %vm15120_vm13, %vm15120_vm13 }
 0x418   :  { %9119 = vmatprep.subr.msk.bf16.mxu0 %vm9117_vm10, %v9118_v50  ;;  %v10657_v50 = vunpack.i.h.bf16 %v12530_v51  ;;  %vm12573_vm10 = vmand %vm15112_vm4, %vm3060_vm7 }
 0x419   :  { %vm15134_vm4 = vmmov %vm15127_vm1 }
 0x41a   :  { %9095 = vmatmul.mubr.msk.bf16.vlgmr.msra.gmra.mrb[40].mxu1 %vm15127_vm1, %v11016_v31  ;;  %v3600_v60 = vsel %vm3592_vm3, %v10662_v63, %v10657_v50  ;;  %v3598_v48 = vsel %vm3592_vm3, %v10657_v50, %v10652_v47  ;;  %v3798_v47 = vadd.s32 2, %v15070_v22  ;;  %v11028_v22 = vld [vmem:[%s14687_s5 + $0x80] sm:$0xff]  }
 0x41b   :  { %9112 = vmatpush1.bf16.msk.msra.mxu1 %vm9110_vm8, %v9111_v32  ;;  %3200 = vmatprep.mubr.bf16.mxu1 %v14911_v54  ;;  %vm12557_vm8 = vmand %vm15004_vm12, %vm3058_vm11 }
 0x41c   :  { %9127 = vmatprep.subr.msk.bf16.mxu1 %vm9125_vm2, %v9126_v46  ;;  %v10656_v46 = vunpack.i.l.bf16 %v12530_v51  ;;  %vm9128_vm12 = vmpackc.low %vm15124_vm5, %vm15124_vm5  ;;  %v12726_v51 = vpop.permute.xlu1 %10684 }
 0x41d   :  { %vm9135_vm9 = vmpackc.low %vm12557_vm8, %vm12557_vm8  ;;  %vm3803_vm8 = vcmp.ge.s32.totalorder %v3799_v5, 0 }
 0x41e   :  { %9088 = vmatmul.mubr.msk.bf16.gmra.mrb[44].mxu0 %vm15128_vm15, %v11017_v38  ;;  %v3599_v15 = vsel %vm3592_vm3, %v10661_v34, %v10656_v46  ;;  %vm9143_vm2 = vmpackc.low %vm12573_vm10, %vm12573_vm10  ;;  %vm3807_vm10 = vcmp.lt.s32.totalorder %v3799_v5, 16  ;;  %v3597_v11 = vsel %vm3592_vm3, %v10656_v46, %v10651_v58  ;;  %v11021_v58 = vld [vmem:[%s14687_s5 + $0x48] sm:$0xff]   ;;  %v10687_v46 = vunpack.i.h.bf16 %v12726_v51 }
 0x41f   :  { %3332 = vmatprep.mubr.bf16.mxu0 %v14911_v54  ;;  %v9144_v36 = vpack.c.bf16 %v3600_v60, %v3599_v15  ;;  %vm12618_vm15 = vmand %vm15120_vm13, %vm3057_vm6  ;;  %v9139_v7 = vpack.c.bf16 %v3598_v48, %v3597_v11 }
 0x420   :  { %vm15137_vm13 = vmmov %vm15127_vm1 }
 0x422   :  { %9096 = vmatmul.mubr.msk.bf16.gmra.mrb[44].mxu1 %vm15129_vm14, %v11017_v38  ;;  %vm3801_vm14 = vcmp.ge.s32.totalorder %v3797_v30, 0  ;;  %v12724_v38 = vpop.permute.xlu0 %10689 }
 0x423   :  { %3385 = vmatprep.mubr.bf16.mxu1 %v14911_v54  ;;  %v10692_v26 = vunpack.i.h.bf16 %v12724_v38  ;;  %v10691_v50 = vunpack.i.l.bf16 %v12724_v38  ;;  %v11025_v38 = vld [vmem:[%s14687_s5 + $0x68] sm:$0xff]  }
 0x426   :  { %9105 = vmatmul.mubr.msk.bf16.vlgmr.msra.gmra.mrb[40].mxu0 %vm15134_vm4, %v11018_v56  ;;  %v12742_v2 = vpop.permute.xlu0 %10694 }
 0x427   :  { %9122 = vmatpush1.bf16.msk.msra.mxu0 %vm9120_vm0, %v9121_v12  ;;  %3342 = vmatprep.mubr.bf16.mxu0 %v14911_v54  ;;  %vm3805_vm0 = vcmp.lt.s32.totalorder %v3797_v30, 16  ;;  %v10672_v12 = vunpack.i.h.bf16 %v12587_v44  ;;  %v10696_v52 = vunpack.i.l.bf16 %v12742_v2  ;;  %v11022_v44 = vld [vmem:[%s14687_s5 + $0x50] sm:$0xff]  }
 0x428   :  { %9137 = vmatprep.subr.msk.bf16.mxu0 %vm9135_vm9, %v9136_v24  ;;  %vm15138_vm9 = vmmov %vm15127_vm1 }
 0x429   :  { %vm12635_vm4 = vmand %vm3801_vm14, %vm3805_vm0  ;;  %vm15143_vm14 = vcmp.lt.s32.totalorder %v12329_v25, 16 }
 0x42a   :  { %9113 = vmatmul.mubr.msk.bf16.vlgmr.msra.gmra.mrb[40].mxu1 %vm15127_vm1, %v11018_v56  ;;  %vm12647_vm1 = vmand %vm3803_vm8, %vm3807_vm10  ;;  %v10697_v56 = vunpack.i.h.bf16 %v12742_v2 }
 0x42b   :  { %9130 = vmatpush1.bf16.msk.msra.mxu1 %vm9128_vm12, %v9129_v3  ;;  %3395 = vmatprep.mubr.bf16.mxu1 %v14911_v54  ;;  %vm9138_vm12 = vmpackc.low %vm12618_vm15, %vm12618_vm15  ;;  %v10667_v3 = vunpack.i.h.bf16 %v12589_v1 }
 0x42c   :  { %9145 = vmatprep.subr.msk.bf16.mxu1 %vm9143_vm2, %v9144_v36  ;;  %vm3787_vm2 = vcmp.lt.s32.totalorder %v11259_v10, 98  ;;  %vm12656_vm0 = vmand %vm15124_vm5, %vm15143_vm14  ;;  %vm15149_vm5 = vcmp.ge.s32.totalorder %v12191_v61, 0 }
 0x42d   :  { %vm12687_vm8 = vmand %vm12647_vm1, %vm15149_vm5  ;;  %v3791_v31 = vsel %vm3787_vm2, %v10672_v12, %v10667_v3  ;;  %v3790_v61 = vsel %vm3787_vm2, %v10671_v45, %v10666_v40  ;;  %v3795_v23 = vsel %vm3787_vm2, %v10682_v28, %v10677_v59  ;;  %v3794_v13 = vsel %vm3787_vm2, %v10681_v55, %v10676_v16 }
 0x42e   :  { %9106 = vmatmul.mubr.msk.bf16.gmra.mrb[44].mxu0 %vm15137_vm13, %v11019_v33  ;;  %vm15146_vm13 = vcmp.ge.s32.totalorder %v12177_v35, 0  ;;  %v3594_v35 = vsel %vm3592_vm3, %v10647_v17, %v10662_v63  ;;  %vm9146_vm3 = vmpackc.low %vm12656_vm0, %vm12656_vm0  ;;  %v9154_v39 = vpack.c.bf16 %v3791_v31, %v3790_v61  ;;  %v9162_v21 = vpack.c.bf16 %v3795_v23, %v3794_v13  ;;  %v12744_v17 = vpop.permute.xlu1 %10699 }
 0x42f   :  { %3486 = vmatprep.mubr.bf16.mxu0 %v14911_v54  ;;  %v9147_v32 = vpack.c.bf16 %v3594_v35, %v3593_v18  ;;  %vm9161_vm14 = vmpackc.low %vm12687_vm8, %vm12687_vm8  ;;  %vm3800_vm0 = vcmp.ge.s32.totalorder %v3796_v43, 0  ;;  %vm3802_vm8 = vcmp.ge.s32.totalorder %v3798_v47, 0  ;;  %v10686_v63 = vunpack.i.l.bf16 %v12726_v51 }
 0x430   :  { %v10702_v6 = vunpack.i.h.bf16 %v12744_v17  ;;  %v10701_v8 = vunpack.i.l.bf16 %v12744_v17  ;;  %v3788_v15 = vsel %vm3787_vm2, %v10666_v40, %v10681_v55  ;;  %v3789_v24 = vsel %vm3787_vm2, %v10667_v3, %v10682_v28  ;;  %v11023_v3 = vld [vmem:[%s14687_s5 + $0x58] sm:$0xff]  }
 0x431   :  { %v9165_v0 = vpack.c.bf16 %v3789_v24, %v3788_v15  ;;  %v11027_v17 = vld [vmem:[%s14687_s5 + $0x78] sm:$0xff]  }
 0x432   :  { %9114 = vmatmul.mubr.msk.bf16.gmra.mrb[44].mxu1 %vm15138_vm9, %v11019_v33  ;;  %vm12664_vm9 = vmand %vm12635_vm4, %vm15146_vm13  ;;  %vm15152_vm13 = vcmask 130048  }
 0x433   :  { %3539 = vmatprep.mubr.bf16.mxu1 %v14911_v54  ;;  %vm9153_vm10 = vmpackc.low %vm12664_vm9, %vm12664_vm9  ;;  %vm3804_vm9 = vcmp.lt.s32.totalorder %v3796_v43, 16 }
 0x434   :  { %vm15153_vm5 = vmmov %vm15152_vm13 }
 0x435   :  { %vm12746_vm15 = vmand %vm3800_vm0, %vm3804_vm9  ;;  %vm15163_vm9 = vcmp.ge.s32.totalorder %v12202_v29, 0  ;;  %v3793_v29 = vsel %vm3787_vm2, %v10677_v59, %v10672_v12  ;;  %v12834_v12 = vpop.permute.xlu0 %10709 }
 0x436   :  { %9123 = vmatmul.mubr.msk.bf16.vlgmr.msra.gmra.mrb[40].mxu0 %vm15152_vm13, %v11020_v19  ;;  %vm3806_vm13 = vcmp.lt.s32.totalorder %v3798_v47, 16  ;;  %v10711_v28 = vunpack.i.l.bf16 %v12834_v12 }
 0x437   :  { %9140 = vmatpush1.bf16.msk.msra.mxu0 %vm9138_vm12, %v9139_v7  ;;  %3496 = vmatprep.mubr.bf16.mxu0 %v14911_v54  ;;  %vm15156_vm12 = vmmov %vm15153_vm5 }
 0x438   :  { %9155 = vmatprep.subr.msk.bf16.mxu0 %vm9153_vm10, %v9154_v39  ;;  %vm12756_vm10 = vmand %vm3802_vm8, %vm3806_vm13 }
 0x439   :  { %vm12779_vm8 = vmand %vm12756_vm10, %vm15163_vm9  ;;  %v10715_v40 = vpop.permute.xlu0 %10714 }
 0x43a   :  { %9131 = vmatmul.mubr.msk.bf16.vlgmr.msra.gmra.mrb[40].mxu1 %vm15153_vm5, %v11020_v19  ;;  %vm9171_vm13 = vmpackc.low %vm12635_vm4, %vm12635_vm4  ;;  %v10717_v62 = vunpack.i.h.bf16 %v10715_v40  ;;  %v10716_v11 = vunpack.i.l.bf16 %v10715_v40 }
 0x43b   :  { %9148 = vmatpush1.bf16.msk.msra.mxu1 %vm9146_vm3, %v9147_v32  ;;  %3549 = vmatprep.mubr.bf16.mxu1 %v14911_v54  ;;  %vm15157_vm3 = vmmov %vm15153_vm5  ;;  %vm15160_vm5 = vcmp.ge.s32.totalorder %v12185_v41, 0  ;;  %v3792_v41 = vsel %vm3787_vm2, %v10676_v16, %v10671_v45  ;;  %v12836_v45 = vpop.permute.xlu1 %10704  ;;  %v10712_v16 = vunpack.i.h.bf16 %v12834_v12 }
 0x43c   :  { %9163 = vmatprep.subr.msk.bf16.mxu1 %vm9161_vm14, %v9162_v21  ;;  %vm3998_vm14 = vcmp.lt.s32.totalorder %v11259_v10, 96  ;;  %vm12771_vm0 = vmand %vm12746_vm15, %vm15160_vm5  ;;  %v9157_v33 = vpack.c.bf16 %v3793_v29, %v3792_v41  ;;  %vm15166_vm5 = vcmask 130048   ;;  %v10707_v55 = vunpack.i.h.bf16 %v12836_v45 }
 0x43d   :  { %v4002_v36 = vsel %vm3998_vm14, %v10692_v26, %v10687_v46  ;;  %v4001_v1 = vsel %vm3998_vm14, %v10691_v50, %v10686_v63  ;;  %v4006_v30 = vsel %vm3998_vm14, %v10702_v6, %v10697_v56  ;;  %v4005_v5 = vsel %vm3998_vm14, %v10701_v8, %v10696_v52  ;;  %vm9156_vm2 = vmpackc.low %vm12771_vm0, %vm12771_vm0 }
 0x43e   :  { %9124 = vmatmul.mubr.msk.bf16.gmra.mrb[44].mxu0 %vm15156_vm12, %v11021_v58  ;;  %vm9164_vm12 = vmpackc.low %vm12779_vm8, %vm12779_vm8  ;;  %v9172_v37 = vpack.c.bf16 %v4002_v36, %v4001_v1  ;;  %v9180_v57 = vpack.c.bf16 %v4006_v30, %v4005_v5  ;;  %v10706_v42 = vunpack.i.l.bf16 %v12836_v45  ;;  %v4003_v19 = vsel %vm3998_vm14, %v10696_v52, %v10691_v50  ;;  %v4379_v50 = vpop.permute.xlu0 %4378 }
 0x43f   :  { %3681 = vmatprep.mubr.bf16.mxu0 %v14911_v54  ;;  %vm15167_vm9 = vmmov %vm15166_vm5  ;;  %v10720_v59 = vpop.permute.xlu1 %10719  ;;  %v4004_v20 = vsel %vm3998_vm14, %v10697_v56, %v10692_v26  ;;  %v3999_v31 = vsel %vm3998_vm14, %v10686_v63, %v10701_v8  ;;  %v4000_v9 = vsel %vm3998_vm14, %v10687_v46, %v10702_v6  ;;  %v11029_v26 = vld [vmem:[%s14687_s5 + $0x88] sm:$0xff]  }
 0x440   :  { %vm15168_vm0 = vmmov %vm15166_vm5  ;;  %v10722_v48 = vunpack.i.h.bf16 %v10720_v59  ;;  %v10721_v18 = vunpack.i.l.bf16 %v10720_v59  ;;  %v9175_v53 = vpack.c.bf16 %v4004_v20, %v4003_v19  ;;  %v9183_v4 = vpack.c.bf16 %v4000_v9, %v3999_v31 }
 0x441   :  { %vm15169_vm8 = vmmov %vm15168_vm0 }
 0x442   :  { %9132 = vmatmul.mubr.msk.bf16.gmra.mrb[44].mxu1 %vm15157_vm3, %v11021_v58  ;;  %vm9179_vm3 = vmpackc.low %vm12647_vm1, %vm12647_vm1  ;;  %v11026_v58 = vld [vmem:[%s14687_s5 + $0x70] sm:$0xff]   ;;  %v4389_v45 = vpop.permute.xlu0 %4388  ;;  %s11139_s5 = smov 124  }
 0x443   :  { %3734 = vmatprep.mubr.bf16.mxu1 %v14911_v54  ;;  %vm15174_vm14 = vmmov %vm15168_vm0  ;;  %v4384_v29 = vpop.permute.xlu1 %4383 }
 0x446   :  { %9141 = vmatmul.mubr.msk.bf16.vlgmr.msra.gmra.mrb[40].mxu0 %vm15166_vm5, %v11022_v44  ;;  %vm15176_vm5 = vmmov %vm15168_vm0 }
 0x447   :  { %9158 = vmatpush1.bf16.msk.msra.mxu0 %vm9156_vm2, %v9157_v33  ;;  %3691 = vmatprep.mubr.bf16.mxu0 %v14911_v54  ;;  %vm9174_vm2 = vmpackc.low %vm12746_vm15, %vm12746_vm15 }
 0x448   :  { %9173 = vmatprep.subr.msk.bf16.mxu0 %vm9171_vm13, %v9172_v37  ;;  %vm4193_vm13 = vcmp.lt.s32.totalorder %v11259_v10, 94 }
 0x449   :  { %v4197_v23 = vsel %vm4193_vm13, %v10712_v16, %v10707_v55  ;;  %v4196_v13 = vsel %vm4193_vm13, %v10711_v28, %v10706_v42  ;;  %v4201_v7 = vsel %vm4193_vm13, %v10722_v48, %v10717_v62  ;;  %v4200_v32 = vsel %vm4193_vm13, %v10721_v18, %v10716_v11 }
 0x44a   :  { %9149 = vmatmul.mubr.msk.bf16.vlgmr.msra.gmra.mrb[40].mxu1 %vm15167_vm9, %v11022_v44  ;;  %v9190_v39 = vpack.c.bf16 %v4197_v23, %v4196_v13  ;;  %v9198_v21 = vpack.c.bf16 %v4201_v7, %v4200_v32  ;;  %vm15177_vm9 = vmmov %vm15168_vm0  ;;  %v4198_v51 = vsel %vm4193_vm13, %v10716_v11, %v10711_v28  ;;  %v4199_v43 = vsel %vm4193_vm13, %v10717_v62, %v10712_v16 }
 0x44b   :  { %9166 = vmatpush1.bf16.msk.msra.mxu1 %vm9164_vm12, %v9165_v0  ;;  %3744 = vmatprep.mubr.bf16.mxu1 %v14911_v54  ;;  %vm12866_vm12 = vmand %vm12635_vm4, %vm3058_vm11  ;;  %v4194_v47 = vsel %vm4193_vm13, %v10706_v42, %v10721_v18  ;;  %v4195_v27 = vsel %vm4193_vm13, %v10707_v55, %v10722_v48 }
 0x44c   :  { %9181 = vmatprep.subr.msk.bf16.mxu1 %vm9179_vm3, %v9180_v57  ;;  %vm12889_vm11 = vmand %vm12647_vm1, %vm3060_vm7  ;;  %v9201_v2 = vpack.c.bf16 %v4195_v27, %v4194_v47 }
 0x44d   :  { %vm9182_vm4 = vmpackc.low %vm12756_vm10, %vm12756_vm10 }
 0x44e   :  { %9142 = vmatmul.mubr.msk.bf16.gmra.mrb[44].mxu0 %vm15168_vm0, %v11023_v3  ;;  %vm9189_vm7 = vmpackc.low %vm12866_vm12, %vm12866_vm12 }
 0x44f   :  { %3892 = vmatprep.mubr.bf16.mxu0 %v14911_v54  ;;  %vm9197_vm1 = vmpackc.low %vm12889_vm11, %vm12889_vm11 }
 0x450   :  { %vm15175_vm3 = vmmov %vm15168_vm0 }
 0x451   :  { %vm4206_vm0 = vmand %vm12746_vm15, %vm3057_vm6 }
 0x452   :  { %9150 = vmatmul.mubr.msk.bf16.gmra.mrb[44].mxu1 %vm15169_vm8, %v11023_v3  ;;  %vm15178_vm8 = vcmp.lt.s32.totalorder %v12329_v25, 16  ;;  %vm9192_vm6 = vmpackc.low %vm4206_vm0, %vm4206_vm0  ;;  %v9193_v25 = vpack.c.bf16 %v4199_v43, %v4198_v51 }
 0x453   :  { %3945 = vmatprep.mubr.bf16.mxu1 %v14911_v54  ;;  %vm15180_vm12 = vmmov %vm15175_vm3 }
 0x454   :  { %vm15181_vm13 = vmmov %vm15175_vm3 }
 0x455   :  { %vm15182_vm11 = vmmov %vm15175_vm3 }
 0x456   :  { %9159 = vmatmul.mubr.msk.bf16.vlgmr.msra.gmra.mrb[40].mxu0 %vm15174_vm14, %v11024_v14 }
 0x457   :  { %9176 = vmatpush1.bf16.msk.msra.mxu0 %vm9174_vm2, %v9175_v53  ;;  %3902 = vmatprep.mubr.bf16.mxu0 %v14911_v54  ;;  %vm4208_vm2 = vmand %vm12756_vm10, %vm15178_vm8 }
 0x458   :  { %9191 = vmatprep.subr.msk.bf16.mxu0 %vm9189_vm7, %v9190_v39  ;;  %vm9200_vm15 = vmpackc.low %vm4208_vm2, %vm4208_vm2  ;;  %v4394_v39 = vpop.permute.xlu1 %4393 }
 0x459   :  { %vm15179_vm10 = vmmov %vm15175_vm3 }
 0x45a   :  { %9167 = vmatmul.mubr.msk.bf16.vlgmr.msra.gmra.mrb[40].mxu1 %vm15175_vm3, %v11024_v14  ;;  %vm15184_vm7 = vmmov %vm15175_vm3 }
 0x45b   :  { %9184 = vmatpush1.bf16.msk.msra.mxu1 %vm9182_vm4, %v9183_v4  ;;  %3955 = vmatprep.mubr.bf16.mxu1 %v14911_v54  ;;  %vm15183_vm4 = vmmov %vm15175_vm3 }
 0x45c   :  { %9199 = vmatprep.subr.msk.bf16.mxu1 %vm9197_vm1, %v9198_v21  ;;  %vm15185_vm1 = vmmov %vm15175_vm3 }
 0x45d   :  { %vm15186_vm14 = vmmov %vm15185_vm1 }
 0x45e   :  { %9160 = vmatmul.mubr.msk.bf16.gmra.mrb[44].mxu0 %vm15176_vm5, %v11025_v38 }
 0x45f   :  { %4087 = vmatprep.mubr.bf16.mxu0 %v14911_v54 }
 0x462   :  { %9168 = vmatmul.mubr.msk.bf16.gmra.mrb[44].mxu1 %vm15177_vm9, %v11025_v38 }
 0x463   :  { %4140 = vmatprep.mubr.bf16.mxu1 %v14911_v54 }
 0x466   :  { %9177 = vmatmul.mubr.msk.bf16.vlgmr.msra.gmra.mrb[40].mxu0 %vm15179_vm10, %v11026_v58 }
 0x467   :  { %9194 = vmatpush1.bf16.msk.msra.mxu0 %vm9192_vm6, %v9193_v25  ;;  %4097 = vmatprep.mubr.bf16.mxu0 %v14911_v54 }
 0x46a   :  { %9185 = vmatmul.mubr.msk.bf16.vlgmr.msra.gmra.mrb[40].mxu1 %vm15180_vm12, %v11026_v58 }
 0x46b   :  { %9202 = vmatpush1.bf16.msk.msra.mxu1 %vm9200_vm15, %v9201_v2  ;;  %4150 = vmatprep.mubr.bf16.mxu1 %v14911_v54 }
 0x46e   :  { %9178 = vmatmul.mubr.msk.bf16.gmra.mrb[44].mxu0 %vm15181_vm13, %v11027_v17 }
 0x46f   :  { %4282 = vmatprep.mubr.bf16.mxu0 %v14911_v54 }
 0x472   :  { %9186 = vmatmul.mubr.msk.bf16.gmra.mrb[44].mxu1 %vm15182_vm11, %v11027_v17 }
 0x473   :  { %4335 = vmatprep.mubr.bf16.mxu1 %v14911_v54 }
 0x476   :  { %9195 = vmatmul.mubr.msk.bf16.vlgmr.msra.gmra.mrb[40].mxu0 %vm15183_vm4, %v11028_v22 }
 0x477   :  { %4292 = vmatprep.mubr.bf16.mxu0 %v14911_v54 }
 0x47a   :  { %9203 = vmatmul.mubr.msk.bf16.vlgmr.msra.gmra.mrb[40].mxu1 %vm15184_vm7, %v11028_v22 }
 0x47b   :  { %4345 = vmatprep.mubr.bf16.mxu1 %v14911_v54 }
 0x47e   :  { %9196 = vmatmul.mubr.msk.bf16.gmra.mrb[44].mxu0 %vm15185_vm1, %v11029_v26 }
 0x47f   :  { %4606 = vmatprep.mubr.bf16.mxu0 %v14911_v54 }
 0x482   :  { %9204 = vmatmul.mubr.msk.bf16.gmra.mrb[44].mxu1 %vm15186_vm14, %v11029_v26 }
 0x483   :  { %4679 = vmatprep.mubr.bf16.mxu1 %v14911_v54 }
 0x549   :  { %v4284_v46 = vpop.f32.mrb[40].mxu0 }
 0x54a   :  { %v4396_v34 = vadd.f32 %v4379_v50, %v4284_v46  ;;  %v4286_v56 = vpop.f32.mrb[41].mxu0 }
 0x54b   :  { %v4397_v8 = vadd.f32 %v4379_v50, %v4286_v56  ;;  %v4288_v49 = vpop.f32.mrb[42].mxu0 }
 0x54c   :  { %vm4412_vm3 = vcmp.ge.f32.partialorder %v4396_v34, 0.0  ;;  %v4428_v15 = vmul.f32 0.2, %v4396_v34  ;;  %v4400_v36 = vadd.f32 %v4384_v29, %v4288_v49  ;;  %v4290_v1 = vpop.f32.mrb[43].mxu0 }
 0x54d   :  { %v4337_v63 = vpop.f32.mrb[40].mxu1  ;;  %vm4413_vm9 = vcmp.ge.f32.partialorder %v4397_v8, 0.0  ;;  %v4429_v44 = vmul.f32 0.2, %v4397_v8  ;;  %v4401_v0 = vadd.f32 %v4384_v29, %v4290_v1 }
 0x54e   :  { %v4398_v52 = vadd.f32 %v4379_v50, %v4337_v63  ;;  %v4339_v6 = vpop.f32.mrb[41].mxu1  ;;  %v12970_v5 = vsel %vm4412_vm3, %v4396_v34, %v4428_v15  ;;  %vm4416_vm8 = vcmp.ge.f32.partialorder %v4400_v36, 0.0  ;;  %v4432_v57 = vmul.f32 0.2, %v4400_v36 }
 0x54f   :  { %v4399_v60 = vadd.f32 %v4379_v50, %v4339_v6  ;;  %v4341_v41 = vpop.f32.mrb[42].mxu1  ;;  %v12974_v3 = vsel %vm4413_vm9, %v4397_v8, %v4429_v44  ;;  %vm4417_vm2 = vcmp.ge.f32.partialorder %v4401_v0, 0.0  ;;  %v4433_v40 = vmul.f32 0.2, %v4401_v0 }
 0x550   :  { %vm4414_vm5 = vcmp.ge.f32.partialorder %v4398_v52, 0.0  ;;  %v4430_v24 = vmul.f32 0.2, %v4398_v52  ;;  %v4343_v30 = vpop.f32.mrb[43].mxu1  ;;  %v4402_v12 = vadd.f32 %v4384_v29, %v4341_v41  ;;  %v12976_v16 = vsel %vm4416_vm8, %v4400_v36, %v4432_v57 }
 0x551   :  { %vm4415_vm0 = vcmp.ge.f32.partialorder %v4399_v60, 0.0  ;;  %v4431_v33 = vmul.f32 0.2, %v4399_v60  ;;  %v4403_v59 = vadd.f32 %v4384_v29, %v4343_v30  ;;  %v4294_v42 = vpop.f32.mrb[44].mxu0  ;;  %v12980_v11 = vsel %vm4417_vm2, %v4401_v0, %v4433_v40  ;;  %v8553_v40 = vld [vmem:[%s14690_s8 + $0x18] sm:$0xff] }
 0x552   :  { %v12972_v37 = vsel %vm4414_vm5, %v4398_v52, %v4430_v24  ;;  %vm4418_vm6 = vcmp.ge.f32.partialorder %v4402_v12, 0.0  ;;  %v4434_v55 = vmul.f32 0.2, %v4402_v12  ;;  %v4404_v18 = vadd.f32 %v4389_v45, %v4294_v42  ;;  %v4296_v35 = vpop.f32.mrb[45].mxu0 }
 0x553   :  { %v12978_v28 = vsel %vm4415_vm0, %v4399_v60, %v4431_v33  ;;  %vm4419_vm15 = vcmp.ge.f32.partialorder %v4403_v59, 0.0  ;;  %v4435_v48 = vmul.f32 0.2, %v4403_v59  ;;  %v4405_v31 = vadd.f32 %v4389_v45, %v4296_v35  ;;  %v4298_v61 = vpop.f32.mrb[46].mxu0 }
 0x554   :  { %v4450_v20 = vsel %vm4418_vm6, %v4402_v12, %v4434_v55  ;;  %vm4420_vm10 = vcmp.ge.f32.partialorder %v4404_v18, 0.0  ;;  %v4436_v7 = vmul.f32 0.2, %v4404_v18  ;;  %v12984_v32 = vpack.i.bf16 %v12976_v16, %v12970_v5  ;;  %v4300_v53 = vpop.f32.mrb[47].mxu0 }
 0x555   :  { %v4347_v62 = vpop.f32.mrb[44].mxu1  ;;  %v4451_v13 = vsel %vm4419_vm15, %v4403_v59, %v4435_v48  ;;  %vm4421_vm12 = vcmp.ge.f32.partialorder %v4405_v31, 0.0  ;;  %v4437_v21 = vmul.f32 0.2, %v4405_v31  ;;  %v4408_v47 = vadd.f32 %v4394_v39, %v4298_v61  ;;  %v8832_v48 = vld [vmem:[%s14691_s9] sm:$0xff]  ;;  %v8833_v61 = vld [vmem:[%s14691_s9 + $0x8] sm:$0xff] }
 0x556   :  { %v4349_v19 = vpop.f32.mrb[45].mxu1  ;;  %v4406_v9 = vadd.f32 %v4389_v45, %v4347_v62  ;;  %v4452_v51 = vsel %vm4420_vm10, %v4404_v18, %v4436_v7  ;;  %10729 = vrot.lane.b32.xlu0 %v12984_v32, %s11139_s5  ;;  %v12989_v25 = vpack.i.bf16 %v4450_v20, %v12972_v37  ;;  %v4409_v2 = vadd.f32 %v4394_v39, %v4300_v53 }
 0x557   :  { %v4407_v14 = vadd.f32 %v4389_v45, %v4349_v19  ;;  %v4351_v23 = vpop.f32.mrb[46].mxu1  ;;  %v4453_v27 = vsel %vm4421_vm12, %v4405_v31, %v4437_v21  ;;  %vm4424_vm4 = vcmp.ge.f32.partialorder %v4408_v47, 0.0  ;;  %v4440_v22 = vmul.f32 0.2, %v4408_v47 }
 0x558   :  { %v4353_v4 = vpop.f32.mrb[47].mxu1  ;;  %vm4422_vm13 = vcmp.ge.f32.partialorder %v4406_v9, 0.0  ;;  %v4438_v38 = vmul.f32 0.2, %v4406_v9  ;;  %v4410_v26 = vadd.f32 %v4394_v39, %v4351_v23  ;;  %10724 = vrot.lane.b32.xlu1 %v12989_v25, %s11139_s5  ;;  %vm4425_vm7 = vcmp.ge.f32.partialorder %v4409_v2, 0.0 }
 0x559   :  { %vm4423_vm11 = vcmp.ge.f32.partialorder %v4407_v14, 0.0  ;;  %v4439_v43 = vmul.f32 0.2, %v4407_v14  ;;  %v4441_v50 = vmul.f32 0.2, %v4409_v2  ;;  %v4411_v46 = vadd.f32 %v4394_v39, %v4353_v4 }
 0x55a   :  { %v4454_v58 = vsel %vm4422_vm13, %v4406_v9, %v4438_v38  ;;  %v12995_v63 = vpack.i.bf16 %v12980_v11, %v12974_v3  ;;  %v4456_v34 = vsel %vm4424_vm4, %v4408_v47, %v4440_v22  ;;  %vm4426_vm1 = vcmp.ge.f32.partialorder %v4410_v26, 0.0  ;;  %v8555_v38 = vld [vmem:[%s14690_s8 + $0x28] sm:$0xff]  ;;  %v8834_v22 = vld [vmem:[%s14691_s9 + $0x10] sm:$0xff] }
 0x55b   :  { %v4455_v17 = vsel %vm4423_vm11, %v4407_v14, %v4439_v43  ;;  %v4442_v56 = vmul.f32 0.2, %v4410_v26  ;;  %v12998_v52 = vpack.i.bf16 %v4451_v13, %v12978_v28  ;;  %v4457_v6 = vsel %vm4425_vm7, %v4409_v2, %v4441_v50 }
 0x55c   :  { %vm4427_vm14 = vcmp.ge.f32.partialorder %v4411_v46, 0.0  ;;  %v4443_v8 = vmul.f32 0.2, %v4411_v46  ;;  %10734 = vrot.lane.b32.xlu0 %v12995_v63, %s11139_s5  ;;  %v13002_v49 = vpack.i.bf16 %v4456_v34, %v4452_v51  ;;  %v13004_v41 = vpack.i.bf16 %v4457_v6, %v4453_v27 }
 0x55d   :  { %v4458_v60 = vsel %vm4426_vm1, %v4410_v26, %v4442_v56  ;;  %10739 = vrot.lane.b32.xlu1 %v12998_v52, %s11139_s5  ;;  %v13024_v44 = vpack.c.bf16 %v12980_v11, %v12974_v3  ;;  %v13027_v36 = vpack.c.bf16 %v4451_v13, %v12978_v28  ;;  %v13031_v1 = vpack.c.bf16 %v12976_v16, %v12970_v5  ;;  %v8550_v5 = vld [vmem:[%s14690_s8] sm:$0xff]  ;;  %v8552_v3 = vld [vmem:[%s14690_s8 + $0x10] sm:$0xff] }
 0x55e   :  { %v4459_v29 = vsel %vm4427_vm14, %v4411_v46, %v4443_v8  ;;  %v13008_v15 = vpack.i.bf16 %v4458_v60, %v4454_v58  ;;  %v13033_v30 = vpack.c.bf16 %v4457_v6, %v4453_v27  ;;  %v13036_v33 = vpack.c.bf16 %v4450_v20, %v12972_v37  ;;  %v8551_v37 = vld [vmem:[%s14690_s8 + $0x8] sm:$0xff]  ;;  %v8554_v16 = vld [vmem:[%s14690_s8 + $0x20] sm:$0xff] }
 0x55f   :  { %v13010_v24 = vpack.i.bf16 %v4459_v29, %v4455_v17  ;;  %v13039_v0 = vpack.c.bf16 %v4459_v29, %v4455_v17  ;;  %v13041_v57 = vpack.c.bf16 %v4456_v34, %v4452_v51  ;;  %v13043_v12 = vpack.c.bf16 %v4458_v60, %v4454_v58  ;;  %v8835_v29 = vld [vmem:[%s14691_s9 + $0x18] sm:$0xff] }
 0x560   :  { %10749 = vrot.lane.b32.xlu0 %v13004_v41, %s11139_s5  ;;  %vm4508_vm3 = vcmp.lt.s32.totalorder %v11259_v10, 124  ;;  %vm4561_vm5 = vcmask 261120   ;;  %vm4930_vm9 = vcmp.lt.s32.totalorder %v11259_v10, 120  ;;  %vm5205_vm0 = vcmp.lt.s32.totalorder %v11259_v10, 116 }
 0x561   :  { %10744 = vrot.lane.b32.xlu1 %v13008_v15, %s11139_s5  ;;  %vm5480_vm8 = vcmp.lt.s32.totalorder %v11259_v10, 64  ;;  %vm5755_vm2 = vcmp.lt.s32.totalorder %v11259_v10, 60  ;;  %vm6030_vm6 = vcmp.lt.s32.totalorder %v11259_v10, 56  ;;  %vm6305_vm15 = vcmp.lt.s32.totalorder %v11259_v10, 52 }
 0x564   :  { %10754 = vrot.lane.b32.xlu0 %v13002_v49, %s11139_s5 }
 0x565   :  { %10759 = vrot.lane.b32.xlu1 %v13010_v24, %s11139_s5 }
 0x568   :  { %10764 = vrot.lane.b32.xlu0 %v12995_v63, %s11140_s3 }
 0x569   :  { %10769 = vrot.lane.b32.xlu1 %v12989_v25, %s11140_s3 }
 0x56c   :  { %10774 = vrot.lane.b32.xlu0 %v12984_v32, %s11140_s3 }
 0x56d   :  { %10779 = vrot.lane.b32.xlu1 %v12998_v52, %s11140_s3 }
 0x570   :  { %10789 = vrot.lane.b32.xlu0 %v13004_v41, %s11140_s3 }
 0x571   :  { %10784 = vrot.lane.b32.xlu1 %v13008_v15, %s11140_s3 }
 0x574   :  { %10794 = vrot.lane.b32.xlu0 %v13002_v49, %s11140_s3 }
 0x575   :  { %10799 = vrot.lane.b32.xlu1 %v13010_v24, %s11140_s3 }
 0x578   :  { %10804 = vrot.lane.b32.xlu0 %v12995_v63, %s11141_s17 }
 0x579   :  { %10809 = vrot.lane.b32.xlu1 %v12989_v25, %s11141_s17 }
 0x57c   :  { %10814 = vrot.lane.b32.xlu0 %v12984_v32, %s11141_s17 }
 0x57d   :  { %10819 = vrot.lane.b32.xlu1 %v12998_v52, %s11141_s17 }
 0x580   :  { %10829 = vrot.lane.b32.xlu0 %v13004_v41, %s11141_s17 }
 0x581   :  { %10824 = vrot.lane.b32.xlu1 %v13008_v15, %s11141_s17 }
 0x584   :  { %10834 = vrot.lane.b32.xlu0 %v13002_v49, %s11141_s17 }
 0x585   :  { %10839 = vrot.lane.b32.xlu1 %v13010_v24, %s11141_s17 }
 0x588   :  { %10844 = vrot.lane.b32.xlu0 %v12995_v63, %s11142_s18 }
 0x589   :  { %10849 = vrot.lane.b32.xlu1 %v12989_v25, %s11142_s18 }
 0x58c   :  { %10854 = vrot.lane.b32.xlu0 %v12984_v32, %s11142_s18 }
 0x58d   :  { %10859 = vrot.lane.b32.xlu1 %v12998_v52, %s11142_s18 }
 0x590   :  { %10869 = vrot.lane.b32.xlu0 %v13004_v41, %s11142_s18 }
 0x591   :  { %10864 = vrot.lane.b32.xlu1 %v13008_v15, %s11142_s18 }
 0x594   :  { %10874 = vrot.lane.b32.xlu0 %v13002_v49, %s11142_s18 }
 0x595   :  { %10879 = vrot.lane.b32.xlu1 %v13010_v24, %s11142_s18 }
 0x598   :  { %10884 = vrot.lane.b32.xlu0 %v12995_v63, %s11143_s1 }
 0x599   :  { %10889 = vrot.lane.b32.xlu1 %v12989_v25, %s11143_s1 }
 0x59c   :  { %10894 = vrot.lane.b32.xlu0 %v12984_v32, %s11143_s1 }
 0x59d   :  { %10899 = vrot.lane.b32.xlu1 %v12998_v52, %s11143_s1 }
 0x5a0   :  { %10909 = vrot.lane.b32.xlu0 %v13004_v41, %s11143_s1 }
 0x5a1   :  { %10904 = vrot.lane.b32.xlu1 %v13008_v15, %s11143_s1 }
 0x5a4   :  { %10914 = vrot.lane.b32.xlu0 %v13002_v49, %s11143_s1 }
 0x5a5   :  { %10919 = vrot.lane.b32.xlu1 %v13010_v24, %s11143_s1 }
 0x5a8   :  { %10924 = vrot.lane.b32.xlu0 %v12995_v63, %s11144_s26 }
 0x5a9   :  { %10929 = vrot.lane.b32.xlu1 %v12989_v25, %s11144_s26 }
 0x5ac   :  { %10934 = vrot.lane.b32.xlu0 %v12984_v32, %s11144_s26 }
 0x5ad   :  { %10939 = vrot.lane.b32.xlu1 %v12998_v52, %s11144_s26 }
 0x5b0   :  { %10949 = vrot.lane.b32.xlu0 %v13004_v41, %s11144_s26 }
 0x5b1   :  { %10944 = vrot.lane.b32.xlu1 %v13008_v15, %s11144_s26 }
 0x5b4   :  { %10954 = vrot.lane.b32.xlu0 %v13002_v49, %s11144_s26 }
 0x5b5   :  { %10959 = vrot.lane.b32.xlu1 %v13010_v24, %s11144_s26 }
 0x5b8   :  { %10964 = vrot.lane.b32.xlu0 %v12995_v63, %s11145_s27  ;;  %v8556_v63 = vld [vmem:[%s14690_s8 + $0x30] sm:$0xff] }
 0x5b9   :  { %10969 = vrot.lane.b32.xlu1 %v12989_v25, %s11145_s27 }
 0x5bc   :  { %10974 = vrot.lane.b32.xlu0 %v12984_v32, %s11145_s27 }
 0x5bd   :  { %10979 = vrot.lane.b32.xlu1 %v12998_v52, %s11145_s27 }
 0x5c0   :  { %10989 = vrot.lane.b32.xlu0 %v13004_v41, %s11145_s27 }
 0x5c1   :  { %10984 = vrot.lane.b32.xlu1 %v13008_v15, %s11145_s27 }
 0x5c4   :  { %10994 = vrot.lane.b32.xlu0 %v13002_v49, %s11145_s27 }
 0x5c5   :  { %10999 = vrot.lane.b32.xlu1 %v13010_v24, %s11145_s27 }
 0x5c8   :  { %8560 = vperm.xlu0 %10481, %v8550_v5   ;;  %v10730_v45 = vpop.permute.xlu0 %10729 }
 0x5c9   :  { %8565 = vperm.xlu1 %10562, %v8551_v37   ;;  %v10732_v55 = vunpack.i.h.bf16 %v10730_v45  ;;  %v10731_v42 = vunpack.i.l.bf16 %v10730_v45  ;;  %v8557_v45 = vld [vmem:[%s14690_s8 + $0x38] sm:$0xff] }
 0x5ca   :  { %v10725_v59 = vpop.permute.xlu1 %10724 }
 0x5cb   :  { %v10727_v18 = vunpack.i.h.bf16 %v10725_v59  ;;  %v10726_v35 = vunpack.i.l.bf16 %v10725_v59 }
 0x5cc   :  { %8570 = vperm.xlu0 %10481, %v8552_v3   ;;  %v11030_v3 = vld [vmem:[%s14689_s7 + $0x20] sm:$0xff]  }
 0x5cd   :  { %8575 = vperm.xlu1 %10562, %v8553_v40  }
 0x5ce   :  { %v10735_v28 = vpop.permute.xlu0 %10734 }
 0x5cf   :  { %v10737_v62 = vunpack.i.h.bf16 %v10735_v28  ;;  %v10736_v11 = vunpack.i.l.bf16 %v10735_v28  ;;  %v10740_v19 = vpop.permute.xlu1 %10739 }
 0x5d0   :  { %8580 = vperm.xlu0 %10481, %v8554_v16   ;;  %v10742_v9 = vunpack.i.h.bf16 %v10740_v19  ;;  %v10741_v14 = vunpack.i.l.bf16 %v10740_v19  ;;  %v8837_v19 = vld [vmem:[%s14691_s9 + $0x28] sm:$0xff] }
 0x5d1   :  { %v4518_v20 = vsel %vm4508_vm3, %v10732_v55, %v10737_v62  ;;  %v4517_v31 = vsel %vm4508_vm3, %v10731_v42, %v10736_v11  ;;  %8842 = vperm.xlu1 %10562, %v8832_v48   ;;  %v4513_v7 = vsel %vm4508_vm3, %v10736_v11, %v10726_v35  ;;  %v4514_v32 = vsel %vm4508_vm3, %v10737_v62, %v10727_v18 }
 0x5d2   :  { %v13116_v23 = vpack.c.bf16 %v4518_v20, %v4517_v31  ;;  %v10750_v13 = vpop.permute.xlu0 %10749  ;;  %v4510_v53 = vsel %vm4508_vm3, %v10727_v18, %v10742_v9  ;;  %v4509_v4 = vsel %vm4508_vm3, %v10726_v35, %v10741_v14  ;;  %v13131_v47 = vpack.c.bf16 %v4514_v32, %v4513_v7  ;;  %v8836_v18 = vld [vmem:[%s14691_s9 + $0x20] sm:$0xff] }
 0x5d3   :  { %v10752_v39 = vunpack.i.h.bf16 %v10750_v13  ;;  %v10751_v21 = vunpack.i.l.bf16 %v10750_v13  ;;  %v13129_v51 = vpack.c.bf16 %v4510_v53, %v4509_v4  ;;  %v10745_v43 = vpop.permute.xlu1 %10744  ;;  %v4521_v27 = vsel %vm4508_vm3, %v10741_v14, %v10731_v42  ;;  %v8838_v13 = vld [vmem:[%s14691_s9 + $0x30] sm:$0xff]  ;;  %v8839_v53 = vld [vmem:[%s14691_s9 + $0x38] sm:$0xff]  ;;  %v11031_v4 = vld [vmem:[%s14689_s7 + $0x28] sm:$0xff]  }
 0x5d4   :  { %v4522_v58 = vsel %vm4508_vm3, %v10742_v9, %v10732_v55  ;;  %8847 = vperm.xlu0 %10481, %v8833_v61   ;;  %v10747_v25 = vunpack.i.h.bf16 %v10745_v43  ;;  %v10746_v2 = vunpack.i.l.bf16 %v10745_v43  ;;  %4574 = vmatprep.subr.bf16.mxu0 %v13131_v47  ;;  %v8910_v43 = vld [vmem:[#allocation2] sm:$0x1] }
 0x5d5   :  { %v13137_v17 = vpack.c.bf16 %v4522_v58, %v4521_v27  ;;  %8585 = vperm.xlu1 %10562, %v8555_v38   ;;  %4575 = vmatpush1.bf16.msra.mxu0 %v13116_v23 }
 0x5d6   :  { %v10755_v26 = vpop.permute.xlu0 %10754  ;;  %v4515_v34 = vsel %vm4508_vm3, %v10751_v21, %v10746_v2  ;;  %v4516_v56 = vsel %vm4508_vm3, %v10752_v39, %v10747_v25 }
 0x5d7   :  { %4647 = vmatprep.subr.bf16.mxu1 %v13137_v17  ;;  %v10757_v50 = vunpack.i.h.bf16 %v10755_v26  ;;  %v10756_v46 = vunpack.i.l.bf16 %v10755_v26  ;;  %v10760_v52 = vpop.permute.xlu1 %10759  ;;  %v13153_v6 = vpack.c.bf16 %v4516_v56, %v4515_v34 }
 0x5d8   :  { %4648 = vmatpush1.bf16.msra.mxu1 %v13129_v51  ;;  %8852 = vperm.xlu0 %10481, %v8834_v22   ;;  %v10762_v8 = vunpack.i.h.bf16 %v10760_v52  ;;  %v10761_v49 = vunpack.i.l.bf16 %v10760_v52 }
 0x5d9   :  { %v4519_v60 = vsel %vm4508_vm3, %v10756_v46, %v10751_v21  ;;  %v4520_v41 = vsel %vm4508_vm3, %v10757_v50, %v10752_v39  ;;  %8590 = vperm.xlu1 %10562, %v8556_v63   ;;  %4576 = vmatprep.subr.bf16.mxu0 %v13153_v6 }
 0x5da   :  { %v13162_v15 = vpack.c.bf16 %v4520_v41, %v4519_v60  ;;  %v13165_v24 = vpop.permute.xlu0 %10764  ;;  %v4512_v5 = vsel %vm4508_vm3, %v10747_v25, %v10762_v8  ;;  %v4511_v37 = vsel %vm4508_vm3, %v10746_v2, %v10761_v49  ;;  %v4523_v28 = vsel %vm4508_vm3, %v10761_v49, %v10756_v46  ;;  %v11032_v2 = vld [vmem:[%s14689_s7 + $0x30] sm:$0xff]  }
 0x5db   :  { %v13177_v40 = vpack.c.bf16 %v4512_v5, %v4511_v37  ;;  %v13179_v59 = vpop.permute.xlu1 %10769  ;;  %v10767_v16 = vunpack.i.h.bf16 %v13165_v24  ;;  %v4524_v55 = vsel %vm4508_vm3, %v10762_v8, %v10757_v50  ;;  %v10766_v11 = vunpack.i.l.bf16 %v13165_v24  ;;  %v11033_v50 = vld [vmem:[%s14689_s7 + $0x38] sm:$0xff]  }
 0x5dc   :  { %8857 = vperm.xlu0 %10481, %v8835_v29   ;;  %4577 = vmatpush1.bf16.msra.mxu0 %v13162_v15  ;;  %v10772_v42 = vunpack.i.h.bf16 %v13179_v59  ;;  %v10771_v62 = vunpack.i.l.bf16 %v13179_v59  ;;  %v13190_v48 = vpack.c.bf16 %v4524_v55, %v4523_v28 }
 0x5dd   :  { %4752 = vmatprep.subr.bf16.mxu0 %v13024_v44  ;;  %8595 = vperm.xlu1 %10562, %v8557_v45   ;;  %v11034_v45 = vld [vmem:[%s14689_s7] sm:$0xff]  }
 0x5de   :  { %v10775_v35 = vpop.permute.xlu0 %10774  ;;  %4649 = vmatprep.subr.bf16.mxu1 %v13190_v48  ;;  %v4935_v7 = vsel %vm4930_vm9, %v10766_v11, %v10771_v62  ;;  %v4936_v32 = vsel %vm4930_vm9, %v10767_v16, %v10772_v42 }
 0x5df   :  { %9209 = vmatmul.mubr.msk.bf16.vlgmr.msra.gmra.mrb[48].mxu0 %vm4561_vm5, %v11030_v3  ;;  %4650 = vmatpush1.bf16.msra.mxu1 %v13177_v40  ;;  %v13203_v20 = vpop.permute.xlu1 %10779  ;;  %v10777_v31 = vunpack.i.h.bf16 %v10775_v35  ;;  %v10776_v9 = vunpack.i.l.bf16 %v10775_v35  ;;  %v13234_v39 = vpack.c.bf16 %v4936_v32, %v4935_v7 }
 0x5e0   :  { %8862 = vperm.xlu0 %10481, %v8836_v18   ;;  %v10782_v14 = vunpack.i.h.bf16 %v13203_v20  ;;  %v10781_v61 = vunpack.i.l.bf16 %v13203_v20  ;;  %4825 = vmatprep.subr.bf16.mxu1 %v13027_v36 }
 0x5e1   :  { %4753 = vmatpush1.bf16.msra.mxu0 %v13031_v1  ;;  %8867 = vperm.xlu1 %10562, %v8837_v19   ;;  %v4939_v49 = vsel %vm4930_vm9, %v10776_v9, %v10766_v11  ;;  %v4940_v60 = vsel %vm4930_vm9, %v10777_v31, %v10767_v16 }
 0x5e2   :  { %4754 = vmatprep.subr.bf16.mxu0 %v13033_v30  ;;  %9213 = vmatmul.mubr.msk.bf16.vlgmr.msra.gmra.mrb[48].mxu1 %vm4561_vm5, %v11030_v3  ;;  %v4943_v21 = vsel %vm4930_vm9, %v10781_v61, %v10776_v9  ;;  %v4944_v38 = vsel %vm4930_vm9, %v10782_v14, %v10777_v31  ;;  %v10790_v58 = vpop.permute.xlu0 %10789  ;;  %v4931_v35 = vsel %vm4930_vm9, %v10771_v62, %v10781_v61 }
 0x5e3   :  { %4616 = vmatprep.mubr.bf16.mxu0 %v14911_v54  ;;  %4826 = vmatpush1.bf16.msra.mxu1 %v13036_v33  ;;  %v13247_v27 = vpack.c.bf16 %v4944_v38, %v4943_v21  ;;  %v10785_v25 = vpop.permute.xlu1 %10784  ;;  %v10792_v56 = vunpack.i.h.bf16 %v10790_v58  ;;  %v10791_v52 = vunpack.i.l.bf16 %v10790_v58  ;;  %v13301_v19 = vpack.c.bf16 %v4940_v60, %v4939_v49  ;;  %v11036_v49 = vld [vmem:[%s14689_s7 + $0x10] sm:$0xff]  }
 0x5e4   :  { %8872 = vperm.xlu0 %10481, %v8838_v13   ;;  %4827 = vmatprep.subr.bf16.mxu1 %v13039_v0  ;;  %v10787_v63 = vunpack.i.h.bf16 %v10785_v25  ;;  %v10786_v34 = vunpack.i.l.bf16 %v10785_v25  ;;  %v4932_v9 = vsel %vm4930_vm9, %v10772_v42, %v10782_v14 }
 0x5e5   :  { %4755 = vmatpush1.bf16.msra.mxu0 %v13041_v57  ;;  %8877 = vperm.xlu1 %10562, %v8839_v53   ;;  %v13342_v21 = vpack.c.bf16 %v4932_v9, %v4931_v35 }
 0x5e6   :  { %4995 = vmatprep.subr.bf16.mxu0 %v13234_v39  ;;  %4689 = vmatprep.mubr.bf16.mxu1 %v14911_v54  ;;  %v10795_v22 = vpop.permute.xlu0 %10794  ;;  %v4937_v3 = vsel %vm4930_vm9, %v10791_v52, %v10786_v34  ;;  %v4938_v28 = vsel %vm4930_vm9, %v10792_v56, %v10787_v63 }
 0x5e7   :  { %9210 = vmatmul.mubr.msk.bf16.gmra.mrb[52].mxu0 %vm4561_vm5, %v11031_v4  ;;  %4828 = vmatpush1.bf16.msra.mxu1 %v13043_v12  ;;  %v10800_v26 = vpop.permute.xlu1 %10799  ;;  %v10797_v41 = vunpack.i.h.bf16 %v10795_v22  ;;  %v10796_v29 = vunpack.i.l.bf16 %v10795_v22  ;;  %v13316_v62 = vpack.c.bf16 %v4938_v28, %v4937_v3  ;;  %v11035_v22 = vld [vmem:[%s14689_s7 + $0x8] sm:$0xff]  }
 0x5e8   :  { %8913 = vperm.xlu0 %10481, %v8910_v43   ;;  %5068 = vmatprep.subr.bf16.mxu1 %v13247_v27  ;;  %v10802_v5 = vunpack.i.h.bf16 %v10800_v26  ;;  %v10801_v37 = vunpack.i.l.bf16 %v10800_v26 }
 0x5e9   :  { %4626 = vmatprep.mubr.bf16.mxu0 %v14911_v54  ;;  %v4941_v13 = vsel %vm4930_vm9, %v10796_v29, %v10791_v52  ;;  %v4942_v7 = vsel %vm4930_vm9, %v10797_v41, %v10792_v56 }
 0x5ea   :  { %9214 = vmatmul.mubr.msk.bf16.gmra.mrb[52].mxu1 %vm4561_vm5, %v11031_v4  ;;  %v13266_v46 = vpop.permute.xlu0 %10804  ;;  %v4945_v59 = vsel %vm4930_vm9, %v10801_v37, %v10796_v29  ;;  %v4946_v42 = vsel %vm4930_vm9, %v10802_v5, %v10797_v41  ;;  %v13344_v38 = vpack.c.bf16 %v4942_v7, %v4941_v13  ;;  %v4933_v43 = vsel %vm4930_vm9, %v10786_v34, %v10801_v37  ;;  %v11037_v29 = vld [vmem:[%s14689_s7 + $0x18] sm:$0xff]  }
 0x5eb   :  { %4699 = vmatprep.mubr.bf16.mxu1 %v14911_v54  ;;  %v13268_v8 = vpop.permute.xlu1 %10809  ;;  %v10807_v55 = vunpack.i.h.bf16 %v13266_v46  ;;  %v10806_v11 = vunpack.i.l.bf16 %v13266_v46  ;;  %v4934_v58 = vsel %vm4930_vm9, %v10787_v63, %v10802_v5  ;;  %v13351_v25 = vpack.c.bf16 %v4946_v42, %v4945_v59 }
 0x5ec   :  { %v10812_v24 = vunpack.i.h.bf16 %v13268_v8  ;;  %v10811_v16 = vunpack.i.l.bf16 %v13268_v8  ;;  %v13370_v63 = vpack.c.bf16 %v4934_v58, %v4933_v43 }
 0x5ee   :  { %v13292_v18 = vpop.permute.xlu0 %10814  ;;  %v5210_v53 = vsel %vm5205_vm0, %v10806_v11, %v10811_v16  ;;  %v5211_v4 = vsel %vm5205_vm0, %v10807_v55, %v10812_v24 }
 0x5ef   :  { %9211 = vmatmul.mubr.msk.bf16.gmra.mrb[56].mxu0 %vm4561_vm5, %v11032_v2  ;;  %v13304_v31 = vpop.permute.xlu1 %10819  ;;  %v10817_v61 = vunpack.i.h.bf16 %v13292_v18  ;;  %v10816_v32 = vunpack.i.l.bf16 %v13292_v18 }
 0x5f0   :  { %4636 = vmatprep.mubr.bf16.mxu0 %v14911_v54  ;;  %v10822_v20 = vunpack.i.h.bf16 %v13304_v31  ;;  %v10821_v14 = vunpack.i.l.bf16 %v13304_v31 }
 0x5f1   :  { %v5214_v35 = vsel %vm5205_vm0, %v10816_v32, %v10806_v11  ;;  %v5215_v9 = vsel %vm5205_vm0, %v10817_v61, %v10807_v55 }
 0x5f2   :  { %9215 = vmatmul.mubr.msk.bf16.gmra.mrb[56].mxu1 %vm4561_vm5, %v11032_v2  ;;  %v13353_v2 = vpack.c.bf16 %v5211_v4, %v5210_v53  ;;  %v5218_v26 = vsel %vm5205_vm0, %v10821_v14, %v10816_v32  ;;  %v10830_v56 = vpop.permute.xlu0 %10829  ;;  %v11038_v53 = vld [vmem:[%s14689_s7 + $0x40] sm:$0xff]   ;;  %v5206_v58 = vsel %vm5205_vm0, %v10811_v16, %v10821_v14 }
 0x5f3   :  { %4709 = vmatprep.mubr.bf16.mxu1 %v14911_v54  ;;  %v10825_v52 = vpop.permute.xlu1 %10824  ;;  %v10832_v3 = vunpack.i.h.bf16 %v10830_v56  ;;  %v10831_v28 = vunpack.i.l.bf16 %v10830_v56 }
 0x5f4   :  { %v10827_v37 = vunpack.i.h.bf16 %v10825_v52 }
 0x5f6   :  { %v10835_v60 = vpop.permute.xlu0 %10834  ;;  %v5213_v11 = vsel %vm5205_vm0, %v10832_v3, %v10827_v37 }
 0x5f7   :  { %9212 = vmatmul.mubr.msk.bf16.gmra.mrb[60].mxu0 %vm4561_vm5, %v11033_v50  ;;  %v10840_v41 = vpop.permute.xlu1 %10839  ;;  %v10837_v13 = vunpack.i.h.bf16 %v10835_v60  ;;  %v10836_v7 = vunpack.i.l.bf16 %v10835_v60 }
 0x5f8   :  { %4784 = vmatprep.mubr.bf16.mxu0 %v14911_v54  ;;  %v10842_v59 = vunpack.i.h.bf16 %v10840_v41  ;;  %v10841_v42 = vunpack.i.l.bf16 %v10840_v41 }
 0x5f9   :  { %v5216_v56 = vsel %vm5205_vm0, %v10836_v7, %v10831_v28 }
 0x5fa   :  { %9216 = vmatmul.mubr.msk.bf16.gmra.mrb[60].mxu1 %vm4561_vm5, %v11033_v50  ;;  %v5219_v50 = vsel %vm5205_vm0, %v10822_v20, %v10817_v61  ;;  %v13391_v5 = vpop.permute.xlu0 %10844  ;;  %v5220_v8 = vsel %vm5205_vm0, %v10841_v42, %v10836_v7  ;;  %v11039_v7 = vld [vmem:[%s14689_s7 + $0x48] sm:$0xff]  }
 0x5fb   :  { %4857 = vmatprep.mubr.bf16.mxu1 %v14911_v54  ;;  %v13373_v34 = vpack.c.bf16 %v5219_v50, %v5218_v26  ;;  %v13393_v18 = vpop.permute.xlu1 %10849  ;;  %v10847_v61 = vunpack.i.h.bf16 %v13391_v5  ;;  %v10846_v32 = vunpack.i.l.bf16 %v13391_v5  ;;  %v5207_v50 = vsel %vm5205_vm0, %v10812_v24, %v10822_v20 }
 0x5fc   :  { %v10852_v46 = vunpack.i.h.bf16 %v13393_v18  ;;  %v10851_v55 = vunpack.i.l.bf16 %v13393_v18  ;;  %v5221_v24 = vsel %vm5205_vm0, %v10842_v59, %v10837_v13 }
 0x5fe   :  { %v13417_v43 = vpop.permute.xlu0 %10854  ;;  %v5485_v60 = vsel %vm5480_vm8, %v10846_v32, %v10851_v55  ;;  %v5486_v41 = vsel %vm5480_vm8, %v10847_v61, %v10852_v46 }
 0x5ff   :  { %9221 = vmatmul.mubr.msk.bf16.vlgmr.msra.gmra.mrb[48].mxu0 %vm4561_vm5, %v11034_v45  ;;  %v13429_v26 = vpop.permute.xlu1 %10859  ;;  %v10857_v14 = vunpack.i.h.bf16 %v13417_v43 }
 0x600   :  { %4996 = vmatpush1.bf16.msra.mxu0 %v13301_v19  ;;  %4794 = vmatprep.mubr.bf16.mxu0 %v14911_v54  ;;  %v10862_v31 = vunpack.i.h.bf16 %v13429_v26  ;;  %v10861_v20 = vunpack.i.l.bf16 %v13429_v26 }
 0x601   :  { %4997 = vmatprep.subr.bf16.mxu0 %v13316_v62 }
 0x602   :  { %9225 = vmatmul.mubr.msk.bf16.vlgmr.msra.gmra.mrb[48].mxu1 %vm4561_vm5, %v11034_v45  ;;  %v10826_v45 = vunpack.i.l.bf16 %v10825_v52  ;;  %v5217_v52 = vsel %vm5205_vm0, %v10837_v13, %v10832_v3  ;;  %v13478_v13 = vpack.c.bf16 %v5486_v41, %v5485_v60 }
 0x603   :  { %5069 = vmatpush1.bf16.msra.mxu1 %v13342_v21  ;;  %4867 = vmatprep.mubr.bf16.mxu1 %v14911_v54  ;;  %v13469_v3 = vpack.c.bf16 %v5217_v52, %v5216_v56 }
 0x604   :  { %4998 = vmatpush1.bf16.msra.mxu0 %v13344_v38  ;;  %5070 = vmatprep.subr.bf16.mxu1 %v13351_v25  ;;  %v5212_v4 = vsel %vm5205_vm0, %v10831_v28, %v10826_v45  ;;  %v5208_v28 = vsel %vm5205_vm0, %v10826_v45, %v10841_v42  ;;  %15187 = vst [vmem:[#allocation7_spill] sm:$0xff] %v13478_v13 }
 0x605   :  { %5270 = vmatprep.subr.bf16.mxu0 %v13353_v2  ;;  %v13441_v16 = vpack.c.bf16 %v5213_v11, %v5212_v4  ;;  %v10865_v4 = vpop.permute.xlu1 %10864  ;;  %v11040_v11 = vld [vmem:[%s14689_s7 + $0x50] sm:$0xff]  }
 0x606   :  { %v10867_v52 = vunpack.i.h.bf16 %v10865_v4 }
 0x607   :  { %9222 = vmatmul.mubr.msk.bf16.gmra.mrb[52].mxu0 %vm4561_vm5, %v11035_v22  ;;  %5071 = vmatpush1.bf16.msra.mxu1 %v13370_v63 }
 0x608   :  { %4804 = vmatprep.mubr.bf16.mxu0 %v14911_v54  ;;  %5343 = vmatprep.subr.bf16.mxu1 %v13373_v34 }
 0x60a   :  { %9226 = vmatmul.mubr.msk.bf16.gmra.mrb[52].mxu1 %vm4561_vm5, %v11035_v22  ;;  %v13426_v22 = vpack.c.bf16 %v5215_v9, %v5214_v35  ;;  %v5209_v35 = vsel %vm5205_vm0, %v10827_v37, %v10842_v59  ;;  %v13476_v9 = vpack.c.bf16 %v5221_v24, %v5220_v8  ;;  %v5494_v37 = vsel %vm5480_vm8, %v10862_v31, %v10857_v14 }
 0x60b   :  { %4877 = vmatprep.mubr.bf16.mxu1 %v14911_v54  ;;  %v13495_v59 = vpack.c.bf16 %v5209_v35, %v5208_v28  ;;  %v10866_v8 = vunpack.i.l.bf16 %v10865_v4  ;;  %v5490_v35 = vsel %vm5480_vm8, %v10857_v14, %v10847_v61  ;;  %v11042_v4 = vld [vmem:[%s14689_s7 + $0x60] sm:$0xff]   ;;  %v5482_v14 = vsel %vm5480_vm8, %v10852_v46, %v10862_v31 }
 0x60f   :  { %9223 = vmatmul.mubr.msk.bf16.gmra.mrb[56].mxu0 %vm4561_vm5, %v11036_v49 }
 0x610   :  { %4814 = vmatprep.mubr.bf16.mxu0 %v14911_v54 }
 0x612   :  { %9227 = vmatmul.mubr.msk.bf16.gmra.mrb[56].mxu1 %vm4561_vm5, %v11036_v49  ;;  %v10856_v49 = vunpack.i.l.bf16 %v13417_v43 }
 0x613   :  { %4887 = vmatprep.mubr.bf16.mxu1 %v14911_v54 }
 0x614   :  { %v5493_v45 = vsel %vm5480_vm8, %v10861_v20, %v10856_v49  ;;  %v5489_v28 = vsel %vm5480_vm8, %v10856_v49, %v10846_v32 }
 0x615   :  { %v13498_v42 = vpack.c.bf16 %v5494_v37, %v5493_v45 }
 0x617   :  { %9224 = vmatmul.mubr.msk.bf16.gmra.mrb[60].mxu0 %vm4561_vm5, %v11037_v29  ;;  %15188 = vst [vmem:[#allocation6_spill] sm:$0xff] %v13498_v42 }
 0x618   :  { %5027 = vmatprep.mubr.bf16.mxu0 %v14911_v54 }
 0x61a   :  { %9228 = vmatmul.mubr.msk.bf16.gmra.mrb[60].mxu1 %vm4561_vm5, %v11037_v29  ;;  %v13467_v29 = vpack.c.bf16 %v5207_v50, %v5206_v58  ;;  %v10880_v58 = vpop.permute.xlu1 %10879  ;;  %v11041_v50 = vld [vmem:[%s14689_s7 + $0x58] sm:$0xff]  }
 0x61b   :  { %5100 = vmatprep.mubr.bf16.mxu1 %v14911_v54  ;;  %v10882_v37 = vunpack.i.h.bf16 %v10880_v58 }
 0x61e   :  { %v13518_v41 = vpop.permute.xlu1 %10889 }
 0x61f   :  { %9233 = vmatmul.mubr.msk.bf16.vlgmr.msra.gmra.mrb[48].mxu0 %vm4561_vm5, %v11038_v53 }
 0x620   :  { %5271 = vmatpush1.bf16.msra.mxu0 %v13426_v22  ;;  %5037 = vmatprep.mubr.bf16.mxu0 %v14911_v54 }
 0x621   :  { %5272 = vmatprep.subr.bf16.mxu0 %v13441_v16 }
 0x622   :  { %9237 = vmatmul.mubr.msk.bf16.vlgmr.msra.gmra.mrb[48].mxu1 %vm4561_vm5, %v11038_v53  ;;  %v10870_v53 = vpop.permute.xlu0 %10869  ;;  %v13554_v5 = vpop.permute.xlu1 %10899 }
 0x623   :  { %5344 = vmatpush1.bf16.msra.mxu1 %v13467_v29  ;;  %5110 = vmatprep.mubr.bf16.mxu1 %v14911_v54  ;;  %v10872_v24 = vunpack.i.h.bf16 %v10870_v53  ;;  %v10871_v60 = vunpack.i.l.bf16 %v10870_v53  ;;  %v10881_v53 = vunpack.i.l.bf16 %v10880_v58  ;;  %v5481_v58 = vsel %vm5480_vm8, %v10851_v55, %v10861_v20 }
 0x624   :  { %5273 = vmatpush1.bf16.msra.mxu0 %v13469_v3  ;;  %5345 = vmatprep.subr.bf16.mxu1 %v13476_v9 }
 0x625   :  { %5545 = vmatprep.subr.bf16.mxu0 %v13478_v13  ;;  %v5488_v32 = vsel %vm5480_vm8, %v10872_v24, %v10867_v52  ;;  %v5483_v26 = vsel %vm5480_vm8, %v10866_v8, %v10881_v53 }
 0x626   :  { %v10875_v43 = vpop.permute.xlu0 %10874 }
 0x627   :  { %9234 = vmatmul.mubr.msk.bf16.gmra.mrb[52].mxu0 %vm4561_vm5, %v11039_v7  ;;  %5346 = vmatpush1.bf16.msra.mxu1 %v13495_v59  ;;  %v10876_v45 = vunpack.i.l.bf16 %v10875_v43 }
 0x628   :  { %5047 = vmatprep.mubr.bf16.mxu0 %v14911_v54  ;;  %5618 = vmatprep.subr.bf16.mxu1 %v13498_v42 }
 0x629   :  { %v5491_v49 = vsel %vm5480_vm8, %v10876_v45, %v10871_v60  ;;  %v5495_v18 = vsel %vm5480_vm8, %v10881_v53, %v10876_v45 }
 0x62a   :  { %9238 = vmatmul.mubr.msk.bf16.gmra.mrb[52].mxu1 %vm4561_vm5, %v11039_v7  ;;  %v13516_v56 = vpop.permute.xlu0 %10884  ;;  %v10877_v7 = vunpack.i.h.bf16 %v10875_v43 }
 0x62b   :  { %5120 = vmatprep.mubr.bf16.mxu1 %v14911_v54  ;;  %v15193_v45 = vunpack.i.h.bf16 %v13516_v56 }
 0x62c   :  { %v5492_v61 = vsel %vm5480_vm8, %v10877_v7, %v10872_v24  ;;  %v5496_v46 = vsel %vm5480_vm8, %v10882_v37, %v10877_v7  ;;  %v15190_v24 = vunpack.i.l.bf16 %v13518_v41 }
 0x62e   :  { %v13542_v43 = vpop.permute.xlu0 %10894 }
 0x62f   :  { %9235 = vmatmul.mubr.msk.bf16.gmra.mrb[56].mxu0 %vm4561_vm5, %v11040_v11  ;;  %v10897_v20 = vunpack.i.h.bf16 %v13542_v43 }
 0x630   :  { %5057 = vmatprep.mubr.bf16.mxu0 %v14911_v54 }
 0x632   :  { %9239 = vmatmul.mubr.msk.bf16.gmra.mrb[56].mxu1 %vm4561_vm5, %v11040_v11  ;;  %v5487_v11 = vsel %vm5480_vm8, %v10871_v60, %v10866_v8  ;;  %v15191_v60 = vunpack.i.l.bf16 %v13516_v56 }
 0x633   :  { %5130 = vmatprep.mubr.bf16.mxu1 %v14911_v54  ;;  %v13566_v55 = vpack.c.bf16 %v5488_v32, %v5487_v11  ;;  %v15192_v11 = vunpack.i.h.bf16 %v13518_v41  ;;  %v13592_v32 = vpack.c.bf16 %v5482_v14, %v5481_v58  ;;  %v10910_v14 = vpop.permute.xlu0 %10909  ;;  %v11044_v58 = vld [vmem:[%s14689_s7 + $0x70] sm:$0xff]  }
 0x635   :  { %15189 = vst [vmem:[#allocation10_spill] sm:$0xff] %v13566_v55  ;;  %v5761_v7 = vsel %vm5755_vm2, %v15193_v45, %v15192_v11  ;;  %v11043_v11 = vld [vmem:[%s14689_s7 + $0x68] sm:$0xff]  }
 0x637   :  { %9236 = vmatmul.mubr.msk.bf16.gmra.mrb[60].mxu0 %vm4561_vm5, %v11041_v50 }
 0x638   :  { %5302 = vmatprep.mubr.bf16.mxu0 %v14911_v54 }
 0x63a   :  { %9240 = vmatmul.mubr.msk.bf16.gmra.mrb[60].mxu1 %vm4561_vm5, %v11041_v50  ;;  %v13551_v50 = vpack.c.bf16 %v5490_v35, %v5489_v28  ;;  %v10896_v28 = vunpack.i.l.bf16 %v13542_v43  ;;  %v5760_v35 = vsel %vm5755_vm2, %v15191_v60, %v15190_v24  ;;  %v13594_v43 = vpack.c.bf16 %v5492_v61, %v5491_v49  ;;  %v10905_v49 = vpop.permute.xlu1 %10904 }
 0x63b   :  { %5375 = vmatprep.mubr.bf16.mxu1 %v14911_v54  ;;  %v5484_v24 = vsel %vm5480_vm8, %v10867_v52, %v10882_v37  ;;  %v13601_v60 = vpack.c.bf16 %v5496_v46, %v5495_v18  ;;  %v13603_v31 = vpack.c.bf16 %v5761_v7, %v5760_v35  ;;  %v15197_v61 = vunpack.i.l.bf16 %v13554_v5  ;;  %v10915_v18 = vpop.permute.xlu0 %10914 }
 0x63c   :  { %15194 = vst [vmem:[#allocation11_spill] sm:$0xff] %v13594_v43  ;;  %v15198_v52 = vunpack.i.h.bf16 %v13554_v5  ;;  %v13620_v53 = vpack.c.bf16 %v5484_v24, %v5483_v26  ;;  %v11045_v26 = vld [vmem:[%s14689_s7 + $0x78] sm:$0xff]   ;;  %v10907_v45 = vunpack.i.h.bf16 %v10905_v49  ;;  %v10906_v7 = vunpack.i.l.bf16 %v10905_v49 }
 0x63d   :  { %15195 = vst [vmem:[#allocation8_spill] sm:$0xff] %v13601_v60  ;;  %15196 = vst [vmem:[#allocation12_spill] sm:$0xff] %v13603_v31  ;;  %v5768_v8 = vsel %vm5755_vm2, %v15197_v61, %v10896_v28  ;;  %v10912_v24 = vunpack.i.h.bf16 %v10910_v14  ;;  %v10916_v49 = vunpack.i.l.bf16 %v10915_v18 }
 0x63e   :  { %v5769_v37 = vsel %vm5755_vm2, %v15198_v52, %v10897_v20  ;;  %15199 = vst [vmem:[#allocation9_spill] sm:$0xff] %v13620_v53  ;;  %v10920_v46 = vpop.permute.xlu1 %10919 }
 0x63f   :  { %9245 = vmatmul.mubr.msk.bf16.vlgmr.msra.gmra.mrb[48].mxu0 %vm4561_vm5, %v11042_v4  ;;  %v13641_v35 = vpop.permute.xlu0 %10924 }
 0x640   :  { %5546 = vmatpush1.bf16.msra.mxu0 %v13551_v50  ;;  %5312 = vmatprep.mubr.bf16.mxu0 %v14911_v54 }
 0x641   :  { %5547 = vmatprep.subr.bf16.mxu0 %v13566_v55 }
 0x642   :  { %9249 = vmatmul.mubr.msk.bf16.vlgmr.msra.gmra.mrb[48].mxu1 %vm4561_vm5, %v11042_v4  ;;  %v13623_v4 = vpack.c.bf16 %v5769_v37, %v5768_v8  ;;  %v13643_v61 = vpop.permute.xlu1 %10929  ;;  %v15201_v8 = vunpack.i.l.bf16 %v13516_v56  ;;  %v15202_v37 = vunpack.i.h.bf16 %v13516_v56 }
 0x643   :  { %5619 = vmatpush1.bf16.msra.mxu1 %v13592_v32  ;;  %5385 = vmatprep.mubr.bf16.mxu1 %v14911_v54 }
 0x644   :  { %5548 = vmatpush1.bf16.msra.mxu0 %v13594_v43  ;;  %5620 = vmatprep.subr.bf16.mxu1 %v13601_v60  ;;  %15200 = vst [vmem:[#allocation13_spill] sm:$0xff] %v13623_v4  ;;  %v5764_v52 = vsel %vm5755_vm2, %v10896_v28, %v15201_v8  ;;  %v11046_v60 = vld [vmem:[%s14689_s7 + $0x80] sm:$0xff]   ;;  %v5763_v28 = vsel %vm5755_vm2, %v10912_v24, %v10907_v45  ;;  %v13667_v8 = vpop.permute.xlu0 %10934 }
 0x645   :  { %5820 = vmatprep.subr.bf16.mxu0 %v13603_v31  ;;  %v10922_v31 = vunpack.i.h.bf16 %v10920_v46 }
 0x646   :  { %v13679_v56 = vpop.permute.xlu1 %10939 }
 0x647   :  { %9246 = vmatmul.mubr.msk.bf16.gmra.mrb[52].mxu0 %vm4561_vm5, %v11043_v11  ;;  %5621 = vmatpush1.bf16.msra.mxu1 %v13620_v53 }
 0x648   :  { %5322 = vmatprep.mubr.bf16.mxu0 %v14911_v54  ;;  %5893 = vmatprep.subr.bf16.mxu1 %v13623_v4  ;;  %v10917_v4 = vunpack.i.h.bf16 %v10915_v18  ;;  %v15206_v18 = vunpack.i.h.bf16 %v13554_v5 }
 0x64a   :  { %9250 = vmatmul.mubr.msk.bf16.gmra.mrb[52].mxu1 %vm4561_vm5, %v11043_v11  ;;  %v10911_v11 = vunpack.i.l.bf16 %v10910_v14  ;;  %v10921_v14 = vunpack.i.l.bf16 %v10920_v46  ;;  %v15207_v46 = vunpack.i.h.bf16 %v13518_v41  ;;  %v5767_v13 = vsel %vm5755_vm2, %v10917_v4, %v10912_v24 }
 0x64b   :  { %5395 = vmatprep.mubr.bf16.mxu1 %v14911_v54  ;;  %v15210_v24 = vunpack.i.l.bf16 %v13641_v35 }
 0x64c   :  { %v5762_v43 = vsel %vm5755_vm2, %v10911_v11, %v10906_v7  ;;  %v5766_v53 = vsel %vm5755_vm2, %v10916_v49, %v10911_v11 }
 0x64f   :  { %9247 = vmatmul.mubr.msk.bf16.gmra.mrb[56].mxu0 %vm4561_vm5, %v11044_v58 }
 0x650   :  { %5332 = vmatprep.mubr.bf16.mxu0 %v14911_v54 }
 0x652   :  { %9251 = vmatmul.mubr.msk.bf16.gmra.mrb[56].mxu1 %vm4561_vm5, %v11044_v58  ;;  %v5765_v58 = vsel %vm5755_vm2, %v10897_v20, %v15202_v37  ;;  %v15204_v37 = vunpack.i.l.bf16 %v13518_v41  ;;  %v5757_v20 = vsel %vm5755_vm2, %v15207_v46, %v15206_v18  ;;  %v5770_v41 = vsel %vm5755_vm2, %v10921_v14, %v10916_v49 }
 0x653   :  { %5405 = vmatprep.mubr.bf16.mxu1 %v14911_v54  ;;  %v13676_v42 = vpack.c.bf16 %v5765_v58, %v5764_v52  ;;  %v10937_v52 = vunpack.i.h.bf16 %v13667_v8  ;;  %v10936_v58 = vunpack.i.l.bf16 %v13667_v8  ;;  %v15211_v46 = vunpack.i.h.bf16 %v13643_v61 }
 0x654   :  { %v15212_v49 = vunpack.i.h.bf16 %v13641_v35  ;;  %v5758_v18 = vsel %vm5755_vm2, %v10906_v7, %v10921_v14  ;;  %v10950_v7 = vpop.permute.xlu0 %10949  ;;  %v10945_v14 = vpop.permute.xlu1 %10944 }
 0x655   :  { %15205 = vst [vmem:[#allocation14_spill] sm:$0xff] %v13676_v42 }
 0x657   :  { %9248 = vmatmul.mubr.msk.bf16.gmra.mrb[60].mxu0 %vm4561_vm5, %v11045_v26 }
 0x658   :  { %5577 = vmatprep.mubr.bf16.mxu0 %v14911_v54 }
 0x65a   :  { %9252 = vmatmul.mubr.msk.bf16.gmra.mrb[60].mxu1 %vm4561_vm5, %v11045_v26  ;;  %v15203_v26 = vunpack.i.l.bf16 %v13554_v5  ;;  %v5771_v5 = vsel %vm5755_vm2, %v10922_v31, %v10917_v4  ;;  %v6036_v4 = vsel %vm6030_vm6, %v15212_v49, %v15211_v46  ;;  %v11047_v46 = vld [vmem:[%s14689_s7 + $0x88] sm:$0xff]   ;;  %v10947_v49 = vunpack.i.h.bf16 %v10945_v14 }
 0x65b   :  { %5650 = vmatprep.mubr.bf16.mxu1 %v14911_v54 }
 0x65c   :  { %v5756_v55 = vsel %vm5755_vm2, %v15204_v37, %v15203_v26  ;;  %v13691_v26 = vpack.c.bf16 %v5763_v28, %v5762_v43  ;;  %v15209_v43 = vunpack.i.l.bf16 %v13643_v61  ;;  %v13719_v37 = vpack.c.bf16 %v5767_v13, %v5766_v53 }
 0x65d   :  { %v13717_v8 = vpack.c.bf16 %v5757_v20, %v5756_v55  ;;  %v15217_v13 = vunpack.i.l.bf16 %v13679_v56  ;;  %v11048_v20 = vld [vmem:[%s14689_s7 + $0x90] sm:$0xff]  }
 0x65e   :  { %15208 = vst [vmem:[#allocation15_spill] sm:$0xff] %v13691_v26  ;;  %v6035_v28 = vsel %vm6030_vm6, %v15210_v24, %v15209_v43  ;;  %15214 = vst [vmem:[#allocation17_spill] sm:$0xff] %v13719_v37  ;;  %v5759_v43 = vsel %vm5755_vm2, %v10907_v45, %v10922_v31  ;;  %v13726_v24 = vpack.c.bf16 %v5771_v5, %v5770_v41  ;;  %v15218_v31 = vunpack.i.h.bf16 %v13679_v56  ;;  %v10955_v41 = vpop.permute.xlu0 %10954  ;;  %v10960_v5 = vpop.permute.xlu1 %10959 }
 0x65f   :  { %9257 = vmatmul.mubr.msk.bf16.vlgmr.msra.gmra.mrb[48].mxu0 %vm4561_vm5, %v11046_v60  ;;  %15213 = vst [vmem:[#allocation16_spill] sm:$0xff] %v13717_v8  ;;  %v13728_v11 = vpack.c.bf16 %v6036_v4, %v6035_v28  ;;  %v6043_v55 = vsel %vm6030_vm6, %v15217_v13, %v10936_v58  ;;  %v13745_v53 = vpack.c.bf16 %v5759_v43, %v5758_v18  ;;  %v11049_v18 = vld [vmem:[%s14689_s7 + $0x98] sm:$0xff]   ;;  %v10946_v4 = vunpack.i.l.bf16 %v10945_v14 }
 0x660   :  { %5821 = vmatpush1.bf16.msra.mxu0 %v13676_v42  ;;  %5587 = vmatprep.mubr.bf16.mxu0 %v14911_v54  ;;  %15215 = vst [vmem:[#allocation18_spill] sm:$0xff] %v13726_v24  ;;  %v10952_v43 = vunpack.i.h.bf16 %v10950_v7  ;;  %v10956_v14 = vunpack.i.l.bf16 %v10955_v41 }
 0x661   :  { %5822 = vmatprep.subr.bf16.mxu0 %v13691_v26  ;;  %15216 = vst [vmem:[#allocation19_spill] sm:$0xff] %v13728_v11  ;;  %15219 = vst [vmem:[#allocation20_spill] sm:$0xff] %v13745_v53 }
 0x662   :  { %9261 = vmatmul.mubr.msk.bf16.vlgmr.msra.gmra.mrb[48].mxu1 %vm4561_vm5, %v11046_v60  ;;  %v6044_v60 = vsel %vm6030_vm6, %v15218_v31, %v10937_v52  ;;  %v13766_v28 = vpop.permute.xlu0 %10964  ;;  %v13768_v13 = vpop.permute.xlu1 %10969 }
 0x663   :  { %5894 = vmatpush1.bf16.msra.mxu1 %v13717_v8  ;;  %5660 = vmatprep.mubr.bf16.mxu1 %v14911_v54  ;;  %v13748_v45 = vpack.c.bf16 %v6044_v60, %v6043_v55  ;;  %v15221_v55 = vunpack.i.l.bf16 %v13641_v35  ;;  %v15222_v60 = vunpack.i.h.bf16 %v13641_v35 }
 0x664   :  { %5823 = vmatpush1.bf16.msra.mxu0 %v13719_v37  ;;  %5895 = vmatprep.subr.bf16.mxu1 %v13726_v24  ;;  %v11050_v24 = vld [vmem:[%s14689_s7 + $0xa0] sm:$0xff]  }
 0x665   :  { %6095 = vmatprep.subr.bf16.mxu0 %v13728_v11  ;;  %15220 = vst [vmem:[#allocation21_spill] sm:$0xff] %v13748_v45  ;;  %v6039_v31 = vsel %vm6030_vm6, %v10936_v58, %v15221_v55  ;;  %v10962_v11 = vunpack.i.h.bf16 %v10960_v5  ;;  %v6038_v58 = vsel %vm6030_vm6, %v10952_v43, %v10947_v49 }
 0x666   :  { %v13792_v55 = vpop.permute.xlu0 %10974  ;;  %v13804_v35 = vpop.permute.xlu1 %10979 }
 0x667   :  { %9258 = vmatmul.mubr.msk.bf16.gmra.mrb[52].mxu0 %vm4561_vm5, %v11047_v46  ;;  %5896 = vmatpush1.bf16.msra.mxu1 %v13745_v53 }
 0x668   :  { %5597 = vmatprep.mubr.bf16.mxu0 %v14911_v54  ;;  %6168 = vmatprep.subr.bf16.mxu1 %v13748_v45  ;;  %v10957_v45 = vunpack.i.h.bf16 %v10955_v41  ;;  %v15226_v41 = vunpack.i.h.bf16 %v13679_v56 }
 0x66a   :  { %9262 = vmatmul.mubr.msk.bf16.gmra.mrb[52].mxu1 %vm4561_vm5, %v11047_v46  ;;  %v10951_v46 = vunpack.i.l.bf16 %v10950_v7  ;;  %v10961_v7 = vunpack.i.l.bf16 %v10960_v5  ;;  %v15227_v5 = vunpack.i.h.bf16 %v13643_v61  ;;  %v6042_v8 = vsel %vm6030_vm6, %v10957_v45, %v10952_v43 }
 0x66b   :  { %5670 = vmatprep.mubr.bf16.mxu1 %v14911_v54  ;;  %v15229_v43 = vunpack.i.l.bf16 %v13766_v28 }
 0x66c   :  { %v6037_v37 = vsel %vm6030_vm6, %v10951_v46, %v10946_v4  ;;  %v6041_v42 = vsel %vm6030_vm6, %v10956_v14, %v10951_v46  ;;  %v10981_v46 = vunpack.i.l.bf16 %v13804_v35 }
 0x66f   :  { %9259 = vmatmul.mubr.msk.bf16.gmra.mrb[56].mxu0 %vm4561_vm5, %v11048_v20 }
 0x670   :  { %5607 = vmatprep.mubr.bf16.mxu0 %v14911_v54 }
 0x672   :  { %9263 = vmatmul.mubr.msk.bf16.gmra.mrb[56].mxu1 %vm4561_vm5, %v11048_v20  ;;  %v6040_v20 = vsel %vm6030_vm6, %v10937_v52, %v15222_v60  ;;  %v15224_v60 = vunpack.i.l.bf16 %v13643_v61  ;;  %v6032_v52 = vsel %vm6030_vm6, %v15227_v5, %v15226_v41  ;;  %v6045_v61 = vsel %vm6030_vm6, %v10961_v7, %v10956_v14 }
 0x673   :  { %5680 = vmatprep.mubr.bf16.mxu1 %v14911_v54  ;;  %v13801_v53 = vpack.c.bf16 %v6040_v20, %v6039_v31  ;;  %v10977_v31 = vunpack.i.h.bf16 %v13792_v55  ;;  %v10976_v20 = vunpack.i.l.bf16 %v13792_v55  ;;  %v10982_v41 = vunpack.i.h.bf16 %v13804_v35 }
 0x674   :  { %v15230_v5 = vunpack.i.h.bf16 %v13768_v13  ;;  %v15231_v14 = vunpack.i.h.bf16 %v13766_v28  ;;  %v13844_v55 = vpack.c.bf16 %v6042_v8, %v6041_v42 }
 0x675   :  { %15225 = vst [vmem:[#allocation22_spill] sm:$0xff] %v13801_v53  ;;  %v6318_v42 = vsel %vm6305_vm15, %v10981_v46, %v10976_v20 }
 0x677   :  { %9260 = vmatmul.mubr.msk.bf16.gmra.mrb[60].mxu0 %vm4561_vm5, %v11049_v18 }
 0x678   :  { %5852 = vmatprep.mubr.bf16.mxu0 %v14911_v54 }
 0x67a   :  { %9264 = vmatmul.mubr.msk.bf16.gmra.mrb[60].mxu1 %vm4561_vm5, %v11049_v18  ;;  %v15223_v18 = vunpack.i.l.bf16 %v13679_v56  ;;  %v6046_v56 = vsel %vm6030_vm6, %v10962_v11, %v10957_v45  ;;  %v6311_v45 = vsel %vm6305_vm15, %v15231_v14, %v15230_v5  ;;  %v11051_v5 = vld [vmem:[%s14689_s7 + $0xa8] sm:$0xff]  }
 0x67b   :  { %5925 = vmatprep.mubr.bf16.mxu1 %v14911_v54 }
 0x67c   :  { %v6031_v26 = vsel %vm6030_vm6, %v15224_v60, %v15223_v18  ;;  %v13816_v18 = vpack.c.bf16 %v6038_v58, %v6037_v37  ;;  %v15228_v37 = vunpack.i.l.bf16 %v13768_v13  ;;  %v6033_v60 = vsel %vm6030_vm6, %v10946_v4, %v10961_v7  ;;  %v10985_v4 = vpop.permute.xlu1 %10984  ;;  %v11053_v7 = vld [vmem:[%s14689_s7 + $0xb8] sm:$0xff]  }
 0x67d   :  { %v13842_v35 = vpack.c.bf16 %v6032_v52, %v6031_v26  ;;  %v6319_v26 = vsel %vm6305_vm15, %v10982_v41, %v10977_v31  ;;  %v10987_v52 = vunpack.i.h.bf16 %v10985_v4 }
 0x67e   :  { %v6310_v58 = vsel %vm6305_vm15, %v15229_v43, %v15228_v37  ;;  %v6034_v37 = vsel %vm6030_vm6, %v10947_v49, %v10962_v11  ;;  %v13851_v43 = vpack.c.bf16 %v6046_v56, %v6045_v61  ;;  %v13869_v8 = vpack.c.bf16 %v6319_v26, %v6318_v42  ;;  %v10990_v49 = vpop.permute.xlu0 %10989 }
 0x67f   :  { %9269 = vmatmul.mubr.msk.bf16.vlgmr.msra.gmra.mrb[48].mxu0 %vm4561_vm5, %v11050_v24  ;;  %v13866_v11 = vpack.c.bf16 %v6034_v37, %v6033_v60  ;;  %v10986_v61 = vunpack.i.l.bf16 %v10985_v4  ;;  %v10992_v56 = vunpack.i.h.bf16 %v10990_v49  ;;  %v15235_v60 = vunpack.i.l.bf16 %v13766_v28 }
 0x680   :  { %6096 = vmatpush1.bf16.msra.mxu0 %v13801_v53  ;;  %5862 = vmatprep.mubr.bf16.mxu0 %v14911_v54  ;;  %15232 = vst [vmem:[#allocation23_spill] sm:$0xff] %v13851_v43  ;;  %v13853_v53 = vpack.c.bf16 %v6311_v45, %v6310_v58  ;;  %15234 = vst [vmem:[#allocation25_spill] sm:$0xff] %v13869_v8  ;;  %v10991_v58 = vunpack.i.l.bf16 %v10990_v49  ;;  %v11000_v45 = vpop.permute.xlu1 %10999  ;;  %v11054_v49 = vld [vmem:[%s14689_s7 + $0xc0] sm:$0xff]  }
 0x681   :  { %6097 = vmatprep.subr.bf16.mxu0 %v13816_v18  ;;  %v6314_v37 = vsel %vm6305_vm15, %v10976_v20, %v15235_v60  ;;  %v11002_v4 = vunpack.i.h.bf16 %v11000_v45  ;;  %v15238_v60 = vunpack.i.h.bf16 %v13768_v13 }
 0x682   :  { %9273 = vmatmul.mubr.msk.bf16.vlgmr.msra.gmra.mrb[48].mxu1 %vm4561_vm5, %v11050_v24  ;;  %15233 = vst [vmem:[#allocation24_spill] sm:$0xff] %v13853_v53  ;;  %v11052_v24 = vld [vmem:[%s14689_s7 + $0xb0] sm:$0xff]   ;;  %v10995_v14 = vpop.permute.xlu0 %10994  ;;  %v6312_v20 = vsel %vm6305_vm15, %v10991_v58, %v10986_v61 }
 0x683   :  { %6169 = vmatpush1.bf16.msra.mxu1 %v13842_v35  ;;  %5935 = vmatprep.mubr.bf16.mxu1 %v14911_v54  ;;  %v10997_v26 = vunpack.i.h.bf16 %v10995_v14 }
 0x684   :  { %6098 = vmatpush1.bf16.msra.mxu0 %v13844_v55  ;;  %6170 = vmatprep.subr.bf16.mxu1 %v13851_v43 }
 0x685   :  { %6370 = vmatprep.subr.bf16.mxu0 %v13853_v53  ;;  %v6317_v53 = vsel %vm6305_vm15, %v10997_v26, %v10992_v56 }
 0x687   :  { %9270 = vmatmul.mubr.msk.bf16.gmra.mrb[52].mxu0 %vm4561_vm5, %v11051_v5  ;;  %6171 = vmatpush1.bf16.msra.mxu1 %v13866_v11 }
 0x688   :  { %5872 = vmatprep.mubr.bf16.mxu0 %v14911_v54  ;;  %6443 = vmatprep.subr.bf16.mxu1 %v13869_v8  ;;  %v11001_v8 = vunpack.i.l.bf16 %v11000_v45  ;;  %v6307_v45 = vsel %vm6305_vm15, %v15238_v60, %v10982_v41  ;;  %v15256_v60 = vld [vmem:[#allocation23_spill] sm:$0xff] }
 0x68a   :  { %9274 = vmatmul.mubr.msk.bf16.gmra.mrb[52].mxu1 %vm4561_vm5, %v11051_v5  ;;  %v15236_v5 = vunpack.i.h.bf16 %v13766_v28  ;;  %v6313_v28 = vsel %vm6305_vm15, %v10992_v56, %v10987_v52  ;;  %v6308_v56 = vsel %vm6305_vm15, %v10986_v61, %v11001_v8  ;;  %v15251_v61 = vld [vmem:[#allocation17_spill] sm:$0xff] }
 0x68b   :  { %5945 = vmatprep.mubr.bf16.mxu1 %v14911_v54  ;;  %v13921_v43 = vpack.c.bf16 %v6313_v28, %v6312_v20  ;;  %v11082_v20 = vld [vmem:[%s14689_s7 + $0x1a0] sm:$0xff]   ;;  %v15254_v28 = vld [vmem:[#allocation19_spill] sm:$0xff] }
 0x68c   :  { %v6315_v42 = vsel %vm6305_vm15, %v10977_v31, %v15236_v5  ;;  %v15237_v31 = vunpack.i.l.bf16 %v13768_v13  ;;  %v6321_v13 = vsel %vm6305_vm15, %v11002_v4, %v10997_v26  ;;  %v11055_v26 = vld [vmem:[%s14689_s7 + $0xc8] sm:$0xff]  }
 0x68f   :  { %9271 = vmatmul.mubr.msk.bf16.gmra.mrb[56].mxu0 %vm4561_vm5, %v11052_v24 }
 0x690   :  { %5882 = vmatprep.mubr.bf16.mxu0 %v14911_v54 }
 0x692   :  { %9275 = vmatmul.mubr.msk.bf16.gmra.mrb[56].mxu1 %vm4561_vm5, %v11052_v24  ;;  %v10996_v24 = vunpack.i.l.bf16 %v10995_v14  ;;  %v6306_v14 = vsel %vm6305_vm15, %v15237_v31, %v10981_v46  ;;  %v11083_v31 = vld [vmem:[%s14689_s7 + $0x1a8] sm:$0xff]  }
 0x693   :  { %5955 = vmatprep.mubr.bf16.mxu1 %v14911_v54  ;;  %v13930_v41 = vpack.c.bf16 %v6307_v45, %v6306_v14  ;;  %v15255_v14 = vld [vmem:[#allocation21_spill] sm:$0xff] }
 0x694   :  { %v6316_v5 = vsel %vm6305_vm15, %v10996_v24, %v10991_v58  ;;  %v6320_v46 = vsel %vm6305_vm15, %v11001_v8, %v10996_v24  ;;  %v11056_v8 = vld [vmem:[%s14689_s7 + $0xd0] sm:$0xff]   ;;  %v15252_v24 = vld [vmem:[#allocation18_spill] sm:$0xff] }
 0x695   :  { %v13932_v58 = vpack.c.bf16 %v6317_v53, %v6316_v5  ;;  %v11086_v45 = vld [vmem:[%s14689_s7 + $0x1c0] sm:$0xff]  }
 0x697   :  { %9272 = vmatmul.mubr.msk.bf16.gmra.mrb[60].mxu0 %vm4561_vm5, %v11053_v7 }
 0x698   :  { %6127 = vmatprep.mubr.bf16.mxu0 %v14911_v54 }
 0x69a   :  { %9276 = vmatmul.mubr.msk.bf16.gmra.mrb[60].mxu1 %vm4561_vm5, %v11053_v7  ;;  %v13910_v7 = vpack.c.bf16 %v6315_v42, %v6314_v37  ;;  %v6309_v37 = vsel %vm6305_vm15, %v10987_v52, %v11002_v4  ;;  %v13939_v42 = vpack.c.bf16 %v6321_v13, %v6320_v46  ;;  %v11059_v52 = vld [vmem:[%s14689_s7 + $0xe8] sm:$0xff]   ;;  %v11080_v4 = vld [vmem:[%s14689_s7 + $0x190] sm:$0xff]   ;;  %v14232_v13 = vmul.u32 256, %v11259_v10 }
 0x69b   :  { %6200 = vmatprep.mubr.bf16.mxu1 %v14911_v54  ;;  %v13948_v53 = vpack.c.bf16 %v6309_v37, %v6308_v56  ;;  %v15258_v37 = vld [vmem:[#allocation24_spill] sm:$0xff]  ;;  %v11087_v10 = vld [vmem:[%s14689_s7 + $0x1c8] sm:$0xff]  }
 0x69f   :  { %9281 = vmatmul.mubr.msk.bf16.vlgmr.msra.gmra.mrb[48].mxu0 %vm4561_vm5, %v11054_v49 }
 0x6a0   :  { %6371 = vmatpush1.bf16.msra.mxu0 %v13910_v7  ;;  %6137 = vmatprep.mubr.bf16.mxu0 %v14911_v54 }
 0x6a1   :  { %6372 = vmatprep.subr.bf16.mxu0 %v13921_v43 }
 0x6a2   :  { %9285 = vmatmul.mubr.msk.bf16.vlgmr.msra.gmra.mrb[48].mxu1 %vm4561_vm5, %v11054_v49  ;;  %v15253_v49 = vld [vmem:[#allocation22_spill] sm:$0xff] }
 0x6a3   :  { %6444 = vmatpush1.bf16.msra.mxu1 %v13930_v41  ;;  %6210 = vmatprep.mubr.bf16.mxu1 %v14911_v54 }
 0x6a4   :  { %6373 = vmatpush1.bf16.msra.mxu0 %v13932_v58  ;;  %6445 = vmatprep.subr.bf16.mxu1 %v13939_v42 }
 0x6a5   :  { %6588 = vmatprep.subr.bf16.mxu0 %v13036_v33  ;;  %v11057_v33 = vld [vmem:[%s14689_s7 + $0xd8] sm:$0xff]  }
 0x6a7   :  { %9282 = vmatmul.mubr.msk.bf16.gmra.mrb[52].mxu0 %vm4561_vm5, %v11055_v26  ;;  %6446 = vmatpush1.bf16.msra.mxu1 %v13948_v53 }
 0x6a8   :  { %6147 = vmatprep.mubr.bf16.mxu0 %v14911_v54  ;;  %6661 = vmatprep.subr.bf16.mxu1 %v13031_v1  ;;  %v11058_v1 = vld [vmem:[%s14689_s7 + $0xe0] sm:$0xff]  }
 0x6aa   :  { %9286 = vmatmul.mubr.msk.bf16.gmra.mrb[52].mxu1 %vm4561_vm5, %v11055_v26  ;;  %v15259_v26 = vld [vmem:[#allocation25_spill] sm:$0xff] }
 0x6ab   :  { %6220 = vmatprep.mubr.bf16.mxu1 %v14911_v54 }
 0x6af   :  { %9283 = vmatmul.mubr.msk.bf16.gmra.mrb[56].mxu0 %vm4561_vm5, %v11056_v8 }
 0x6b0   :  { %6157 = vmatprep.mubr.bf16.mxu0 %v14911_v54 }
 0x6b2   :  { %9287 = vmatmul.mubr.msk.bf16.gmra.mrb[56].mxu1 %vm4561_vm5, %v11056_v8 }
 0x6b3   :  { %6230 = vmatprep.mubr.bf16.mxu1 %v14911_v54 }
 0x6b7   :  { %9284 = vmatmul.mubr.msk.bf16.gmra.mrb[60].mxu0 %vm4561_vm5, %v11057_v33 }
 0x6b8   :  { %6402 = vmatprep.mubr.bf16.mxu0 %v14911_v54 }
 0x6ba   :  { %9288 = vmatmul.mubr.msk.bf16.gmra.mrb[60].mxu1 %vm4561_vm5, %v11057_v33 }
 0x6bb   :  { %6475 = vmatprep.mubr.bf16.mxu1 %v14911_v54 }
 0x6bf   :  { %9293 = vmatmul.mubr.msk.bf16.vlgmr.msra.gmra.mrb[48].mxu0 %vm4561_vm5, %v11058_v1 }
 0x6c0   :  { %6589 = vmatpush1.bf16.msra.mxu0 %v13024_v44  ;;  %6412 = vmatprep.mubr.bf16.mxu0 %v14911_v54  ;;  %v11060_v44 = vld [vmem:[%s14689_s7 + $0xf0] sm:$0xff]  }
 0x6c1   :  { %6590 = vmatprep.subr.bf16.mxu0 %v13043_v12  ;;  %v11065_v12 = vld [vmem:[%s14689_s7 + $0x118] sm:$0xff]  }
 0x6c2   :  { %9297 = vmatmul.mubr.msk.bf16.vlgmr.msra.gmra.mrb[48].mxu1 %vm4561_vm5, %v11058_v1 }
 0x6c3   :  { %6662 = vmatpush1.bf16.msra.mxu1 %v13027_v36  ;;  %6485 = vmatprep.mubr.bf16.mxu1 %v14911_v54  ;;  %v11061_v36 = vld [vmem:[%s14689_s7 + $0xf8] sm:$0xff]  }
 0x6c4   :  { %6591 = vmatpush1.bf16.msra.mxu0 %v13033_v30  ;;  %6663 = vmatprep.subr.bf16.mxu1 %v13041_v57  ;;  %v11062_v30 = vld [vmem:[%s14689_s7 + $0x100] sm:$0xff]   ;;  %v11064_v57 = vld [vmem:[%s14689_s7 + $0x110] sm:$0xff]  }
 0x6c5   :  { %6806 = vmatprep.subr.bf16.mxu0 %v13129_v51  ;;  %v11067_v51 = vld [vmem:[%s14689_s7 + $0x128] sm:$0xff]  }
 0x6c7   :  { %9294 = vmatmul.mubr.msk.bf16.gmra.mrb[52].mxu0 %vm4561_vm5, %v11059_v52  ;;  %6664 = vmatpush1.bf16.msra.mxu1 %v13039_v0  ;;  %v11063_v0 = vld [vmem:[%s14689_s7 + $0x108] sm:$0xff]  }
 0x6c8   :  { %6422 = vmatprep.mubr.bf16.mxu0 %v14911_v54  ;;  %6879 = vmatprep.subr.bf16.mxu1 %v13116_v23  ;;  %v11066_v23 = vld [vmem:[%s14689_s7 + $0x120] sm:$0xff]  }
 0x6ca   :  { %9298 = vmatmul.mubr.msk.bf16.gmra.mrb[52].mxu1 %vm4561_vm5, %v11059_v52 }
 0x6cb   :  { %6495 = vmatprep.mubr.bf16.mxu1 %v14911_v54 }
 0x6cf   :  { %9295 = vmatmul.mubr.msk.bf16.gmra.mrb[56].mxu0 %vm4561_vm5, %v11060_v44 }
 0x6d0   :  { %6432 = vmatprep.mubr.bf16.mxu0 %v14911_v54 }
 0x6d2   :  { %9299 = vmatmul.mubr.msk.bf16.gmra.mrb[56].mxu1 %vm4561_vm5, %v11060_v44 }
 0x6d3   :  { %6505 = vmatprep.mubr.bf16.mxu1 %v14911_v54 }
 0x6d7   :  { %9296 = vmatmul.mubr.msk.bf16.gmra.mrb[60].mxu0 %vm4561_vm5, %v11061_v36 }
 0x6d8   :  { %6620 = vmatprep.mubr.bf16.mxu0 %v14911_v54 }
 0x6da   :  { %9300 = vmatmul.mubr.msk.bf16.gmra.mrb[60].mxu1 %vm4561_vm5, %v11061_v36 }
 0x6db   :  { %6693 = vmatprep.mubr.bf16.mxu1 %v14911_v54 }
 0x6df   :  { %9305 = vmatmul.mubr.msk.bf16.vlgmr.msra.gmra.mrb[48].mxu0 %vm4561_vm5, %v11062_v30 }
 0x6e0   :  { %6807 = vmatpush1.bf16.msra.mxu0 %v13131_v47  ;;  %6630 = vmatprep.mubr.bf16.mxu0 %v14911_v54  ;;  %v11068_v47 = vld [vmem:[%s14689_s7 + $0x130] sm:$0xff]  }
 0x6e1   :  { %6808 = vmatprep.subr.bf16.mxu0 %v13177_v40  ;;  %v11072_v40 = vld [vmem:[%s14689_s7 + $0x150] sm:$0xff]  }
 0x6e2   :  { %9309 = vmatmul.mubr.msk.bf16.vlgmr.msra.gmra.mrb[48].mxu1 %vm4561_vm5, %v11062_v30  ;;  %v11090_v30 = vld [vmem:[%s14689_s7 + $0x1e0] sm:$0xff]  }
 0x6e3   :  { %6880 = vmatpush1.bf16.msra.mxu1 %v13137_v17  ;;  %6703 = vmatprep.mubr.bf16.mxu1 %v14911_v54  ;;  %v11069_v17 = vld [vmem:[%s14689_s7 + $0x138] sm:$0xff]  }
 0x6e4   :  { %6809 = vmatpush1.bf16.msra.mxu0 %v13153_v6  ;;  %6881 = vmatprep.subr.bf16.mxu1 %v13162_v15  ;;  %v11070_v6 = vld [vmem:[%s14689_s7 + $0x140] sm:$0xff]   ;;  %v11071_v15 = vld [vmem:[%s14689_s7 + $0x148] sm:$0xff]  }
 0x6e5   :  { %7024 = vmatprep.subr.bf16.mxu0 %v13342_v21  ;;  %v15241_v21 = vld [vmem:[#allocation6_spill] sm:$0xff] }
 0x6e7   :  { %9306 = vmatmul.mubr.msk.bf16.gmra.mrb[52].mxu0 %vm4561_vm5, %v11063_v0  ;;  %6882 = vmatpush1.bf16.msra.mxu1 %v13190_v48  ;;  %v11073_v48 = vld [vmem:[%s14689_s7 + $0x158] sm:$0xff]  }
 0x6e8   :  { %6640 = vmatprep.mubr.bf16.mxu0 %v14911_v54  ;;  %7097 = vmatprep.subr.bf16.mxu1 %v13301_v19  ;;  %v15240_v19 = vld [vmem:[#allocation9_spill] sm:$0xff] }
 0x6ea   :  { %9310 = vmatmul.mubr.msk.bf16.gmra.mrb[52].mxu1 %vm4561_vm5, %v11063_v0 }
 0x6eb   :  { %6713 = vmatprep.mubr.bf16.mxu1 %v14911_v54 }
 0x6ef   :  { %9307 = vmatmul.mubr.msk.bf16.gmra.mrb[56].mxu0 %vm4561_vm5, %v11064_v57 }
 0x6f0   :  { %6650 = vmatprep.mubr.bf16.mxu0 %v14911_v54 }
 0x6f2   :  { %9311 = vmatmul.mubr.msk.bf16.gmra.mrb[56].mxu1 %vm4561_vm5, %v11064_v57 }
 0x6f3   :  { %6723 = vmatprep.mubr.bf16.mxu1 %v14911_v54 }
 0x6f7   :  { %9308 = vmatmul.mubr.msk.bf16.gmra.mrb[60].mxu0 %vm4561_vm5, %v11065_v12 }
 0x6f8   :  { %6838 = vmatprep.mubr.bf16.mxu0 %v14911_v54 }
 0x6fa   :  { %9312 = vmatmul.mubr.msk.bf16.gmra.mrb[60].mxu1 %vm4561_vm5, %v11065_v12 }
 0x6fb   :  { %6911 = vmatprep.mubr.bf16.mxu1 %v14911_v54 }
 0x6ff   :  { %9317 = vmatmul.mubr.msk.bf16.vlgmr.msra.gmra.mrb[48].mxu0 %vm4561_vm5, %v11066_v23 }
 0x700   :  { %7025 = vmatpush1.bf16.msra.mxu0 %v13234_v39  ;;  %6848 = vmatprep.mubr.bf16.mxu0 %v14911_v54  ;;  %v11074_v39 = vld [vmem:[%s14689_s7 + $0x160] sm:$0xff]  }
 0x701   :  { %7026 = vmatprep.subr.bf16.mxu0 %v13370_v63  ;;  %v15245_v63 = vld [vmem:[#allocation8_spill] sm:$0xff] }
 0x702   :  { %9321 = vmatmul.mubr.msk.bf16.vlgmr.msra.gmra.mrb[48].mxu1 %vm4561_vm5, %v11066_v23 }
 0x703   :  { %7098 = vmatpush1.bf16.msra.mxu1 %v13247_v27  ;;  %6921 = vmatprep.mubr.bf16.mxu1 %v14911_v54  ;;  %v15239_v27 = vld [vmem:[#allocation7_spill] sm:$0xff] }
 0x704   :  { %7027 = vmatpush1.bf16.msra.mxu0 %v13316_v62  ;;  %7099 = vmatprep.subr.bf16.mxu1 %v13344_v38  ;;  %v11075_v62 = vld [vmem:[%s14689_s7 + $0x168] sm:$0xff]  }
 0x705   :  { %7242 = vmatprep.subr.bf16.mxu0 %v13467_v29  ;;  %v15242_v38 = vld [vmem:[#allocation10_spill] sm:$0xff] }
 0x706   :  { %v11078_v29 = vld [vmem:[%s14689_s7 + $0x180] sm:$0xff]  }
 0x707   :  { %9318 = vmatmul.mubr.msk.bf16.gmra.mrb[52].mxu0 %vm4561_vm5, %v11067_v51  ;;  %7100 = vmatpush1.bf16.msra.mxu1 %v13351_v25  ;;  %v15243_v25 = vld [vmem:[#allocation11_spill] sm:$0xff] }
 0x708   :  { %6858 = vmatprep.mubr.bf16.mxu0 %v14911_v54  ;;  %7315 = vmatprep.subr.bf16.mxu1 %v13426_v22  ;;  %v11076_v22 = vld [vmem:[%s14689_s7 + $0x170] sm:$0xff]  }
 0x70a   :  { %9322 = vmatmul.mubr.msk.bf16.gmra.mrb[52].mxu1 %vm4561_vm5, %v11067_v51 }
 0x70b   :  { %6931 = vmatprep.mubr.bf16.mxu1 %v14911_v54 }
 0x70f   :  { %9319 = vmatmul.mubr.msk.bf16.gmra.mrb[56].mxu0 %vm4561_vm5, %v11068_v47 }
 0x710   :  { %6868 = vmatprep.mubr.bf16.mxu0 %v14911_v54 }
 0x712   :  { %9323 = vmatmul.mubr.msk.bf16.gmra.mrb[56].mxu1 %vm4561_vm5, %v11068_v47 }
 0x713   :  { %6941 = vmatprep.mubr.bf16.mxu1 %v14911_v54 }
 0x717   :  { %9320 = vmatmul.mubr.msk.bf16.gmra.mrb[60].mxu0 %vm4561_vm5, %v11069_v17 }
 0x718   :  { %7056 = vmatprep.mubr.bf16.mxu0 %v14911_v54 }
 0x71a   :  { %9324 = vmatmul.mubr.msk.bf16.gmra.mrb[60].mxu1 %vm4561_vm5, %v11069_v17 }
 0x71b   :  { %7129 = vmatprep.mubr.bf16.mxu1 %v14911_v54 }
 0x71f   :  { %9329 = vmatmul.mubr.msk.bf16.vlgmr.msra.gmra.mrb[48].mxu0 %vm4561_vm5, %v11070_v6 }
 0x720   :  { %7243 = vmatpush1.bf16.msra.mxu0 %v13353_v2  ;;  %7066 = vmatprep.mubr.bf16.mxu0 %v14911_v54  ;;  %v15244_v2 = vld [vmem:[#allocation16_spill] sm:$0xff] }
 0x721   :  { %7244 = vmatprep.subr.bf16.mxu0 %v13495_v59  ;;  %v11079_v59 = vld [vmem:[%s14689_s7 + $0x188] sm:$0xff]  }
 0x722   :  { %9333 = vmatmul.mubr.msk.bf16.vlgmr.msra.gmra.mrb[48].mxu1 %vm4561_vm5, %v11070_v6 }
 0x723   :  { %7316 = vmatpush1.bf16.msra.mxu1 %v13373_v34  ;;  %7139 = vmatprep.mubr.bf16.mxu1 %v14911_v54  ;;  %v15246_v34 = vld [vmem:[#allocation14_spill] sm:$0xff] }
 0x724   :  { %7245 = vmatpush1.bf16.msra.mxu0 %v13441_v16  ;;  %7317 = vmatprep.subr.bf16.mxu1 %v13469_v3  ;;  %v11077_v16 = vld [vmem:[%s14689_s7 + $0x178] sm:$0xff]  }
 0x725   :  { %7460 = vmatprep.subr.bf16.mxu0 %v13592_v32  ;;  %v15247_v3 = vld [vmem:[#allocation12_spill] sm:$0xff]  ;;  %v15250_v32 = vld [vmem:[#allocation15_spill] sm:$0xff] }
 0x727   :  { %9330 = vmatmul.mubr.msk.bf16.gmra.mrb[52].mxu0 %vm4561_vm5, %v11071_v15  ;;  %7318 = vmatpush1.bf16.msra.mxu1 %v13476_v9  ;;  %v15248_v9 = vld [vmem:[#allocation20_spill] sm:$0xff] }
 0x728   :  { %7076 = vmatprep.mubr.bf16.mxu0 %v14911_v54  ;;  %7533 = vmatprep.subr.bf16.mxu1 %v13551_v50  ;;  %v15249_v50 = vld [vmem:[#allocation13_spill] sm:$0xff] }
 0x72a   :  { %9334 = vmatmul.mubr.msk.bf16.gmra.mrb[52].mxu1 %vm4561_vm5, %v11071_v15 }
 0x72b   :  { %7149 = vmatprep.mubr.bf16.mxu1 %v14911_v54 }
 0x72f   :  { %9331 = vmatmul.mubr.msk.bf16.gmra.mrb[56].mxu0 %vm4561_vm5, %v11072_v40 }
 0x730   :  { %7086 = vmatprep.mubr.bf16.mxu0 %v14911_v54 }
 0x732   :  { %9335 = vmatmul.mubr.msk.bf16.gmra.mrb[56].mxu1 %vm4561_vm5, %v11072_v40 }
 0x733   :  { %7159 = vmatprep.mubr.bf16.mxu1 %v14911_v54 }
 0x737   :  { %9332 = vmatmul.mubr.msk.bf16.gmra.mrb[60].mxu0 %vm4561_vm5, %v11073_v48 }
 0x738   :  { %7274 = vmatprep.mubr.bf16.mxu0 %v14911_v54 }
 0x73a   :  { %9336 = vmatmul.mubr.msk.bf16.gmra.mrb[60].mxu1 %vm4561_vm5, %v11073_v48 }
 0x73b   :  { %7347 = vmatprep.mubr.bf16.mxu1 %v14911_v54 }
 0x73f   :  { %9341 = vmatmul.mubr.msk.bf16.vlgmr.msra.gmra.mrb[48].mxu0 %vm4561_vm5, %v11074_v39 }
 0x740   :  { %7461 = vmatpush1.bf16.msra.mxu0 %v15239_v27  ;;  %7284 = vmatprep.mubr.bf16.mxu0 %v14911_v54 }
 0x741   :  { %7462 = vmatprep.subr.bf16.mxu0 %v15240_v19 }
 0x742   :  { %9345 = vmatmul.mubr.msk.bf16.vlgmr.msra.gmra.mrb[48].mxu1 %vm4561_vm5, %v11074_v39 }
 0x743   :  { %7534 = vmatpush1.bf16.msra.mxu1 %v15241_v21  ;;  %7357 = vmatprep.mubr.bf16.mxu1 %v14911_v54 }
 0x744   :  { %7463 = vmatpush1.bf16.msra.mxu0 %v15242_v38  ;;  %7535 = vmatprep.subr.bf16.mxu1 %v15243_v25 }
 0x745   :  { %7678 = vmatprep.subr.bf16.mxu0 %v15244_v2 }
 0x747   :  { %9342 = vmatmul.mubr.msk.bf16.gmra.mrb[52].mxu0 %vm4561_vm5, %v11075_v62  ;;  %7536 = vmatpush1.bf16.msra.mxu1 %v15245_v63 }
 0x748   :  { %7294 = vmatprep.mubr.bf16.mxu0 %v14911_v54  ;;  %7751 = vmatprep.subr.bf16.mxu1 %v15246_v34 }
 0x74a   :  { %9346 = vmatmul.mubr.msk.bf16.gmra.mrb[52].mxu1 %vm4561_vm5, %v11075_v62 }
 0x74b   :  { %7367 = vmatprep.mubr.bf16.mxu1 %v14911_v54 }
 0x74f   :  { %9343 = vmatmul.mubr.msk.bf16.gmra.mrb[56].mxu0 %vm4561_vm5, %v11076_v22 }
 0x750   :  { %7304 = vmatprep.mubr.bf16.mxu0 %v14911_v54 }
 0x752   :  { %9347 = vmatmul.mubr.msk.bf16.gmra.mrb[56].mxu1 %vm4561_vm5, %v11076_v22  ;;  %v11091_v22 = vld [vmem:[%s14689_s7 + $0x1e8] sm:$0xff]  }
 0x753   :  { %7377 = vmatprep.mubr.bf16.mxu1 %v14911_v54 }
 0x757   :  { %9344 = vmatmul.mubr.msk.bf16.gmra.mrb[60].mxu0 %vm4561_vm5, %v11077_v16 }
 0x758   :  { %7492 = vmatprep.mubr.bf16.mxu0 %v14911_v54 }
 0x75a   :  { %9348 = vmatmul.mubr.msk.bf16.gmra.mrb[60].mxu1 %vm4561_vm5, %v11077_v16 }
 0x75b   :  { %7565 = vmatprep.mubr.bf16.mxu1 %v14911_v54 }
 0x75f   :  { %9353 = vmatmul.mubr.msk.bf16.vlgmr.msra.gmra.mrb[48].mxu0 %vm4561_vm5, %v11078_v29 }
 0x760   :  { %7679 = vmatpush1.bf16.msra.mxu0 %v15247_v3  ;;  %7502 = vmatprep.mubr.bf16.mxu0 %v14911_v54 }
 0x761   :  { %7680 = vmatprep.subr.bf16.mxu0 %v15248_v9 }
 0x762   :  { %9357 = vmatmul.mubr.msk.bf16.vlgmr.msra.gmra.mrb[48].mxu1 %vm4561_vm5, %v11078_v29 }
 0x763   :  { %7752 = vmatpush1.bf16.msra.mxu1 %v15249_v50  ;;  %7575 = vmatprep.mubr.bf16.mxu1 %v14911_v54 }
 0x764   :  { %7681 = vmatpush1.bf16.msra.mxu0 %v15250_v32  ;;  %7753 = vmatprep.subr.bf16.mxu1 %v15251_v61 }
 0x765   :  { %7896 = vmatprep.subr.bf16.mxu0 %v13842_v35  ;;  %v11081_v35 = vld [vmem:[%s14689_s7 + $0x198] sm:$0xff]  }
 0x767   :  { %9354 = vmatmul.mubr.msk.bf16.gmra.mrb[52].mxu0 %vm4561_vm5, %v11079_v59  ;;  %7754 = vmatpush1.bf16.msra.mxu1 %v15252_v24 }
 0x768   :  { %7512 = vmatprep.mubr.bf16.mxu0 %v14911_v54  ;;  %7969 = vmatprep.subr.bf16.mxu1 %v15253_v49 }
 0x76a   :  { %9358 = vmatmul.mubr.msk.bf16.gmra.mrb[52].mxu1 %vm4561_vm5, %v11079_v59 }
 0x76b   :  { %7585 = vmatprep.mubr.bf16.mxu1 %v14911_v54 }
 0x76f   :  { %9355 = vmatmul.mubr.msk.bf16.gmra.mrb[56].mxu0 %vm4561_vm5, %v11080_v4 }
 0x770   :  { %7522 = vmatprep.mubr.bf16.mxu0 %v14911_v54 }
 0x772   :  { %9359 = vmatmul.mubr.msk.bf16.gmra.mrb[56].mxu1 %vm4561_vm5, %v11080_v4 }
 0x773   :  { %7595 = vmatprep.mubr.bf16.mxu1 %v14911_v54 }
 0x777   :  { %9356 = vmatmul.mubr.msk.bf16.gmra.mrb[60].mxu0 %vm4561_vm5, %v11081_v35 }
 0x778   :  { %7710 = vmatprep.mubr.bf16.mxu0 %v14911_v54 }
 0x77a   :  { %9360 = vmatmul.mubr.msk.bf16.gmra.mrb[60].mxu1 %vm4561_vm5, %v11081_v35 }
 0x77b   :  { %7783 = vmatprep.mubr.bf16.mxu1 %v14911_v54 }
 0x77f   :  { %9365 = vmatmul.mubr.msk.bf16.vlgmr.msra.gmra.mrb[48].mxu0 %vm4561_vm5, %v11082_v20 }
 0x780   :  { %7897 = vmatpush1.bf16.msra.mxu0 %v15254_v28  ;;  %7720 = vmatprep.mubr.bf16.mxu0 %v14911_v54 }
 0x781   :  { %7898 = vmatprep.subr.bf16.mxu0 %v13866_v11  ;;  %v15257_v11 = vlaneseq }
 0x782   :  { %9369 = vmatmul.mubr.msk.bf16.vlgmr.msra.gmra.mrb[48].mxu1 %vm4561_vm5, %v11082_v20 }
 0x783   :  { %7970 = vmatpush1.bf16.msra.mxu1 %v15255_v14  ;;  %7793 = vmatprep.mubr.bf16.mxu1 %v14911_v54 }
 0x784   :  { %7899 = vmatpush1.bf16.msra.mxu0 %v13816_v18  ;;  %7971 = vmatprep.subr.bf16.mxu1 %v13844_v55  ;;  %v11084_v18 = vld [vmem:[%s14689_s7 + $0x1b0] sm:$0xff]   ;;  %v11085_v55 = vld [vmem:[%s14689_s7 + $0x1b8] sm:$0xff]  }
 0x785   :  { %8114 = vmatprep.subr.bf16.mxu0 %v13930_v41 }
 0x787   :  { %9366 = vmatmul.mubr.msk.bf16.gmra.mrb[52].mxu0 %vm4561_vm5, %v11083_v31  ;;  %7972 = vmatpush1.bf16.msra.mxu1 %v15256_v60 }
 0x788   :  { %7730 = vmatprep.mubr.bf16.mxu0 %v14911_v54  ;;  %8187 = vmatprep.subr.bf16.mxu1 %v13910_v7  ;;  %v14222_v7 = vshrl.u32 %v15257_v11, 7 }
 0x78a   :  { %9370 = vmatmul.mubr.msk.bf16.gmra.mrb[52].mxu1 %vm4561_vm5, %v11083_v31  ;;  %v8309_v5 = vadd.s32 128, %v14222_v7  ;;  %v8310_v46 = vadd.s32 136, %v14222_v7  ;;  %v8341_v41 = vadd.s32 384, %v14222_v7  ;;  %v8342_v56 = vadd.s32 392, %v14222_v7 }
 0x78b   :  { %7803 = vmatprep.mubr.bf16.mxu1 %v14911_v54  ;;  %v8311_v8 = vadd.s32 144, %v14222_v7  ;;  %v8312_v33 = vadd.s32 152, %v14222_v7  ;;  %v8325_v1 = vadd.s32 256, %v14222_v7  ;;  %v8326_v52 = vadd.s32 264, %v14222_v7 }
 0x78c   :  { %vm8374_vm10 = vcmp.eq.s32.totalorder %v8309_v5, %v14232_v13  ;;  %vm8375_vm12 = vcmp.eq.s32.totalorder %v8310_v46, %v14232_v13  ;;  %vm8406_vm11 = vcmp.eq.s32.totalorder %v8341_v41, %v14232_v13  ;;  %vm8407_vm4 = vcmp.eq.s32.totalorder %v8342_v56, %v14232_v13  ;;  %v11092_v56 = vld [vmem:[%s14689_s7 + $0x1f0] sm:$0xff]  }
 0x78d   :  { %vm9637_vm13 = vmpackc.low %vm8375_vm12, %vm8374_vm10  ;;  %vm8358_vm1 = vcmp.eq.s32.totalorder %v14222_v7, %v14232_v13  ;;  %v8295_v44 = vadd.s32 16, %v14222_v7  ;;  %v8296_v36 = vadd.s32 24, %v14222_v7  ;;  %vm8376_vm3 = vcmp.eq.s32.totalorder %v8311_v8, %v14232_v13 }
 0x78e   :  { %vm9669_vm7 = vmpackc.low %vm8407_vm4, %vm8406_vm11  ;;  %vm8377_vm9 = vcmp.eq.s32.totalorder %v8312_v33, %v14232_v13  ;;  %v8343_v0 = vadd.s32 400, %v14222_v7  ;;  %v8344_v57 = vadd.s32 408, %v14222_v7  ;;  %v8313_v12 = vadd.s32 160, %v14222_v7 }
 0x78f   :  { %9367 = vmatmul.mubr.msk.bf16.gmra.mrb[56].mxu0 %vm4561_vm5, %v11084_v18  ;;  %v8314_v23 = vadd.s32 168, %v14222_v7  ;;  %vm8390_vm8 = vcmp.eq.s32.totalorder %v8325_v1, %v14232_v13  ;;  %vm8391_vm2 = vcmp.eq.s32.totalorder %v8326_v52, %v14232_v13  ;;  %v8327_v47 = vadd.s32 272, %v14222_v7  ;;  %vm14300_vm6 = vmpackc.low %vm8377_vm9, %vm8376_vm3 }
 0x790   :  { %7740 = vmatprep.mubr.bf16.mxu0 %v14911_v54  ;;  %v8328_v17 = vadd.s32 280, %v14222_v7  ;;  %vm8360_vm15 = vcmp.eq.s32.totalorder %v8295_v44, %v14232_v13  ;;  %vm8361_vm10 = vcmp.eq.s32.totalorder %v8296_v36, %v14232_v13  ;;  %v8297_v15 = vadd.s32 32, %v14222_v7  ;;  %vm14321_vm11 = vmpackc.low %vm8391_vm2, %vm8390_vm8 }
 0x791   :  { %v8298_v40 = vadd.s32 40, %v14222_v7  ;;  %vm8408_vm12 = vcmp.eq.s32.totalorder %v8343_v0, %v14232_v13  ;;  %v8345_v48 = vadd.s32 416, %v14222_v7  ;;  %v8346_v39 = vadd.s32 424, %v14222_v7 }
 0x792   :  { %9371 = vmatmul.mubr.msk.bf16.gmra.mrb[56].mxu1 %vm4561_vm5, %v11084_v18  ;;  %vm8378_vm4 = vcmp.eq.s32.totalorder %v8313_v12, %v14232_v13  ;;  %v8315_v19 = vadd.s32 176, %v14222_v7  ;;  %v8316_v62 = vadd.s32 184, %v14222_v7  ;;  %vm8393_vm3 = vcmp.eq.s32.totalorder %v8328_v17, %v14232_v13 }
 0x793   :  { %7813 = vmatprep.mubr.bf16.mxu1 %v14911_v54  ;;  %v8329_v38 = vadd.s32 288, %v14222_v7  ;;  %v8330_v25 = vadd.s32 296, %v14222_v7  ;;  %vm8363_vm8 = vcmp.eq.s32.totalorder %v8298_v40, %v14232_v13  ;;  %v8299_v63 = vadd.s32 48, %v14222_v7  ;;  %v11093_v40 = vld [vmem:[%s14689_s7 + $0x1f8] sm:$0xff]  }
 0x794   :  { %v8300_v34 = vadd.s32 56, %v14222_v7  ;;  %v8347_v29 = vadd.s32 432, %v14222_v7  ;;  %v8348_v3 = vadd.s32 440, %v14222_v7  ;;  %v8317_v59 = vadd.s32 192, %v14222_v7 }
 0x795   :  { %v8318_v50 = vadd.s32 200, %v14222_v7  ;;  %v8331_v61 = vadd.s32 304, %v14222_v7  ;;  %v8332_v24 = vadd.s32 312, %v14222_v7  ;;  %v8301_v4 = vadd.s32 64, %v14222_v7 }
 0x796   :  { %v8302_v35 = vadd.s32 72, %v14222_v7  ;;  %v8349_v28 = vadd.s32 448, %v14222_v7  ;;  %v8350_v31 = vadd.s32 456, %v14222_v7  ;;  %v8319_v60 = vadd.s32 208, %v14222_v7 }
 0x797   :  { %9368 = vmatmul.mubr.msk.bf16.gmra.mrb[60].mxu0 %vm4561_vm5, %v11085_v55  ;;  %v8320_v18 = vadd.s32 216, %v14222_v7  ;;  %v8333_v11 = vadd.s32 320, %v14222_v7  ;;  %v8303_v46 = vadd.s32 80, %v14222_v7  ;;  %v8304_v41 = vadd.s32 88, %v14222_v7 }
 0x798   :  { %7928 = vmatprep.mubr.bf16.mxu0 %v14911_v54  ;;  %v8335_v33 = vadd.s32 336, %v14222_v7  ;;  %v8336_v1 = vadd.s32 344, %v14222_v7  ;;  %v8305_v44 = vadd.s32 96, %v14222_v7  ;;  %v8306_v36 = vadd.s32 104, %v14222_v7 }
 0x799   :  { %v8353_v0 = vadd.s32 480, %v14222_v7  ;;  %v8324_v51 = vadd.s32 248, %v14222_v7  ;;  %v8337_v6 = vadd.s32 352, %v14222_v7  ;;  %v8356_v27 = vadd.s32 504, %v14222_v7 }
 0x79a   :  { %9372 = vmatmul.mubr.msk.bf16.gmra.mrb[60].mxu1 %vm4561_vm5, %v11085_v55 }
 0x79b   :  { %8001 = vmatprep.mubr.bf16.mxu1 %v14911_v54 }
 0x79f   :  { %9377 = vmatmul.mubr.msk.bf16.vlgmr.msra.gmra.mrb[48].mxu0 %vm4561_vm5, %v11086_v45 }
 0x7a0   :  { %8115 = vmatpush1.bf16.msra.mxu0 %v15258_v37  ;;  %7938 = vmatprep.mubr.bf16.mxu0 %v14911_v54 }
 0x7a1   :  { %8116 = vmatprep.subr.bf16.mxu0 %v13948_v53  ;;  %v11146_v53 = vmov 1.0|1.0  }
 0x7a2   :  { %9381 = vmatmul.mubr.msk.bf16.vlgmr.msra.gmra.mrb[48].mxu1 %vm4561_vm5, %v11086_v45  ;;  %v8334_v45 = vadd.s32 328, %v14222_v7 }
 0x7a3   :  { %8188 = vmatpush1.bf16.msra.mxu1 %v15259_v26  ;;  %8011 = vmatprep.mubr.bf16.mxu1 %v14911_v54  ;;  %v8352_v26 = vadd.s32 472, %v14222_v7 }
 0x7a4   :  { %8117 = vmatpush1.bf16.msra.mxu0 %v13921_v43  ;;  %8189 = vmatprep.subr.bf16.mxu1 %v13932_v58  ;;  %v11088_v43 = vld [vmem:[%s14689_s7 + $0x1d0] sm:$0xff]   ;;  %v11089_v58 = vld [vmem:[%s14689_s7 + $0x1d8] sm:$0xff]   ;;  %s11147_s7 = smov [#allocation3]  }
 0x7a5   :  { %9638 = vmatprep.subr.msk.bf16.mxu0 %vm9637_vm13, %v11146_v53  ;;  %vm8409_vm13 = vcmp.eq.s32.totalorder %v8344_v57, %v14232_v13  ;;  %v8354_v57 = vadd.s32 488, %v14222_v7  ;;  %s8954_s25 = sshll.u32 %s11147_s7, 4  ;;  %s8955_s25 = int_to_ptr.vmem [resolvable:$true] %s8954_s25 }
 0x7a6   :  { %vm14348_vm9 = vmpackc.low %vm8409_vm13, %vm8408_vm12  ;;  %vm8380_vm12 = vcmp.eq.s32.totalorder %v8315_v19, %v14232_v13  ;;  %vm8381_vm13 = vcmp.eq.s32.totalorder %v8316_v62, %v14232_v13  ;;  %v8339_v19 = vadd.s32 368, %v14222_v7  ;;  %v8340_v62 = vadd.s32 376, %v14222_v7  ;;  %s11098_s2 = scalar_lea.vmem %s8955_s25, 16  ;;  %s11102_s16 = scalar_lea.vmem %s8955_s25, 32 }
 0x7a7   :  { %9378 = vmatmul.mubr.msk.bf16.gmra.mrb[52].mxu0 %vm4561_vm5, %v11087_v10  ;;  %8190 = vmatpush1.bf16.msra.mxu1 %v13939_v42  ;;  %v8294_v42 = vadd.s32 8, %v14222_v7  ;;  %p11099_p0 = scmp.ne.s32.totalorder %s8955_s25, %s11098_s2  ;;  %p11103_p1 = scmp.lt.s32.totalorder %s8955_s25, %s8955_s25 }
 0x7a8   :  { %7948 = vmatprep.mubr.bf16.mxu0 %v14911_v54  ;;  %9670 = vmatprep.subr.msk.bf16.mxu1 %vm9669_vm7, %v11146_v53  ;;  %vm8379_vm7 = vcmp.eq.s32.totalorder %v8314_v23, %v14232_v13  ;;  %v8323_v23 = vadd.s32 240, %v14222_v7  ;;  %p11104_p2 = scmp.lt.s32.totalorder %s11102_s16, %s11098_s2 }
 0x7a9   :  { %vm8359_vm14 = vcmp.eq.s32.totalorder %v8294_v42, %v14232_v13  ;;  %vm14364_vm2 = vmpackc.low %vm8379_vm7, %vm8378_vm4  ;;  %vm8394_vm4 = vcmp.eq.s32.totalorder %v8329_v38, %v14232_v13  ;;  %vm8395_vm7 = vcmp.eq.s32.totalorder %v8330_v25, %v14232_v13  ;;  %v8322_v42 = vadd.s32 232, %v14222_v7 }
 0x7aa   :  { %9382 = vmatmul.mubr.msk.bf16.gmra.mrb[52].mxu1 %vm4561_vm5, %v11087_v10  ;;  %vm14292_vm0 = vmpackc.low %vm8359_vm14, %vm8358_vm1  ;;  %vm8392_vm14 = vcmp.eq.s32.totalorder %v8327_v47, %v14232_v13  ;;  %v8351_v10 = vadd.s32 464, %v14222_v7  ;;  %p11105_p3 = por %p11104_p2, %p11103_p1 }
 0x7ab   :  { %8021 = vmatprep.mubr.bf16.mxu1 %v14911_v54  ;;  %vm14336_vm1 = vmpackc.low %vm8361_vm10, %vm8360_vm15  ;;  %vm8411_vm15 = vcmp.eq.s32.totalorder %v8346_v39, %v14232_v13  ;;  %v8355_v39 = vadd.s32 496, %v14222_v7 }
 0x7ac   :  { %vm14380_vm10 = vmpackc.low %vm8393_vm3, %vm8392_vm14  ;;  %vm8364_vm14 = vcmp.eq.s32.totalorder %v8299_v63, %v14232_v13  ;;  %vm8365_vm3 = vcmp.eq.s32.totalorder %v8300_v34, %v14232_v13  ;;  %p11106_p4 = pnand %p11105_p3, %p11099_p0 }
 0x7af   :  { %9379 = vmatmul.mubr.msk.bf16.gmra.mrb[56].mxu0 %vm4561_vm5, %v11088_v43 }
 0x7b0   :  { %7958 = vmatprep.mubr.bf16.mxu0 %v14911_v54 }
 0x7b2   :  { %9383 = vmatmul.mubr.msk.bf16.gmra.mrb[56].mxu1 %vm4561_vm5, %v11088_v43 }
 0x7b3   :  { %8031 = vmatprep.mubr.bf16.mxu1 %v14911_v54 }
 0x7b7   :  { %9380 = vmatmul.mubr.msk.bf16.gmra.mrb[60].mxu0 %vm4561_vm5, %v11089_v58 }
 0x7b8   :  { %8146 = vmatprep.mubr.bf16.mxu0 %v14911_v54 }
 0x7ba   :  { %9384 = vmatmul.mubr.msk.bf16.gmra.mrb[60].mxu1 %vm4561_vm5, %v11089_v58  ;;  %v8321_v58 = vadd.s32 224, %v14222_v7 }
 0x7bb   :  { %8219 = vmatprep.mubr.bf16.mxu1 %v14911_v54 }
 0x7bf   :  { %9389 = vmatmul.mubr.msk.bf16.vlgmr.msra.gmra.mrb[48].mxu0 %vm4561_vm5, %v11090_v30 }
 0x7c0   :  { %8156 = vmatprep.mubr.bf16.mxu0 %v14911_v54  ;;  %9640 = vmatpush3.bf16.msk.msra.mxu0 %vm14292_vm0, %v11146_v53  ;;  %vm8362_vm0 = vcmp.eq.s32.totalorder %v8297_v15, %v14232_v13  ;;  %v8338_v15 = vadd.s32 360, %v14222_v7 }
 0x7c1   :  { %9642 = vmatprep.subr.msk.bf16.mxu0 %vm14300_vm6, %v11146_v53  ;;  %vm8410_vm6 = vcmp.eq.s32.totalorder %v8345_v48, %v14232_v13  ;;  %v8308_v48 = vadd.s32 120, %v14222_v7 }
 0x7c2   :  { %9393 = vmatmul.mubr.msk.bf16.vlgmr.msra.gmra.mrb[48].mxu1 %vm4561_vm5, %v11090_v30 }
 0x7c3   :  { %8229 = vmatprep.mubr.bf16.mxu1 %v14911_v54  ;;  %9672 = vmatpush3.bf16.msk.msra.mxu1 %vm14321_vm11, %v11146_v53  ;;  %vm14398_vm11 = vmpackc.low %vm8363_vm8, %vm8362_vm0  ;;  %vm8412_vm0 = vcmp.eq.s32.totalorder %v8347_v29, %v14232_v13  ;;  %vm8413_vm8 = vcmp.eq.s32.totalorder %v8348_v3, %v14232_v13 }
 0x7c4   :  { %9644 = vmatpush3.bf16.msk.msra.mxu0 %vm14336_vm1, %v11146_v53  ;;  %9674 = vmatprep.subr.msk.bf16.mxu1 %vm14348_vm9, %v11146_v53  ;;  %vm14413_vm1 = vmpackc.low %vm8411_vm15, %vm8410_vm6  ;;  %vm8382_vm6 = vcmp.eq.s32.totalorder %v8317_v59, %v14232_v13  ;;  %vm8383_vm15 = vcmp.eq.s32.totalorder %v8318_v50, %v14232_v13 }
 0x7c5   :  { %9646 = vmatprep.subr.msk.bf16.mxu0 %vm14364_vm2, %v11146_v53  ;;  %vm14426_vm9 = vmpackc.low %vm8381_vm13, %vm8380_vm12  ;;  %vm8396_vm12 = vcmp.eq.s32.totalorder %v8331_v61, %v14232_v13  ;;  %vm8397_vm13 = vcmp.eq.s32.totalorder %v8332_v24, %v14232_v13 }
 0x7c6   :  { %vm14442_vm2 = vmpackc.low %vm8395_vm7, %vm8394_vm4  ;;  %vm8366_vm4 = vcmp.eq.s32.totalorder %v8301_v4, %v14232_v13  ;;  %vm8367_vm7 = vcmp.eq.s32.totalorder %v8302_v35, %v14232_v13 }
 0x7c7   :  { %9390 = vmatmul.mubr.msk.bf16.gmra.mrb[52].mxu0 %vm4561_vm5, %v11091_v22  ;;  %9676 = vmatpush3.bf16.msk.msra.mxu1 %vm14380_vm10, %v11146_v53  ;;  %vm14460_vm10 = vmpackc.low %vm8365_vm3, %vm8364_vm14  ;;  %vm8414_vm14 = vcmp.eq.s32.totalorder %v8349_v28, %v14232_v13  ;;  %vm8415_vm3 = vcmp.eq.s32.totalorder %v8350_v31, %v14232_v13 }
 0x7c8   :  { %8166 = vmatprep.mubr.bf16.mxu0 %v14911_v54  ;;  %9648 = vmatpush3.bf16.msk.msra.mxu0 %vm14398_vm11, %v11146_v53  ;;  %vm14475_vm11 = vmpackc.low %vm8413_vm8, %vm8412_vm0  ;;  %vm8384_vm0 = vcmp.eq.s32.totalorder %v8319_v60, %v14232_v13  ;;  %vm8385_vm8 = vcmp.eq.s32.totalorder %v8320_v18, %v14232_v13 }
 0x7c9   :  { %9678 = vmatprep.subr.msk.bf16.mxu1 %vm14413_vm1, %v11146_v53  ;;  %9650 = vmatprep.subr.msk.bf16.mxu0 %vm14426_vm9, %v11146_v53  ;;  %vm14491_vm1 = vmpackc.low %vm8383_vm15, %vm8382_vm6  ;;  %vm8398_vm6 = vcmp.eq.s32.totalorder %v8333_v11, %v14232_v13  ;;  %vm8399_vm15 = vcmp.eq.s32.totalorder %v8334_v45, %v14232_v13 }
 0x7ca   :  { %9394 = vmatmul.mubr.msk.bf16.gmra.mrb[52].mxu1 %vm4561_vm5, %v11091_v22  ;;  %vm14507_vm9 = vmpackc.low %vm8397_vm13, %vm8396_vm12  ;;  %vm8368_vm12 = vcmp.eq.s32.totalorder %v8303_v46, %v14232_v13  ;;  %vm8369_vm13 = vcmp.eq.s32.totalorder %v8304_v41, %v14232_v13  ;;  %v8561_v41 = vpop.permute.xlu0 %8560 }
 0x7cb   :  { %8239 = vmatprep.mubr.bf16.mxu1 %v14911_v54  ;;  %9680 = vmatpush3.bf16.msk.msra.mxu1 %vm14442_vm2, %v11146_v53  ;;  %vm14525_vm2 = vmpackc.low %vm8367_vm7, %vm8366_vm4  ;;  %vm8416_vm4 = vcmp.eq.s32.totalorder %v8351_v10, %v14232_v13  ;;  %vm8417_vm7 = vcmp.eq.s32.totalorder %v8352_v26, %v14232_v13 }
 0x7cc   :  { %9652 = vmatpush3.bf16.msk.msra.mxu0 %vm14460_vm10, %v11146_v53  ;;  %9682 = vmatprep.subr.msk.bf16.mxu1 %vm14475_vm11, %v11146_v53  ;;  %vm14540_vm10 = vmpackc.low %vm8415_vm3, %vm8414_vm14  ;;  %vm8386_vm14 = vcmp.eq.s32.totalorder %v8321_v58, %v14232_v13  ;;  %vm8387_vm3 = vcmp.eq.s32.totalorder %v8322_v42, %v14232_v13 }
 0x7cd   :  { %9654 = vmatprep.subr.msk.bf16.mxu0 %vm14491_vm1, %v11146_v53  ;;  %vm14553_vm11 = vmpackc.low %vm8385_vm8, %vm8384_vm0  ;;  %vm8400_vm0 = vcmp.eq.s32.totalorder %v8335_v33, %v14232_v13  ;;  %vm8401_vm8 = vcmp.eq.s32.totalorder %v8336_v1, %v14232_v13 }
 0x7ce   :  { %vm14569_vm1 = vmpackc.low %vm8399_vm15, %vm8398_vm6  ;;  %vm8370_vm6 = vcmp.eq.s32.totalorder %v8305_v44, %v14232_v13  ;;  %vm8371_vm15 = vcmp.eq.s32.totalorder %v8306_v36, %v14232_v13  ;;  %v8571_v37 = vpop.permute.xlu0 %8570 }
 0x7cf   :  { %9391 = vmatmul.mubr.msk.bf16.gmra.mrb[56].mxu0 %vm4561_vm5, %v11092_v56  ;;  %9684 = vmatpush3.bf16.msk.msra.mxu1 %vm14507_vm9, %v11146_v53  ;;  %vm14587_vm9 = vmpackc.low %vm8369_vm13, %vm8368_vm12  ;;  %vm8418_vm12 = vcmp.eq.s32.totalorder %v8353_v0, %v14232_v13  ;;  %vm8419_vm13 = vcmp.eq.s32.totalorder %v8354_v57, %v14232_v13 }
 0x7d0   :  { %8176 = vmatprep.mubr.bf16.mxu0 %v14911_v54  ;;  %9656 = vmatpush3.bf16.msk.msra.mxu0 %vm14525_vm2, %v11146_v53  ;;  %vm14600_vm2 = vmpackc.low %vm8417_vm7, %vm8416_vm4  ;;  %vm8388_vm4 = vcmp.eq.s32.totalorder %v8323_v23, %v14232_v13  ;;  %vm8389_vm7 = vcmp.eq.s32.totalorder %v8324_v51, %v14232_v13 }
 0x7d1   :  { %9686 = vmatprep.subr.msk.bf16.mxu1 %vm14540_vm10, %v11146_v53  ;;  %9658 = vmatprep.subr.msk.bf16.mxu0 %vm14553_vm11, %v11146_v53  ;;  %vm9661_vm10 = vmpackc.low %vm8387_vm3, %vm8386_vm14  ;;  %vm8402_vm3 = vcmp.eq.s32.totalorder %v8337_v6, %v14232_v13 }
 0x7d2   :  { %9395 = vmatmul.mubr.msk.bf16.gmra.mrb[56].mxu1 %vm4561_vm5, %v11092_v56  ;;  %vm9691_vm11 = vmpackc.low %vm8401_vm8, %vm8400_vm0  ;;  %vm8403_vm0 = vcmp.eq.s32.totalorder %v8338_v15, %v14232_v13  ;;  %v8566_v56 = vpop.permute.xlu1 %8565  ;;  %v8581_v26 = vpop.permute.xlu0 %8580 }
 0x7d3   :  { %8249 = vmatprep.mubr.bf16.mxu1 %v14911_v54  ;;  %9688 = vmatpush3.bf16.msk.msra.mxu1 %vm14569_vm1, %v11146_v53  ;;  %vm9663_vm1 = vmpackc.low %vm8371_vm15, %vm8370_vm6  ;;  %v8307_v54 = vadd.s32 112, %v14222_v7  ;;  %vm8373_vm6 = vcmp.eq.s32.totalorder %v8308_v48, %v14232_v13  ;;  %vm8420_vm15 = vcmp.eq.s32.totalorder %v8355_v39, %v14232_v13 }
 0x7d4   :  { %9660 = vmatpush3.bf16.msk.msra.mxu0 %vm14587_vm9, %v11146_v53  ;;  %9690 = vmatprep.subr.msk.bf16.mxu1 %vm14600_vm2, %v11146_v53  ;;  %vm9693_vm14 = vmpackc.low %vm8419_vm13, %vm8418_vm12  ;;  %vm8404_vm13 = vcmp.eq.s32.totalorder %v8339_v19, %v14232_v13 }
 0x7d5   :  { %9662 = vmatprep.subr.msk.bf16.mxu0 %vm9661_vm10, %v11146_v53  ;;  %vm9665_vm8 = vmpackc.low %vm8389_vm7, %vm8388_vm4  ;;  %vm8372_vm2 = vcmp.eq.s32.totalorder %v8307_v54, %v14232_v13  ;;  %vm8421_vm10 = vcmp.eq.s32.totalorder %v8356_v27, %v14232_v13 }
 0x7d6   :  { %vm9695_vm9 = vmpackc.low %vm8403_vm0, %vm8402_vm3  ;;  %v8576_v10 = vpop.permute.xlu1 %8575  ;;  %v8848_v33 = vpop.permute.xlu0 %8847 }
 0x7d7   :  { %9392 = vmatmul.mubr.msk.bf16.gmra.mrb[60].mxu0 %vm4561_vm5, %v11093_v40  ;;  %9692 = vmatpush3.bf16.msk.msra.mxu1 %vm9691_vm11, %v11146_v53  ;;  %vm9667_vm12 = vmpackc.low %vm8373_vm6, %vm8372_vm2  ;;  %vm8405_vm11 = vcmp.eq.s32.totalorder %v8340_v62, %v14232_v13 }
 0x7d8   :  { %9664 = vmatpush3.bf16.msk.msra.mxu0 %vm9663_vm1, %v11146_v53  ;;  %9694 = vmatprep.subr.msk.bf16.mxu1 %vm9693_vm14, %v11146_v53  ;;  %vm9699_vm4 = vmpackc.low %vm8405_vm11, %vm8404_vm13  ;;  %vm8888_vm14 = vcmask 15360  }
 0x7d9   :  { %9666 = vmatprep.subr.msk.bf16.mxu0 %vm9665_vm8, %v11146_v53 }
 0x7da   :  { %9396 = vmatmul.mubr.msk.bf16.gmra.mrb[60].mxu1 %vm4561_vm5, %v11093_v40  ;;  %vm9697_vm5 = vmpackc.low %vm8421_vm10, %vm8420_vm15  ;;  %v8843_v8 = vpop.permute.xlu1 %8842  ;;  %v8853_v39 = vpop.permute.xlu0 %8852  ;;  %vm8931_vm15 = vcmask 8192   ;;  %vm8946_vm10 = vcmask 0  }
 0x7db   :  { %9696 = vmatpush3.bf16.msk.msra.mxu1 %vm9695_vm9, %v11146_v53 }
 0x7dc   :  { %9668 = vmatpush3.bf16.msk.msra.mxu0 %vm9667_vm12, %v11146_v53  ;;  %9698 = vmatprep.subr.msk.bf16.mxu1 %vm9697_vm5, %v11146_v53 }
 0x7de   :  { %v8586_v48 = vpop.permute.xlu1 %8585 }
 0x7df   :  { %9700 = vmatpush3.bf16.msk.msra.mxu1 %vm9699_vm4, %v11146_v53 }
 0x892   :  { %v8148_v21 = vpop.f32.mrb[48].mxu0 }
 0x893   :  { %v8150_v38 = vpop.f32.mrb[49].mxu0 }
 0x894   :  { %v8152_v25 = vpop.f32.mrb[50].mxu0  ;;  %8662 = vmatprep.mubr.f32.mxu0 %v8150_v38 }
 0x895   :  { %v8154_v2 = vpop.f32.mrb[51].mxu0  ;;  %8663 = vmatmul.mubr.f32.vlgmr.msra.gmra.mrb[64].mxu0 %v8148_v21  ;;  %v8221_v63 = vpop.f32.mrb[48].mxu1 }
 0x896   :  { %8667 = vmatprep.mubr.f32.mxu0 %v8154_v2  ;;  %v8223_v34 = vpop.f32.mrb[49].mxu1 }
 0x897   :  { %v8225_v22 = vpop.f32.mrb[50].mxu1  ;;  %8767 = vmatprep.mubr.f32.mxu1 %v8223_v34 }
 0x898   :  { %v8227_v16 = vpop.f32.mrb[51].mxu1  ;;  %8768 = vmatmul.mubr.f32.vlgmr.msra.gmra.mrb[64].mxu1 %v8221_v63 }
 0x899   :  { %8668 = vmatmul.mubr.f32.gmra.mrb[66].mxu0 %v8152_v25  ;;  %8772 = vmatprep.mubr.f32.mxu1 %v8227_v16 }
 0x89a   :  { %v8158_v29 = vpop.f32.mrb[52].mxu0 }
 0x89b   :  { %v8160_v13 = vpop.f32.mrb[53].mxu0 }
 0x89c   :  { %v8162_v3 = vpop.f32.mrb[54].mxu0  ;;  %8672 = vmatprep.mubr.f32.mxu0 %v8160_v13  ;;  %8773 = vmatmul.mubr.f32.gmra.mrb[66].mxu1 %v8225_v22 }
 0x89d   :  { %v8164_v53 = vpop.f32.mrb[55].mxu0  ;;  %8673 = vmatmul.mubr.f32.gmra.mrb[68].mxu0 %v8158_v29  ;;  %v8231_v9 = vpop.f32.mrb[52].mxu1 }
 0x89e   :  { %8677 = vmatprep.mubr.f32.mxu0 %v8164_v53  ;;  %v8233_v59 = vpop.f32.mrb[53].mxu1 }
 0x89f   :  { %v8235_v50 = vpop.f32.mrb[54].mxu1  ;;  %8777 = vmatprep.mubr.f32.mxu1 %v8233_v59 }
 0x8a0   :  { %v8237_v32 = vpop.f32.mrb[55].mxu1  ;;  %8778 = vmatmul.mubr.f32.gmra.mrb[68].mxu1 %v8231_v9 }
 0x8a1   :  { %8678 = vmatmul.mubr.f32.gmra.mrb[70].mxu0 %v8162_v3  ;;  %8782 = vmatprep.mubr.f32.mxu1 %v8237_v32 }
 0x8a2   :  { %v8168_v61 = vpop.f32.mrb[56].mxu0 }
 0x8a3   :  { %v8170_v24 = vpop.f32.mrb[57].mxu0 }
 0x8a4   :  { %v8172_v49 = vpop.f32.mrb[58].mxu0  ;;  %8682 = vmatprep.mubr.f32.mxu0 %v8170_v24  ;;  %8783 = vmatmul.mubr.f32.gmra.mrb[70].mxu1 %v8235_v50 }
 0x8a5   :  { %v8174_v4 = vpop.f32.mrb[59].mxu0  ;;  %8683 = vmatmul.mubr.f32.gmra.mrb[72].mxu0 %v8168_v61  ;;  %v8241_v35 = vpop.f32.mrb[56].mxu1 }
 0x8a6   :  { %8687 = vmatprep.mubr.f32.mxu0 %v8174_v4  ;;  %v8243_v20 = vpop.f32.mrb[57].mxu1  ;;  %v8591_v4 = vpop.permute.xlu1 %8590 }
 0x8a7   :  { %v8245_v28 = vpop.f32.mrb[58].mxu1  ;;  %8787 = vmatprep.mubr.f32.mxu1 %v8243_v20 }
 0x8a8   :  { %v8247_v31 = vpop.f32.mrb[59].mxu1  ;;  %8788 = vmatmul.mubr.f32.gmra.mrb[72].mxu1 %v8241_v35  ;;  %v8858_v35 = vpop.permute.xlu0 %8857 }
 0x8a9   :  { %8688 = vmatmul.mubr.f32.gmra.mrb[74].mxu0 %v8172_v49  ;;  %8792 = vmatprep.mubr.f32.mxu1 %v8247_v31 }
 0x8aa   :  { %v8178_v14 = vpop.f32.mrb[60].mxu0 }
 0x8ab   :  { %v8180_v60 = vpop.f32.mrb[61].mxu0 }
 0x8ac   :  { %v8182_v18 = vpop.f32.mrb[62].mxu0  ;;  %8692 = vmatprep.mubr.f32.mxu0 %v8180_v60  ;;  %8793 = vmatmul.mubr.f32.gmra.mrb[74].mxu1 %v8245_v28 }
 0x8ad   :  { %v8184_v55 = vpop.f32.mrb[63].mxu0  ;;  %8693 = vmatmul.mubr.f32.gmra.mrb[76].mxu0 %v8178_v14  ;;  %v8251_v11 = vpop.f32.mrb[60].mxu1 }
 0x8ae   :  { %8697 = vmatprep.mubr.f32.mxu0 %v8184_v55  ;;  %v8253_v45 = vpop.f32.mrb[61].mxu1 }
 0x8af   :  { %v8255_v5 = vpop.f32.mrb[62].mxu1  ;;  %8797 = vmatprep.mubr.f32.mxu1 %v8253_v45 }
 0x8b0   :  { %v8257_v46 = vpop.f32.mrb[63].mxu1  ;;  %8798 = vmatmul.mubr.f32.gmra.mrb[76].mxu1 %v8251_v11 }
 0x8b1   :  { %8698 = vmatmul.mubr.f32.gmra.mrb[78].mxu0 %v8182_v18  ;;  %8802 = vmatprep.mubr.f32.mxu1 %v8257_v46 }
 0x8b4   :  { %8803 = vmatmul.mubr.f32.gmra.mrb[78].mxu1 %v8255_v5 }
 0x968   :  { %v9557_v43 = vpop.f32.mrb[64].mxu0 }
 0x969   :  { %v9558_v58 = vpop.f32.mrb[65].mxu0 }
 0x96a   :  { %v9559_v42 = vadd.f32 %v9558_v58, %v9557_v43 }
 0x96b   :  { %v9613_v52 = vpop.f32.mrb[64].mxu1 }
 0x96c   :  { %v8665_v1 = vadd.f32 %v9559_v42, %v8561_v41  ;;  %v9560_v44 = vpop.f32.mrb[66].mxu0  ;;  %v9614_v36 = vpop.f32.mrb[65].mxu1 }
 0x96d   :  { %v9561_v30 = vpop.f32.mrb[67].mxu0  ;;  %v9615_v0 = vadd.f32 %v9614_v36, %v9613_v52  ;;  %v8596_v36 = vpop.permute.xlu1 %8595 }
 0x96e   :  { %v9562_v57 = vadd.f32 %v9561_v30, %v9560_v44 }
 0x96f   :  { %v8770_v12 = vadd.f32 %v9615_v0, %v8665_v1  ;;  %v9616_v51 = vpop.f32.mrb[66].mxu1 }
 0x970   :  { %v8670_v23 = vadd.f32 %v9562_v57, %v8566_v56  ;;  %v9563_v47 = vpop.f32.mrb[68].mxu0  ;;  %v9617_v17 = vpop.f32.mrb[67].mxu1 }
 0x971   :  { %v9564_v6 = vpop.f32.mrb[69].mxu0  ;;  %vm8808_vm7 = vcmp.ge.f32.partialorder %v8770_v12, 0.0  ;;  %v8816_v15 = vmul.f32 0.2, %v8770_v12  ;;  %v9618_v40 = vadd.f32 %v9617_v17, %v9616_v51 }
 0x972   :  { %v9565_v54 = vadd.f32 %v9564_v6, %v9563_v47 }
 0x973   :  { %v8824_v27 = vsel %vm8808_vm7, %v8770_v12, %v8816_v15  ;;  %v8775_v19 = vadd.f32 %v9618_v40, %v8670_v23  ;;  %v9619_v21 = vpop.f32.mrb[68].mxu1  ;;  %v8863_v12 = vpop.permute.xlu0 %8862 }
 0x974   :  { %v8675_v62 = vadd.f32 %v9565_v54, %v8571_v37  ;;  %v9566_v38 = vpop.f32.mrb[70].mxu0  ;;  %v9620_v25 = vpop.f32.mrb[69].mxu1  ;;  %v8880_v16 = vmul.f32 %v8843_v8, %v8824_v27 }
 0x975   :  { %v9567_v2 = vpop.f32.mrb[71].mxu0  ;;  %vm8809_vm1 = vcmp.ge.f32.partialorder %v8775_v19, 0.0  ;;  %v8817_v63 = vmul.f32 0.2, %v8775_v19  ;;  %v9621_v34 = vadd.f32 %v9620_v25, %v9619_v21 }
 0x976   :  { %v9568_v22 = vadd.f32 %v9567_v2, %v9566_v38  ;;  %v8889_v20 = vsel %vm8888_vm14, %v8880_v16, 0.0  ;;  %v8868_v38 = vpop.permute.xlu1 %8867 }
 0x977   :  { %v8825_v29 = vsel %vm8809_vm1, %v8775_v19, %v8817_v63  ;;  %v8780_v13 = vadd.f32 %v9621_v34, %v8675_v62  ;;  %v9622_v53 = vpop.f32.mrb[70].mxu1 }
 0x978   :  { %v8680_v3 = vadd.f32 %v9568_v22, %v8576_v10  ;;  %v9569_v9 = vpop.f32.mrb[72].mxu0  ;;  %v8881_v59 = vmul.f32 %v8848_v33, %v8825_v29  ;;  %v9623_v50 = vpop.f32.mrb[71].mxu1 }
 0x979   :  { %v9570_v32 = vpop.f32.mrb[73].mxu0  ;;  %vm8810_vm3 = vcmp.ge.f32.partialorder %v8780_v13, 0.0  ;;  %v8818_v61 = vmul.f32 0.2, %v8780_v13  ;;  %v9624_v24 = vadd.f32 %v9623_v50, %v9622_v53 }
 0x97a   :  { %v9571_v49 = vadd.f32 %v9570_v32, %v9569_v9  ;;  %v8890_v28 = vsel %vm8888_vm14, %v8881_v59, 0.0  ;;  %v8873_v9 = vpop.permute.xlu0 %8872 }
 0x97b   :  { %v8891_v31 = vadd.f32 %v8890_v28, %v8889_v20  ;;  %v8826_v14 = vsel %vm8810_vm3, %v8780_v13, %v8818_v61  ;;  %v8785_v60 = vadd.f32 %v9624_v24, %v8680_v3  ;;  %v9625_v55 = vpop.f32.mrb[72].mxu1 }
 0x97c   :  { %v8685_v18 = vadd.f32 %v9571_v49, %v8581_v26  ;;  %v9572_v11 = vpop.f32.mrb[74].mxu0  ;;  %v8882_v45 = vmul.f32 %v8853_v39, %v8826_v14  ;;  %v9626_v5 = vpop.f32.mrb[73].mxu1 }
 0x97d   :  { %v9573_v46 = vpop.f32.mrb[75].mxu0  ;;  %vm8811_vm0 = vcmp.ge.f32.partialorder %v8785_v60, 0.0  ;;  %v8819_v41 = vmul.f32 0.2, %v8785_v60  ;;  %v9627_v56 = vadd.f32 %v9626_v5, %v9625_v55 }
 0x97e   :  { %v9574_v37 = vadd.f32 %v9573_v46, %v9572_v11  ;;  %v8892_v10 = vsel %vm8888_vm14, %v8882_v45, 0.0  ;;  %v8918_v11 = vsub.s32 0, %v14222_v7  ;;  %v8914_v5 = vpop.permute.xlu0 %8913 }
 0x97f   :  { %v8893_v43 = vadd.f32 %v8892_v10, %v8891_v31  ;;  %v8827_v58 = vsel %vm8811_vm0, %v8785_v60, %v8819_v41  ;;  %v8790_v42 = vadd.f32 %v9627_v56, %v8685_v18  ;;  %v9628_v33 = vpop.f32.mrb[74].mxu1 }
 0x980   :  { %v8690_v8 = vadd.f32 %v9574_v37, %v8586_v48  ;;  %v9575_v1 = vpop.f32.mrb[76].mxu0  ;;  %v8883_v52 = vmul.f32 %v8858_v35, %v8827_v58  ;;  %v9629_v44 = vpop.f32.mrb[75].mxu1  ;;  %v8919_v41 = vrot.slane %v8914_v5, %v8918_v11 }
 0x981   :  { %v9576_v26 = vpop.f32.mrb[77].mxu0  ;;  %vm8812_vm8 = vcmp.ge.f32.partialorder %v8790_v42, 0.0  ;;  %v8820_v30 = vmul.f32 0.2, %v8790_v42  ;;  %v9630_v0 = vadd.f32 %v9629_v44, %v9628_v33 }
 0x982   :  { %v9577_v57 = vadd.f32 %v9576_v26, %v9575_v1  ;;  %v8894_v23 = vsel %vm8888_vm14, %v8883_v52, 0.0 }
 0x983   :  { %v8895_v51 = vadd.f32 %v8894_v23, %v8893_v43  ;;  %v8828_v47 = vsel %vm8812_vm8, %v8790_v42, %v8820_v30  ;;  %v8795_v17 = vadd.f32 %v9630_v0, %v8690_v8  ;;  %v9631_v15 = vpop.f32.mrb[76].mxu1 }
 0x984   :  { %v8695_v6 = vadd.f32 %v9577_v57, %v8591_v4  ;;  %v9578_v40 = vpop.f32.mrb[78].mxu0  ;;  %v8884_v54 = vmul.f32 %v8863_v12, %v8828_v47  ;;  %v9632_v48 = vpop.f32.mrb[77].mxu1 }
 0x985   :  { %v9579_v39 = vpop.f32.mrb[79].mxu0  ;;  %vm8813_vm9 = vcmp.ge.f32.partialorder %v8795_v17, 0.0  ;;  %v8821_v27 = vmul.f32 0.2, %v8795_v17  ;;  %v9633_v19 = vadd.f32 %v9632_v48, %v9631_v15  ;;  %v8878_v4 = vpop.permute.xlu1 %8877 }
 0x986   :  { %v9580_v62 = vadd.f32 %v9579_v39, %v9578_v40  ;;  %v8896_v21 = vsel %vm8888_vm14, %v8884_v54, 0.0 }
 0x987   :  { %v8897_v25 = vadd.f32 %v8896_v21, %v8895_v51  ;;  %v8829_v2 = vsel %vm8813_vm9, %v8795_v17, %v8821_v27  ;;  %v8800_v63 = vadd.f32 %v9633_v19, %v8695_v6  ;;  %v9634_v22 = vpop.f32.mrb[78].mxu1 }
 0x988   :  { %v8700_v34 = vadd.f32 %v9580_v62, %v8596_v36  ;;  %v8885_v16 = vmul.f32 %v8868_v38, %v8829_v2  ;;  %v9635_v29 = vpop.f32.mrb[79].mxu1 }
 0x989   :  { %vm8814_vm2 = vcmp.ge.f32.partialorder %v8800_v63, 0.0  ;;  %v8822_v13 = vmul.f32 0.2, %v8800_v63  ;;  %v9636_v3 = vadd.f32 %v9635_v29, %v9634_v22 }
 0x98a   :  { %v8898_v53 = vsel %vm8888_vm14, %v8885_v16, 0.0 }
 0x98b   :  { %v8899_v59 = vadd.f32 %v8898_v53, %v8897_v25  ;;  %v8830_v50 = vsel %vm8814_vm2, %v8800_v63, %v8822_v13  ;;  %v8805_v32 = vadd.f32 %v9636_v3, %v8700_v34 }
 0x98c   :  { %v8886_v61 = vmul.f32 %v8873_v9, %v8830_v50 }
 0x98d   :  { %vm8815_vm6 = vcmp.ge.f32.partialorder %v8805_v32, 0.0  ;;  %v8823_v24 = vmul.f32 0.2, %v8805_v32 }
 0x98e   :  { %v8900_v49 = vsel %vm8888_vm14, %v8886_v61, 0.0 }
 0x98f   :  { %v8901_v35 = vadd.f32 %v8900_v49, %v8899_v59  ;;  %v8831_v20 = vsel %vm8815_vm6, %v8805_v32, %v8823_v24 }
 0x990   :  { %v8887_v28 = vmul.f32 %v8878_v4, %v8831_v20 }
 0x992   :  { %v8902_v31 = vsel %vm8888_vm14, %v8887_v28, 0.0 }
 0x993   :  { %v8903_v14 = vadd.f32 %v8902_v31, %v8901_v35 }
 0x995   :  { %v8904_v60 = vrot.slane %v8903_v14, 4 }
 0x997   :  { %v8905_v18 = vadd.f32 %v8904_v60, %v8903_v14 }
 0x999   :  { %v8906_v55 = vrot.slane %v8905_v18, 2 }
 0x99b   :  { %v8907_v45 = vadd.f32 %v8906_v55, %v8905_v18 }
 0x99d   :  { %v8908_v46 = vrot.slane %v8907_v45, 1 }
 0x99f   :  { %v8909_v56 = vadd.f32 %v8908_v46, %v8907_v45 }
 0x9a1   :  { %v8920_v37 = vadd.f32 %v8919_v41, %v8909_v56 }
 0x9a3   :  { %v8921_v10 = vsub.f32 0.0, %v8920_v37 }
 0x9a5   :  { %v8923_v43 = vand.u32 2147483647, %v8921_v10  ;;  %v8922_v52 = vmax.f32 %v8921_v10, 0.0 }
 0x9a7   :  { %v8924_v58 = vsub.f32 0.0, %v8923_v43 }
 0x9a9   :  { %v8925_v42 = vmul.f32 1.442695, %v8924_v58 }
 0x9ab   :  { %11094 = vpow2.f32 %v8925_v42 }
 0x9b5   :  { %v11095_v8 = vpop.eup %11094 }
 0x9b6   :  { %v8927_v33 = vadd.f32 1.0, %v11095_v8 }
 0x9b8   :  { %11096 = vlog2.f32 %v8927_v33 }
 0x9c2   :  { %v11097_v1 = vpop.eup %11096 }
 0x9c3   :  { %v8929_v44 = vmul.f32 0.6931472, %v11097_v1 }
 0x9c5   :  { %v8930_v26 = vadd.f32 %v8929_v44, %v8922_v52 }
 0x9c7   :  { %v8932_v7 = vsel %vm8931_vm15, %v8930_v26, 0.0 }
 0x9c8   :  { %8933 = vadd.xlane.f32.xlu1 %v8932_v7 }
 0xa55   :  { %v8934_v36 = vpop.xlane.xlu1 %8933 }
 0xa56   :  { %v8935_v30 = vrot.slane %v8934_v36, 4 }
 0xa58   :  { %v8936_v0 = vadd.f32 %v8935_v30, %v8934_v36 }
 0xa5a   :  { %v8937_v57 = vrot.slane %v8936_v0, 2 }
 0xa5c   :  { %v8938_v12 = vadd.f32 %v8937_v57, %v8936_v0 }
 0xa5e   :  { %v8939_v23 = vrot.slane %v8938_v12, 1 }
 0xa60   :  { %v8940_v51 = vadd.f32 %v8939_v23, %v8938_v12 }
 0xa62   :  { %10373 = vpush %v8940_v51 }
 0xa93   :  { %s10374_s14 = spop %10373 }
 0xa94   :  { %s8944_s15 = smul.f32 0.5, %s10374_s14 }
 0xa96   :  { %v8945_v47 = vstv %s8944_s15 }
 0xa97   :  { %8947 = vst.msk [vmem:[#allocation3] sm:$0x1] %vm8946_vm10, %v8945_v47 }
 0xa98   :  { %11109 = shalt.err (!%p11106_p4)
}
 0xa99   :  { %s11110_s17 = scalar_lea.hbm %s14693_s11, 16 }
 0xa9a   :  { %p11111_p5 = scmp.ne.s32.totalorder %s14693_s11, %s11110_s17  ;;  %p11114_p6 = scmp.lt.u32.totalorder %s11110_s17, %s14693_s11 }
 0xa9c   :  { %p11116_p7 = pnand %p11114_p6, %p11111_p5 }
 0xa9e   :  { %11119 = shalt.err (!%p11116_p7)
}
 0xa9f   :  { %8957 = dma.vmem_to_hbm [thread:$0]  %s8955_s25, 16, %s14693_s11, [#allocation4]  }
 0xaa0   :  { %11120 = dma.done.wait [#allocation4], 16  }
 0xaa1   :  { %11121 = vsyncadd [#allocation4], 4294967280 }
 0xaa2   :  { %8961 = vsyncpa [#allocation4], 1 }

</bundles_post_ra>
